<compile_context>
chip_gen: v7x
topology: tpu7x:2x2x1
jax: 0.10.0
libtpu: 0.0.40
codegen_flags: <defaults>
</compile_context>

<pallas_src>
import functools

import numpy as np
import jax
import jax.numpy as jnp
from jax import lax
from jax.experimental import pallas as pl
from jax.experimental.pallas import tpu as pltpu


# ----------------------------- the fused kernel ----------------------------- #

def _make_kernel(layer_specs):
    """Build the whole-network kernel for a static layer structure.

    Argument order (must match `prep_unet`):
      image, then per down layer [sd(4,Ro,Ri), bw(4,K,N), scale(1,N), shift(1,N)],
      then per up layer [su(4,R,R), (bua(4,Ka,N) if skip), bub(4,Kb,N),
                         pep(2,Ro,R), scale(1,N), shift(1,N)], finally the output ref.
    """

    def kernel(*refs):
        o_ref = refs[-1]
        it = iter(refs[:-1])
        dot = functools.partial(jnp.dot, preferred_element_type=jnp.float32)

        cur = next(it)[...]                      # image, (B*H, W*Cin)
        skips = []                               # a1..a5 (post-BN, pre-activation)

        for spec in layer_specs:
            if spec["kind"] == "down":
                sd_ref = next(it)                # (4, B*Ho, B*H) row gathers (one per kh)
                bw_ref = next(it)                # (4, W*Cin, Wo*Cout) tap weights
                scale = next(it)[...]
                shift = next(it)[...]
                inp = cur if spec["pre"] is None else jnp.where(cur >= 0, cur, 0.2 * cur)
                acc = None
                for t in range(4):
                    term = dot(dot(sd_ref[t], inp), bw_ref[t])
                    acc = term if acc is None else acc + term
                cur = acc * scale + shift        # folded BatchNorm (or identity)
                skips.append(cur)
            else:                                # "up" (transposed conv)
                su_ref = next(it)                # (4, B*H, B*H) row gathers per (ry,dy)
                bua_ref = next(it) if spec["has_skip"] else None
                bub_ref = next(it)
                pep_ref = next(it)               # (2, B*2H, B*H) even/odd row interleave
                scale = next(it)[...]
                shift = next(it)[...]
                b_in = jnp.maximum(cur, 0.0)     # ReLU on deeper-path input
                a_in = (jnp.maximum(skips[spec["skip"]], 0.0)
                        if spec["has_skip"] else None)
                phases = []
                for ry in range(2):
                    acc = None
                    for dy in range(2):
                        idx = ry * 2 + dy
                        g = su_ref[idx]
                        term = dot(dot(g, b_in), bub_ref[idx])
                        if a_in is not None:     # fused skip-concat via K split
                            term = term + dot(dot(g, a_in), bua_ref[idx])
                        acc = term if acc is None else acc + term
                    phases.append(acc)
                out = dot(pep_ref[0], phases[0]) + dot(pep_ref[1], phases[1])
                out = out * scale + shift        # folded BatchNorm / bias
                if spec["post_tanh"]:
                    out = jnp.tanh(out)
                cur = out

        o_ref[...] = cur.astype(o_ref.dtype)

    return kernel


def make_forward(layer_specs, output_nc):
    kernel = _make_kernel(layer_specs)

    def forward(image_nchw, weights):
        B, C, H, W = image_nchw.shape
        x2d = jnp.transpose(image_nchw, (0, 2, 3, 1)).reshape(B * H, W * C)
        y2d = pl.pallas_call(
            kernel,
            out_shape=jax.ShapeDtypeStruct((B * H, W * output_nc), jnp.float32),
            compiler_params=pltpu.CompilerParams(
                vmem_limit_bytes=32 * 1024 * 1024),
        )(x2d, *weights)
        y = y2d.reshape(B, H, W, output_nc)
        return jnp.transpose(y, (0, 3, 1, 2))

    return forward


# ------------------- host-side folding of weights / BN ---------------------- #

def _fold_bn(bn, eps=1e-5):
    g, b, m, v = [np.asarray(t, np.float32) for t in bn]
    s = g / np.sqrt(v + eps)
    return s, b - m * s


def _down_mats(w_oihw, H, W, B):
    """Conv2d(k=4, s=2, p=1, bias=False): per-kh row gathers + tap-weight matrices."""
    w = np.asarray(w_oihw, np.float32)           # (Cout, Cin, 4, 4)
    cout, cin = w.shape[0], w.shape[1]
    Ho, Wo = H // 2, W // 2
    sds, bws = [], []
    for dh in range(4):
        sd = np.zeros((B * Ho, B * H), np.float32)
        for b in range(B):
            for oh in range(Ho):
                h = 2 * oh + dh - 1              # H zero-padding folded (out-of-range -> 0 row)
                if 0 <= h < H:
                    sd[b * Ho + oh, b * H + h] = 1.0
        bw = np.zeros((W * cin, Wo * cout), np.float32)
        for ow in range(Wo):
            for dw in range(4):
                ws = 2 * ow + dw - 1             # W zero-padding folded
                if 0 <= ws < W:
                    bw[ws * cin:(ws + 1) * cin, ow * cout:(ow + 1) * cout] += w[:, :, dh, dw].T
        sds.append(sd)
        bws.append(bw)
    return sds, bws, Ho, Wo, cout


def _up_mats(wt_iohw, H, W, B, ca):
    """ConvTranspose2d(k=4, s=2, p=1): per-(ry,dy) row gathers, tap-weight matrices split
    over [skip | deeper] input channels, and even/odd output-row interleave matrices."""
    wt = np.asarray(wt_iohw, np.float32)         # (Cin_total, Cout, 4, 4)
    cout = wt.shape[1]
    Wout = 2 * W

    sus = []
    for ry in range(2):
        for dy in range(2):
            su = np.zeros((B * H, B * H), np.float32)
            for b in range(B):
                for m in range(H):
                    h = m + dy + ry - 1
                    if 0 <= h < H:
                        su[b * H + m, b * H + h] = 1.0
            sus.append(su)

    def tap_weights(wp):
        cp = wp.shape[0]
        mats = []
        for ry in range(2):
            for dy in range(2):
                kh = 3 - 2 * dy - ry
                bu = np.zeros((W * cp, Wout * cout), np.float32)
                for n in range(W):
                    for rx in range(2):
                        for dx in range(2):
                            ws = n + dx + rx - 1
                            if 0 <= ws < W:
                                kw = 3 - 2 * dx - rx
                                col = (2 * n + rx) * cout
                                bu[ws * cp:(ws + 1) * cp, col:col + cout] += wp[:, :, kh, kw]
                mats.append(bu)
        return mats

    bua = tap_weights(wt[:ca]) if ca > 0 else None
    bub = tap_weights(wt[ca:])

    pe = np.zeros((B * 2 * H, B * H), np.float32)
    po = np.zeros_like(pe)
    for b in range(B):
        for m in range(H):
            pe[b * 2 * H + 2 * m, b * H + m] = 1.0
            po[b * 2 * H + 2 * m + 1, b * H + m] = 1.0
    return sus, bua, bub, pe, po, cout


def prep_unet(raw, B, H0, W0, input_nc, output_nc, ngf, eps=1e-5):
    """Fold BN + build all gather / tap-weight / interleave matrices (host numpy)."""
    flat, specs = [], []
    H, W = H0, W0

    down_cfg = [("d1_w", None, None),
                ("d2_w", "d2_bn", "lrelu"),
                ("d3_w", "d3_bn", "lrelu"),
                ("d4_w", "d4_bn", "lrelu"),
                ("d5_w", None, "lrelu")]
    for wk, bnk, pre in down_cfg:
        sds, bws, Ho, Wo, cout = _down_mats(raw[wk], H, W, B)
        if bnk is None:
            s = np.ones((cout,), np.float32)
            t = np.zeros((cout,), np.float32)
        else:
            s, t = _fold_bn(raw[bnk], eps)
        flat += [np.stack(sds), np.stack(bws),
                 np.tile(s, Wo)[None, :], np.tile(t, Wo)[None, :]]
        specs.append({"kind": "down", "pre": pre})
        H, W = Ho, Wo

    up_cfg = [("u5_w", "u5_bn", 0,        None,   False),
              ("u4_w", "u4_bn", ngf * 8,  None,   False),
              ("u3_w", "u3_bn", ngf * 4,  None,   False),
              ("u2_w", "u2_bn", ngf * 2,  None,   False),
              ("u1_w", None,    ngf,      "u1_b", True)]
    for i, (wk, bnk, ca, biask, post_tanh) in enumerate(up_cfg):
        sus, bua, bub, pe, po, cout = _up_mats(raw[wk], H, W, B, ca)
        if bnk is not None:
            s, t = _fold_bn(raw[bnk], eps)
        else:
            s = np.ones((cout,), np.float32)
            t = (np.asarray(raw[biask], np.float32) if biask is not None
                 else np.zeros((cout,), np.float32))
        Wout = 2 * W
        arrs = [np.stack(sus)]
        if bua is not None:
            arrs.append(np.stack(bua))
        arrs += [np.stack(bub), np.stack([pe, po]),
                 np.tile(s, Wout)[None, :], np.tile(t, Wout)[None, :]]
        flat += arrs
        specs.append({"kind": "up", "has_skip": ca > 0,
                      "skip": (4 - i) if ca > 0 else None,
                      "post_tanh": post_tanh})
        H, W = 2 * H, 2 * W

    weights = [jnp.asarray(a) for a in flat]
    return specs, weights


# ------------------------- parameter construction --------------------------- #

def init_raw_params(key, input_nc, output_nc, ngf):
    """Synthetic weights in PyTorch layouts (Conv: OIHW, ConvT: IOHW) + BN stats."""
    keys = iter(jax.random.split(key, 64))

    def convw(cout, cin):
        return jax.random.normal(next(keys), (cout, cin, 4, 4), jnp.float32) / np.sqrt(cin * 16)

    def convtw(cin, cout):
        return jax.random.normal(next(keys), (cin, cout, 4, 4), jnp.float32) / np.sqrt(cin * 16)

    def bnp(c):
        g = 1.0 + 0.1 * jax.random.normal(next(keys), (c,), jnp.float32)
        b = 0.1 * jax.random.normal(next(keys), (c,), jnp.float32)
        m = 0.1 * jax.random.normal(next(keys), (c,), jnp.float32)
        v = jax.random.uniform(next(keys), (c,), jnp.float32, 0.5, 1.5)
        return (g, b, m, v)

    raw = {}
    raw["d1_w"] = convw(ngf, input_nc)                                    # outermost down
    raw["d2_w"] = convw(ngf * 2, ngf);       raw["d2_bn"] = bnp(ngf * 2)
    raw["d3_w"] = convw(ngf * 4, ngf * 2);   raw["d3_bn"] = bnp(ngf * 4)
    raw["d4_w"] = convw(ngf * 8, ngf * 4);   raw["d4_bn"] = bnp(ngf * 8)
    raw["d5_w"] = convw(ngf * 8, ngf * 8)                                 # innermost down
    raw["u5_w"] = convtw(ngf * 8, ngf * 8);  raw["u5_bn"] = bnp(ngf * 8)  # innermost up
    raw["u4_w"] = convtw(ngf * 16, ngf * 4); raw["u4_bn"] = bnp(ngf * 4)
    raw["u3_w"] = convtw(ngf * 8, ngf * 2);  raw["u3_bn"] = bnp(ngf * 2)
    raw["u2_w"] = convtw(ngf * 4, ngf);      raw["u2_bn"] = bnp(ngf)
    raw["u1_w"] = convtw(ngf * 2, output_nc)                              # outermost up (bias)
    raw["u1_b"] = 0.05 * jax.random.normal(next(keys), (output_nc,), jnp.float32)
    return raw


# --------------------------- pure-JAX reference ----------------------------- #

_DN = ("NCHW", "OIHW", "NCHW")


def _ref_conv(x, w):  # Conv2d k=4 s=2 p=1, bias=False
    return lax.conv_general_dilated(x, w, (2, 2), [(1, 1), (1, 1)],
                                    dimension_numbers=_DN,
                                    precision=lax.Precision.HIGHEST)


def _ref_convT(x, w_t):  # ConvTranspose2d k=4 s=2 p=1 (no bias)
    w = jnp.flip(jnp.transpose(w_t, (1, 0, 2, 3)), axis=(2, 3))
    return lax.conv_general_dilated(x, w, (1, 1), [(2, 2), (2, 2)],
                                    lhs_dilation=(2, 2),
                                    dimension_numbers=_DN,
                                    precision=lax.Precision.HIGHEST)


def _ref_bn(x, bn, eps=1e-5):
    g, b, m, v = bn
    s = (g / jnp.sqrt(v + eps)).reshape(1, -1, 1, 1)
    return (x - m.reshape(1, -1, 1, 1)) * s + b.reshape(1, -1, 1, 1)


def reference_forward(image_nchw, raw):
    lrelu = lambda t: jnp.where(t >= 0, t, 0.2 * t)
    relu = lambda t: jnp.maximum(t, 0.0)
    cat = lambda a, b: jnp.concatenate([a, b], axis=1)

    a1 = _ref_conv(image_nchw, raw["d1_w"])
    a2 = _ref_bn(_ref_conv(lrelu(a1), raw["d2_w"]), raw["d2_bn"])
    a3 = _ref_bn(_ref_conv(lrelu(a2), raw["d3_w"]), raw["d3_bn"])
    a4 = _ref_bn(_ref_conv(lrelu(a3), raw["d4_w"]), raw["d4_bn"])
    a5 = _ref_conv(lrelu(a4), raw["d5_w"])
    b5 = _ref_bn(_ref_convT(relu(a5), raw["u5_w"]), raw["u5_bn"])
    b4 = _ref_bn(_ref_convT(relu(cat(a4, b5)), raw["u4_w"]), raw["u4_bn"])
    b3 = _ref_bn(_ref_convT(relu(cat(a3, b4)), raw["u3_w"]), raw["u3_bn"])
    b2 = _ref_bn(_ref_convT(relu(cat(a2, b3)), raw["u2_w"]), raw["u2_bn"])
    y = _ref_convT(relu(cat(a1, b2)), raw["u1_w"]) + raw["u1_b"].reshape(1, -1, 1, 1)
    return jnp.tanh(y)


# ----------------------------------- main ----------------------------------- #

if __name__ == "__main__":
    # num_downs=5 is the minimum the recursive constructor produces -> spatial must be >= 32.
    B, input_nc, output_nc, H, W = 2, 4, 3, 32, 32
    ngf = 8

    key = jax.random.PRNGKey(0)
    k_img, k_par = jax.random.split(key)
    image = jax.random.normal(k_img, (B, input_nc, H, W), jnp.float32)   # NCHW like PyTorch

    raw = init_raw_params(k_par, input_nc, output_nc, ngf)
    raw_np = {k: (tuple(np.asarray(t) for t in v) if isinstance(v, tuple) else np.asarray(v))
              for k, v in raw.items()}
    specs, weights = prep_unet(raw_np, B, H, W, input_nc, output_nc, ngf)

    fwd = jax.jit(make_forward(specs, output_nc))
    out = jax.block_until_ready(fwd(image, weights))
    assert out.shape == (B, output_nc, H, W)

    ref = jax.block_until_ready(jax.jit(reference_forward)(image, raw))
    np.testing.assert_allclose(np.asarray(out), np.asarray(ref), rtol=1e-3, atol=1e-3)
    print("KERNEL_OK")
</pallas_src>

<mosaic_0001>
module attributes {stable_mosaic.version = 11 : i64} {
  func.func @kernel(%arg0: memref<64x128xf32, #tpu.memory_space<vmem>>, %arg1: memref<4x32x64xf32, #tpu.memory_space<vmem>>, %arg2: memref<4x128x128xf32, #tpu.memory_space<vmem>>, %arg3: memref<1x128xf32, #tpu.memory_space<vmem>>, %arg4: memref<1x128xf32, #tpu.memory_space<vmem>>, %arg5: memref<4x16x32xf32, #tpu.memory_space<vmem>>, %arg6: memref<4x128x128xf32, #tpu.memory_space<vmem>>, %arg7: memref<1x128xf32, #tpu.memory_space<vmem>>, %arg8: memref<1x128xf32, #tpu.memory_space<vmem>>, %arg9: memref<4x8x16xf32, #tpu.memory_space<vmem>>, %arg10: memref<4x128x128xf32, #tpu.memory_space<vmem>>, %arg11: memref<1x128xf32, #tpu.memory_space<vmem>>, %arg12: memref<1x128xf32, #tpu.memory_space<vmem>>, %arg13: memref<4x4x8xf32, #tpu.memory_space<vmem>>, %arg14: memref<4x128x128xf32, #tpu.memory_space<vmem>>, %arg15: memref<1x128xf32, #tpu.memory_space<vmem>>, %arg16: memref<1x128xf32, #tpu.memory_space<vmem>>, %arg17: memref<4x2x4xf32, #tpu.memory_space<vmem>>, %arg18: memref<4x128x64xf32, #tpu.memory_space<vmem>>, %arg19: memref<1x64xf32, #tpu.memory_space<vmem>>, %arg20: memref<1x64xf32, #tpu.memory_space<vmem>>, %arg21: memref<4x2x2xf32, #tpu.memory_space<vmem>>, %arg22: memref<4x64x128xf32, #tpu.memory_space<vmem>>, %arg23: memref<2x4x2xf32, #tpu.memory_space<vmem>>, %arg24: memref<1x128xf32, #tpu.memory_space<vmem>>, %arg25: memref<1x128xf32, #tpu.memory_space<vmem>>, %arg26: memref<4x4x4xf32, #tpu.memory_space<vmem>>, %arg27: memref<4x128x128xf32, #tpu.memory_space<vmem>>, %arg28: memref<4x128x128xf32, #tpu.memory_space<vmem>>, %arg29: memref<2x8x4xf32, #tpu.memory_space<vmem>>, %arg30: memref<1x128xf32, #tpu.memory_space<vmem>>, %arg31: memref<1x128xf32, #tpu.memory_space<vmem>>, %arg32: memref<4x8x8xf32, #tpu.memory_space<vmem>>, %arg33: memref<4x128x128xf32, #tpu.memory_space<vmem>>, %arg34: memref<4x128x128xf32, #tpu.memory_space<vmem>>, %arg35: memref<2x16x8xf32, #tpu.memory_space<vmem>>, %arg36: memref<1x128xf32, #tpu.memory_space<vmem>>, %arg37: memref<1x128xf32, #tpu.memory_space<vmem>>, %arg38: memref<4x16x16xf32, #tpu.memory_space<vmem>>, %arg39: memref<4x128x128xf32, #tpu.memory_space<vmem>>, %arg40: memref<4x128x128xf32, #tpu.memory_space<vmem>>, %arg41: memref<2x32x16xf32, #tpu.memory_space<vmem>>, %arg42: memref<1x128xf32, #tpu.memory_space<vmem>>, %arg43: memref<1x128xf32, #tpu.memory_space<vmem>>, %arg44: memref<4x32x32xf32, #tpu.memory_space<vmem>>, %arg45: memref<4x128x96xf32, #tpu.memory_space<vmem>>, %arg46: memref<4x128x96xf32, #tpu.memory_space<vmem>>, %arg47: memref<2x64x32xf32, #tpu.memory_space<vmem>>, %arg48: memref<1x96xf32, #tpu.memory_space<vmem>>, %arg49: memref<1x96xf32, #tpu.memory_space<vmem>>, %arg50: memref<64x96xf32, #tpu.memory_space<vmem>>) attributes {dimension_semantics = [], scalar_prefetch = 0 : i64, scratch_operands = 0 : i64, tpu.core_type = #tpu.core_type<tc>} {
    %c0 = arith.constant 0 : index
    %c0_0 = arith.constant 0 : index
    %0 = vector.load %arg0[%c0, %c0_0] : memref<64x128xf32, #tpu.memory_space<vmem>>, vector<64x128xf32>
    %c0_1 = arith.constant 0 : index
    %c0_2 = arith.constant 0 : index
    %1 = vector.load %arg3[%c0_1, %c0_2] : memref<1x128xf32, #tpu.memory_space<vmem>>, vector<1x128xf32>
    %c0_3 = arith.constant 0 : index
    %c0_4 = arith.constant 0 : index
    %2 = vector.load %arg4[%c0_3, %c0_4] : memref<1x128xf32, #tpu.memory_space<vmem>>, vector<1x128xf32>
    %c0_5 = arith.constant 0 : index
    %c0_6 = arith.constant 0 : index
    %c0_7 = arith.constant 0 : index
    %3 = vector.load %arg1[%c0_5, %c0_6, %c0_7] : memref<4x32x64xf32, #tpu.memory_space<vmem>>, vector<1x32x64xf32>
    %4 = vector.shape_cast %3 : vector<1x32x64xf32> to vector<32x64xf32>
    %cst = arith.constant dense<0.000000e+00> : vector<32x128xf32>
    %5 = tpu.matmul %4, %0, %cst {dimension_numbers = #tpu.dot_dimension_numbers<[1], [0], [0], [1], [0, 0, 1, 1], [], []>} : vector<32x64xf32>, vector<64x128xf32>, vector<32x128xf32> -> vector<32x128xf32>
    %c0_8 = arith.constant 0 : index
    %c0_9 = arith.constant 0 : index
    %c0_10 = arith.constant 0 : index
    %6 = vector.load %arg2[%c0_8, %c0_9, %c0_10] : memref<4x128x128xf32, #tpu.memory_space<vmem>>, vector<1x128x128xf32>
    %7 = vector.shape_cast %6 : vector<1x128x128xf32> to vector<128x128xf32>
    %cst_11 = arith.constant dense<0.000000e+00> : vector<32x128xf32>
    %8 = tpu.matmul %5, %7, %cst_11 {dimension_numbers = #tpu.dot_dimension_numbers<[1], [0], [0], [1], [0, 0, 1, 1], [], []>} : vector<32x128xf32>, vector<128x128xf32>, vector<32x128xf32> -> vector<32x128xf32>
    %c1 = arith.constant 1 : index
    %c0_12 = arith.constant 0 : index
    %c0_13 = arith.constant 0 : index
    %9 = vector.load %arg1[%c1, %c0_12, %c0_13] : memref<4x32x64xf32, #tpu.memory_space<vmem>>, vector<1x32x64xf32>
    %10 = vector.shape_cast %9 : vector<1x32x64xf32> to vector<32x64xf32>
    %cst_14 = arith.constant dense<0.000000e+00> : vector<32x128xf32>
    %11 = tpu.matmul %10, %0, %cst_14 {dimension_numbers = #tpu.dot_dimension_numbers<[1], [0], [0], [1], [0, 0, 1, 1], [], []>} : vector<32x64xf32>, vector<64x128xf32>, vector<32x128xf32> -> vector<32x128xf32>
    %c1_15 = arith.constant 1 : index
    %c0_16 = arith.constant 0 : index
    %c0_17 = arith.constant 0 : index
    %12 = vector.load %arg2[%c1_15, %c0_16, %c0_17] : memref<4x128x128xf32, #tpu.memory_space<vmem>>, vector<1x128x128xf32>
    %13 = vector.shape_cast %12 : vector<1x128x128xf32> to vector<128x128xf32>
    %cst_18 = arith.constant dense<0.000000e+00> : vector<32x128xf32>
    %14 = tpu.matmul %11, %13, %cst_18 {dimension_numbers = #tpu.dot_dimension_numbers<[1], [0], [0], [1], [0, 0, 1, 1], [], []>} : vector<32x128xf32>, vector<128x128xf32>, vector<32x128xf32> -> vector<32x128xf32>
    %15 = arith.addf %8, %14 : vector<32x128xf32>
    %c2 = arith.constant 2 : index
    %c0_19 = arith.constant 0 : index
    %c0_20 = arith.constant 0 : index
    %16 = vector.load %arg1[%c2, %c0_19, %c0_20] : memref<4x32x64xf32, #tpu.memory_space<vmem>>, vector<1x32x64xf32>
    %17 = vector.shape_cast %16 : vector<1x32x64xf32> to vector<32x64xf32>
    %cst_21 = arith.constant dense<0.000000e+00> : vector<32x128xf32>
    %18 = tpu.matmul %17, %0, %cst_21 {dimension_numbers = #tpu.dot_dimension_numbers<[1], [0], [0], [1], [0, 0, 1, 1], [], []>} : vector<32x64xf32>, vector<64x128xf32>, vector<32x128xf32> -> vector<32x128xf32>
    %c2_22 = arith.constant 2 : index
    %c0_23 = arith.constant 0 : index
    %c0_24 = arith.constant 0 : index
    %19 = vector.load %arg2[%c2_22, %c0_23, %c0_24] : memref<4x128x128xf32, #tpu.memory_space<vmem>>, vector<1x128x128xf32>
    %20 = vector.shape_cast %19 : vector<1x128x128xf32> to vector<128x128xf32>
    %cst_25 = arith.constant dense<0.000000e+00> : vector<32x128xf32>
    %21 = tpu.matmul %18, %20, %cst_25 {dimension_numbers = #tpu.dot_dimension_numbers<[1], [0], [0], [1], [0, 0, 1, 1], [], []>} : vector<32x128xf32>, vector<128x128xf32>, vector<32x128xf32> -> vector<32x128xf32>
    %22 = arith.addf %15, %21 : vector<32x128xf32>
    %c3 = arith.constant 3 : index
    %c0_26 = arith.constant 0 : index
    %c0_27 = arith.constant 0 : index
    %23 = vector.load %arg1[%c3, %c0_26, %c0_27] : memref<4x32x64xf32, #tpu.memory_space<vmem>>, vector<1x32x64xf32>
    %24 = vector.shape_cast %23 : vector<1x32x64xf32> to vector<32x64xf32>
    %cst_28 = arith.constant dense<0.000000e+00> : vector<32x128xf32>
    %25 = tpu.matmul %24, %0, %cst_28 {dimension_numbers = #tpu.dot_dimension_numbers<[1], [0], [0], [1], [0, 0, 1, 1], [], []>} : vector<32x64xf32>, vector<64x128xf32>, vector<32x128xf32> -> vector<32x128xf32>
    %c3_29 = arith.constant 3 : index
    %c0_30 = arith.constant 0 : index
    %c0_31 = arith.constant 0 : index
    %26 = vector.load %arg2[%c3_29, %c0_30, %c0_31] : memref<4x128x128xf32, #tpu.memory_space<vmem>>, vector<1x128x128xf32>
    %27 = vector.shape_cast %26 : vector<1x128x128xf32> to vector<128x128xf32>
    %cst_32 = arith.constant dense<0.000000e+00> : vector<32x128xf32>
    %28 = tpu.matmul %25, %27, %cst_32 {dimension_numbers = #tpu.dot_dimension_numbers<[1], [0], [0], [1], [0, 0, 1, 1], [], []>} : vector<32x128xf32>, vector<128x128xf32>, vector<32x128xf32> -> vector<32x128xf32>
    %29 = arith.addf %22, %28 : vector<32x128xf32>
    %30 = vector.broadcast %1 : vector<1x128xf32> to vector<32x128xf32>
    %31 = arith.mulf %29, %30 : vector<32x128xf32>
    %32 = vector.broadcast %2 : vector<1x128xf32> to vector<32x128xf32>
    %33 = arith.addf %31, %32 : vector<32x128xf32>
    %c0_33 = arith.constant 0 : index
    %c0_34 = arith.constant 0 : index
    %34 = vector.load %arg7[%c0_33, %c0_34] : memref<1x128xf32, #tpu.memory_space<vmem>>, vector<1x128xf32>
    %c0_35 = arith.constant 0 : index
    %c0_36 = arith.constant 0 : index
    %35 = vector.load %arg8[%c0_35, %c0_36] : memref<1x128xf32, #tpu.memory_space<vmem>>, vector<1x128xf32>
    %cst_37 = arith.constant 0.000000e+00 : f32
    %36 = vector.broadcast %cst_37 : f32 to vector<32x128xf32>
    %37 = arith.cmpf oge, %33, %36 : vector<32x128xf32>
    %cst_38 = arith.constant 2.000000e-01 : f32
    %38 = vector.broadcast %cst_38 : f32 to vector<32x128xf32>
    %39 = arith.mulf %38, %33 : vector<32x128xf32>
    %40 = arith.select %37, %33, %39 : vector<32x128xi1>, vector<32x128xf32>
    %c0_39 = arith.constant 0 : index
    %c0_40 = arith.constant 0 : index
    %c0_41 = arith.constant 0 : index
    %41 = vector.load %arg5[%c0_39, %c0_40, %c0_41] : memref<4x16x32xf32, #tpu.memory_space<vmem>>, vector<1x16x32xf32>
    %42 = vector.shape_cast %41 : vector<1x16x32xf32> to vector<16x32xf32>
    %cst_42 = arith.constant dense<0.000000e+00> : vector<16x128xf32>
    %43 = tpu.matmul %42, %40, %cst_42 {dimension_numbers = #tpu.dot_dimension_numbers<[1], [0], [0], [1], [0, 0, 1, 1], [], []>} : vector<16x32xf32>, vector<32x128xf32>, vector<16x128xf32> -> vector<16x128xf32>
    %c0_43 = arith.constant 0 : index
    %c0_44 = arith.constant 0 : index
    %c0_45 = arith.constant 0 : index
    %44 = vector.load %arg6[%c0_43, %c0_44, %c0_45] : memref<4x128x128xf32, #tpu.memory_space<vmem>>, vector<1x128x128xf32>
    %45 = vector.shape_cast %44 : vector<1x128x128xf32> to vector<128x128xf32>
    %cst_46 = arith.constant dense<0.000000e+00> : vector<16x128xf32>
    %46 = tpu.matmul %43, %45, %cst_46 {dimension_numbers = #tpu.dot_dimension_numbers<[1], [0], [0], [1], [0, 0, 1, 1], [], []>} : vector<16x128xf32>, vector<128x128xf32>, vector<16x128xf32> -> vector<16x128xf32>
    %c1_47 = arith.constant 1 : index
    %c0_48 = arith.constant 0 : index
    %c0_49 = arith.constant 0 : index
    %47 = vector.load %arg5[%c1_47, %c0_48, %c0_49] : memref<4x16x32xf32, #tpu.memory_space<vmem>>, vector<1x16x32xf32>
    %48 = vector.shape_cast %47 : vector<1x16x32xf32> to vector<16x32xf32>
    %cst_50 = arith.constant dense<0.000000e+00> : vector<16x128xf32>
    %49 = tpu.matmul %48, %40, %cst_50 {dimension_numbers = #tpu.dot_dimension_numbers<[1], [0], [0], [1], [0, 0, 1, 1], [], []>} : vector<16x32xf32>, vector<32x128xf32>, vector<16x128xf32> -> vector<16x128xf32>
    %c1_51 = arith.constant 1 : index
    %c0_52 = arith.constant 0 : index
    %c0_53 = arith.constant 0 : index
    %50 = vector.load %arg6[%c1_51, %c0_52, %c0_53] : memref<4x128x128xf32, #tpu.memory_space<vmem>>, vector<1x128x128xf32>
    %51 = vector.shape_cast %50 : vector<1x128x128xf32> to vector<128x128xf32>
    %cst_54 = arith.constant dense<0.000000e+00> : vector<16x128xf32>
    %52 = tpu.matmul %49, %51, %cst_54 {dimension_numbers = #tpu.dot_dimension_numbers<[1], [0], [0], [1], [0, 0, 1, 1], [], []>} : vector<16x128xf32>, vector<128x128xf32>, vector<16x128xf32> -> vector<16x128xf32>
    %53 = arith.addf %46, %52 : vector<16x128xf32>
    %c2_55 = arith.constant 2 : index
    %c0_56 = arith.constant 0 : index
    %c0_57 = arith.constant 0 : index
    %54 = vector.load %arg5[%c2_55, %c0_56, %c0_57] : memref<4x16x32xf32, #tpu.memory_space<vmem>>, vector<1x16x32xf32>
    %55 = vector.shape_cast %54 : vector<1x16x32xf32> to vector<16x32xf32>
    %cst_58 = arith.constant dense<0.000000e+00> : vector<16x128xf32>
    %56 = tpu.matmul %55, %40, %cst_58 {dimension_numbers = #tpu.dot_dimension_numbers<[1], [0], [0], [1], [0, 0, 1, 1], [], []>} : vector<16x32xf32>, vector<32x128xf32>, vector<16x128xf32> -> vector<16x128xf32>
    %c2_59 = arith.constant 2 : index
    %c0_60 = arith.constant 0 : index
    %c0_61 = arith.constant 0 : index
    %57 = vector.load %arg6[%c2_59, %c0_60, %c0_61] : memref<4x128x128xf32, #tpu.memory_space<vmem>>, vector<1x128x128xf32>
    %58 = vector.shape_cast %57 : vector<1x128x128xf32> to vector<128x128xf32>
    %cst_62 = arith.constant dense<0.000000e+00> : vector<16x128xf32>
    %59 = tpu.matmul %56, %58, %cst_62 {dimension_numbers = #tpu.dot_dimension_numbers<[1], [0], [0], [1], [0, 0, 1, 1], [], []>} : vector<16x128xf32>, vector<128x128xf32>, vector<16x128xf32> -> vector<16x128xf32>
    %60 = arith.addf %53, %59 : vector<16x128xf32>
    %c3_63 = arith.constant 3 : index
    %c0_64 = arith.constant 0 : index
    %c0_65 = arith.constant 0 : index
    %61 = vector.load %arg5[%c3_63, %c0_64, %c0_65] : memref<4x16x32xf32, #tpu.memory_space<vmem>>, vector<1x16x32xf32>
    %62 = vector.shape_cast %61 : vector<1x16x32xf32> to vector<16x32xf32>
    %cst_66 = arith.constant dense<0.000000e+00> : vector<16x128xf32>
    %63 = tpu.matmul %62, %40, %cst_66 {dimension_numbers = #tpu.dot_dimension_numbers<[1], [0], [0], [1], [0, 0, 1, 1], [], []>} : vector<16x32xf32>, vector<32x128xf32>, vector<16x128xf32> -> vector<16x128xf32>
    %c3_67 = arith.constant 3 : index
    %c0_68 = arith.constant 0 : index
    %c0_69 = arith.constant 0 : index
    %64 = vector.load %arg6[%c3_67, %c0_68, %c0_69] : memref<4x128x128xf32, #tpu.memory_space<vmem>>, vector<1x128x128xf32>
    %65 = vector.shape_cast %64 : vector<1x128x128xf32> to vector<128x128xf32>
    %cst_70 = arith.constant dense<0.000000e+00> : vector<16x128xf32>
    %66 = tpu.matmul %63, %65, %cst_70 {dimension_numbers = #tpu.dot_dimension_numbers<[1], [0], [0], [1], [0, 0, 1, 1], [], []>} : vector<16x128xf32>, vector<128x128xf32>, vector<16x128xf32> -> vector<16x128xf32>
    %67 = arith.addf %60, %66 : vector<16x128xf32>
    %68 = vector.broadcast %34 : vector<1x128xf32> to vector<16x128xf32>
    %69 = arith.mulf %67, %68 : vector<16x128xf32>
    %70 = vector.broadcast %35 : vector<1x128xf32> to vector<16x128xf32>
    %71 = arith.addf %69, %70 : vector<16x128xf32>
    %c0_71 = arith.constant 0 : index
    %c0_72 = arith.constant 0 : index
    %72 = vector.load %arg11[%c0_71, %c0_72] : memref<1x128xf32, #tpu.memory_space<vmem>>, vector<1x128xf32>
    %c0_73 = arith.constant 0 : index
    %c0_74 = arith.constant 0 : index
    %73 = vector.load %arg12[%c0_73, %c0_74] : memref<1x128xf32, #tpu.memory_space<vmem>>, vector<1x128xf32>
    %cst_75 = arith.constant 0.000000e+00 : f32
    %74 = vector.broadcast %cst_75 : f32 to vector<16x128xf32>
    %75 = arith.cmpf oge, %71, %74 : vector<16x128xf32>
    %cst_76 = arith.constant 2.000000e-01 : f32
    %76 = vector.broadcast %cst_76 : f32 to vector<16x128xf32>
    %77 = arith.mulf %76, %71 : vector<16x128xf32>
    %78 = arith.select %75, %71, %77 : vector<16x128xi1>, vector<16x128xf32>
    %c0_77 = arith.constant 0 : index
    %c0_78 = arith.constant 0 : index
    %c0_79 = arith.constant 0 : index
    %79 = vector.load %arg9[%c0_77, %c0_78, %c0_79] : memref<4x8x16xf32, #tpu.memory_space<vmem>>, vector<1x8x16xf32>
    %80 = vector.shape_cast %79 : vector<1x8x16xf32> to vector<8x16xf32>
    %cst_80 = arith.constant dense<0.000000e+00> : vector<8x128xf32>
    %81 = tpu.matmul %80, %78, %cst_80 {dimension_numbers = #tpu.dot_dimension_numbers<[1], [0], [0], [1], [0, 0, 1, 1], [], []>} : vector<8x16xf32>, vector<16x128xf32>, vector<8x128xf32> -> vector<8x128xf32>
    %c0_81 = arith.constant 0 : index
    %c0_82 = arith.constant 0 : index
    %c0_83 = arith.constant 0 : index
    %82 = vector.load %arg10[%c0_81, %c0_82, %c0_83] : memref<4x128x128xf32, #tpu.memory_space<vmem>>, vector<1x128x128xf32>
    %83 = vector.shape_cast %82 : vector<1x128x128xf32> to vector<128x128xf32>
    %cst_84 = arith.constant dense<0.000000e+00> : vector<8x128xf32>
    %84 = tpu.matmul %81, %83, %cst_84 {dimension_numbers = #tpu.dot_dimension_numbers<[1], [0], [0], [1], [0, 0, 1, 1], [], []>} : vector<8x128xf32>, vector<128x128xf32>, vector<8x128xf32> -> vector<8x128xf32>
    %c1_85 = arith.constant 1 : index
    %c0_86 = arith.constant 0 : index
    %c0_87 = arith.constant 0 : index
    %85 = vector.load %arg9[%c1_85, %c0_86, %c0_87] : memref<4x8x16xf32, #tpu.memory_space<vmem>>, vector<1x8x16xf32>
    %86 = vector.shape_cast %85 : vector<1x8x16xf32> to vector<8x16xf32>
    %cst_88 = arith.constant dense<0.000000e+00> : vector<8x128xf32>
    %87 = tpu.matmul %86, %78, %cst_88 {dimension_numbers = #tpu.dot_dimension_numbers<[1], [0], [0], [1], [0, 0, 1, 1], [], []>} : vector<8x16xf32>, vector<16x128xf32>, vector<8x128xf32> -> vector<8x128xf32>
    %c1_89 = arith.constant 1 : index
    %c0_90 = arith.constant 0 : index
    %c0_91 = arith.constant 0 : index
    %88 = vector.load %arg10[%c1_89, %c0_90, %c0_91] : memref<4x128x128xf32, #tpu.memory_space<vmem>>, vector<1x128x128xf32>
    %89 = vector.shape_cast %88 : vector<1x128x128xf32> to vector<128x128xf32>
    %cst_92 = arith.constant dense<0.000000e+00> : vector<8x128xf32>
    %90 = tpu.matmul %87, %89, %cst_92 {dimension_numbers = #tpu.dot_dimension_numbers<[1], [0], [0], [1], [0, 0, 1, 1], [], []>} : vector<8x128xf32>, vector<128x128xf32>, vector<8x128xf32> -> vector<8x128xf32>
    %91 = arith.addf %84, %90 : vector<8x128xf32>
    %c2_93 = arith.constant 2 : index
    %c0_94 = arith.constant 0 : index
    %c0_95 = arith.constant 0 : index
    %92 = vector.load %arg9[%c2_93, %c0_94, %c0_95] : memref<4x8x16xf32, #tpu.memory_space<vmem>>, vector<1x8x16xf32>
    %93 = vector.shape_cast %92 : vector<1x8x16xf32> to vector<8x16xf32>
    %cst_96 = arith.constant dense<0.000000e+00> : vector<8x128xf32>
    %94 = tpu.matmul %93, %78, %cst_96 {dimension_numbers = #tpu.dot_dimension_numbers<[1], [0], [0], [1], [0, 0, 1, 1], [], []>} : vector<8x16xf32>, vector<16x128xf32>, vector<8x128xf32> -> vector<8x128xf32>
    %c2_97 = arith.constant 2 : index
    %c0_98 = arith.constant 0 : index
    %c0_99 = arith.constant 0 : index
    %95 = vector.load %arg10[%c2_97, %c0_98, %c0_99] : memref<4x128x128xf32, #tpu.memory_space<vmem>>, vector<1x128x128xf32>
    %96 = vector.shape_cast %95 : vector<1x128x128xf32> to vector<128x128xf32>
    %cst_100 = arith.constant dense<0.000000e+00> : vector<8x128xf32>
    %97 = tpu.matmul %94, %96, %cst_100 {dimension_numbers = #tpu.dot_dimension_numbers<[1], [0], [0], [1], [0, 0, 1, 1], [], []>} : vector<8x128xf32>, vector<128x128xf32>, vector<8x128xf32> -> vector<8x128xf32>
    %98 = arith.addf %91, %97 : vector<8x128xf32>
    %c3_101 = arith.constant 3 : index
    %c0_102 = arith.constant 0 : index
    %c0_103 = arith.constant 0 : index
    %99 = vector.load %arg9[%c3_101, %c0_102, %c0_103] : memref<4x8x16xf32, #tpu.memory_space<vmem>>, vector<1x8x16xf32>
    %100 = vector.shape_cast %99 : vector<1x8x16xf32> to vector<8x16xf32>
    %cst_104 = arith.constant dense<0.000000e+00> : vector<8x128xf32>
    %101 = tpu.matmul %100, %78, %cst_104 {dimension_numbers = #tpu.dot_dimension_numbers<[1], [0], [0], [1], [0, 0, 1, 1], [], []>} : vector<8x16xf32>, vector<16x128xf32>, vector<8x128xf32> -> vector<8x128xf32>
    %c3_105 = arith.constant 3 : index
    %c0_106 = arith.constant 0 : index
    %c0_107 = arith.constant 0 : index
    %102 = vector.load %arg10[%c3_105, %c0_106, %c0_107] : memref<4x128x128xf32, #tpu.memory_space<vmem>>, vector<1x128x128xf32>
    %103 = vector.shape_cast %102 : vector<1x128x128xf32> to vector<128x128xf32>
    %cst_108 = arith.constant dense<0.000000e+00> : vector<8x128xf32>
    %104 = tpu.matmul %101, %103, %cst_108 {dimension_numbers = #tpu.dot_dimension_numbers<[1], [0], [0], [1], [0, 0, 1, 1], [], []>} : vector<8x128xf32>, vector<128x128xf32>, vector<8x128xf32> -> vector<8x128xf32>
    %105 = arith.addf %98, %104 : vector<8x128xf32>
    %106 = vector.broadcast %72 : vector<1x128xf32> to vector<8x128xf32>
    %107 = arith.mulf %105, %106 : vector<8x128xf32>
    %108 = vector.broadcast %73 : vector<1x128xf32> to vector<8x128xf32>
    %109 = arith.addf %107, %108 : vector<8x128xf32>
    %c0_109 = arith.constant 0 : index
    %c0_110 = arith.constant 0 : index
    %110 = vector.load %arg15[%c0_109, %c0_110] : memref<1x128xf32, #tpu.memory_space<vmem>>, vector<1x128xf32>
    %c0_111 = arith.constant 0 : index
    %c0_112 = arith.constant 0 : index
    %111 = vector.load %arg16[%c0_111, %c0_112] : memref<1x128xf32, #tpu.memory_space<vmem>>, vector<1x128xf32>
    %cst_113 = arith.constant 0.000000e+00 : f32
    %112 = vector.broadcast %cst_113 : f32 to vector<8x128xf32>
    %113 = arith.cmpf oge, %109, %112 : vector<8x128xf32>
    %cst_114 = arith.constant 2.000000e-01 : f32
    %114 = vector.broadcast %cst_114 : f32 to vector<8x128xf32>
    %115 = arith.mulf %114, %109 : vector<8x128xf32>
    %116 = arith.select %113, %109, %115 : vector<8x128xi1>, vector<8x128xf32>
    %c0_115 = arith.constant 0 : index
    %c0_116 = arith.constant 0 : index
    %c0_117 = arith.constant 0 : index
    %117 = vector.load %arg13[%c0_115, %c0_116, %c0_117] : memref<4x4x8xf32, #tpu.memory_space<vmem>>, vector<1x4x8xf32>
    %118 = vector.shape_cast %117 : vector<1x4x8xf32> to vector<4x8xf32>
    %cst_118 = arith.constant dense<0.000000e+00> : vector<4x128xf32>
    %119 = tpu.matmul %118, %116, %cst_118 {dimension_numbers = #tpu.dot_dimension_numbers<[1], [0], [0], [1], [0, 0, 1, 1], [], []>} : vector<4x8xf32>, vector<8x128xf32>, vector<4x128xf32> -> vector<4x128xf32>
    %c0_119 = arith.constant 0 : index
    %c0_120 = arith.constant 0 : index
    %c0_121 = arith.constant 0 : index
    %120 = vector.load %arg14[%c0_119, %c0_120, %c0_121] : memref<4x128x128xf32, #tpu.memory_space<vmem>>, vector<1x128x128xf32>
    %121 = vector.shape_cast %120 : vector<1x128x128xf32> to vector<128x128xf32>
    %cst_122 = arith.constant dense<0.000000e+00> : vector<4x128xf32>
    %122 = tpu.matmul %119, %121, %cst_122 {dimension_numbers = #tpu.dot_dimension_numbers<[1], [0], [0], [1], [0, 0, 1, 1], [], []>} : vector<4x128xf32>, vector<128x128xf32>, vector<4x128xf32> -> vector<4x128xf32>
    %c1_123 = arith.constant 1 : index
    %c0_124 = arith.constant 0 : index
    %c0_125 = arith.constant 0 : index
    %123 = vector.load %arg13[%c1_123, %c0_124, %c0_125] : memref<4x4x8xf32, #tpu.memory_space<vmem>>, vector<1x4x8xf32>
    %124 = vector.shape_cast %123 : vector<1x4x8xf32> to vector<4x8xf32>
    %cst_126 = arith.constant dense<0.000000e+00> : vector<4x128xf32>
    %125 = tpu.matmul %124, %116, %cst_126 {dimension_numbers = #tpu.dot_dimension_numbers<[1], [0], [0], [1], [0, 0, 1, 1], [], []>} : vector<4x8xf32>, vector<8x128xf32>, vector<4x128xf32> -> vector<4x128xf32>
    %c1_127 = arith.constant 1 : index
    %c0_128 = arith.constant 0 : index
    %c0_129 = arith.constant 0 : index
    %126 = vector.load %arg14[%c1_127, %c0_128, %c0_129] : memref<4x128x128xf32, #tpu.memory_space<vmem>>, vector<1x128x128xf32>
    %127 = vector.shape_cast %126 : vector<1x128x128xf32> to vector<128x128xf32>
    %cst_130 = arith.constant dense<0.000000e+00> : vector<4x128xf32>
    %128 = tpu.matmul %125, %127, %cst_130 {dimension_numbers = #tpu.dot_dimension_numbers<[1], [0], [0], [1], [0, 0, 1, 1], [], []>} : vector<4x128xf32>, vector<128x128xf32>, vector<4x128xf32> -> vector<4x128xf32>
    %129 = arith.addf %122, %128 : vector<4x128xf32>
    %c2_131 = arith.constant 2 : index
    %c0_132 = arith.constant 0 : index
    %c0_133 = arith.constant 0 : index
    %130 = vector.load %arg13[%c2_131, %c0_132, %c0_133] : memref<4x4x8xf32, #tpu.memory_space<vmem>>, vector<1x4x8xf32>
    %131 = vector.shape_cast %130 : vector<1x4x8xf32> to vector<4x8xf32>
    %cst_134 = arith.constant dense<0.000000e+00> : vector<4x128xf32>
    %132 = tpu.matmul %131, %116, %cst_134 {dimension_numbers = #tpu.dot_dimension_numbers<[1], [0], [0], [1], [0, 0, 1, 1], [], []>} : vector<4x8xf32>, vector<8x128xf32>, vector<4x128xf32> -> vector<4x128xf32>
    %c2_135 = arith.constant 2 : index
    %c0_136 = arith.constant 0 : index
    %c0_137 = arith.constant 0 : index
    %133 = vector.load %arg14[%c2_135, %c0_136, %c0_137] : memref<4x128x128xf32, #tpu.memory_space<vmem>>, vector<1x128x128xf32>
    %134 = vector.shape_cast %133 : vector<1x128x128xf32> to vector<128x128xf32>
    %cst_138 = arith.constant dense<0.000000e+00> : vector<4x128xf32>
    %135 = tpu.matmul %132, %134, %cst_138 {dimension_numbers = #tpu.dot_dimension_numbers<[1], [0], [0], [1], [0, 0, 1, 1], [], []>} : vector<4x128xf32>, vector<128x128xf32>, vector<4x128xf32> -> vector<4x128xf32>
    %136 = arith.addf %129, %135 : vector<4x128xf32>
    %c3_139 = arith.constant 3 : index
    %c0_140 = arith.constant 0 : index
    %c0_141 = arith.constant 0 : index
    %137 = vector.load %arg13[%c3_139, %c0_140, %c0_141] : memref<4x4x8xf32, #tpu.memory_space<vmem>>, vector<1x4x8xf32>
    %138 = vector.shape_cast %137 : vector<1x4x8xf32> to vector<4x8xf32>
    %cst_142 = arith.constant dense<0.000000e+00> : vector<4x128xf32>
    %139 = tpu.matmul %138, %116, %cst_142 {dimension_numbers = #tpu.dot_dimension_numbers<[1], [0], [0], [1], [0, 0, 1, 1], [], []>} : vector<4x8xf32>, vector<8x128xf32>, vector<4x128xf32> -> vector<4x128xf32>
    %c3_143 = arith.constant 3 : index
    %c0_144 = arith.constant 0 : index
    %c0_145 = arith.constant 0 : index
    %140 = vector.load %arg14[%c3_143, %c0_144, %c0_145] : memref<4x128x128xf32, #tpu.memory_space<vmem>>, vector<1x128x128xf32>
    %141 = vector.shape_cast %140 : vector<1x128x128xf32> to vector<128x128xf32>
    %cst_146 = arith.constant dense<0.000000e+00> : vector<4x128xf32>
    %142 = tpu.matmul %139, %141, %cst_146 {dimension_numbers = #tpu.dot_dimension_numbers<[1], [0], [0], [1], [0, 0, 1, 1], [], []>} : vector<4x128xf32>, vector<128x128xf32>, vector<4x128xf32> -> vector<4x128xf32>
    %143 = arith.addf %136, %142 : vector<4x128xf32>
    %144 = vector.broadcast %110 : vector<1x128xf32> to vector<4x128xf32>
    %145 = arith.mulf %143, %144 : vector<4x128xf32>
    %146 = vector.broadcast %111 : vector<1x128xf32> to vector<4x128xf32>
    %147 = arith.addf %145, %146 : vector<4x128xf32>
    %c0_147 = arith.constant 0 : index
    %c0_148 = arith.constant 0 : index
    %148 = vector.load %arg19[%c0_147, %c0_148] : memref<1x64xf32, #tpu.memory_space<vmem>>, vector<1x64xf32>
    %c0_149 = arith.constant 0 : index
    %c0_150 = arith.constant 0 : index
    %149 = vector.load %arg20[%c0_149, %c0_150] : memref<1x64xf32, #tpu.memory_space<vmem>>, vector<1x64xf32>
    %cst_151 = arith.constant 0.000000e+00 : f32
    %150 = vector.broadcast %cst_151 : f32 to vector<4x128xf32>
    %151 = arith.cmpf oge, %147, %150 : vector<4x128xf32>
    %cst_152 = arith.constant 2.000000e-01 : f32
    %152 = vector.broadcast %cst_152 : f32 to vector<4x128xf32>
    %153 = arith.mulf %152, %147 : vector<4x128xf32>
    %154 = arith.select %151, %147, %153 : vector<4x128xi1>, vector<4x128xf32>
    %c0_153 = arith.constant 0 : index
    %c0_154 = arith.constant 0 : index
    %c0_155 = arith.constant 0 : index
    %155 = vector.load %arg17[%c0_153, %c0_154, %c0_155] : memref<4x2x4xf32, #tpu.memory_space<vmem>>, vector<1x2x4xf32>
    %156 = vector.shape_cast %155 : vector<1x2x4xf32> to vector<2x4xf32>
    %cst_156 = arith.constant dense<0.000000e+00> : vector<2x128xf32>
    %157 = tpu.matmul %156, %154, %cst_156 {dimension_numbers = #tpu.dot_dimension_numbers<[1], [0], [0], [1], [0, 0, 1, 1], [], []>} : vector<2x4xf32>, vector<4x128xf32>, vector<2x128xf32> -> vector<2x128xf32>
    %c0_157 = arith.constant 0 : index
    %c0_158 = arith.constant 0 : index
    %c0_159 = arith.constant 0 : index
    %158 = vector.load %arg18[%c0_157, %c0_158, %c0_159] : memref<4x128x64xf32, #tpu.memory_space<vmem>>, vector<1x128x64xf32>
    %159 = vector.shape_cast %158 : vector<1x128x64xf32> to vector<128x64xf32>
    %cst_160 = arith.constant dense<0.000000e+00> : vector<2x64xf32>
    %160 = tpu.matmul %157, %159, %cst_160 {dimension_numbers = #tpu.dot_dimension_numbers<[1], [0], [0], [1], [0, 0, 1, 1], [], []>} : vector<2x128xf32>, vector<128x64xf32>, vector<2x64xf32> -> vector<2x64xf32>
    %c1_161 = arith.constant 1 : index
    %c0_162 = arith.constant 0 : index
    %c0_163 = arith.constant 0 : index
    %161 = vector.load %arg17[%c1_161, %c0_162, %c0_163] : memref<4x2x4xf32, #tpu.memory_space<vmem>>, vector<1x2x4xf32>
    %162 = vector.shape_cast %161 : vector<1x2x4xf32> to vector<2x4xf32>
    %cst_164 = arith.constant dense<0.000000e+00> : vector<2x128xf32>
    %163 = tpu.matmul %162, %154, %cst_164 {dimension_numbers = #tpu.dot_dimension_numbers<[1], [0], [0], [1], [0, 0, 1, 1], [], []>} : vector<2x4xf32>, vector<4x128xf32>, vector<2x128xf32> -> vector<2x128xf32>
    %c1_165 = arith.constant 1 : index
    %c0_166 = arith.constant 0 : index
    %c0_167 = arith.constant 0 : index
    %164 = vector.load %arg18[%c1_165, %c0_166, %c0_167] : memref<4x128x64xf32, #tpu.memory_space<vmem>>, vector<1x128x64xf32>
    %165 = vector.shape_cast %164 : vector<1x128x64xf32> to vector<128x64xf32>
    %cst_168 = arith.constant dense<0.000000e+00> : vector<2x64xf32>
    %166 = tpu.matmul %163, %165, %cst_168 {dimension_numbers = #tpu.dot_dimension_numbers<[1], [0], [0], [1], [0, 0, 1, 1], [], []>} : vector<2x128xf32>, vector<128x64xf32>, vector<2x64xf32> -> vector<2x64xf32>
    %167 = arith.addf %160, %166 : vector<2x64xf32>
    %c2_169 = arith.constant 2 : index
    %c0_170 = arith.constant 0 : index
    %c0_171 = arith.constant 0 : index
    %168 = vector.load %arg17[%c2_169, %c0_170, %c0_171] : memref<4x2x4xf32, #tpu.memory_space<vmem>>, vector<1x2x4xf32>
    %169 = vector.shape_cast %168 : vector<1x2x4xf32> to vector<2x4xf32>
    %cst_172 = arith.constant dense<0.000000e+00> : vector<2x128xf32>
    %170 = tpu.matmul %169, %154, %cst_172 {dimension_numbers = #tpu.dot_dimension_numbers<[1], [0], [0], [1], [0, 0, 1, 1], [], []>} : vector<2x4xf32>, vector<4x128xf32>, vector<2x128xf32> -> vector<2x128xf32>
    %c2_173 = arith.constant 2 : index
    %c0_174 = arith.constant 0 : index
    %c0_175 = arith.constant 0 : index
    %171 = vector.load %arg18[%c2_173, %c0_174, %c0_175] : memref<4x128x64xf32, #tpu.memory_space<vmem>>, vector<1x128x64xf32>
    %172 = vector.shape_cast %171 : vector<1x128x64xf32> to vector<128x64xf32>
    %cst_176 = arith.constant dense<0.000000e+00> : vector<2x64xf32>
    %173 = tpu.matmul %170, %172, %cst_176 {dimension_numbers = #tpu.dot_dimension_numbers<[1], [0], [0], [1], [0, 0, 1, 1], [], []>} : vector<2x128xf32>, vector<128x64xf32>, vector<2x64xf32> -> vector<2x64xf32>
    %174 = arith.addf %167, %173 : vector<2x64xf32>
    %c3_177 = arith.constant 3 : index
    %c0_178 = arith.constant 0 : index
    %c0_179 = arith.constant 0 : index
    %175 = vector.load %arg17[%c3_177, %c0_178, %c0_179] : memref<4x2x4xf32, #tpu.memory_space<vmem>>, vector<1x2x4xf32>
    %176 = vector.shape_cast %175 : vector<1x2x4xf32> to vector<2x4xf32>
    %cst_180 = arith.constant dense<0.000000e+00> : vector<2x128xf32>
    %177 = tpu.matmul %176, %154, %cst_180 {dimension_numbers = #tpu.dot_dimension_numbers<[1], [0], [0], [1], [0, 0, 1, 1], [], []>} : vector<2x4xf32>, vector<4x128xf32>, vector<2x128xf32> -> vector<2x128xf32>
    %c3_181 = arith.constant 3 : index
    %c0_182 = arith.constant 0 : index
    %c0_183 = arith.constant 0 : index
    %178 = vector.load %arg18[%c3_181, %c0_182, %c0_183] : memref<4x128x64xf32, #tpu.memory_space<vmem>>, vector<1x128x64xf32>
    %179 = vector.shape_cast %178 : vector<1x128x64xf32> to vector<128x64xf32>
    %cst_184 = arith.constant dense<0.000000e+00> : vector<2x64xf32>
    %180 = tpu.matmul %177, %179, %cst_184 {dimension_numbers = #tpu.dot_dimension_numbers<[1], [0], [0], [1], [0, 0, 1, 1], [], []>} : vector<2x128xf32>, vector<128x64xf32>, vector<2x64xf32> -> vector<2x64xf32>
    %181 = arith.addf %174, %180 : vector<2x64xf32>
    %182 = vector.broadcast %148 : vector<1x64xf32> to vector<2x64xf32>
    %183 = arith.mulf %181, %182 : vector<2x64xf32>
    %184 = vector.broadcast %149 : vector<1x64xf32> to vector<2x64xf32>
    %185 = arith.addf %183, %184 : vector<2x64xf32>
    %c0_185 = arith.constant 0 : index
    %c0_186 = arith.constant 0 : index
    %186 = vector.load %arg24[%c0_185, %c0_186] : memref<1x128xf32, #tpu.memory_space<vmem>>, vector<1x128xf32>
    %c0_187 = arith.constant 0 : index
    %c0_188 = arith.constant 0 : index
    %187 = vector.load %arg25[%c0_187, %c0_188] : memref<1x128xf32, #tpu.memory_space<vmem>>, vector<1x128xf32>
    %cst_189 = arith.constant 0.000000e+00 : f32
    %188 = vector.broadcast %cst_189 : f32 to vector<2x64xf32>
    %189 = arith.maximumf %185, %188 : vector<2x64xf32>
    %c0_190 = arith.constant 0 : index
    %c0_191 = arith.constant 0 : index
    %c0_192 = arith.constant 0 : index
    %190 = vector.load %arg21[%c0_190, %c0_191, %c0_192] : memref<4x2x2xf32, #tpu.memory_space<vmem>>, vector<1x2x2xf32>
    %191 = vector.shape_cast %190 : vector<1x2x2xf32> to vector<2x2xf32>
    %cst_193 = arith.constant dense<0.000000e+00> : vector<2x64xf32>
    %192 = tpu.matmul %191, %189, %cst_193 {dimension_numbers = #tpu.dot_dimension_numbers<[1], [0], [0], [1], [0, 0, 1, 1], [], []>} : vector<2x2xf32>, vector<2x64xf32>, vector<2x64xf32> -> vector<2x64xf32>
    %c0_194 = arith.constant 0 : index
    %c0_195 = arith.constant 0 : index
    %c0_196 = arith.constant 0 : index
    %193 = vector.load %arg22[%c0_194, %c0_195, %c0_196] : memref<4x64x128xf32, #tpu.memory_space<vmem>>, vector<1x64x128xf32>
    %194 = vector.shape_cast %193 : vector<1x64x128xf32> to vector<64x128xf32>
    %cst_197 = arith.constant dense<0.000000e+00> : vector<2x128xf32>
    %195 = tpu.matmul %192, %194, %cst_197 {dimension_numbers = #tpu.dot_dimension_numbers<[1], [0], [0], [1], [0, 0, 1, 1], [], []>} : vector<2x64xf32>, vector<64x128xf32>, vector<2x128xf32> -> vector<2x128xf32>
    %c1_198 = arith.constant 1 : index
    %c0_199 = arith.constant 0 : index
    %c0_200 = arith.constant 0 : index
    %196 = vector.load %arg21[%c1_198, %c0_199, %c0_200] : memref<4x2x2xf32, #tpu.memory_space<vmem>>, vector<1x2x2xf32>
    %197 = vector.shape_cast %196 : vector<1x2x2xf32> to vector<2x2xf32>
    %cst_201 = arith.constant dense<0.000000e+00> : vector<2x64xf32>
    %198 = tpu.matmul %197, %189, %cst_201 {dimension_numbers = #tpu.dot_dimension_numbers<[1], [0], [0], [1], [0, 0, 1, 1], [], []>} : vector<2x2xf32>, vector<2x64xf32>, vector<2x64xf32> -> vector<2x64xf32>
    %c1_202 = arith.constant 1 : index
    %c0_203 = arith.constant 0 : index
    %c0_204 = arith.constant 0 : index
    %199 = vector.load %arg22[%c1_202, %c0_203, %c0_204] : memref<4x64x128xf32, #tpu.memory_space<vmem>>, vector<1x64x128xf32>
    %200 = vector.shape_cast %199 : vector<1x64x128xf32> to vector<64x128xf32>
    %cst_205 = arith.constant dense<0.000000e+00> : vector<2x128xf32>
    %201 = tpu.matmul %198, %200, %cst_205 {dimension_numbers = #tpu.dot_dimension_numbers<[1], [0], [0], [1], [0, 0, 1, 1], [], []>} : vector<2x64xf32>, vector<64x128xf32>, vector<2x128xf32> -> vector<2x128xf32>
    %202 = arith.addf %195, %201 : vector<2x128xf32>
    %c2_206 = arith.constant 2 : index
    %c0_207 = arith.constant 0 : index
    %c0_208 = arith.constant 0 : index
    %203 = vector.load %arg21[%c2_206, %c0_207, %c0_208] : memref<4x2x2xf32, #tpu.memory_space<vmem>>, vector<1x2x2xf32>
    %204 = vector.shape_cast %203 : vector<1x2x2xf32> to vector<2x2xf32>
    %cst_209 = arith.constant dense<0.000000e+00> : vector<2x64xf32>
    %205 = tpu.matmul %204, %189, %cst_209 {dimension_numbers = #tpu.dot_dimension_numbers<[1], [0], [0], [1], [0, 0, 1, 1], [], []>} : vector<2x2xf32>, vector<2x64xf32>, vector<2x64xf32> -> vector<2x64xf32>
    %c2_210 = arith.constant 2 : index
    %c0_211 = arith.constant 0 : index
    %c0_212 = arith.constant 0 : index
    %206 = vector.load %arg22[%c2_210, %c0_211, %c0_212] : memref<4x64x128xf32, #tpu.memory_space<vmem>>, vector<1x64x128xf32>
    %207 = vector.shape_cast %206 : vector<1x64x128xf32> to vector<64x128xf32>
    %cst_213 = arith.constant dense<0.000000e+00> : vector<2x128xf32>
    %208 = tpu.matmul %205, %207, %cst_213 {dimension_numbers = #tpu.dot_dimension_numbers<[1], [0], [0], [1], [0, 0, 1, 1], [], []>} : vector<2x64xf32>, vector<64x128xf32>, vector<2x128xf32> -> vector<2x128xf32>
    %c3_214 = arith.constant 3 : index
    %c0_215 = arith.constant 0 : index
    %c0_216 = arith.constant 0 : index
    %209 = vector.load %arg21[%c3_214, %c0_215, %c0_216] : memref<4x2x2xf32, #tpu.memory_space<vmem>>, vector<1x2x2xf32>
    %210 = vector.shape_cast %209 : vector<1x2x2xf32> to vector<2x2xf32>
    %cst_217 = arith.constant dense<0.000000e+00> : vector<2x64xf32>
    %211 = tpu.matmul %210, %189, %cst_217 {dimension_numbers = #tpu.dot_dimension_numbers<[1], [0], [0], [1], [0, 0, 1, 1], [], []>} : vector<2x2xf32>, vector<2x64xf32>, vector<2x64xf32> -> vector<2x64xf32>
    %c3_218 = arith.constant 3 : index
    %c0_219 = arith.constant 0 : index
    %c0_220 = arith.constant 0 : index
    %212 = vector.load %arg22[%c3_218, %c0_219, %c0_220] : memref<4x64x128xf32, #tpu.memory_space<vmem>>, vector<1x64x128xf32>
    %213 = vector.shape_cast %212 : vector<1x64x128xf32> to vector<64x128xf32>
    %cst_221 = arith.constant dense<0.000000e+00> : vector<2x128xf32>
    %214 = tpu.matmul %211, %213, %cst_221 {dimension_numbers = #tpu.dot_dimension_numbers<[1], [0], [0], [1], [0, 0, 1, 1], [], []>} : vector<2x64xf32>, vector<64x128xf32>, vector<2x128xf32> -> vector<2x128xf32>
    %215 = arith.addf %208, %214 : vector<2x128xf32>
    %c0_222 = arith.constant 0 : index
    %c0_223 = arith.constant 0 : index
    %c0_224 = arith.constant 0 : index
    %216 = vector.load %arg23[%c0_222, %c0_223, %c0_224] : memref<2x4x2xf32, #tpu.memory_space<vmem>>, vector<1x4x2xf32>
    %217 = vector.shape_cast %216 : vector<1x4x2xf32> to vector<4x2xf32>
    %cst_225 = arith.constant dense<0.000000e+00> : vector<4x128xf32>
    %218 = tpu.matmul %217, %202, %cst_225 {dimension_numbers = #tpu.dot_dimension_numbers<[1], [0], [0], [1], [0, 0, 1, 1], [], []>} : vector<4x2xf32>, vector<2x128xf32>, vector<4x128xf32> -> vector<4x128xf32>
    %c1_226 = arith.constant 1 : index
    %c0_227 = arith.constant 0 : index
    %c0_228 = arith.constant 0 : index
    %219 = vector.load %arg23[%c1_226, %c0_227, %c0_228] : memref<2x4x2xf32, #tpu.memory_space<vmem>>, vector<1x4x2xf32>
    %220 = vector.shape_cast %219 : vector<1x4x2xf32> to vector<4x2xf32>
    %cst_229 = arith.constant dense<0.000000e+00> : vector<4x128xf32>
    %221 = tpu.matmul %220, %215, %cst_229 {dimension_numbers = #tpu.dot_dimension_numbers<[1], [0], [0], [1], [0, 0, 1, 1], [], []>} : vector<4x2xf32>, vector<2x128xf32>, vector<4x128xf32> -> vector<4x128xf32>
    %222 = arith.addf %218, %221 : vector<4x128xf32>
    %223 = vector.broadcast %186 : vector<1x128xf32> to vector<4x128xf32>
    %224 = arith.mulf %222, %223 : vector<4x128xf32>
    %225 = vector.broadcast %187 : vector<1x128xf32> to vector<4x128xf32>
    %226 = arith.addf %224, %225 : vector<4x128xf32>
    %c0_230 = arith.constant 0 : index
    %c0_231 = arith.constant 0 : index
    %227 = vector.load %arg30[%c0_230, %c0_231] : memref<1x128xf32, #tpu.memory_space<vmem>>, vector<1x128xf32>
    %c0_232 = arith.constant 0 : index
    %c0_233 = arith.constant 0 : index
    %228 = vector.load %arg31[%c0_232, %c0_233] : memref<1x128xf32, #tpu.memory_space<vmem>>, vector<1x128xf32>
    %cst_234 = arith.constant 0.000000e+00 : f32
    %229 = vector.broadcast %cst_234 : f32 to vector<4x128xf32>
    %230 = arith.maximumf %226, %229 : vector<4x128xf32>
    %cst_235 = arith.constant 0.000000e+00 : f32
    %231 = vector.broadcast %cst_235 : f32 to vector<4x128xf32>
    %232 = arith.maximumf %147, %231 : vector<4x128xf32>
    %c0_236 = arith.constant 0 : index
    %c0_237 = arith.constant 0 : index
    %c0_238 = arith.constant 0 : index
    %233 = vector.load %arg26[%c0_236, %c0_237, %c0_238] : memref<4x4x4xf32, #tpu.memory_space<vmem>>, vector<1x4x4xf32>
    %234 = vector.shape_cast %233 : vector<1x4x4xf32> to vector<4x4xf32>
    %cst_239 = arith.constant dense<0.000000e+00> : vector<4x128xf32>
    %235 = tpu.matmul %234, %230, %cst_239 {dimension_numbers = #tpu.dot_dimension_numbers<[1], [0], [0], [1], [0, 0, 1, 1], [], []>} : vector<4x4xf32>, vector<4x128xf32>, vector<4x128xf32> -> vector<4x128xf32>
    %c0_240 = arith.constant 0 : index
    %c0_241 = arith.constant 0 : index
    %c0_242 = arith.constant 0 : index
    %236 = vector.load %arg28[%c0_240, %c0_241, %c0_242] : memref<4x128x128xf32, #tpu.memory_space<vmem>>, vector<1x128x128xf32>
    %237 = vector.shape_cast %236 : vector<1x128x128xf32> to vector<128x128xf32>
    %cst_243 = arith.constant dense<0.000000e+00> : vector<4x128xf32>
    %238 = tpu.matmul %235, %237, %cst_243 {dimension_numbers = #tpu.dot_dimension_numbers<[1], [0], [0], [1], [0, 0, 1, 1], [], []>} : vector<4x128xf32>, vector<128x128xf32>, vector<4x128xf32> -> vector<4x128xf32>
    %cst_244 = arith.constant dense<0.000000e+00> : vector<4x128xf32>
    %239 = tpu.matmul %234, %232, %cst_244 {dimension_numbers = #tpu.dot_dimension_numbers<[1], [0], [0], [1], [0, 0, 1, 1], [], []>} : vector<4x4xf32>, vector<4x128xf32>, vector<4x128xf32> -> vector<4x128xf32>
    %c0_245 = arith.constant 0 : index
    %c0_246 = arith.constant 0 : index
    %c0_247 = arith.constant 0 : index
    %240 = vector.load %arg27[%c0_245, %c0_246, %c0_247] : memref<4x128x128xf32, #tpu.memory_space<vmem>>, vector<1x128x128xf32>
    %241 = vector.shape_cast %240 : vector<1x128x128xf32> to vector<128x128xf32>
    %cst_248 = arith.constant dense<0.000000e+00> : vector<4x128xf32>
    %242 = tpu.matmul %239, %241, %cst_248 {dimension_numbers = #tpu.dot_dimension_numbers<[1], [0], [0], [1], [0, 0, 1, 1], [], []>} : vector<4x128xf32>, vector<128x128xf32>, vector<4x128xf32> -> vector<4x128xf32>
    %243 = arith.addf %238, %242 : vector<4x128xf32>
    %c1_249 = arith.constant 1 : index
    %c0_250 = arith.constant 0 : index
    %c0_251 = arith.constant 0 : index
    %244 = vector.load %arg26[%c1_249, %c0_250, %c0_251] : memref<4x4x4xf32, #tpu.memory_space<vmem>>, vector<1x4x4xf32>
    %245 = vector.shape_cast %244 : vector<1x4x4xf32> to vector<4x4xf32>
    %cst_252 = arith.constant dense<0.000000e+00> : vector<4x128xf32>
    %246 = tpu.matmul %245, %230, %cst_252 {dimension_numbers = #tpu.dot_dimension_numbers<[1], [0], [0], [1], [0, 0, 1, 1], [], []>} : vector<4x4xf32>, vector<4x128xf32>, vector<4x128xf32> -> vector<4x128xf32>
    %c1_253 = arith.constant 1 : index
    %c0_254 = arith.constant 0 : index
    %c0_255 = arith.constant 0 : index
    %247 = vector.load %arg28[%c1_253, %c0_254, %c0_255] : memref<4x128x128xf32, #tpu.memory_space<vmem>>, vector<1x128x128xf32>
    %248 = vector.shape_cast %247 : vector<1x128x128xf32> to vector<128x128xf32>
    %cst_256 = arith.constant dense<0.000000e+00> : vector<4x128xf32>
    %249 = tpu.matmul %246, %248, %cst_256 {dimension_numbers = #tpu.dot_dimension_numbers<[1], [0], [0], [1], [0, 0, 1, 1], [], []>} : vector<4x128xf32>, vector<128x128xf32>, vector<4x128xf32> -> vector<4x128xf32>
    %cst_257 = arith.constant dense<0.000000e+00> : vector<4x128xf32>
    %250 = tpu.matmul %245, %232, %cst_257 {dimension_numbers = #tpu.dot_dimension_numbers<[1], [0], [0], [1], [0, 0, 1, 1], [], []>} : vector<4x4xf32>, vector<4x128xf32>, vector<4x128xf32> -> vector<4x128xf32>
    %c1_258 = arith.constant 1 : index
    %c0_259 = arith.constant 0 : index
    %c0_260 = arith.constant 0 : index
    %251 = vector.load %arg27[%c1_258, %c0_259, %c0_260] : memref<4x128x128xf32, #tpu.memory_space<vmem>>, vector<1x128x128xf32>
    %252 = vector.shape_cast %251 : vector<1x128x128xf32> to vector<128x128xf32>
    %cst_261 = arith.constant dense<0.000000e+00> : vector<4x128xf32>
    %253 = tpu.matmul %250, %252, %cst_261 {dimension_numbers = #tpu.dot_dimension_numbers<[1], [0], [0], [1], [0, 0, 1, 1], [], []>} : vector<4x128xf32>, vector<128x128xf32>, vector<4x128xf32> -> vector<4x128xf32>
    %254 = arith.addf %249, %253 : vector<4x128xf32>
    %255 = arith.addf %243, %254 : vector<4x128xf32>
    %c2_262 = arith.constant 2 : index
    %c0_263 = arith.constant 0 : index
    %c0_264 = arith.constant 0 : index
    %256 = vector.load %arg26[%c2_262, %c0_263, %c0_264] : memref<4x4x4xf32, #tpu.memory_space<vmem>>, vector<1x4x4xf32>
    %257 = vector.shape_cast %256 : vector<1x4x4xf32> to vector<4x4xf32>
    %cst_265 = arith.constant dense<0.000000e+00> : vector<4x128xf32>
    %258 = tpu.matmul %257, %230, %cst_265 {dimension_numbers = #tpu.dot_dimension_numbers<[1], [0], [0], [1], [0, 0, 1, 1], [], []>} : vector<4x4xf32>, vector<4x128xf32>, vector<4x128xf32> -> vector<4x128xf32>
    %c2_266 = arith.constant 2 : index
    %c0_267 = arith.constant 0 : index
    %c0_268 = arith.constant 0 : index
    %259 = vector.load %arg28[%c2_266, %c0_267, %c0_268] : memref<4x128x128xf32, #tpu.memory_space<vmem>>, vector<1x128x128xf32>
    %260 = vector.shape_cast %259 : vector<1x128x128xf32> to vector<128x128xf32>
    %cst_269 = arith.constant dense<0.000000e+00> : vector<4x128xf32>
    %261 = tpu.matmul %258, %260, %cst_269 {dimension_numbers = #tpu.dot_dimension_numbers<[1], [0], [0], [1], [0, 0, 1, 1], [], []>} : vector<4x128xf32>, vector<128x128xf32>, vector<4x128xf32> -> vector<4x128xf32>
    %cst_270 = arith.constant dense<0.000000e+00> : vector<4x128xf32>
    %262 = tpu.matmul %257, %232, %cst_270 {dimension_numbers = #tpu.dot_dimension_numbers<[1], [0], [0], [1], [0, 0, 1, 1], [], []>} : vector<4x4xf32>, vector<4x128xf32>, vector<4x128xf32> -> vector<4x128xf32>
    %c2_271 = arith.constant 2 : index
    %c0_272 = arith.constant 0 : index
    %c0_273 = arith.constant 0 : index
    %263 = vector.load %arg27[%c2_271, %c0_272, %c0_273] : memref<4x128x128xf32, #tpu.memory_space<vmem>>, vector<1x128x128xf32>
    %264 = vector.shape_cast %263 : vector<1x128x128xf32> to vector<128x128xf32>
    %cst_274 = arith.constant dense<0.000000e+00> : vector<4x128xf32>
    %265 = tpu.matmul %262, %264, %cst_274 {dimension_numbers = #tpu.dot_dimension_numbers<[1], [0], [0], [1], [0, 0, 1, 1], [], []>} : vector<4x128xf32>, vector<128x128xf32>, vector<4x128xf32> -> vector<4x128xf32>
    %266 = arith.addf %261, %265 : vector<4x128xf32>
    %c3_275 = arith.constant 3 : index
    %c0_276 = arith.constant 0 : index
    %c0_277 = arith.constant 0 : index
    %267 = vector.load %arg26[%c3_275, %c0_276, %c0_277] : memref<4x4x4xf32, #tpu.memory_space<vmem>>, vector<1x4x4xf32>
    %268 = vector.shape_cast %267 : vector<1x4x4xf32> to vector<4x4xf32>
    %cst_278 = arith.constant dense<0.000000e+00> : vector<4x128xf32>
    %269 = tpu.matmul %268, %230, %cst_278 {dimension_numbers = #tpu.dot_dimension_numbers<[1], [0], [0], [1], [0, 0, 1, 1], [], []>} : vector<4x4xf32>, vector<4x128xf32>, vector<4x128xf32> -> vector<4x128xf32>
    %c3_279 = arith.constant 3 : index
    %c0_280 = arith.constant 0 : index
    %c0_281 = arith.constant 0 : index
    %270 = vector.load %arg28[%c3_279, %c0_280, %c0_281] : memref<4x128x128xf32, #tpu.memory_space<vmem>>, vector<1x128x128xf32>
    %271 = vector.shape_cast %270 : vector<1x128x128xf32> to vector<128x128xf32>
    %cst_282 = arith.constant dense<0.000000e+00> : vector<4x128xf32>
    %272 = tpu.matmul %269, %271, %cst_282 {dimension_numbers = #tpu.dot_dimension_numbers<[1], [0], [0], [1], [0, 0, 1, 1], [], []>} : vector<4x128xf32>, vector<128x128xf32>, vector<4x128xf32> -> vector<4x128xf32>
    %cst_283 = arith.constant dense<0.000000e+00> : vector<4x128xf32>
    %273 = tpu.matmul %268, %232, %cst_283 {dimension_numbers = #tpu.dot_dimension_numbers<[1], [0], [0], [1], [0, 0, 1, 1], [], []>} : vector<4x4xf32>, vector<4x128xf32>, vector<4x128xf32> -> vector<4x128xf32>
    %c3_284 = arith.constant 3 : index
    %c0_285 = arith.constant 0 : index
    %c0_286 = arith.constant 0 : index
    %274 = vector.load %arg27[%c3_284, %c0_285, %c0_286] : memref<4x128x128xf32, #tpu.memory_space<vmem>>, vector<1x128x128xf32>
    %275 = vector.shape_cast %274 : vector<1x128x128xf32> to vector<128x128xf32>
    %cst_287 = arith.constant dense<0.000000e+00> : vector<4x128xf32>
    %276 = tpu.matmul %273, %275, %cst_287 {dimension_numbers = #tpu.dot_dimension_numbers<[1], [0], [0], [1], [0, 0, 1, 1], [], []>} : vector<4x128xf32>, vector<128x128xf32>, vector<4x128xf32> -> vector<4x128xf32>
    %277 = arith.addf %272, %276 : vector<4x128xf32>
    %278 = arith.addf %266, %277 : vector<4x128xf32>
    %c0_288 = arith.constant 0 : index
    %c0_289 = arith.constant 0 : index
    %c0_290 = arith.constant 0 : index
    %279 = vector.load %arg29[%c0_288, %c0_289, %c0_290] : memref<2x8x4xf32, #tpu.memory_space<vmem>>, vector<1x8x4xf32>
    %280 = vector.shape_cast %279 : vector<1x8x4xf32> to vector<8x4xf32>
    %cst_291 = arith.constant dense<0.000000e+00> : vector<8x128xf32>
    %281 = tpu.matmul %280, %255, %cst_291 {dimension_numbers = #tpu.dot_dimension_numbers<[1], [0], [0], [1], [0, 0, 1, 1], [], []>} : vector<8x4xf32>, vector<4x128xf32>, vector<8x128xf32> -> vector<8x128xf32>
    %c1_292 = arith.constant 1 : index
    %c0_293 = arith.constant 0 : index
    %c0_294 = arith.constant 0 : index
    %282 = vector.load %arg29[%c1_292, %c0_293, %c0_294] : memref<2x8x4xf32, #tpu.memory_space<vmem>>, vector<1x8x4xf32>
    %283 = vector.shape_cast %282 : vector<1x8x4xf32> to vector<8x4xf32>
    %cst_295 = arith.constant dense<0.000000e+00> : vector<8x128xf32>
    %284 = tpu.matmul %283, %278, %cst_295 {dimension_numbers = #tpu.dot_dimension_numbers<[1], [0], [0], [1], [0, 0, 1, 1], [], []>} : vector<8x4xf32>, vector<4x128xf32>, vector<8x128xf32> -> vector<8x128xf32>
    %285 = arith.addf %281, %284 : vector<8x128xf32>
    %286 = vector.broadcast %227 : vector<1x128xf32> to vector<8x128xf32>
    %287 = arith.mulf %285, %286 : vector<8x128xf32>
    %288 = vector.broadcast %228 : vector<1x128xf32> to vector<8x128xf32>
    %289 = arith.addf %287, %288 : vector<8x128xf32>
    %c0_296 = arith.constant 0 : index
    %c0_297 = arith.constant 0 : index
    %290 = vector.load %arg36[%c0_296, %c0_297] : memref<1x128xf32, #tpu.memory_space<vmem>>, vector<1x128xf32>
    %c0_298 = arith.constant 0 : index
    %c0_299 = arith.constant 0 : index
    %291 = vector.load %arg37[%c0_298, %c0_299] : memref<1x128xf32, #tpu.memory_space<vmem>>, vector<1x128xf32>
    %cst_300 = arith.constant 0.000000e+00 : f32
    %292 = vector.broadcast %cst_300 : f32 to vector<8x128xf32>
    %293 = arith.maximumf %289, %292 : vector<8x128xf32>
    %cst_301 = arith.constant 0.000000e+00 : f32
    %294 = vector.broadcast %cst_301 : f32 to vector<8x128xf32>
    %295 = arith.maximumf %109, %294 : vector<8x128xf32>
    %c0_302 = arith.constant 0 : index
    %c0_303 = arith.constant 0 : index
    %c0_304 = arith.constant 0 : index
    %296 = vector.load %arg32[%c0_302, %c0_303, %c0_304] : memref<4x8x8xf32, #tpu.memory_space<vmem>>, vector<1x8x8xf32>
    %297 = vector.shape_cast %296 : vector<1x8x8xf32> to vector<8x8xf32>
    %cst_305 = arith.constant dense<0.000000e+00> : vector<8x128xf32>
    %298 = tpu.matmul %297, %293, %cst_305 {dimension_numbers = #tpu.dot_dimension_numbers<[1], [0], [0], [1], [0, 0, 1, 1], [], []>} : vector<8x8xf32>, vector<8x128xf32>, vector<8x128xf32> -> vector<8x128xf32>
    %c0_306 = arith.constant 0 : index
    %c0_307 = arith.constant 0 : index
    %c0_308 = arith.constant 0 : index
    %299 = vector.load %arg34[%c0_306, %c0_307, %c0_308] : memref<4x128x128xf32, #tpu.memory_space<vmem>>, vector<1x128x128xf32>
    %300 = vector.shape_cast %299 : vector<1x128x128xf32> to vector<128x128xf32>
    %cst_309 = arith.constant dense<0.000000e+00> : vector<8x128xf32>
    %301 = tpu.matmul %298, %300, %cst_309 {dimension_numbers = #tpu.dot_dimension_numbers<[1], [0], [0], [1], [0, 0, 1, 1], [], []>} : vector<8x128xf32>, vector<128x128xf32>, vector<8x128xf32> -> vector<8x128xf32>
    %cst_310 = arith.constant dense<0.000000e+00> : vector<8x128xf32>
    %302 = tpu.matmul %297, %295, %cst_310 {dimension_numbers = #tpu.dot_dimension_numbers<[1], [0], [0], [1], [0, 0, 1, 1], [], []>} : vector<8x8xf32>, vector<8x128xf32>, vector<8x128xf32> -> vector<8x128xf32>
    %c0_311 = arith.constant 0 : index
    %c0_312 = arith.constant 0 : index
    %c0_313 = arith.constant 0 : index
    %303 = vector.load %arg33[%c0_311, %c0_312, %c0_313] : memref<4x128x128xf32, #tpu.memory_space<vmem>>, vector<1x128x128xf32>
    %304 = vector.shape_cast %303 : vector<1x128x128xf32> to vector<128x128xf32>
    %cst_314 = arith.constant dense<0.000000e+00> : vector<8x128xf32>
    %305 = tpu.matmul %302, %304, %cst_314 {dimension_numbers = #tpu.dot_dimension_numbers<[1], [0], [0], [1], [0, 0, 1, 1], [], []>} : vector<8x128xf32>, vector<128x128xf32>, vector<8x128xf32> -> vector<8x128xf32>
    %306 = arith.addf %301, %305 : vector<8x128xf32>
    %c1_315 = arith.constant 1 : index
    %c0_316 = arith.constant 0 : index
    %c0_317 = arith.constant 0 : index
    %307 = vector.load %arg32[%c1_315, %c0_316, %c0_317] : memref<4x8x8xf32, #tpu.memory_space<vmem>>, vector<1x8x8xf32>
    %308 = vector.shape_cast %307 : vector<1x8x8xf32> to vector<8x8xf32>
    %cst_318 = arith.constant dense<0.000000e+00> : vector<8x128xf32>
    %309 = tpu.matmul %308, %293, %cst_318 {dimension_numbers = #tpu.dot_dimension_numbers<[1], [0], [0], [1], [0, 0, 1, 1], [], []>} : vector<8x8xf32>, vector<8x128xf32>, vector<8x128xf32> -> vector<8x128xf32>
    %c1_319 = arith.constant 1 : index
    %c0_320 = arith.constant 0 : index
    %c0_321 = arith.constant 0 : index
    %310 = vector.load %arg34[%c1_319, %c0_320, %c0_321] : memref<4x128x128xf32, #tpu.memory_space<vmem>>, vector<1x128x128xf32>
    %311 = vector.shape_cast %310 : vector<1x128x128xf32> to vector<128x128xf32>
    %cst_322 = arith.constant dense<0.000000e+00> : vector<8x128xf32>
    %312 = tpu.matmul %309, %311, %cst_322 {dimension_numbers = #tpu.dot_dimension_numbers<[1], [0], [0], [1], [0, 0, 1, 1], [], []>} : vector<8x128xf32>, vector<128x128xf32>, vector<8x128xf32> -> vector<8x128xf32>
    %cst_323 = arith.constant dense<0.000000e+00> : vector<8x128xf32>
    %313 = tpu.matmul %308, %295, %cst_323 {dimension_numbers = #tpu.dot_dimension_numbers<[1], [0], [0], [1], [0, 0, 1, 1], [], []>} : vector<8x8xf32>, vector<8x128xf32>, vector<8x128xf32> -> vector<8x128xf32>
    %c1_324 = arith.constant 1 : index
    %c0_325 = arith.constant 0 : index
    %c0_326 = arith.constant 0 : index
    %314 = vector.load %arg33[%c1_324, %c0_325, %c0_326] : memref<4x128x128xf32, #tpu.memory_space<vmem>>, vector<1x128x128xf32>
    %315 = vector.shape_cast %314 : vector<1x128x128xf32> to vector<128x128xf32>
    %cst_327 = arith.constant dense<0.000000e+00> : vector<8x128xf32>
    %316 = tpu.matmul %313, %315, %cst_327 {dimension_numbers = #tpu.dot_dimension_numbers<[1], [0], [0], [1], [0, 0, 1, 1], [], []>} : vector<8x128xf32>, vector<128x128xf32>, vector<8x128xf32> -> vector<8x128xf32>
    %317 = arith.addf %312, %316 : vector<8x128xf32>
    %318 = arith.addf %306, %317 : vector<8x128xf32>
    %c2_328 = arith.constant 2 : index
    %c0_329 = arith.constant 0 : index
    %c0_330 = arith.constant 0 : index
    %319 = vector.load %arg32[%c2_328, %c0_329, %c0_330] : memref<4x8x8xf32, #tpu.memory_space<vmem>>, vector<1x8x8xf32>
    %320 = vector.shape_cast %319 : vector<1x8x8xf32> to vector<8x8xf32>
    %cst_331 = arith.constant dense<0.000000e+00> : vector<8x128xf32>
    %321 = tpu.matmul %320, %293, %cst_331 {dimension_numbers = #tpu.dot_dimension_numbers<[1], [0], [0], [1], [0, 0, 1, 1], [], []>} : vector<8x8xf32>, vector<8x128xf32>, vector<8x128xf32> -> vector<8x128xf32>
    %c2_332 = arith.constant 2 : index
    %c0_333 = arith.constant 0 : index
    %c0_334 = arith.constant 0 : index
    %322 = vector.load %arg34[%c2_332, %c0_333, %c0_334] : memref<4x128x128xf32, #tpu.memory_space<vmem>>, vector<1x128x128xf32>
    %323 = vector.shape_cast %322 : vector<1x128x128xf32> to vector<128x128xf32>
    %cst_335 = arith.constant dense<0.000000e+00> : vector<8x128xf32>
    %324 = tpu.matmul %321, %323, %cst_335 {dimension_numbers = #tpu.dot_dimension_numbers<[1], [0], [0], [1], [0, 0, 1, 1], [], []>} : vector<8x128xf32>, vector<128x128xf32>, vector<8x128xf32> -> vector<8x128xf32>
    %cst_336 = arith.constant dense<0.000000e+00> : vector<8x128xf32>
    %325 = tpu.matmul %320, %295, %cst_336 {dimension_numbers = #tpu.dot_dimension_numbers<[1], [0], [0], [1], [0, 0, 1, 1], [], []>} : vector<8x8xf32>, vector<8x128xf32>, vector<8x128xf32> -> vector<8x128xf32>
    %c2_337 = arith.constant 2 : index
    %c0_338 = arith.constant 0 : index
    %c0_339 = arith.constant 0 : index
    %326 = vector.load %arg33[%c2_337, %c0_338, %c0_339] : memref<4x128x128xf32, #tpu.memory_space<vmem>>, vector<1x128x128xf32>
    %327 = vector.shape_cast %326 : vector<1x128x128xf32> to vector<128x128xf32>
    %cst_340 = arith.constant dense<0.000000e+00> : vector<8x128xf32>
    %328 = tpu.matmul %325, %327, %cst_340 {dimension_numbers = #tpu.dot_dimension_numbers<[1], [0], [0], [1], [0, 0, 1, 1], [], []>} : vector<8x128xf32>, vector<128x128xf32>, vector<8x128xf32> -> vector<8x128xf32>
    %329 = arith.addf %324, %328 : vector<8x128xf32>
    %c3_341 = arith.constant 3 : index
    %c0_342 = arith.constant 0 : index
    %c0_343 = arith.constant 0 : index
    %330 = vector.load %arg32[%c3_341, %c0_342, %c0_343] : memref<4x8x8xf32, #tpu.memory_space<vmem>>, vector<1x8x8xf32>
    %331 = vector.shape_cast %330 : vector<1x8x8xf32> to vector<8x8xf32>
    %cst_344 = arith.constant dense<0.000000e+00> : vector<8x128xf32>
    %332 = tpu.matmul %331, %293, %cst_344 {dimension_numbers = #tpu.dot_dimension_numbers<[1], [0], [0], [1], [0, 0, 1, 1], [], []>} : vector<8x8xf32>, vector<8x128xf32>, vector<8x128xf32> -> vector<8x128xf32>
    %c3_345 = arith.constant 3 : index
    %c0_346 = arith.constant 0 : index
    %c0_347 = arith.constant 0 : index
    %333 = vector.load %arg34[%c3_345, %c0_346, %c0_347] : memref<4x128x128xf32, #tpu.memory_space<vmem>>, vector<1x128x128xf32>
    %334 = vector.shape_cast %333 : vector<1x128x128xf32> to vector<128x128xf32>
    %cst_348 = arith.constant dense<0.000000e+00> : vector<8x128xf32>
    %335 = tpu.matmul %332, %334, %cst_348 {dimension_numbers = #tpu.dot_dimension_numbers<[1], [0], [0], [1], [0, 0, 1, 1], [], []>} : vector<8x128xf32>, vector<128x128xf32>, vector<8x128xf32> -> vector<8x128xf32>
    %cst_349 = arith.constant dense<0.000000e+00> : vector<8x128xf32>
    %336 = tpu.matmul %331, %295, %cst_349 {dimension_numbers = #tpu.dot_dimension_numbers<[1], [0], [0], [1], [0, 0, 1, 1], [], []>} : vector<8x8xf32>, vector<8x128xf32>, vector<8x128xf32> -> vector<8x128xf32>
    %c3_350 = arith.constant 3 : index
    %c0_351 = arith.constant 0 : index
    %c0_352 = arith.constant 0 : index
    %337 = vector.load %arg33[%c3_350, %c0_351, %c0_352] : memref<4x128x128xf32, #tpu.memory_space<vmem>>, vector<1x128x128xf32>
    %338 = vector.shape_cast %337 : vector<1x128x128xf32> to vector<128x128xf32>
    %cst_353 = arith.constant dense<0.000000e+00> : vector<8x128xf32>
    %339 = tpu.matmul %336, %338, %cst_353 {dimension_numbers = #tpu.dot_dimension_numbers<[1], [0], [0], [1], [0, 0, 1, 1], [], []>} : vector<8x128xf32>, vector<128x128xf32>, vector<8x128xf32> -> vector<8x128xf32>
    %340 = arith.addf %335, %339 : vector<8x128xf32>
    %341 = arith.addf %329, %340 : vector<8x128xf32>
    %c0_354 = arith.constant 0 : index
    %c0_355 = arith.constant 0 : index
    %c0_356 = arith.constant 0 : index
    %342 = vector.load %arg35[%c0_354, %c0_355, %c0_356] : memref<2x16x8xf32, #tpu.memory_space<vmem>>, vector<1x16x8xf32>
    %343 = vector.shape_cast %342 : vector<1x16x8xf32> to vector<16x8xf32>
    %cst_357 = arith.constant dense<0.000000e+00> : vector<16x128xf32>
    %344 = tpu.matmul %343, %318, %cst_357 {dimension_numbers = #tpu.dot_dimension_numbers<[1], [0], [0], [1], [0, 0, 1, 1], [], []>} : vector<16x8xf32>, vector<8x128xf32>, vector<16x128xf32> -> vector<16x128xf32>
    %c1_358 = arith.constant 1 : index
    %c0_359 = arith.constant 0 : index
    %c0_360 = arith.constant 0 : index
    %345 = vector.load %arg35[%c1_358, %c0_359, %c0_360] : memref<2x16x8xf32, #tpu.memory_space<vmem>>, vector<1x16x8xf32>
    %346 = vector.shape_cast %345 : vector<1x16x8xf32> to vector<16x8xf32>
    %cst_361 = arith.constant dense<0.000000e+00> : vector<16x128xf32>
    %347 = tpu.matmul %346, %341, %cst_361 {dimension_numbers = #tpu.dot_dimension_numbers<[1], [0], [0], [1], [0, 0, 1, 1], [], []>} : vector<16x8xf32>, vector<8x128xf32>, vector<16x128xf32> -> vector<16x128xf32>
    %348 = arith.addf %344, %347 : vector<16x128xf32>
    %349 = vector.broadcast %290 : vector<1x128xf32> to vector<16x128xf32>
    %350 = arith.mulf %348, %349 : vector<16x128xf32>
    %351 = vector.broadcast %291 : vector<1x128xf32> to vector<16x128xf32>
    %352 = arith.addf %350, %351 : vector<16x128xf32>
    %c0_362 = arith.constant 0 : index
    %c0_363 = arith.constant 0 : index
    %353 = vector.load %arg42[%c0_362, %c0_363] : memref<1x128xf32, #tpu.memory_space<vmem>>, vector<1x128xf32>
    %c0_364 = arith.constant 0 : index
    %c0_365 = arith.constant 0 : index
    %354 = vector.load %arg43[%c0_364, %c0_365] : memref<1x128xf32, #tpu.memory_space<vmem>>, vector<1x128xf32>
    %cst_366 = arith.constant 0.000000e+00 : f32
    %355 = vector.broadcast %cst_366 : f32 to vector<16x128xf32>
    %356 = arith.maximumf %352, %355 : vector<16x128xf32>
    %cst_367 = arith.constant 0.000000e+00 : f32
    %357 = vector.broadcast %cst_367 : f32 to vector<16x128xf32>
    %358 = arith.maximumf %71, %357 : vector<16x128xf32>
    %c0_368 = arith.constant 0 : index
    %c0_369 = arith.constant 0 : index
    %c0_370 = arith.constant 0 : index
    %359 = vector.load %arg38[%c0_368, %c0_369, %c0_370] : memref<4x16x16xf32, #tpu.memory_space<vmem>>, vector<1x16x16xf32>
    %360 = vector.shape_cast %359 : vector<1x16x16xf32> to vector<16x16xf32>
    %cst_371 = arith.constant dense<0.000000e+00> : vector<16x128xf32>
    %361 = tpu.matmul %360, %356, %cst_371 {dimension_numbers = #tpu.dot_dimension_numbers<[1], [0], [0], [1], [0, 0, 1, 1], [], []>} : vector<16x16xf32>, vector<16x128xf32>, vector<16x128xf32> -> vector<16x128xf32>
    %c0_372 = arith.constant 0 : index
    %c0_373 = arith.constant 0 : index
    %c0_374 = arith.constant 0 : index
    %362 = vector.load %arg40[%c0_372, %c0_373, %c0_374] : memref<4x128x128xf32, #tpu.memory_space<vmem>>, vector<1x128x128xf32>
    %363 = vector.shape_cast %362 : vector<1x128x128xf32> to vector<128x128xf32>
    %cst_375 = arith.constant dense<0.000000e+00> : vector<16x128xf32>
    %364 = tpu.matmul %361, %363, %cst_375 {dimension_numbers = #tpu.dot_dimension_numbers<[1], [0], [0], [1], [0, 0, 1, 1], [], []>} : vector<16x128xf32>, vector<128x128xf32>, vector<16x128xf32> -> vector<16x128xf32>
    %cst_376 = arith.constant dense<0.000000e+00> : vector<16x128xf32>
    %365 = tpu.matmul %360, %358, %cst_376 {dimension_numbers = #tpu.dot_dimension_numbers<[1], [0], [0], [1], [0, 0, 1, 1], [], []>} : vector<16x16xf32>, vector<16x128xf32>, vector<16x128xf32> -> vector<16x128xf32>
    %c0_377 = arith.constant 0 : index
    %c0_378 = arith.constant 0 : index
    %c0_379 = arith.constant 0 : index
    %366 = vector.load %arg39[%c0_377, %c0_378, %c0_379] : memref<4x128x128xf32, #tpu.memory_space<vmem>>, vector<1x128x128xf32>
    %367 = vector.shape_cast %366 : vector<1x128x128xf32> to vector<128x128xf32>
    %cst_380 = arith.constant dense<0.000000e+00> : vector<16x128xf32>
    %368 = tpu.matmul %365, %367, %cst_380 {dimension_numbers = #tpu.dot_dimension_numbers<[1], [0], [0], [1], [0, 0, 1, 1], [], []>} : vector<16x128xf32>, vector<128x128xf32>, vector<16x128xf32> -> vector<16x128xf32>
    %369 = arith.addf %364, %368 : vector<16x128xf32>
    %c1_381 = arith.constant 1 : index
    %c0_382 = arith.constant 0 : index
    %c0_383 = arith.constant 0 : index
    %370 = vector.load %arg38[%c1_381, %c0_382, %c0_383] : memref<4x16x16xf32, #tpu.memory_space<vmem>>, vector<1x16x16xf32>
    %371 = vector.shape_cast %370 : vector<1x16x16xf32> to vector<16x16xf32>
    %cst_384 = arith.constant dense<0.000000e+00> : vector<16x128xf32>
    %372 = tpu.matmul %371, %356, %cst_384 {dimension_numbers = #tpu.dot_dimension_numbers<[1], [0], [0], [1], [0, 0, 1, 1], [], []>} : vector<16x16xf32>, vector<16x128xf32>, vector<16x128xf32> -> vector<16x128xf32>
    %c1_385 = arith.constant 1 : index
    %c0_386 = arith.constant 0 : index
    %c0_387 = arith.constant 0 : index
    %373 = vector.load %arg40[%c1_385, %c0_386, %c0_387] : memref<4x128x128xf32, #tpu.memory_space<vmem>>, vector<1x128x128xf32>
    %374 = vector.shape_cast %373 : vector<1x128x128xf32> to vector<128x128xf32>
    %cst_388 = arith.constant dense<0.000000e+00> : vector<16x128xf32>
    %375 = tpu.matmul %372, %374, %cst_388 {dimension_numbers = #tpu.dot_dimension_numbers<[1], [0], [0], [1], [0, 0, 1, 1], [], []>} : vector<16x128xf32>, vector<128x128xf32>, vector<16x128xf32> -> vector<16x128xf32>
    %cst_389 = arith.constant dense<0.000000e+00> : vector<16x128xf32>
    %376 = tpu.matmul %371, %358, %cst_389 {dimension_numbers = #tpu.dot_dimension_numbers<[1], [0], [0], [1], [0, 0, 1, 1], [], []>} : vector<16x16xf32>, vector<16x128xf32>, vector<16x128xf32> -> vector<16x128xf32>
    %c1_390 = arith.constant 1 : index
    %c0_391 = arith.constant 0 : index
    %c0_392 = arith.constant 0 : index
    %377 = vector.load %arg39[%c1_390, %c0_391, %c0_392] : memref<4x128x128xf32, #tpu.memory_space<vmem>>, vector<1x128x128xf32>
    %378 = vector.shape_cast %377 : vector<1x128x128xf32> to vector<128x128xf32>
    %cst_393 = arith.constant dense<0.000000e+00> : vector<16x128xf32>
    %379 = tpu.matmul %376, %378, %cst_393 {dimension_numbers = #tpu.dot_dimension_numbers<[1], [0], [0], [1], [0, 0, 1, 1], [], []>} : vector<16x128xf32>, vector<128x128xf32>, vector<16x128xf32> -> vector<16x128xf32>
    %380 = arith.addf %375, %379 : vector<16x128xf32>
    %381 = arith.addf %369, %380 : vector<16x128xf32>
    %c2_394 = arith.constant 2 : index
    %c0_395 = arith.constant 0 : index
    %c0_396 = arith.constant 0 : index
    %382 = vector.load %arg38[%c2_394, %c0_395, %c0_396] : memref<4x16x16xf32, #tpu.memory_space<vmem>>, vector<1x16x16xf32>
    %383 = vector.shape_cast %382 : vector<1x16x16xf32> to vector<16x16xf32>
    %cst_397 = arith.constant dense<0.000000e+00> : vector<16x128xf32>
    %384 = tpu.matmul %383, %356, %cst_397 {dimension_numbers = #tpu.dot_dimension_numbers<[1], [0], [0], [1], [0, 0, 1, 1], [], []>} : vector<16x16xf32>, vector<16x128xf32>, vector<16x128xf32> -> vector<16x128xf32>
    %c2_398 = arith.constant 2 : index
    %c0_399 = arith.constant 0 : index
    %c0_400 = arith.constant 0 : index
    %385 = vector.load %arg40[%c2_398, %c0_399, %c0_400] : memref<4x128x128xf32, #tpu.memory_space<vmem>>, vector<1x128x128xf32>
    %386 = vector.shape_cast %385 : vector<1x128x128xf32> to vector<128x128xf32>
    %cst_401 = arith.constant dense<0.000000e+00> : vector<16x128xf32>
    %387 = tpu.matmul %384, %386, %cst_401 {dimension_numbers = #tpu.dot_dimension_numbers<[1], [0], [0], [1], [0, 0, 1, 1], [], []>} : vector<16x128xf32>, vector<128x128xf32>, vector<16x128xf32> -> vector<16x128xf32>
    %cst_402 = arith.constant dense<0.000000e+00> : vector<16x128xf32>
    %388 = tpu.matmul %383, %358, %cst_402 {dimension_numbers = #tpu.dot_dimension_numbers<[1], [0], [0], [1], [0, 0, 1, 1], [], []>} : vector<16x16xf32>, vector<16x128xf32>, vector<16x128xf32> -> vector<16x128xf32>
    %c2_403 = arith.constant 2 : index
    %c0_404 = arith.constant 0 : index
    %c0_405 = arith.constant 0 : index
    %389 = vector.load %arg39[%c2_403, %c0_404, %c0_405] : memref<4x128x128xf32, #tpu.memory_space<vmem>>, vector<1x128x128xf32>
    %390 = vector.shape_cast %389 : vector<1x128x128xf32> to vector<128x128xf32>
    %cst_406 = arith.constant dense<0.000000e+00> : vector<16x128xf32>
    %391 = tpu.matmul %388, %390, %cst_406 {dimension_numbers = #tpu.dot_dimension_numbers<[1], [0], [0], [1], [0, 0, 1, 1], [], []>} : vector<16x128xf32>, vector<128x128xf32>, vector<16x128xf32> -> vector<16x128xf32>
    %392 = arith.addf %387, %391 : vector<16x128xf32>
    %c3_407 = arith.constant 3 : index
    %c0_408 = arith.constant 0 : index
    %c0_409 = arith.constant 0 : index
    %393 = vector.load %arg38[%c3_407, %c0_408, %c0_409] : memref<4x16x16xf32, #tpu.memory_space<vmem>>, vector<1x16x16xf32>
    %394 = vector.shape_cast %393 : vector<1x16x16xf32> to vector<16x16xf32>
    %cst_410 = arith.constant dense<0.000000e+00> : vector<16x128xf32>
    %395 = tpu.matmul %394, %356, %cst_410 {dimension_numbers = #tpu.dot_dimension_numbers<[1], [0], [0], [1], [0, 0, 1, 1], [], []>} : vector<16x16xf32>, vector<16x128xf32>, vector<16x128xf32> -> vector<16x128xf32>
    %c3_411 = arith.constant 3 : index
    %c0_412 = arith.constant 0 : index
    %c0_413 = arith.constant 0 : index
    %396 = vector.load %arg40[%c3_411, %c0_412, %c0_413] : memref<4x128x128xf32, #tpu.memory_space<vmem>>, vector<1x128x128xf32>
    %397 = vector.shape_cast %396 : vector<1x128x128xf32> to vector<128x128xf32>
    %cst_414 = arith.constant dense<0.000000e+00> : vector<16x128xf32>
    %398 = tpu.matmul %395, %397, %cst_414 {dimension_numbers = #tpu.dot_dimension_numbers<[1], [0], [0], [1], [0, 0, 1, 1], [], []>} : vector<16x128xf32>, vector<128x128xf32>, vector<16x128xf32> -> vector<16x128xf32>
    %cst_415 = arith.constant dense<0.000000e+00> : vector<16x128xf32>
    %399 = tpu.matmul %394, %358, %cst_415 {dimension_numbers = #tpu.dot_dimension_numbers<[1], [0], [0], [1], [0, 0, 1, 1], [], []>} : vector<16x16xf32>, vector<16x128xf32>, vector<16x128xf32> -> vector<16x128xf32>
    %c3_416 = arith.constant 3 : index
    %c0_417 = arith.constant 0 : index
    %c0_418 = arith.constant 0 : index
    %400 = vector.load %arg39[%c3_416, %c0_417, %c0_418] : memref<4x128x128xf32, #tpu.memory_space<vmem>>, vector<1x128x128xf32>
    %401 = vector.shape_cast %400 : vector<1x128x128xf32> to vector<128x128xf32>
    %cst_419 = arith.constant dense<0.000000e+00> : vector<16x128xf32>
    %402 = tpu.matmul %399, %401, %cst_419 {dimension_numbers = #tpu.dot_dimension_numbers<[1], [0], [0], [1], [0, 0, 1, 1], [], []>} : vector<16x128xf32>, vector<128x128xf32>, vector<16x128xf32> -> vector<16x128xf32>
    %403 = arith.addf %398, %402 : vector<16x128xf32>
    %404 = arith.addf %392, %403 : vector<16x128xf32>
    %c0_420 = arith.constant 0 : index
    %c0_421 = arith.constant 0 : index
    %c0_422 = arith.constant 0 : index
    %405 = vector.load %arg41[%c0_420, %c0_421, %c0_422] : memref<2x32x16xf32, #tpu.memory_space<vmem>>, vector<1x32x16xf32>
    %406 = vector.shape_cast %405 : vector<1x32x16xf32> to vector<32x16xf32>
    %cst_423 = arith.constant dense<0.000000e+00> : vector<32x128xf32>
    %407 = tpu.matmul %406, %381, %cst_423 {dimension_numbers = #tpu.dot_dimension_numbers<[1], [0], [0], [1], [0, 0, 1, 1], [], []>} : vector<32x16xf32>, vector<16x128xf32>, vector<32x128xf32> -> vector<32x128xf32>
    %c1_424 = arith.constant 1 : index
    %c0_425 = arith.constant 0 : index
    %c0_426 = arith.constant 0 : index
    %408 = vector.load %arg41[%c1_424, %c0_425, %c0_426] : memref<2x32x16xf32, #tpu.memory_space<vmem>>, vector<1x32x16xf32>
    %409 = vector.shape_cast %408 : vector<1x32x16xf32> to vector<32x16xf32>
    %cst_427 = arith.constant dense<0.000000e+00> : vector<32x128xf32>
    %410 = tpu.matmul %409, %404, %cst_427 {dimension_numbers = #tpu.dot_dimension_numbers<[1], [0], [0], [1], [0, 0, 1, 1], [], []>} : vector<32x16xf32>, vector<16x128xf32>, vector<32x128xf32> -> vector<32x128xf32>
    %411 = arith.addf %407, %410 : vector<32x128xf32>
    %412 = vector.broadcast %353 : vector<1x128xf32> to vector<32x128xf32>
    %413 = arith.mulf %411, %412 : vector<32x128xf32>
    %414 = vector.broadcast %354 : vector<1x128xf32> to vector<32x128xf32>
    %415 = arith.addf %413, %414 : vector<32x128xf32>
    %c0_428 = arith.constant 0 : index
    %c0_429 = arith.constant 0 : index
    %416 = vector.load %arg48[%c0_428, %c0_429] : memref<1x96xf32, #tpu.memory_space<vmem>>, vector<1x96xf32>
    %c0_430 = arith.constant 0 : index
    %c0_431 = arith.constant 0 : index
    %417 = vector.load %arg49[%c0_430, %c0_431] : memref<1x96xf32, #tpu.memory_space<vmem>>, vector<1x96xf32>
    %cst_432 = arith.constant 0.000000e+00 : f32
    %418 = vector.broadcast %cst_432 : f32 to vector<32x128xf32>
    %419 = arith.maximumf %415, %418 : vector<32x128xf32>
    %cst_433 = arith.constant 0.000000e+00 : f32
    %420 = vector.broadcast %cst_433 : f32 to vector<32x128xf32>
    %421 = arith.maximumf %33, %420 : vector<32x128xf32>
    %c0_434 = arith.constant 0 : index
    %c0_435 = arith.constant 0 : index
    %c0_436 = arith.constant 0 : index
    %422 = vector.load %arg44[%c0_434, %c0_435, %c0_436] : memref<4x32x32xf32, #tpu.memory_space<vmem>>, vector<1x32x32xf32>
    %423 = vector.shape_cast %422 : vector<1x32x32xf32> to vector<32x32xf32>
    %cst_437 = arith.constant dense<0.000000e+00> : vector<32x128xf32>
    %424 = tpu.matmul %423, %419, %cst_437 {dimension_numbers = #tpu.dot_dimension_numbers<[1], [0], [0], [1], [0, 0, 1, 1], [], []>} : vector<32x32xf32>, vector<32x128xf32>, vector<32x128xf32> -> vector<32x128xf32>
    %c0_438 = arith.constant 0 : index
    %c0_439 = arith.constant 0 : index
    %c0_440 = arith.constant 0 : index
    %425 = vector.load %arg46[%c0_438, %c0_439, %c0_440] : memref<4x128x96xf32, #tpu.memory_space<vmem>>, vector<1x128x96xf32>
    %426 = vector.shape_cast %425 : vector<1x128x96xf32> to vector<128x96xf32>
    %cst_441 = arith.constant dense<0.000000e+00> : vector<32x96xf32>
    %427 = tpu.matmul %424, %426, %cst_441 {dimension_numbers = #tpu.dot_dimension_numbers<[1], [0], [0], [1], [0, 0, 1, 1], [], []>} : vector<32x128xf32>, vector<128x96xf32>, vector<32x96xf32> -> vector<32x96xf32>
    %cst_442 = arith.constant dense<0.000000e+00> : vector<32x128xf32>
    %428 = tpu.matmul %423, %421, %cst_442 {dimension_numbers = #tpu.dot_dimension_numbers<[1], [0], [0], [1], [0, 0, 1, 1], [], []>} : vector<32x32xf32>, vector<32x128xf32>, vector<32x128xf32> -> vector<32x128xf32>
    %c0_443 = arith.constant 0 : index
    %c0_444 = arith.constant 0 : index
    %c0_445 = arith.constant 0 : index
    %429 = vector.load %arg45[%c0_443, %c0_444, %c0_445] : memref<4x128x96xf32, #tpu.memory_space<vmem>>, vector<1x128x96xf32>
    %430 = vector.shape_cast %429 : vector<1x128x96xf32> to vector<128x96xf32>
    %cst_446 = arith.constant dense<0.000000e+00> : vector<32x96xf32>
    %431 = tpu.matmul %428, %430, %cst_446 {dimension_numbers = #tpu.dot_dimension_numbers<[1], [0], [0], [1], [0, 0, 1, 1], [], []>} : vector<32x128xf32>, vector<128x96xf32>, vector<32x96xf32> -> vector<32x96xf32>
    %432 = arith.addf %427, %431 : vector<32x96xf32>
    %c1_447 = arith.constant 1 : index
    %c0_448 = arith.constant 0 : index
    %c0_449 = arith.constant 0 : index
    %433 = vector.load %arg44[%c1_447, %c0_448, %c0_449] : memref<4x32x32xf32, #tpu.memory_space<vmem>>, vector<1x32x32xf32>
    %434 = vector.shape_cast %433 : vector<1x32x32xf32> to vector<32x32xf32>
    %cst_450 = arith.constant dense<0.000000e+00> : vector<32x128xf32>
    %435 = tpu.matmul %434, %419, %cst_450 {dimension_numbers = #tpu.dot_dimension_numbers<[1], [0], [0], [1], [0, 0, 1, 1], [], []>} : vector<32x32xf32>, vector<32x128xf32>, vector<32x128xf32> -> vector<32x128xf32>
    %c1_451 = arith.constant 1 : index
    %c0_452 = arith.constant 0 : index
    %c0_453 = arith.constant 0 : index
    %436 = vector.load %arg46[%c1_451, %c0_452, %c0_453] : memref<4x128x96xf32, #tpu.memory_space<vmem>>, vector<1x128x96xf32>
    %437 = vector.shape_cast %436 : vector<1x128x96xf32> to vector<128x96xf32>
    %cst_454 = arith.constant dense<0.000000e+00> : vector<32x96xf32>
    %438 = tpu.matmul %435, %437, %cst_454 {dimension_numbers = #tpu.dot_dimension_numbers<[1], [0], [0], [1], [0, 0, 1, 1], [], []>} : vector<32x128xf32>, vector<128x96xf32>, vector<32x96xf32> -> vector<32x96xf32>
    %cst_455 = arith.constant dense<0.000000e+00> : vector<32x128xf32>
    %439 = tpu.matmul %434, %421, %cst_455 {dimension_numbers = #tpu.dot_dimension_numbers<[1], [0], [0], [1], [0, 0, 1, 1], [], []>} : vector<32x32xf32>, vector<32x128xf32>, vector<32x128xf32> -> vector<32x128xf32>
    %c1_456 = arith.constant 1 : index
    %c0_457 = arith.constant 0 : index
    %c0_458 = arith.constant 0 : index
    %440 = vector.load %arg45[%c1_456, %c0_457, %c0_458] : memref<4x128x96xf32, #tpu.memory_space<vmem>>, vector<1x128x96xf32>
    %441 = vector.shape_cast %440 : vector<1x128x96xf32> to vector<128x96xf32>
    %cst_459 = arith.constant dense<0.000000e+00> : vector<32x96xf32>
    %442 = tpu.matmul %439, %441, %cst_459 {dimension_numbers = #tpu.dot_dimension_numbers<[1], [0], [0], [1], [0, 0, 1, 1], [], []>} : vector<32x128xf32>, vector<128x96xf32>, vector<32x96xf32> -> vector<32x96xf32>
    %443 = arith.addf %438, %442 : vector<32x96xf32>
    %444 = arith.addf %432, %443 : vector<32x96xf32>
    %c2_460 = arith.constant 2 : index
    %c0_461 = arith.constant 0 : index
    %c0_462 = arith.constant 0 : index
    %445 = vector.load %arg44[%c2_460, %c0_461, %c0_462] : memref<4x32x32xf32, #tpu.memory_space<vmem>>, vector<1x32x32xf32>
    %446 = vector.shape_cast %445 : vector<1x32x32xf32> to vector<32x32xf32>
    %cst_463 = arith.constant dense<0.000000e+00> : vector<32x128xf32>
    %447 = tpu.matmul %446, %419, %cst_463 {dimension_numbers = #tpu.dot_dimension_numbers<[1], [0], [0], [1], [0, 0, 1, 1], [], []>} : vector<32x32xf32>, vector<32x128xf32>, vector<32x128xf32> -> vector<32x128xf32>
    %c2_464 = arith.constant 2 : index
    %c0_465 = arith.constant 0 : index
    %c0_466 = arith.constant 0 : index
    %448 = vector.load %arg46[%c2_464, %c0_465, %c0_466] : memref<4x128x96xf32, #tpu.memory_space<vmem>>, vector<1x128x96xf32>
    %449 = vector.shape_cast %448 : vector<1x128x96xf32> to vector<128x96xf32>
    %cst_467 = arith.constant dense<0.000000e+00> : vector<32x96xf32>
    %450 = tpu.matmul %447, %449, %cst_467 {dimension_numbers = #tpu.dot_dimension_numbers<[1], [0], [0], [1], [0, 0, 1, 1], [], []>} : vector<32x128xf32>, vector<128x96xf32>, vector<32x96xf32> -> vector<32x96xf32>
    %cst_468 = arith.constant dense<0.000000e+00> : vector<32x128xf32>
    %451 = tpu.matmul %446, %421, %cst_468 {dimension_numbers = #tpu.dot_dimension_numbers<[1], [0], [0], [1], [0, 0, 1, 1], [], []>} : vector<32x32xf32>, vector<32x128xf32>, vector<32x128xf32> -> vector<32x128xf32>
    %c2_469 = arith.constant 2 : index
    %c0_470 = arith.constant 0 : index
    %c0_471 = arith.constant 0 : index
    %452 = vector.load %arg45[%c2_469, %c0_470, %c0_471] : memref<4x128x96xf32, #tpu.memory_space<vmem>>, vector<1x128x96xf32>
    %453 = vector.shape_cast %452 : vector<1x128x96xf32> to vector<128x96xf32>
    %cst_472 = arith.constant dense<0.000000e+00> : vector<32x96xf32>
    %454 = tpu.matmul %451, %453, %cst_472 {dimension_numbers = #tpu.dot_dimension_numbers<[1], [0], [0], [1], [0, 0, 1, 1], [], []>} : vector<32x128xf32>, vector<128x96xf32>, vector<32x96xf32> -> vector<32x96xf32>
    %455 = arith.addf %450, %454 : vector<32x96xf32>
    %c3_473 = arith.constant 3 : index
    %c0_474 = arith.constant 0 : index
    %c0_475 = arith.constant 0 : index
    %456 = vector.load %arg44[%c3_473, %c0_474, %c0_475] : memref<4x32x32xf32, #tpu.memory_space<vmem>>, vector<1x32x32xf32>
    %457 = vector.shape_cast %456 : vector<1x32x32xf32> to vector<32x32xf32>
    %cst_476 = arith.constant dense<0.000000e+00> : vector<32x128xf32>
    %458 = tpu.matmul %457, %419, %cst_476 {dimension_numbers = #tpu.dot_dimension_numbers<[1], [0], [0], [1], [0, 0, 1, 1], [], []>} : vector<32x32xf32>, vector<32x128xf32>, vector<32x128xf32> -> vector<32x128xf32>
    %c3_477 = arith.constant 3 : index
    %c0_478 = arith.constant 0 : index
    %c0_479 = arith.constant 0 : index
    %459 = vector.load %arg46[%c3_477, %c0_478, %c0_479] : memref<4x128x96xf32, #tpu.memory_space<vmem>>, vector<1x128x96xf32>
    %460 = vector.shape_cast %459 : vector<1x128x96xf32> to vector<128x96xf32>
    %cst_480 = arith.constant dense<0.000000e+00> : vector<32x96xf32>
    %461 = tpu.matmul %458, %460, %cst_480 {dimension_numbers = #tpu.dot_dimension_numbers<[1], [0], [0], [1], [0, 0, 1, 1], [], []>} : vector<32x128xf32>, vector<128x96xf32>, vector<32x96xf32> -> vector<32x96xf32>
    %cst_481 = arith.constant dense<0.000000e+00> : vector<32x128xf32>
    %462 = tpu.matmul %457, %421, %cst_481 {dimension_numbers = #tpu.dot_dimension_numbers<[1], [0], [0], [1], [0, 0, 1, 1], [], []>} : vector<32x32xf32>, vector<32x128xf32>, vector<32x128xf32> -> vector<32x128xf32>
    %c3_482 = arith.constant 3 : index
    %c0_483 = arith.constant 0 : index
    %c0_484 = arith.constant 0 : index
    %463 = vector.load %arg45[%c3_482, %c0_483, %c0_484] : memref<4x128x96xf32, #tpu.memory_space<vmem>>, vector<1x128x96xf32>
    %464 = vector.shape_cast %463 : vector<1x128x96xf32> to vector<128x96xf32>
    %cst_485 = arith.constant dense<0.000000e+00> : vector<32x96xf32>
    %465 = tpu.matmul %462, %464, %cst_485 {dimension_numbers = #tpu.dot_dimension_numbers<[1], [0], [0], [1], [0, 0, 1, 1], [], []>} : vector<32x128xf32>, vector<128x96xf32>, vector<32x96xf32> -> vector<32x96xf32>
    %466 = arith.addf %461, %465 : vector<32x96xf32>
    %467 = arith.addf %455, %466 : vector<32x96xf32>
    %c0_486 = arith.constant 0 : index
    %c0_487 = arith.constant 0 : index
    %c0_488 = arith.constant 0 : index
    %468 = vector.load %arg47[%c0_486, %c0_487, %c0_488] : memref<2x64x32xf32, #tpu.memory_space<vmem>>, vector<1x64x32xf32>
    %469 = vector.shape_cast %468 : vector<1x64x32xf32> to vector<64x32xf32>
    %cst_489 = arith.constant dense<0.000000e+00> : vector<64x96xf32>
    %470 = tpu.matmul %469, %444, %cst_489 {dimension_numbers = #tpu.dot_dimension_numbers<[1], [0], [0], [1], [0, 0, 1, 1], [], []>} : vector<64x32xf32>, vector<32x96xf32>, vector<64x96xf32> -> vector<64x96xf32>
    %c1_490 = arith.constant 1 : index
    %c0_491 = arith.constant 0 : index
    %c0_492 = arith.constant 0 : index
    %471 = vector.load %arg47[%c1_490, %c0_491, %c0_492] : memref<2x64x32xf32, #tpu.memory_space<vmem>>, vector<1x64x32xf32>
    %472 = vector.shape_cast %471 : vector<1x64x32xf32> to vector<64x32xf32>
    %cst_493 = arith.constant dense<0.000000e+00> : vector<64x96xf32>
    %473 = tpu.matmul %472, %467, %cst_493 {dimension_numbers = #tpu.dot_dimension_numbers<[1], [0], [0], [1], [0, 0, 1, 1], [], []>} : vector<64x32xf32>, vector<32x96xf32>, vector<64x96xf32> -> vector<64x96xf32>
    %474 = arith.addf %470, %473 : vector<64x96xf32>
    %475 = vector.broadcast %416 : vector<1x96xf32> to vector<64x96xf32>
    %476 = arith.mulf %474, %475 : vector<64x96xf32>
    %477 = vector.broadcast %417 : vector<1x96xf32> to vector<64x96xf32>
    %478 = arith.addf %476, %477 : vector<64x96xf32>
    %479 = math.tanh %478 : vector<64x96xf32>
    %c0_494 = arith.constant 0 : index
    %c0_495 = arith.constant 0 : index
    %480 = vector.load %arg50[%c0_494, %c0_495] : memref<64x96xf32, #tpu.memory_space<vmem>>, vector<64x96xf32>
    tpu.vector_store %arg50[%c0_494, %c0_495], %479 {strides = array<i32>} : memref<64x96xf32, #tpu.memory_space<vmem>>, vector<64x96xf32>,
    return
  }
}

</mosaic_0001>

<bundles_post_ra>
// kernel: forward.1
= control target key start
LH: loop header
LB: loop body
LE: loop exit
PB: predicated region body
PF: predicated region fallthrough
CT: control target
= control target key end

     0   :  { %s18535_s6 = smov 1   ;;  %s18536_s10 = smov 2   ;;  %s20629_s0 = inlined_call_operand.smem [shape: u32[51], index: -1, kind: input, shape index: {}] }
   0x1   :  { %s18631_s5 = sld [smem:[%s20629_s0]]   ;;  %s18537_s14 = smov 3  }
   0x2   :  { %s18636_s9 = sld [smem:[%s20629_s0 + %s18535_s6]]   ;;  %s18538_s18 = smov 4  }
   0x3   :  { %s18641_s13 = sld [smem:[%s20629_s0 + %s18536_s10]]   ;;  %s18539_s22 = smov 5  }
   0x4   :  { %s18646_s17 = sld [smem:[%s20629_s0 + %s18537_s14]]   ;;  %s18540_s26 = smov 6  }
   0x5   :  { %s18651_s21 = sld [smem:[%s20629_s0 + %s18538_s18]]   ;;  %s18541_s30 = smov 7  }
   0x6   :  { %s18656_s25 = sld [smem:[%s20629_s0 + %s18539_s22]]   ;;  %s18542_s4 = smov 8  }
   0x7   :  { %20663 = sst [smem:[#allocation61_spill]] %s18631_s5  ;;  %s18543_s10 = smov 9  }
   0x8   :  { %20664 = sst [smem:[#allocation62_spill]] %s18636_s9  ;;  %s18544_s15 = smov 10  }
   0x9   :  { %20665 = sst [smem:[#allocation63_spill]] %s18641_s13  ;;  %s18545_s20 = smov 11  }
   0xa   :  { %s18661_s29 = sld [smem:[%s20629_s0 + %s18540_s26]]   ;;  %s18546_s26 = smov 12  }
   0xb   :  { %20666 = sst [smem:[#allocation64_spill]] %s18651_s21  ;;  %s18547_s1 = smov 13  }
   0xc   :  { %s18666_s3 = sld [smem:[%s20629_s0 + %s18541_s30]]   ;;  %s18548_s7 = smov 14  }
   0xd   :  { %s18671_s8 = sld [smem:[%s20629_s0 + %s18542_s4]]   ;;  %s18550_s22 = smov 16  }
   0xe   :  { %s18676_s14 = sld [smem:[%s20629_s0 + %s18543_s10]]   ;;  %s18551_s28 = smov 17  }
   0xf   :  { %s18681_s19 = sld [smem:[%s20629_s0 + %s18544_s15]]   ;;  %s18549_s15 = smov 15  }
  0x10   :  { %20667 = sst [smem:[#allocation65_spill]] %s18661_s29 }
  0x11   :  { %s18686_s24 = sld [smem:[%s20629_s0 + %s18545_s20]]  }
  0x12   :  { %20668 = sst [smem:[#allocation66_spill]] %s18666_s3 }
  0x13   :  { %s18691_s30 = sld [smem:[%s20629_s0 + %s18546_s26]]  }
  0x14   :  { %20669 = sst [smem:[#allocation67_spill]] %s18676_s14 }
  0x15   :  { %20670 = sst [smem:[#allocation68_spill]] %s18681_s19 }
  0x16   :  { %s18696_s6 = sld [smem:[%s20629_s0 + %s18547_s1]]  }
  0x17   :  { %s18701_s12 = sld [smem:[%s20629_s0 + %s18548_s7]]   ;;  %s18552_s7 = smov 18  }
  0x18   :  { %s18706_s20 = sld [smem:[%s20629_s0 + %s18549_s15]]   ;;  %s18553_s15 = smov 19  }
  0x19   :  { %20671 = sst [smem:[#allocation69_spill]] %s18691_s30 }
  0x1a   :  { %s18711_s27 = sld [smem:[%s20629_s0 + %s18550_s22]]   ;;  %s18554_s22 = smov 20  }
  0x1b   :  { %s18716_s4 = sld [smem:[%s20629_s0 + %s18551_s28]]   ;;  %s18555_s28 = smov 21  }
  0x1c   :  { %s18726_s19 = sld [smem:[%s20629_s0 + %s18553_s15]]   ;;  %s18557_s15 = smov 23  }
  0x1d   :  { %20672 = sst [smem:[#allocation70_spill]] %s18701_s12 }
  0x1e   :  { %20673 = sst [smem:[#allocation71_spill]] %s18706_s20 }
  0x1f   :  { %s18721_s12 = sld [smem:[%s20629_s0 + %s18552_s7]]   ;;  %s18556_s7 = smov 22  }
  0x20   :  { %s18731_s29 = sld [smem:[%s20629_s0 + %s18554_s22]]   ;;  %s18558_s22 = smov 24  }
  0x21   :  { %20674 = sst [smem:[#allocation72_spill]] %s18716_s4 }
  0x22   :  { %s18736_s13 = sld [smem:[%s20629_s0 + %s18555_s28]]   ;;  %s18559_s28 = smov 25  }
  0x23   :  { %s18746_s5 = sld [smem:[%s20629_s0 + %s18557_s15]]   ;;  %s18561_s15 = smov 27  }
  0x25   :  { %20675 = sst [smem:[#allocation73_spill]] %s18721_s12 }
  0x26   :  { %20676 = sst [smem:[#allocation74_spill]] %s18731_s29 }
  0x27   :  { %s18741_s12 = sld [smem:[%s20629_s0 + %s18556_s7]]   ;;  %s18560_s7 = smov 26  }
  0x28   :  { %20677 = sst [smem:[#allocation75_spill]] %s18736_s13 }
  0x29   :  { %20678 = sst [smem:[#allocation76_spill]] %s18746_s5 }
  0x2a   :  { %s18751_s29 = sld [smem:[%s20629_s0 + %s18558_s22]]   ;;  %s18562_s22 = smov 28  }
  0x2b   :  { %s18756_s13 = sld [smem:[%s20629_s0 + %s18559_s28]]   ;;  %s18563_s28 = smov 29  }
  0x2c   :  { %s18761_s4 = sld [smem:[%s20629_s0 + %s18560_s7]]   ;;  %s18564_s7 = smov 30  }
  0x2d   :  { %s18766_s5 = sld [smem:[%s20629_s0 + %s18561_s15]]   ;;  %s18565_s15 = smov 31  }
  0x2e   :  { %s18776_s20 = sld [smem:[%s20629_s0 + %s18563_s28]]   ;;  %s18567_s28 = smov 33  }
  0x30   :  { %20679 = sst [smem:[#allocation77_spill]] %s18751_s29 }
  0x31   :  { %s18771_s29 = sld [smem:[%s20629_s0 + %s18562_s22]]   ;;  %s18566_s22 = smov 32  }
  0x32   :  { %20680 = sst [smem:[#allocation78_spill]] %s18761_s4 }
  0x33   :  { %20681 = sst [smem:[#allocation79_spill]] %s18766_s5 }
  0x34   :  { %20683 = sst [smem:[#allocation81_spill]] %s18776_s20 }
  0x35   :  { %s18781_s4 = sld [smem:[%s20629_s0 + %s18564_s7]]   ;;  %s18568_s7 = smov 34  }
  0x36   :  { %s18786_s5 = sld [smem:[%s20629_s0 + %s18565_s15]]   ;;  %s18569_s15 = smov 35  }
  0x37   :  { %20682 = sst [smem:[#allocation80_spill]] %s18771_s29 }
  0x38   :  { %s18791_s29 = sld [smem:[%s20629_s0 + %s18566_s22]]   ;;  %s18570_s22 = smov 36  }
  0x39   :  { %s18796_s20 = sld [smem:[%s20629_s0 + %s18567_s28]]   ;;  %s18571_s28 = smov 37  }
  0x3a   :  { %s18801_s30 = sld [smem:[%s20629_s0 + %s18568_s7]]   ;;  %s18572_s7 = smov 38  }
  0x3b   :  { %s18811_s14 = sld [smem:[%s20629_s0 + %s18570_s22]]   ;;  %s18574_s22 = smov 40  }
  0x3c   :  { %20684 = sst [smem:[#allocation82_spill]] %s18786_s5 }
  0x3d   :  { %s18806_s5 = sld [smem:[%s20629_s0 + %s18569_s15]]   ;;  %s18573_s15 = smov 39  }
  0x3f   :  { %20685 = sst [smem:[#allocation83_spill]] %s18796_s20 }
  0x40   :  { %20686 = sst [smem:[#allocation84_spill]] %s18801_s30 }
  0x41   :  { %20688 = sst [smem:[#allocation86_spill]] %s18811_s14 }
  0x42   :  { %s18816_s20 = sld [smem:[%s20629_s0 + %s18571_s28]]   ;;  %s18575_s28 = smov 41  }
  0x43   :  { %20687 = sst [smem:[#allocation85_spill]] %s18806_s5 }
  0x44   :  { %s18821_s30 = sld [smem:[%s20629_s0 + %s18572_s7]]   ;;  %s18576_s7 = smov 42  }
  0x45   :  { %s18826_s5 = sld [smem:[%s20629_s0 + %s18573_s15]]   ;;  %s18577_s15 = smov 43  }
  0x46   :  { %s18831_s14 = sld [smem:[%s20629_s0 + %s18574_s22]]   ;;  %s18578_s22 = smov 44  }
  0x47   :  { %s18836_s3 = sld [smem:[%s20629_s0 + %s18575_s28]]   ;;  %s18579_s28 = smov 45  }
  0x48   :  { %s18851_s21 = sld [smem:[%s20629_s0 + %s18578_s22]]   ;;  %s18582_s22 = smov 48  }
  0x4a   :  { %20689 = sst [smem:[#allocation87_spill]] %s18821_s30 }
  0x4b   :  { %20690 = sst [smem:[#allocation88_spill]] %s18826_s5 }
  0x4c   :  { %s18841_s30 = sld [smem:[%s20629_s0 + %s18576_s7]]   ;;  %s18580_s7 = smov 46  }
  0x4d   :  { %20691 = sst [smem:[#allocation89_spill]] %s18836_s3 }
  0x4e   :  { %s18846_s5 = sld [smem:[%s20629_s0 + %s18577_s15]]   ;;  %s18581_s15 = smov 47  }
  0x4f   :  { %20693 = sst [smem:[#allocation91_spill]] %s18851_s21 }
  0x50   :  { %s18856_s3 = sld [smem:[%s20629_s0 + %s18579_s28]]   ;;  %s18583_s28 = smov 49  }
  0x51   :  { %s18866_s9 = sld [smem:[%s20629_s0 + %s18581_s15]]  }
  0x52   :  { %20692 = sst [smem:[#allocation90_spill]] %s18841_s30 }
  0x53   :  { %s18861_s30 = sld [smem:[%s20629_s0 + %s18580_s7]]   ;;  %s18584_s7 = smov 50  }
  0x54   :  { %s18871_s21 = sld [smem:[%s20629_s0 + %s18582_s22]]  }
  0x56   :  { %20694 = sst [smem:[#allocation92_spill]] %s18856_s3 }
  0x57   :  { %s18876_s3 = sld [smem:[%s20629_s0 + %s18583_s28]]  }
  0x59   :  { %20695 = sst [smem:[#allocation93_spill]] %s18861_s30 }
  0x5a   :  { %s18881_s30 = sld [smem:[%s20629_s0 + %s18584_s7]]  }
  0x5b   :  { %106 = vsyncpa [#allocation3], 0 }
  0x5c   :  { %107 = vsyncpa [#allocation5], 0 }
  0x5d   :  { %108 = vsyncpa [#allocation8], 0 }
  0x5e   :  { %109 = vsyncpa [#allocation11], 0 }
  0x5f   :  { %110 = vsyncpa [#allocation14], 0 }
  0x60   :  { %111 = vsyncpa [#allocation17], 0 }
  0x61   :  { %112 = vsyncpa [#allocation20], 0 }
  0x62   :  { %113 = vsyncpa [#allocation23], 0 }
  0x63   :  { %114 = vsyncpa [#allocation26], 0 }
  0x64   :  { %115 = vsyncpa [#allocation29], 0 }
  0x65   :  { %116 = vsyncpa [#allocation32], 0 }
  0x66   :  { %117 = vsyncpa [#allocation35], 0 }
  0x67   :  { %118 = vsyncpa [#allocation38], 0 }
  0x68   :  { %119 = vsyncpa [#allocation41], 0 }
  0x69   :  { %120 = vsyncpa [#allocation44], 0  ;;  %s18585_s0 = smov [#allocation4]   ;;  %s17867_s16 = scalar_lea.hbm %s18646_s17, 16 }
  0x6a   :  { %s143_s15 = sshll.u32 %s18585_s0, 4  ;;  %p17868_p0 = scmp.ne.s32.totalorder %s18646_s17, %s17867_s16  ;;  %s144_s15 = int_to_ptr.vmem [resolvable:$true] %s143_s15 }
  0x6b   :  { %p17871_p1 = scmp.lt.u32.totalorder %s17867_s16, %s18646_s17 }
  0x6d   :  { %p17873_p2 = pnand %p17871_p1, %p17868_p0 }
  0x6f   :  { %17876 = shalt.err (!%p17873_p2)
}
  0x70   :  { %s17877_s18 = scalar_lea.vmem %s144_s15, 16  ;;  %s17881_s22 = scalar_lea.vmem %s144_s15, 32 }
  0x71   :  { %p17878_p3 = scmp.ne.s32.totalorder %s144_s15, %s17877_s18  ;;  %p17882_p4 = scmp.lt.s32.totalorder %s144_s15, %s144_s15 }
  0x72   :  { %p17883_p5 = scmp.lt.s32.totalorder %s17881_s22, %s17877_s18 }
  0x74   :  { %p17884_p6 = por %p17883_p5, %p17882_p4 }
  0x76   :  { %p17885_p7 = pnand %p17884_p6, %p17878_p3 }
  0x78   :  { %17888 = shalt.err (!%p17885_p7)
}
  0x79   :  { %146 = dma.hbm_to_vmem [thread:$0]  %s18646_s17, 16, %s144_s15, [#allocation5]  }
  0x7a   :  { %s18586_s23 = smov [#allocation7]   ;;  %s18587_s28 = smov [#allocation10]  }
  0x7b   :  { %s162_s26 = sshll.u32 %s18586_s23, 4  ;;  %s187_s1 = sshll.u32 %s18587_s28, 4  ;;  %s163_s26 = int_to_ptr.vmem [resolvable:$true] %s162_s26  ;;  %s188_s1 = int_to_ptr.vmem [resolvable:$true] %s187_s1 }
  0x7c   :  { %s17889_s2 = scalar_lea.hbm %s18656_s25, 1024 }
  0x7d   :  { %p17890_p8 = scmp.ne.s32.totalorder %s18656_s25, %s17889_s2  ;;  %p17893_p9 = scmp.lt.u32.totalorder %s17889_s2, %s18656_s25 }
  0x7f   :  { %p17895_p10 = pnand %p17893_p9, %p17890_p8 }
  0x81   :  { %17898 = shalt.err (!%p17895_p10)
}
  0x82   :  { %s17899_s7 = scalar_lea.vmem %s163_s26, 1024  ;;  %p17904_p12 = scmp.lt.s32.totalorder %s163_s26, %s163_s26 }
  0x83   :  { %p17900_p11 = scmp.ne.s32.totalorder %s163_s26, %s17899_s7  ;;  %p17905_p13 = scmp.lt.s32.totalorder %s17899_s7, %s17899_s7 }
  0x85   :  { %p17906_p0 = por %p17905_p13, %p17904_p12 }
  0x87   :  { %p17907_p1 = pnand %p17906_p0, %p17900_p11 }
  0x89   :  { %17910 = shalt.err (!%p17907_p1)
}
  0x8a   :  { %s18588_s10 = smov 128   ;;  %s18589_s17 = smov 8  }
  0x8b   :  { %168 = dma.hbm_to_vmem [thread:$0]  %s18656_s25, 1024, %s163_s26, [#allocation8], %s18588_s10, %s18588_s10, %s18589_s17  }
  0x8c   :  { %s17911_s11 = scalar_lea.hbm %s18671_s8, 16 }
  0x8d   :  { %p17912_p2 = scmp.ne.s32.totalorder %s18671_s8, %s17911_s11  ;;  %p17915_p3 = scmp.lt.u32.totalorder %s17911_s11, %s18671_s8 }
  0x8f   :  { %p17917_p4 = pnand %p17915_p3, %p17912_p2 }
  0x91   :  { %17920 = shalt.err (!%p17917_p4)
}
  0x92   :  { %s17921_s0 = scalar_lea.vmem %s188_s1, 16  ;;  %s17925_s15 = scalar_lea.vmem %s188_s1, 32 }
  0x93   :  { %p17922_p5 = scmp.ne.s32.totalorder %s188_s1, %s17921_s0  ;;  %p17926_p6 = scmp.lt.s32.totalorder %s188_s1, %s188_s1 }
  0x94   :  { %p17927_p7 = scmp.lt.s32.totalorder %s17925_s15, %s17921_s0 }
  0x96   :  { %p17928_p8 = por %p17927_p7, %p17926_p6 }
  0x98   :  { %p17929_p9 = pnand %p17928_p8, %p17922_p5 }
  0x9a   :  { %17932 = shalt.err (!%p17929_p9)
}
  0x9b   :  { %190 = dma.hbm_to_vmem [thread:$0]  %s18671_s8, 16, %s188_s1, [#allocation11]  }
  0x9c   :  { %s18590_s25 = smov [#allocation13]   ;;  %s18591_s18 = smov [#allocation16]  }
  0x9d   :  { %s211_s16 = sshll.u32 %s18590_s25, 4  ;;  %s230_s22 = sshll.u32 %s18591_s18, 4  ;;  %s212_s16 = int_to_ptr.vmem [resolvable:$true] %s211_s16  ;;  %s231_s22 = int_to_ptr.vmem [resolvable:$true] %s230_s22 }
  0x9e   :  { %s17933_s23 = scalar_lea.hbm %s18686_s24, 16 }
  0x9f   :  { %p17934_p10 = scmp.ne.s32.totalorder %s18686_s24, %s17933_s23  ;;  %p17937_p11 = scmp.lt.u32.totalorder %s17933_s23, %s18686_s24 }
  0xa1   :  { %p17939_p12 = pnand %p17937_p11, %p17934_p10 }
  0xa3   :  { %17942 = shalt.err (!%p17939_p12)
}
  0xa4   :  { %s17943_s26 = scalar_lea.vmem %s212_s16, 16  ;;  %s17947_s28 = scalar_lea.vmem %s212_s16, 32 }
  0xa5   :  { %p17944_p13 = scmp.ne.s32.totalorder %s212_s16, %s17943_s26  ;;  %p17948_p0 = scmp.lt.s32.totalorder %s212_s16, %s212_s16 }
  0xa6   :  { %p17949_p1 = scmp.lt.s32.totalorder %s17947_s28, %s17943_s26 }
  0xa8   :  { %p17950_p2 = por %p17949_p1, %p17948_p0 }
  0xaa   :  { %p17951_p3 = pnand %p17950_p2, %p17944_p13 }
  0xac   :  { %17954 = shalt.err (!%p17951_p3)
}
  0xad   :  { %214 = dma.hbm_to_vmem [thread:$0]  %s18686_s24, 16, %s212_s16, [#allocation14]  }
  0xae   :  { %s17955_s8 = scalar_lea.hbm %s18696_s6, 256 }
  0xaf   :  { %p17956_p4 = scmp.ne.s32.totalorder %s18696_s6, %s17955_s8  ;;  %p17959_p5 = scmp.lt.u32.totalorder %s17955_s8, %s18696_s6 }
  0xb1   :  { %p17961_p6 = pnand %p17959_p5, %p17956_p4 }
  0xb3   :  { %17964 = shalt.err (!%p17961_p6)
}
  0xb4   :  { %s17965_s1 = scalar_lea.vmem %s231_s22, 256  ;;  %p17970_p8 = scmp.lt.s32.totalorder %s231_s22, %s231_s22 }
  0xb5   :  { %p17966_p7 = scmp.ne.s32.totalorder %s231_s22, %s17965_s1  ;;  %p17971_p9 = scmp.lt.s32.totalorder %s17965_s1, %s17965_s1 }
  0xb7   :  { %p17972_p10 = por %p17971_p9, %p17970_p8 }
  0xb9   :  { %p17973_p11 = pnand %p17972_p10, %p17966_p7 }
  0xbb   :  { %17976 = shalt.err (!%p17973_p11)
}
  0xbc   :  { %s18592_s2 = smov 64   ;;  %s18593_s7 = smov 4  }
  0xbd   :  { %236 = dma.hbm_to_vmem [thread:$0]  %s18696_s6, 256, %s231_s22, [#allocation17], %s18592_s2, %s18592_s2, %s18593_s7  }
  0xbe   :  { %s18594_s24 = smov [#allocation19]   ;;  %s18595_s0 = smov [#allocation22]  }
  0xbf   :  { %s255_s11 = sshll.u32 %s18594_s24, 4  ;;  %s279_s15 = sshll.u32 %s18595_s0, 4  ;;  %s256_s11 = int_to_ptr.vmem [resolvable:$true] %s255_s11  ;;  %s280_s15 = int_to_ptr.vmem [resolvable:$true] %s279_s15 }
  0xc0   :  { %s17977_s25 = scalar_lea.hbm %s18711_s27, 16 }
  0xc1   :  { %p17978_p12 = scmp.ne.s32.totalorder %s18711_s27, %s17977_s25  ;;  %p17981_p13 = scmp.lt.u32.totalorder %s17977_s25, %s18711_s27 }
  0xc3   :  { %p17983_p0 = pnand %p17981_p13, %p17978_p12 }
  0xc5   :  { %17986 = shalt.err (!%p17983_p0)
}
  0xc6   :  { %s17987_s16 = scalar_lea.vmem %s256_s11, 16  ;;  %s17991_s18 = scalar_lea.vmem %s256_s11, 32 }
  0xc7   :  { %p17988_p1 = scmp.ne.s32.totalorder %s256_s11, %s17987_s16  ;;  %p17992_p2 = scmp.lt.s32.totalorder %s256_s11, %s256_s11 }
  0xc8   :  { %p17993_p3 = scmp.lt.s32.totalorder %s17991_s18, %s17987_s16 }
  0xca   :  { %p17994_p4 = por %p17993_p3, %p17992_p2 }
  0xcc   :  { %p17995_p5 = pnand %p17994_p4, %p17988_p1 }
  0xce   :  { %17998 = shalt.err (!%p17995_p5)
}
  0xcf   :  { %258 = dma.hbm_to_vmem [thread:$0]  %s18711_s27, 16, %s256_s11, [#allocation20]  }
  0xd0   :  { %s17999_s6 = scalar_lea.hbm %s18726_s19, 16 }
  0xd1   :  { %p18000_p6 = scmp.ne.s32.totalorder %s18726_s19, %s17999_s6  ;;  %p18003_p7 = scmp.lt.u32.totalorder %s17999_s6, %s18726_s19 }
  0xd3   :  { %p18005_p8 = pnand %p18003_p7, %p18000_p6 }
  0xd5   :  { %18008 = shalt.err (!%p18005_p8)
}
  0xd6   :  { %s18009_s22 = scalar_lea.vmem %s280_s15, 16  ;;  %s18013_s23 = scalar_lea.vmem %s280_s15, 32 }
  0xd7   :  { %p18010_p9 = scmp.ne.s32.totalorder %s280_s15, %s18009_s22  ;;  %p18014_p10 = scmp.lt.s32.totalorder %s280_s15, %s280_s15 }
  0xd8   :  { %p18015_p11 = scmp.lt.s32.totalorder %s18013_s23, %s18009_s22 }
  0xda   :  { %p18016_p12 = por %p18015_p11, %p18014_p10 }
  0xdc   :  { %p18017_p13 = pnand %p18016_p12, %p18010_p9 }
  0xde   :  { %18020 = shalt.err (!%p18017_p13)
}
  0xdf   :  { %282 = dma.hbm_to_vmem [thread:$0]  %s18726_s19, 16, %s280_s15, [#allocation23]  }
  0xe0   :  { %s18596_s27 = smov [#allocation25]   ;;  %s18597_s28 = smov [#allocation28]  }
  0xe1   :  { %s300_s26 = sshll.u32 %s18596_s27, 4  ;;  %s325_s8 = sshll.u32 %s18597_s28, 4  ;;  %s301_s26 = int_to_ptr.vmem [resolvable:$true] %s300_s26  ;;  %s326_s8 = int_to_ptr.vmem [resolvable:$true] %s325_s8 }
  0xe2   :  { %s18021_s1 = scalar_lea.hbm %s18741_s12, 4096 }
  0xe3   :  { %p18022_p0 = scmp.ne.s32.totalorder %s18741_s12, %s18021_s1  ;;  %p18025_p1 = scmp.lt.u32.totalorder %s18021_s1, %s18741_s12 }
  0xe5   :  { %p18027_p2 = pnand %p18025_p1, %p18022_p0 }
  0xe7   :  { %18030 = shalt.err (!%p18027_p2)
}
  0xe8   :  { %s18031_s24 = scalar_lea.vmem %s301_s26, 4096  ;;  %p18036_p4 = scmp.lt.s32.totalorder %s301_s26, %s301_s26 }
  0xe9   :  { %p18032_p3 = scmp.ne.s32.totalorder %s301_s26, %s18031_s24  ;;  %p18037_p5 = scmp.lt.s32.totalorder %s18031_s24, %s18031_s24 }
  0xeb   :  { %p18038_p6 = por %p18037_p5, %p18036_p4 }
  0xed   :  { %p18039_p7 = pnand %p18038_p6, %p18032_p3 }
  0xef   :  { %18042 = shalt.err (!%p18039_p7)
}
  0xf0   :  { %306 = dma.hbm_to_vmem [thread:$0]  %s18741_s12, 4096, %s301_s26, [#allocation26], %s18588_s10, %s18588_s10, %s18589_s17  }
  0xf1   :  { %s18043_s19 = scalar_lea.hbm %s18756_s13, 16 }
  0xf2   :  { %p18044_p8 = scmp.ne.s32.totalorder %s18756_s13, %s18043_s19  ;;  %p18047_p9 = scmp.lt.u32.totalorder %s18043_s19, %s18756_s13 }
  0xf4   :  { %p18049_p10 = pnand %p18047_p9, %p18044_p8 }
  0xf6   :  { %18052 = shalt.err (!%p18049_p10)
}
  0xf7   :  { %s18053_s11 = scalar_lea.vmem %s326_s8, 16  ;;  %s18057_s0 = scalar_lea.vmem %s326_s8, 32 }
  0xf8   :  { %p18054_p11 = scmp.ne.s32.totalorder %s326_s8, %s18053_s11  ;;  %p18058_p12 = scmp.lt.s32.totalorder %s326_s8, %s326_s8 }
  0xf9   :  { %p18059_p13 = scmp.lt.s32.totalorder %s18057_s0, %s18053_s11 }
  0xfb   :  { %p18060_p0 = por %p18059_p13, %p18058_p12 }
  0xfd   :  { %p18061_p1 = pnand %p18060_p0, %p18054_p11 }
  0xff   :  { %18064 = shalt.err (!%p18061_p1)
}
 0x100   :  { %328 = dma.hbm_to_vmem [thread:$0]  %s18756_s13, 16, %s326_s8, [#allocation29]  }
 0x101   :  { %s18598_s12 = smov [#allocation31]   ;;  %s18599_s25 = smov [#allocation34]  }
 0x102   :  { %s353_s15 = sshll.u32 %s18598_s12, 4  ;;  %s372_s16 = sshll.u32 %s18599_s25, 4  ;;  %s354_s15 = int_to_ptr.vmem [resolvable:$true] %s353_s15  ;;  %s373_s16 = int_to_ptr.vmem [resolvable:$true] %s372_s16 }
 0x103   :  { %s18065_s18 = scalar_lea.hbm %s18781_s4, 16 }
 0x104   :  { %p18066_p2 = scmp.ne.s32.totalorder %s18781_s4, %s18065_s18  ;;  %p18069_p3 = scmp.lt.u32.totalorder %s18065_s18, %s18781_s4 }
 0x106   :  { %p18071_p4 = pnand %p18069_p3, %p18066_p2 }
 0x108   :  { %18074 = shalt.err (!%p18071_p4)
}
 0x109   :  { %s18075_s6 = scalar_lea.vmem %s354_s15, 16  ;;  %s18079_s22 = scalar_lea.vmem %s354_s15, 32 }
 0x10a   :  { %p18076_p5 = scmp.ne.s32.totalorder %s354_s15, %s18075_s6  ;;  %p18080_p6 = scmp.lt.s32.totalorder %s354_s15, %s354_s15 }
 0x10b   :  { %p18081_p7 = scmp.lt.s32.totalorder %s18079_s22, %s18075_s6 }
 0x10d   :  { %p18082_p8 = por %p18081_p7, %p18080_p6 }
 0x10f   :  { %p18083_p9 = pnand %p18082_p8, %p18076_p5 }
 0x111   :  { %18086 = shalt.err (!%p18083_p9)
}
 0x112   :  { %356 = dma.hbm_to_vmem [thread:$0]  %s18781_s4, 16, %s354_s15, [#allocation32]  }
 0x113   :  { %s18087_s13 = scalar_lea.hbm %s18791_s29, 512 }
 0x114   :  { %p18088_p10 = scmp.ne.s32.totalorder %s18791_s29, %s18087_s13  ;;  %p18091_p11 = scmp.lt.u32.totalorder %s18087_s13, %s18791_s29 }
 0x116   :  { %p18093_p12 = pnand %p18091_p11, %p18088_p10 }
 0x118   :  { %18096 = shalt.err (!%p18093_p12)
}
 0x119   :  { %s18097_s23 = scalar_lea.vmem %s373_s16, 512  ;;  %p18102_p0 = scmp.lt.s32.totalorder %s373_s16, %s373_s16 }
 0x11a   :  { %p18098_p13 = scmp.ne.s32.totalorder %s373_s16, %s18097_s23  ;;  %p18103_p1 = scmp.lt.s32.totalorder %s18097_s23, %s18097_s23 }
 0x11c   :  { %p18104_p2 = por %p18103_p1, %p18102_p0 }
 0x11e   :  { %p18105_p3 = pnand %p18104_p2, %p18098_p13 }
 0x120   :  { %18108 = shalt.err (!%p18105_p3)
}
 0x121   :  { %378 = dma.hbm_to_vmem [thread:$0]  %s18791_s29, 512, %s373_s16, [#allocation35], %s18588_s10, %s18588_s10, %s18589_s17  }
 0x122   :  { %s18600_s4 = smov [#allocation37]   ;;  %s18601_s26 = smov [#allocation40]  }
 0x123   :  { %s401_s27 = sshll.u32 %s18600_s4, 4  ;;  %s424_s28 = sshll.u32 %s18601_s26, 4  ;;  %s402_s27 = int_to_ptr.vmem [resolvable:$true] %s401_s27  ;;  %s425_s28 = int_to_ptr.vmem [resolvable:$true] %s424_s28 }
 0x124   :  { %s18109_s8 = scalar_lea.hbm %s18816_s20, 16 }
 0x125   :  { %p18110_p4 = scmp.ne.s32.totalorder %s18816_s20, %s18109_s8  ;;  %p18113_p5 = scmp.lt.u32.totalorder %s18109_s8, %s18816_s20 }
 0x127   :  { %p18115_p6 = pnand %p18113_p5, %p18110_p4 }
 0x129   :  { %18118 = shalt.err (!%p18115_p6)
}
 0x12a   :  { %s18119_s1 = scalar_lea.vmem %s402_s27, 16  ;;  %s18123_s24 = scalar_lea.vmem %s402_s27, 32 }
 0x12b   :  { %p18120_p7 = scmp.ne.s32.totalorder %s402_s27, %s18119_s1  ;;  %p18124_p8 = scmp.lt.s32.totalorder %s402_s27, %s402_s27 }
 0x12c   :  { %p18125_p9 = scmp.lt.s32.totalorder %s18123_s24, %s18119_s1 }
 0x12e   :  { %p18126_p10 = por %p18125_p9, %p18124_p8 }
 0x130   :  { %p18127_p11 = pnand %p18126_p10, %p18120_p7 }
 0x132   :  { %18130 = shalt.err (!%p18127_p11)
}
 0x133   :  { %404 = dma.hbm_to_vmem [thread:$0]  %s18816_s20, 16, %s402_s27, [#allocation38]  }
 0x134   :  { %s18131_s29 = scalar_lea.hbm %s18831_s14, 8192 }
 0x135   :  { %p18132_p12 = scmp.ne.s32.totalorder %s18831_s14, %s18131_s29  ;;  %p18135_p13 = scmp.lt.u32.totalorder %s18131_s29, %s18831_s14 }
 0x137   :  { %p18137_p0 = pnand %p18135_p13, %p18132_p12 }
 0x139   :  { %18140 = shalt.err (!%p18137_p0)
}
 0x13a   :  { %s18141_s19 = scalar_lea.vmem %s425_s28, 8192  ;;  %p18146_p2 = scmp.lt.s32.totalorder %s425_s28, %s425_s28 }
 0x13b   :  { %p18142_p1 = scmp.ne.s32.totalorder %s425_s28, %s18141_s19  ;;  %p18147_p3 = scmp.lt.s32.totalorder %s18141_s19, %s18141_s19 }
 0x13d   :  { %p18148_p4 = por %p18147_p3, %p18146_p2 }
 0x13f   :  { %p18149_p5 = pnand %p18148_p4, %p18142_p1 }
 0x141   :  { %18152 = shalt.err (!%p18149_p5)
}
 0x142   :  { %430 = dma.hbm_to_vmem [thread:$0]  %s18831_s14, 8192, %s425_s28, [#allocation41], %s18588_s10, %s18588_s10, %s18589_s17  }
 0x143   :  { %s18602_s20 = smov [#allocation43]   ;;  %s18603_s0 = smov [#allocation2]  }
 0x144   :  { %s449_s11 = sshll.u32 %s18602_s20, 4  ;;  %s128_s12 = sshll.u32 %s18603_s0, 4  ;;  %s450_s11 = int_to_ptr.vmem [resolvable:$true] %s449_s11  ;;  %s129_s12 = int_to_ptr.vmem [resolvable:$true] %s128_s12 }
 0x145   :  { %s18153_s15 = scalar_lea.hbm %s18846_s5, 16 }
 0x146   :  { %p18154_p6 = scmp.ne.s32.totalorder %s18846_s5, %s18153_s15  ;;  %p18157_p7 = scmp.lt.u32.totalorder %s18153_s15, %s18846_s5 }
 0x148   :  { %p18159_p8 = pnand %p18157_p7, %p18154_p6 }
 0x14a   :  { %18162 = shalt.err (!%p18159_p8)
}
 0x14b   :  { %s18163_s25 = scalar_lea.vmem %s450_s11, 16  ;;  %s18167_s16 = scalar_lea.vmem %s450_s11, 32 }
 0x14c   :  { %p18164_p9 = scmp.ne.s32.totalorder %s450_s11, %s18163_s25  ;;  %p18168_p10 = scmp.lt.s32.totalorder %s450_s11, %s450_s11 }
 0x14d   :  { %p18169_p11 = scmp.lt.s32.totalorder %s18167_s16, %s18163_s25 }
 0x14f   :  { %p18170_p12 = por %p18169_p11, %p18168_p10 }
 0x151   :  { %p18171_p13 = pnand %p18170_p12, %p18164_p9 }
 0x153   :  { %18174 = shalt.err (!%p18171_p13)
}
 0x154   :  { %s20696_s14 = sld [smem:[#allocation62_spill]] }
 0x155   :  { %452 = dma.hbm_to_vmem [thread:$0]  %s18846_s5, 16, %s450_s11, [#allocation44]  }
 0x15a   :  { %s18175_s18 = scalar_lea.hbm %s20696_s14, 2048 }
 0x15b   :  { %p18176_p0 = scmp.ne.s32.totalorder %s20696_s14, %s18175_s18  ;;  %p18179_p1 = scmp.lt.u32.totalorder %s18175_s18, %s20696_s14 }
 0x15d   :  { %p18181_p2 = pnand %p18179_p1, %p18176_p0 }
 0x15f   :  { %18184 = shalt.err (!%p18181_p2)
}
 0x160   :  { %s18185_s6 = scalar_lea.vmem %s129_s12, 2048  ;;  %p18190_p4 = scmp.lt.s32.totalorder %s129_s12, %s129_s12 }
 0x161   :  { %p18186_p3 = scmp.ne.s32.totalorder %s129_s12, %s18185_s6  ;;  %p18191_p5 = scmp.lt.s32.totalorder %s18185_s6, %s18185_s6 }
 0x163   :  { %p18192_p6 = por %p18191_p5, %p18190_p4 }
 0x165   :  { %p18193_p7 = pnand %p18192_p6, %p18186_p3 }
 0x167   :  { %18196 = shalt.err (!%p18193_p7)
}
 0x168   :  { %s20697_s22 = sld [smem:[#allocation64_spill]]  ;;  %s18604_s5 = smov [#allocation6]  }
 0x169   :  { %134 = dma.hbm_to_vmem [thread:$0]  %s20696_s14, 2048, %s129_s12, [#allocation3], %s18588_s10, %s18588_s10, %s18589_s17  }
 0x16a   :  { %s153_s13 = sshll.u32 %s18604_s5, 4  ;;  %s18605_s23 = smov [#allocation9]   ;;  %s154_s13 = int_to_ptr.vmem [resolvable:$true] %s153_s13 }
 0x16b   :  { %s177_s4 = sshll.u32 %s18605_s23, 4  ;;  %s178_s4 = int_to_ptr.vmem [resolvable:$true] %s177_s4 }
 0x16e   :  { %s18197_s27 = scalar_lea.hbm %s20697_s22, 16 }
 0x16f   :  { %p18198_p8 = scmp.ne.s32.totalorder %s20697_s22, %s18197_s27  ;;  %p18201_p9 = scmp.lt.u32.totalorder %s18197_s27, %s20697_s22 }
 0x171   :  { %p18203_p10 = pnand %p18201_p9, %p18198_p8 }
 0x173   :  { %18206 = shalt.err (!%p18203_p10)
}
 0x174   :  { %s18207_s26 = scalar_lea.vmem %s154_s13, 16  ;;  %s18211_s28 = scalar_lea.vmem %s154_s13, 32 }
 0x175   :  { %p18208_p11 = scmp.ne.s32.totalorder %s154_s13, %s18207_s26  ;;  %p18212_p12 = scmp.lt.s32.totalorder %s154_s13, %s154_s13 }
 0x176   :  { %p18213_p13 = scmp.lt.s32.totalorder %s18211_s28, %s18207_s26 }
 0x178   :  { %p18214_p0 = por %p18213_p13, %p18212_p12 }
 0x17a   :  { %p18215_p1 = pnand %p18214_p0, %p18208_p11 }
 0x17c   :  { %18218 = shalt.err (!%p18215_p1)
}
 0x17d   :  { %s20698_s8 = sld [smem:[#allocation66_spill]] }
 0x17e   :  { %156 = dma.hbm_to_vmem [thread:$0]  %s20697_s22, 16, %s154_s13, [#allocation5]  }
 0x183   :  { %s18219_s1 = scalar_lea.hbm %s20698_s8, 16 }
 0x184   :  { %p18220_p2 = scmp.ne.s32.totalorder %s20698_s8, %s18219_s1  ;;  %p18223_p3 = scmp.lt.u32.totalorder %s18219_s1, %s20698_s8 }
 0x186   :  { %p18225_p4 = pnand %p18223_p3, %p18220_p2 }
 0x188   :  { %18228 = shalt.err (!%p18225_p4)
}
 0x189   :  { %s18229_s24 = scalar_lea.vmem %s178_s4, 16  ;;  %s18233_s29 = scalar_lea.vmem %s178_s4, 32 }
 0x18a   :  { %p18230_p5 = scmp.ne.s32.totalorder %s178_s4, %s18229_s24  ;;  %p18234_p6 = scmp.lt.s32.totalorder %s178_s4, %s178_s4 }
 0x18b   :  { %p18235_p7 = scmp.lt.s32.totalorder %s18233_s29, %s18229_s24 }
 0x18d   :  { %p18236_p8 = por %p18235_p7, %p18234_p6 }
 0x18f   :  { %p18237_p9 = pnand %p18236_p8, %p18230_p5 }
 0x191   :  { %18240 = shalt.err (!%p18237_p9)
}
 0x192   :  { %s20699_s19 = sld [smem:[#allocation67_spill]]  ;;  %s18606_s20 = smov [#allocation12]  }
 0x193   :  { %180 = dma.hbm_to_vmem [thread:$0]  %s20698_s8, 16, %s178_s4, [#allocation8]  }
 0x194   :  { %s196_s11 = sshll.u32 %s18606_s20, 4  ;;  %s18607_s0 = smov [#allocation15]   ;;  %s197_s11 = int_to_ptr.vmem [resolvable:$true] %s196_s11 }
 0x195   :  { %s221_s12 = sshll.u32 %s18607_s0, 4  ;;  %s222_s12 = int_to_ptr.vmem [resolvable:$true] %s221_s12 }
 0x198   :  { %s18241_s15 = scalar_lea.hbm %s20699_s19, 512 }
 0x199   :  { %p18242_p10 = scmp.ne.s32.totalorder %s20699_s19, %s18241_s15  ;;  %p18245_p11 = scmp.lt.u32.totalorder %s18241_s15, %s20699_s19 }
 0x19b   :  { %p18247_p12 = pnand %p18245_p11, %p18242_p10 }
 0x19d   :  { %18250 = shalt.err (!%p18247_p12)
}
 0x19e   :  { %s18251_s25 = scalar_lea.vmem %s197_s11, 512  ;;  %p18256_p0 = scmp.lt.s32.totalorder %s197_s11, %s197_s11 }
 0x19f   :  { %p18252_p13 = scmp.ne.s32.totalorder %s197_s11, %s18251_s25  ;;  %p18257_p1 = scmp.lt.s32.totalorder %s18251_s25, %s18251_s25 }
 0x1a1   :  { %p18258_p2 = por %p18257_p1, %p18256_p0 }
 0x1a3   :  { %p18259_p3 = pnand %p18258_p2, %p18252_p13 }
 0x1a5   :  { %18262 = shalt.err (!%p18259_p3)
}
 0x1a6   :  { %s20700_s16 = sld [smem:[#allocation69_spill]] }
 0x1a7   :  { %202 = dma.hbm_to_vmem [thread:$0]  %s20699_s19, 512, %s197_s11, [#allocation11], %s18588_s10, %s18588_s10, %s18589_s17  }
 0x1ac   :  { %s18263_s14 = scalar_lea.hbm %s20700_s16, 16 }
 0x1ad   :  { %p18264_p4 = scmp.ne.s32.totalorder %s20700_s16, %s18263_s14  ;;  %p18267_p5 = scmp.lt.u32.totalorder %s18263_s14, %s20700_s16 }
 0x1af   :  { %p18269_p6 = pnand %p18267_p5, %p18264_p4 }
 0x1b1   :  { %18272 = shalt.err (!%p18269_p6)
}
 0x1b2   :  { %s18273_s18 = scalar_lea.vmem %s222_s12, 16  ;;  %s18277_s6 = scalar_lea.vmem %s222_s12, 32 }
 0x1b3   :  { %p18274_p7 = scmp.ne.s32.totalorder %s222_s12, %s18273_s18  ;;  %p18278_p8 = scmp.lt.s32.totalorder %s222_s12, %s222_s12 }
 0x1b4   :  { %p18279_p9 = scmp.lt.s32.totalorder %s18277_s6, %s18273_s18 }
 0x1b6   :  { %p18280_p10 = por %p18279_p9, %p18278_p8 }
 0x1b8   :  { %p18281_p11 = pnand %p18280_p10, %p18274_p7 }
 0x1ba   :  { %18284 = shalt.err (!%p18281_p11)
}
 0x1bb   :  { %s20701_s22 = sld [smem:[#allocation71_spill]]  ;;  %s18608_s5 = smov [#allocation18]  }
 0x1bc   :  { %224 = dma.hbm_to_vmem [thread:$0]  %s20700_s16, 16, %s222_s12, [#allocation14]  }
 0x1bd   :  { %s245_s13 = sshll.u32 %s18608_s5, 4  ;;  %s18609_s23 = smov [#allocation21]   ;;  %s246_s13 = int_to_ptr.vmem [resolvable:$true] %s245_s13 }
 0x1be   :  { %s264_s4 = sshll.u32 %s18609_s23, 4  ;;  %s265_s4 = int_to_ptr.vmem [resolvable:$true] %s264_s4 }
 0x1c1   :  { %s18285_s27 = scalar_lea.hbm %s20701_s22, 16 }
 0x1c2   :  { %p18286_p12 = scmp.ne.s32.totalorder %s20701_s22, %s18285_s27  ;;  %p18289_p13 = scmp.lt.u32.totalorder %s18285_s27, %s20701_s22 }
 0x1c4   :  { %p18291_p0 = pnand %p18289_p13, %p18286_p12 }
 0x1c6   :  { %18294 = shalt.err (!%p18291_p0)
}
 0x1c7   :  { %s18295_s26 = scalar_lea.vmem %s246_s13, 16  ;;  %s18299_s28 = scalar_lea.vmem %s246_s13, 32 }
 0x1c8   :  { %p18296_p1 = scmp.ne.s32.totalorder %s246_s13, %s18295_s26  ;;  %p18300_p2 = scmp.lt.s32.totalorder %s246_s13, %s246_s13 }
 0x1c9   :  { %p18301_p3 = scmp.lt.s32.totalorder %s18299_s28, %s18295_s26 }
 0x1cb   :  { %p18302_p4 = por %p18301_p3, %p18300_p2 }
 0x1cd   :  { %p18303_p5 = pnand %p18302_p4, %p18296_p1 }
 0x1cf   :  { %18306 = shalt.err (!%p18303_p5)
}
 0x1d0   :  { %s20702_s8 = sld [smem:[#allocation72_spill]] }
 0x1d1   :  { %248 = dma.hbm_to_vmem [thread:$0]  %s20701_s22, 16, %s246_s13, [#allocation17]  }
 0x1d6   :  { %s18307_s1 = scalar_lea.hbm %s20702_s8, 128 }
 0x1d7   :  { %p18308_p6 = scmp.ne.s32.totalorder %s20702_s8, %s18307_s1  ;;  %p18311_p7 = scmp.lt.u32.totalorder %s18307_s1, %s20702_s8 }
 0x1d9   :  { %p18313_p8 = pnand %p18311_p7, %p18308_p6 }
 0x1db   :  { %18316 = shalt.err (!%p18313_p8)
}
 0x1dc   :  { %s18317_s24 = scalar_lea.vmem %s265_s4, 128  ;;  %p18322_p10 = scmp.lt.s32.totalorder %s265_s4, %s265_s4 }
 0x1dd   :  { %p18318_p9 = scmp.ne.s32.totalorder %s265_s4, %s18317_s24  ;;  %p18323_p11 = scmp.lt.s32.totalorder %s18317_s24, %s18317_s24 }
 0x1df   :  { %p18324_p12 = por %p18323_p11, %p18322_p10 }
 0x1e1   :  { %p18325_p13 = pnand %p18324_p12, %p18318_p9 }
 0x1e3   :  { %18328 = shalt.err (!%p18325_p13)
}
 0x1e4   :  { %s18610_s29 = smov 32   ;;  %s20703_s19 = sld [smem:[#allocation74_spill]] }
 0x1e5   :  { %s18611_s20 = smov 2   ;;  %s18612_s11 = smov [#allocation24]  }
 0x1e6   :  { %270 = dma.hbm_to_vmem [thread:$0]  %s20702_s8, 128, %s265_s4, [#allocation20], %s18610_s29, %s18610_s29, %s18611_s20  }
 0x1e7   :  { %s289_s0 = sshll.u32 %s18612_s11, 4  ;;  %s18613_s12 = smov [#allocation27]   ;;  %s290_s0 = int_to_ptr.vmem [resolvable:$true] %s289_s0 }
 0x1e8   :  { %s315_s15 = sshll.u32 %s18613_s12, 4  ;;  %s316_s15 = int_to_ptr.vmem [resolvable:$true] %s315_s15 }
 0x1ea   :  { %s18329_s25 = scalar_lea.hbm %s20703_s19, 16 }
 0x1eb   :  { %p18330_p0 = scmp.ne.s32.totalorder %s20703_s19, %s18329_s25  ;;  %p18333_p1 = scmp.lt.u32.totalorder %s18329_s25, %s20703_s19 }
 0x1ed   :  { %p18335_p2 = pnand %p18333_p1, %p18330_p0 }
 0x1ef   :  { %18338 = shalt.err (!%p18335_p2)
}
 0x1f0   :  { %s18339_s16 = scalar_lea.vmem %s290_s0, 16  ;;  %s18343_s14 = scalar_lea.vmem %s290_s0, 32 }
 0x1f1   :  { %p18340_p3 = scmp.ne.s32.totalorder %s290_s0, %s18339_s16  ;;  %p18344_p4 = scmp.lt.s32.totalorder %s290_s0, %s290_s0 }
 0x1f2   :  { %p18345_p5 = scmp.lt.s32.totalorder %s18343_s14, %s18339_s16 }
 0x1f4   :  { %p18346_p6 = por %p18345_p5, %p18344_p4 }
 0x1f6   :  { %p18347_p7 = pnand %p18346_p6, %p18340_p3 }
 0x1f8   :  { %18350 = shalt.err (!%p18347_p7)
}
 0x1f9   :  { %s20704_s18 = sld [smem:[#allocation77_spill]] }
 0x1fa   :  { %292 = dma.hbm_to_vmem [thread:$0]  %s20703_s19, 16, %s290_s0, [#allocation23]  }
 0x1ff   :  { %s18351_s6 = scalar_lea.hbm %s20704_s18, 16 }
 0x200   :  { %p18352_p8 = scmp.ne.s32.totalorder %s20704_s18, %s18351_s6  ;;  %p18355_p9 = scmp.lt.u32.totalorder %s18351_s6, %s20704_s18 }
 0x202   :  { %p18357_p10 = pnand %p18355_p9, %p18352_p8 }
 0x204   :  { %18360 = shalt.err (!%p18357_p10)
}
 0x205   :  { %s18361_s22 = scalar_lea.vmem %s316_s15, 16  ;;  %s18365_s5 = scalar_lea.vmem %s316_s15, 32 }
 0x206   :  { %p18362_p11 = scmp.ne.s32.totalorder %s316_s15, %s18361_s22  ;;  %p18366_p12 = scmp.lt.s32.totalorder %s316_s15, %s316_s15 }
 0x207   :  { %p18367_p13 = scmp.lt.s32.totalorder %s18365_s5, %s18361_s22 }
 0x209   :  { %p18368_p0 = por %p18367_p13, %p18366_p12 }
 0x20b   :  { %p18369_p1 = pnand %p18368_p0, %p18362_p11 }
 0x20d   :  { %18372 = shalt.err (!%p18369_p1)
}
 0x20e   :  { %s20705_s13 = sld [smem:[#allocation78_spill]]  ;;  %s18614_s23 = smov [#allocation30]  }
 0x20f   :  { %318 = dma.hbm_to_vmem [thread:$0]  %s20704_s18, 16, %s316_s15, [#allocation26]  }
 0x210   :  { %s334_s4 = sshll.u32 %s18614_s23, 4  ;;  %s18615_s27 = smov [#allocation33]   ;;  %s335_s4 = int_to_ptr.vmem [resolvable:$true] %s334_s4 }
 0x211   :  { %s363_s26 = sshll.u32 %s18615_s27, 4  ;;  %s364_s26 = int_to_ptr.vmem [resolvable:$true] %s363_s26 }
 0x214   :  { %s18373_s28 = scalar_lea.hbm %s20705_s13, 256 }
 0x215   :  { %p18374_p2 = scmp.ne.s32.totalorder %s20705_s13, %s18373_s28  ;;  %p18377_p3 = scmp.lt.u32.totalorder %s18373_s28, %s20705_s13 }
 0x217   :  { %p18379_p4 = pnand %p18377_p3, %p18374_p2 }
 0x219   :  { %18382 = shalt.err (!%p18379_p4)
}
 0x21a   :  { %s18383_s8 = scalar_lea.vmem %s335_s4, 256  ;;  %p18388_p6 = scmp.lt.s32.totalorder %s335_s4, %s335_s4 }
 0x21b   :  { %p18384_p5 = scmp.ne.s32.totalorder %s335_s4, %s18383_s8  ;;  %p18389_p7 = scmp.lt.s32.totalorder %s18383_s8, %s18383_s8 }
 0x21d   :  { %p18390_p8 = por %p18389_p7, %p18388_p6 }
 0x21f   :  { %p18391_p9 = pnand %p18390_p8, %p18384_p5 }
 0x221   :  { %18394 = shalt.err (!%p18391_p9)
}
 0x222   :  { %s20706_s1 = sld [smem:[#allocation82_spill]] }
 0x223   :  { %340 = dma.hbm_to_vmem [thread:$0]  %s20705_s13, 256, %s335_s4, [#allocation29], %s18592_s2, %s18592_s2, %s18593_s7  }
 0x228   :  { %s18395_s24 = scalar_lea.hbm %s20706_s1, 16 }
 0x229   :  { %p18396_p10 = scmp.ne.s32.totalorder %s20706_s1, %s18395_s24  ;;  %p18399_p11 = scmp.lt.u32.totalorder %s18395_s24, %s20706_s1 }
 0x22b   :  { %p18401_p12 = pnand %p18399_p11, %p18396_p10 }
 0x22d   :  { %18404 = shalt.err (!%p18401_p12)
}
 0x22e   :  { %s18405_s29 = scalar_lea.vmem %s364_s26, 16  ;;  %s18409_s19 = scalar_lea.vmem %s364_s26, 32 }
 0x22f   :  { %p18406_p13 = scmp.ne.s32.totalorder %s364_s26, %s18405_s29  ;;  %p18410_p0 = scmp.lt.s32.totalorder %s364_s26, %s364_s26 }
 0x230   :  { %p18411_p1 = scmp.lt.s32.totalorder %s18409_s19, %s18405_s29 }
 0x232   :  { %p18412_p2 = por %p18411_p1, %p18410_p0 }
 0x234   :  { %p18413_p3 = pnand %p18412_p2, %p18406_p13 }
 0x236   :  { %18416 = shalt.err (!%p18413_p3)
}
 0x237   :  { %s20707_s20 = sld [smem:[#allocation86_spill]]  ;;  %s18616_s2 = smov [#allocation36]  }
 0x238   :  { %366 = dma.hbm_to_vmem [thread:$0]  %s20706_s1, 16, %s364_s26, [#allocation32]  }
 0x239   :  { %s391_s7 = sshll.u32 %s18616_s2, 4  ;;  %s18617_s11 = smov [#allocation39]   ;;  %s392_s7 = int_to_ptr.vmem [resolvable:$true] %s391_s7 }
 0x23a   :  { %s412_s0 = sshll.u32 %s18617_s11, 4  ;;  %s413_s0 = int_to_ptr.vmem [resolvable:$true] %s412_s0 }
 0x23d   :  { %s18417_s12 = scalar_lea.hbm %s20707_s20, 16 }
 0x23e   :  { %p18418_p4 = scmp.ne.s32.totalorder %s20707_s20, %s18417_s12  ;;  %p18421_p5 = scmp.lt.u32.totalorder %s18417_s12, %s20707_s20 }
 0x240   :  { %p18423_p6 = pnand %p18421_p5, %p18418_p4 }
 0x242   :  { %18426 = shalt.err (!%p18423_p6)
}
 0x243   :  { %s18427_s15 = scalar_lea.vmem %s392_s7, 16  ;;  %s18431_s25 = scalar_lea.vmem %s392_s7, 32 }
 0x244   :  { %p18428_p7 = scmp.ne.s32.totalorder %s392_s7, %s18427_s15  ;;  %p18432_p8 = scmp.lt.s32.totalorder %s392_s7, %s392_s7 }
 0x245   :  { %p18433_p9 = scmp.lt.s32.totalorder %s18431_s25, %s18427_s15 }
 0x247   :  { %p18434_p10 = por %p18433_p9, %p18432_p8 }
 0x249   :  { %p18435_p11 = pnand %p18434_p10, %p18428_p7 }
 0x24b   :  { %18438 = shalt.err (!%p18435_p11)
}
 0x24c   :  { %s20708_s16 = sld [smem:[#allocation88_spill]] }
 0x24d   :  { %394 = dma.hbm_to_vmem [thread:$0]  %s20707_s20, 16, %s392_s7, [#allocation35]  }
 0x252   :  { %s18439_s14 = scalar_lea.hbm %s20708_s16, 8192 }
 0x253   :  { %p18440_p12 = scmp.ne.s32.totalorder %s20708_s16, %s18439_s14  ;;  %p18443_p13 = scmp.lt.u32.totalorder %s18439_s14, %s20708_s16 }
 0x255   :  { %p18445_p0 = pnand %p18443_p13, %p18440_p12 }
 0x257   :  { %18448 = shalt.err (!%p18445_p0)
}
 0x258   :  { %s18449_s18 = scalar_lea.vmem %s413_s0, 8192  ;;  %p18454_p2 = scmp.lt.s32.totalorder %s413_s0, %s413_s0 }
 0x259   :  { %p18450_p1 = scmp.ne.s32.totalorder %s413_s0, %s18449_s18  ;;  %p18455_p3 = scmp.lt.s32.totalorder %s18449_s18, %s18449_s18 }
 0x25b   :  { %p18456_p4 = por %p18455_p3, %p18454_p2 }
 0x25d   :  { %p18457_p5 = pnand %p18456_p4, %p18450_p1 }
 0x25f   :  { %18460 = shalt.err (!%p18457_p5)
}
 0x260   :  { %s20709_s6 = sld [smem:[#allocation90_spill]]  ;;  %s18618_s22 = smov [#allocation42]  }
 0x261   :  { %418 = dma.hbm_to_vmem [thread:$0]  %s20708_s16, 8192, %s413_s0, [#allocation38], %s18588_s10, %s18588_s10, %s18589_s17  }
 0x262   :  { %s439_s5 = sshll.u32 %s18618_s22, 4  ;;  %s18619_s13 = smov [#allocation45]   ;;  %s440_s5 = int_to_ptr.vmem [resolvable:$true] %s439_s5 }
 0x263   :  { %s458_s23 = sshll.u32 %s18619_s13, 4  ;;  %s459_s23 = int_to_ptr.vmem [resolvable:$true] %s458_s23 }
 0x266   :  { %s18461_s4 = scalar_lea.hbm %s20709_s6, 16 }
 0x267   :  { %p18462_p6 = scmp.ne.s32.totalorder %s20709_s6, %s18461_s4  ;;  %p18465_p7 = scmp.lt.u32.totalorder %s18461_s4, %s20709_s6 }
 0x269   :  { %p18467_p8 = pnand %p18465_p7, %p18462_p6 }
 0x26b   :  { %18470 = shalt.err (!%p18467_p8)
}
 0x26c   :  { %s18471_s27 = scalar_lea.vmem %s440_s5, 16  ;;  %s18475_s26 = scalar_lea.vmem %s440_s5, 32 }
 0x26d   :  { %p18472_p9 = scmp.ne.s32.totalorder %s440_s5, %s18471_s27  ;;  %p18476_p10 = scmp.lt.s32.totalorder %s440_s5, %s440_s5 }
 0x26e   :  { %p18477_p11 = scmp.lt.s32.totalorder %s18475_s26, %s18471_s27 }
 0x270   :  { %p18478_p12 = por %p18477_p11, %p18476_p10 }
 0x272   :  { %p18479_p13 = pnand %p18478_p12, %p18472_p9 }
 0x274   :  { %18482 = shalt.err (!%p18479_p13)
}
 0x275   :  { %s20710_s28 = sld [smem:[#allocation91_spill]] }
 0x276   :  { %442 = dma.hbm_to_vmem [thread:$0]  %s20709_s6, 16, %s440_s5, [#allocation41]  }
 0x27b   :  { %s18483_s8 = scalar_lea.hbm %s20710_s28, 2048 }
 0x27c   :  { %p18484_p0 = scmp.ne.s32.totalorder %s20710_s28, %s18483_s8  ;;  %p18487_p1 = scmp.lt.u32.totalorder %s18483_s8, %s20710_s28 }
 0x27e   :  { %p18489_p2 = pnand %p18487_p1, %p18484_p0 }
 0x280   :  { %18492 = shalt.err (!%p18489_p2)
}
 0x281   :  { %s18493_s1 = scalar_lea.vmem %s459_s23, 2048  ;;  %p18498_p4 = scmp.lt.s32.totalorder %s459_s23, %s459_s23 }
 0x282   :  { %p18494_p3 = scmp.ne.s32.totalorder %s459_s23, %s18493_s1  ;;  %p18499_p5 = scmp.lt.s32.totalorder %s18493_s1, %s18493_s1 }
 0x284   :  { %p18500_p6 = por %p18499_p5, %p18498_p4 }
 0x286   :  { %p18501_p7 = pnand %p18500_p6, %p18494_p3 }
 0x288   :  { %18504 = shalt.err (!%p18501_p7)
}
 0x289   :  { %464 = dma.hbm_to_vmem [thread:$0]  %s20710_s28, 2048, %s459_s23, [#allocation44], %s18588_s10, %s18588_s10, %s18589_s17  }
 0x28a   :  { %18505 = dma.done.wait [#allocation3], 2048  }
 0x28b   :  { %18506 = vsyncadd [#allocation3], 4294965248 }
 0x28c   :  { %18507 = dma.done.wait [#allocation5], 32  }
 0x28d   :  { %18508 = vsyncadd [#allocation5], 4294967264 }
 0x28e   :  { %18509 = dma.done.wait [#allocation8], 1040  }
 0x28f   :  { %18510 = vsyncadd [#allocation8], 4294966256 }
 0x290   :  { %18511 = dma.done.wait [#allocation11], 528  }
 0x291   :  { %18512 = vsyncadd [#allocation11], 4294966768 }
 0x292   :  { %18513 = dma.done.wait [#allocation14], 32  }
 0x293   :  { %18514 = vsyncadd [#allocation14], 4294967264 }
 0x294   :  { %18515 = dma.done.wait [#allocation17], 272  }
 0x295   :  { %18516 = vsyncadd [#allocation17], 4294967024 }
 0x296   :  { %18517 = dma.done.wait [#allocation20], 144  }
 0x297   :  { %18518 = vsyncadd [#allocation20], 4294967152 }
 0x298   :  { %18519 = dma.done.wait [#allocation23], 32  }
 0x299   :  { %18520 = vsyncadd [#allocation23], 4294967264 }
 0x29a   :  { %18521 = dma.done.wait [#allocation26], 4112  }
 0x29b   :  { %18522 = vsyncadd [#allocation26], 4294963184 }
 0x29c   :  { %18523 = dma.done.wait [#allocation29], 272  }
 0x29d   :  { %18524 = vsyncadd [#allocation29], 4294967024 }
 0x29e   :  { %18525 = dma.done.wait [#allocation32], 32  }
 0x29f   :  { %18526 = vsyncadd [#allocation32], 4294967264 }
 0x2a0   :  { %18527 = dma.done.wait [#allocation35], 528  }
 0x2a1   :  { %18528 = vsyncadd [#allocation35], 4294966768 }
 0x2a2   :  { %18529 = dma.done.wait [#allocation38], 8208  }
 0x2a3   :  { %18530 = vsyncadd [#allocation38], 4294959088 }
 0x2a4   :  { %18531 = dma.done.wait [#allocation41], 8208  }
 0x2a5   :  { %18532 = vsyncadd [#allocation41], 4294959088 }
 0x2a6   :  { %18533 = dma.done.wait [#allocation44], 2064  }
 0x2a7   :  { %18534 = vsyncadd [#allocation44], 4294965232  ;;  %s20711_s10 = sld [smem:[#allocation61_spill]]  ;;  %vm576_vm0 = vcmask 523264   ;;  %v572_v8 = vld [vmem:[#allocation2] sm:$0xff]  ;;  %v573_v14 = vld [vmem:[#allocation2 + $0x8] sm:$0xff] }
 0x2a8   :  { %13455 = vmatprep.mubr.msk.f32.mxu0 %vm576_vm0, %v572_v8  ;;  %v980_v10 = vld [vmem:[#allocation2 + $0x40] sm:$0xff]  ;;  %v574_v15 = vld [vmem:[#allocation2 + $0x10] sm:$0xff]  ;;  %v981_v16 = vld [vmem:[#allocation2 + $0x48] sm:$0xff]  ;;  %s20712_s17 = sld [smem:[#allocation63_spill]]  ;;  %vm1431_vm1 = vcmask 261120   ;;  %s20713_s24 = sld [smem:[#allocation65_spill]] }
 0x2a9   :  { %13575 = vmatprep.mubr.msk.f32.mxu1 %vm576_vm0, %v980_v10  ;;  %v982_v17 = vld [vmem:[#allocation2 + $0x50] sm:$0xff]  ;;  %v575_v18 = vld [vmem:[#allocation2 + $0x18] sm:$0xff]  ;;  %v691_v19 = vld [vmem:[#allocation2 + $0x20] sm:$0xff]  ;;  %vm18621_vm6 = vmmov 0   ;;  %s20714_s29 = sld [smem:[#allocation68_spill]]  ;;  %vm2161_vm9 = vcmask 130048  }
 0x2aa   :  { %v983_v20 = vld [vmem:[#allocation2 + $0x58] sm:$0xff]  ;;  %v1188_v21 = vld [vmem:[#allocation2 + $0x60] sm:$0xff]  ;;  %v692_v27 = vld [vmem:[#allocation2 + $0x28] sm:$0xff]  ;;  %s20715_s19 = sld [smem:[#allocation70_spill]]  ;;  %vm2829_vm11 = vcmask 64512   ;;  %s20716_s20 = sld [smem:[#allocation73_spill]] }
 0x2ab   :  { %v693_v28 = vld [vmem:[#allocation2 + $0x30] sm:$0xff]  ;;  %v1189_v30 = vld [vmem:[#allocation2 + $0x68] sm:$0xff]  ;;  %v694_v34 = vld [vmem:[#allocation2 + $0x38] sm:$0xff]  ;;  %vm3501_vm13 = vcmask 1043456   ;;  %vm3497_vm14 = vcmask 31744   ;;  %s20717_s2 = sld [smem:[#allocation75_spill]] }
 0x2ac   :  { %v1190_v33 = vld [vmem:[#allocation2 + $0x70] sm:$0xff]  ;;  %v1191_v36 = vld [vmem:[#allocation2 + $0x78] sm:$0xff]  ;;  %vm4171_vm15 = vcmask 1041408   ;;  %s20718_s7 = sld [smem:[#allocation76_spill]]  ;;  %s20719_s11 = sld [smem:[#allocation79_spill]] }
 0x2ad   :  { %v562_v0 = vld [vmem:[%s20711_s10] sm:$0xff]  ;;  %v563_v1 = vld [vmem:[%s20711_s10 + $0x8] sm:$0xff]  ;;  %v564_v2 = vld [vmem:[%s20711_s10 + $0x10] sm:$0xff]  ;;  %s20720_s0 = sld [smem:[#allocation80_spill]]  ;;  %s20721_s12 = sld [smem:[#allocation81_spill]] }
 0x2ae   :  { %v15929_v3 = vpack.c.bf16 %v563_v1, %v562_v0  ;;  %v565_v4 = vld [vmem:[%s20711_s10 + $0x18] sm:$0xff]  ;;  %v566_v6 = vld [vmem:[%s20711_s10 + $0x20] sm:$0xff]  ;;  %v567_v7 = vld [vmem:[%s20711_s10 + $0x28] sm:$0xff]  ;;  %s20722_s15 = sld [smem:[#allocation83_spill]]  ;;  %s20723_s25 = sld [smem:[#allocation84_spill]] }
 0x2af   :  { %v15933_v5 = vpack.c.bf16 %v565_v4, %v564_v2  ;;  %v15937_v9 = vpack.c.bf16 %v567_v7, %v566_v6  ;;  %v568_v11 = vld [vmem:[%s20711_s10 + $0x30] sm:$0xff]  ;;  %v569_v12 = vld [vmem:[%s20711_s10 + $0x38] sm:$0xff]  ;;  %v11460_v22 = vld [vmem:[%s20712_s17 + $0x80] sm:$0xff]  ;;  %s20724_s16 = sld [smem:[#allocation85_spill]]  ;;  %s20725_s14 = sld [smem:[#allocation87_spill]] }
 0x2b0   :  { %15930 = vmatprep.subr.bf16.mxu0 %v15929_v3  ;;  %16026 = vmatprep.subr.bf16.mxu1 %v15929_v3  ;;  %v15941_v13 = vpack.c.bf16 %v569_v12, %v568_v11  ;;  %v11461_v23 = vld [vmem:[%s20712_s17 + $0x88] sm:$0xff]  ;;  %v11462_v25 = vld [vmem:[%s20712_s17 + $0x90] sm:$0xff]  ;;  %v11463_v26 = vld [vmem:[%s20712_s17 + $0x98] sm:$0xff]  ;;  %s20726_s18 = sld [smem:[#allocation89_spill]]  ;;  %s20727_s6 = sld [smem:[#allocation92_spill]] }
 0x2b1   :  { %15932 = vmatpush3.bf16.msra.mxu0 %v15929_v3  ;;  %16028 = vmatpush3.bf16.msra.mxu1 %v15929_v3  ;;  %v15961_v24 = vpack.c.bf16 %v11461_v23, %v11460_v22  ;;  %v15965_v29 = vpack.c.bf16 %v11463_v26, %v11462_v25  ;;  %v11464_v31 = vld [vmem:[%s20712_s17 + $0xa0] sm:$0xff]  ;;  %v11465_v32 = vld [vmem:[%s20712_s17 + $0xa8] sm:$0xff]  ;;  %v11466_v37 = vld [vmem:[%s20712_s17 + $0xb0] sm:$0xff]  ;;  %s20728_s22 = sld [smem:[#allocation93_spill]] }
 0x2b2   :  { %15934 = vmatprep.subr.bf16.mxu0 %v15933_v5  ;;  %16030 = vmatprep.subr.bf16.mxu1 %v15933_v5  ;;  %v15969_v35 = vpack.c.bf16 %v11465_v32, %v11464_v31  ;;  %v11467_v38 = vld [vmem:[%s20712_s17 + $0xb8] sm:$0xff]  ;;  %v11468_v40 = vld [vmem:[%s20712_s17 + $0xc0] sm:$0xff]  ;;  %v11469_v41 = vld [vmem:[%s20712_s17 + $0xc8] sm:$0xff] }
 0x2b3   :  { %v15973_v39 = vpack.c.bf16 %v11467_v38, %v11466_v37  ;;  %v15977_v42 = vpack.c.bf16 %v11469_v41, %v11468_v40  ;;  %v11470_v43 = vld [vmem:[%s20712_s17 + $0xd0] sm:$0xff]  ;;  %v11471_v44 = vld [vmem:[%s20712_s17 + $0xd8] sm:$0xff]  ;;  %v11472_v45 = vld [vmem:[%s20712_s17 + $0xe0] sm:$0xff] }
 0x2b4   :  { %v15981_v46 = vpack.c.bf16 %v11471_v44, %v11470_v43  ;;  %v11473_v47 = vld [vmem:[%s20712_s17 + $0xe8] sm:$0xff]  ;;  %v11474_v49 = vld [vmem:[%s20712_s17 + $0xf0] sm:$0xff]  ;;  %v11475_v50 = vld [vmem:[%s20712_s17 + $0xf8] sm:$0xff] }
 0x2b5   :  { %15936 = vmatpush3.bf16.msra.mxu0 %v15933_v5  ;;  %16032 = vmatpush3.bf16.msra.mxu1 %v15933_v5  ;;  %v15985_v48 = vpack.c.bf16 %v11473_v47, %v11472_v45  ;;  %v15989_v51 = vpack.c.bf16 %v11475_v50, %v11474_v49  ;;  %v674_v52 = vld [vmem:[%s20712_s17] sm:$0xff]  ;;  %v675_v53 = vld [vmem:[%s20712_s17 + $0x8] sm:$0xff]  ;;  %v676_v63 = vld [vmem:[%s20712_s17 + $0x10] sm:$0xff] }
 0x2b6   :  { %15938 = vmatprep.subr.bf16.mxu0 %v15937_v9  ;;  %16034 = vmatprep.subr.bf16.mxu1 %v15937_v9  ;;  %v15993_v54 = vpack.c.bf16 %v675_v53, %v674_v52  ;;  %v677_v0 = vld [vmem:[%s20712_s17 + $0x18] sm:$0xff]  ;;  %v678_v4 = vld [vmem:[%s20712_s17 + $0x20] sm:$0xff]  ;;  %v680_v11 = vld [vmem:[%s20712_s17 + $0x30] sm:$0xff] }
 0x2b7   :  { %v681_v12 = vld [vmem:[%s20712_s17 + $0x38] sm:$0xff]  ;;  %v686_v22 = vld [vmem:[%s20712_s17 + $0x60] sm:$0xff]  ;;  %v687_v23 = vld [vmem:[%s20712_s17 + $0x68] sm:$0xff] }
 0x2b8   :  { %v688_v25 = vld [vmem:[%s20712_s17 + $0x70] sm:$0xff]  ;;  %v689_v26 = vld [vmem:[%s20712_s17 + $0x78] sm:$0xff]  ;;  %v11488_v40 = vld [vmem:[%s20712_s17 + $0x140] sm:$0xff] }
 0x2b9   :  { %15940 = vmatpush3.bf16.msra.mxu0 %v15937_v9  ;;  %16036 = vmatpush3.bf16.msra.mxu1 %v15937_v9  ;;  %v11482_v31 = vld [vmem:[%s20712_s17 + $0x110] sm:$0xff]  ;;  %v11483_v32 = vld [vmem:[%s20712_s17 + $0x118] sm:$0xff]  ;;  %v11489_v41 = vld [vmem:[%s20712_s17 + $0x148] sm:$0xff] }
 0x2ba   :  { %15942 = vmatprep.subr.bf16.mxu0 %v15941_v13  ;;  %16038 = vmatprep.subr.bf16.mxu1 %v15941_v13  ;;  %v11486_v37 = vld [vmem:[%s20712_s17 + $0x130] sm:$0xff]  ;;  %v11487_v38 = vld [vmem:[%s20712_s17 + $0x138] sm:$0xff]  ;;  %v11493_v47 = vld [vmem:[%s20712_s17 + $0x168] sm:$0xff] }
 0x2bb   :  { %v11490_v43 = vld [vmem:[%s20712_s17 + $0x150] sm:$0xff]  ;;  %v11491_v44 = vld [vmem:[%s20712_s17 + $0x158] sm:$0xff]  ;;  %v11500_v52 = vld [vmem:[%s20712_s17 + $0x180] sm:$0xff] }
 0x2bc   :  { %v16061_v45 = vpack.c.bf16 %v11491_v44, %v11490_v43  ;;  %v11494_v49 = vld [vmem:[%s20712_s17 + $0x170] sm:$0xff]  ;;  %v11495_v50 = vld [vmem:[%s20712_s17 + $0x178] sm:$0xff]  ;;  %v11501_v53 = vld [vmem:[%s20712_s17 + $0x188] sm:$0xff] }
 0x2bd   :  { %15944 = vmatpush3.bf16.msra.mxu0 %v15941_v13  ;;  %16040 = vmatpush3.bf16.msra.mxu1 %v15941_v13  ;;  %v1430_v43 = vld [vmem:[#allocation7 + $0x8] sm:$0xff]  ;;  %v1530_v44 = vld [vmem:[#allocation7 + $0x10] sm:$0xff] }
 0x2be   :  { %15946 = vmatprep.subr.bf16.mxu0 %v15929_v3  ;;  %16074 = vmatprep.subr.bf16.mxu1 %v15929_v3 }
 0x2c0   :  { %13456 = vmatmul.mubr.msk.f32.vlgmr.msra.gmra.mrb[0].mxu0 %vm576_vm0, %v573_v14  ;;  %13576 = vmatmul.mubr.msk.f32.vlgmr.msra.gmra.mrb[0].mxu1 %vm576_vm0, %v981_v16  ;;  %v682_v16 = vld [vmem:[%s20712_s17 + $0x40] sm:$0xff] }
 0x2c1   :  { %15948 = vmatpush3.bf16.msra.mxu0 %v15929_v3  ;;  %13458 = vmatprep.mubr.msk.f32.mxu0 %vm576_vm0, %v574_v15  ;;  %v16005_v15 = vpack.c.bf16 %v681_v12, %v680_v11  ;;  %v11515_v11 = vld [vmem:[%s20712_s17 + $0x1f8] sm:$0xff] }
 0x2c2   :  { %15950 = vmatprep.subr.bf16.mxu0 %v15933_v5  ;;  %16076 = vmatpush3.bf16.msra.mxu1 %v15929_v3  ;;  %v15997_v3 = vpack.c.bf16 %v677_v0, %v676_v63  ;;  %v11506_v0 = vld [vmem:[%s20712_s17 + $0x1b0] sm:$0xff] }
 0x2c3   :  { %13578 = vmatprep.mubr.msk.f32.mxu1 %vm576_vm0, %v982_v17  ;;  %16078 = vmatprep.subr.bf16.mxu1 %v15933_v5  ;;  %v683_v17 = vld [vmem:[%s20712_s17 + $0x48] sm:$0xff] }
 0x2c4   :  { %13459 = vmatmul.mubr.msk.f32.gmra.mrb[2].mxu0 %vm576_vm0, %v575_v18  ;;  %13579 = vmatmul.mubr.msk.f32.gmra.mrb[2].mxu1 %vm576_vm0, %v983_v20  ;;  %v16009_v18 = vpack.c.bf16 %v683_v17, %v682_v16  ;;  %v685_v20 = vld [vmem:[%s20712_s17 + $0x58] sm:$0xff]  ;;  %v11516_v16 = vld [vmem:[#allocation4] ss:$0 sm:$0xff]  ;;  %v11517_v17 = vld [vmem:[#allocation6] ss:$0 sm:$0xff] }
 0x2c5   :  { %15952 = vmatpush3.bf16.msra.mxu0 %v15933_v5  ;;  %13477 = vmatprep.mubr.msk.f32.mxu0 %vm576_vm0, %v691_v19  ;;  %v684_v19 = vld [vmem:[%s20712_s17 + $0x50] sm:$0xff] }
 0x2c6   :  { %15954 = vmatprep.subr.bf16.mxu0 %v15937_v9  ;;  %16080 = vmatpush3.bf16.msra.mxu1 %v15933_v5  ;;  %v679_v5 = vld [vmem:[%s20712_s17 + $0x28] sm:$0xff] }
 0x2c7   :  { %13635 = vmatprep.mubr.msk.f32.mxu1 %vm576_vm0, %v1188_v21  ;;  %16082 = vmatprep.subr.bf16.mxu1 %v15937_v9  ;;  %v16001_v10 = vpack.c.bf16 %v679_v5, %v678_v4  ;;  %v16013_v21 = vpack.c.bf16 %v685_v20, %v684_v19  ;;  %v11510_v4 = vld [vmem:[%s20712_s17 + $0x1d0] sm:$0xff]  ;;  %v11511_v5 = vld [vmem:[%s20712_s17 + $0x1d8] sm:$0xff] }
 0x2c9   :  { %15956 = vmatpush3.bf16.msra.mxu0 %v15937_v9 }
 0x2ca   :  { %15958 = vmatprep.subr.bf16.mxu0 %v15941_v13  ;;  %16084 = vmatpush3.bf16.msra.mxu1 %v15937_v9 }
 0x2cb   :  { %16086 = vmatprep.subr.bf16.mxu1 %v15941_v13 }
 0x2cd   :  { %15960 = vmatpush3.bf16.msra.mxu0 %v15941_v13 }
 0x2ce   :  { %15962 = vmatprep.subr.bf16.mxu0 %v15961_v24  ;;  %16088 = vmatpush3.bf16.msra.mxu1 %v15941_v13 }
 0x2d0   :  { %13478 = vmatmul.mubr.msk.f32.vlgmr.msra.gmra.mrb[4].mxu0 %vm576_vm0, %v692_v27  ;;  %v16021_v27 = vpack.c.bf16 %v689_v26, %v688_v25 }
 0x2d1   :  { %13480 = vmatprep.mubr.msk.f32.mxu0 %vm576_vm0, %v693_v28  ;;  %15964 = vmatpush3.bf16.msra.mxu0 %v15961_v24  ;;  %v16017_v24 = vpack.c.bf16 %v687_v23, %v686_v22  ;;  %v11480_v28 = vld [vmem:[%s20712_s17 + $0x100] sm:$0xff] }
 0x2d2   :  { %13636 = vmatmul.mubr.msk.f32.vlgmr.msra.gmra.mrb[4].mxu1 %vm576_vm0, %v1189_v30  ;;  %15966 = vmatprep.subr.bf16.mxu0 %v15965_v29 }
 0x2d3   :  { %13638 = vmatprep.mubr.msk.f32.mxu1 %vm576_vm0, %v1190_v33  ;;  %v16045_v33 = vpack.c.bf16 %v11483_v32, %v11482_v31 }
 0x2d4   :  { %13481 = vmatmul.mubr.msk.f32.gmra.mrb[6].mxu0 %vm576_vm0, %v694_v34  ;;  %v11484_v34 = vld [vmem:[%s20712_s17 + $0x120] sm:$0xff] }
 0x2d5   :  { %15968 = vmatpush3.bf16.msra.mxu0 %v15965_v29  ;;  %v11481_v29 = vld [vmem:[%s20712_s17 + $0x108] sm:$0xff] }
 0x2d6   :  { %13639 = vmatmul.mubr.msk.f32.gmra.mrb[6].mxu1 %vm576_vm0, %v1191_v36  ;;  %15970 = vmatprep.subr.bf16.mxu0 %v15969_v35  ;;  %v16041_v30 = vpack.c.bf16 %v11481_v29, %v11480_v28 }
 0x2d9   :  { %15972 = vmatpush3.bf16.msra.mxu0 %v15969_v35  ;;  %v11485_v35 = vld [vmem:[%s20712_s17 + $0x128] sm:$0xff] }
 0x2da   :  { %15974 = vmatprep.subr.bf16.mxu0 %v15973_v39  ;;  %v16049_v36 = vpack.c.bf16 %v11485_v35, %v11484_v34 }
 0x2dd   :  { %15976 = vmatpush3.bf16.msra.mxu0 %v15973_v39  ;;  %v16053_v39 = vpack.c.bf16 %v11487_v38, %v11486_v37 }
 0x2de   :  { %15978 = vmatprep.subr.bf16.mxu0 %v15977_v42 }
 0x2e1   :  { %15980 = vmatpush3.bf16.msra.mxu0 %v15977_v42  ;;  %v16057_v42 = vpack.c.bf16 %v11489_v41, %v11488_v40 }
 0x2e2   :  { %15982 = vmatprep.subr.bf16.mxu0 %v15981_v46 }
 0x2e5   :  { %15984 = vmatpush3.bf16.msra.mxu0 %v15981_v46  ;;  %v11492_v46 = vld [vmem:[%s20712_s17 + $0x160] sm:$0xff] }
 0x2e6   :  { %15986 = vmatprep.subr.bf16.mxu0 %v15985_v48 }
 0x2e9   :  { %15988 = vmatpush3.bf16.msra.mxu0 %v15985_v48  ;;  %v16065_v48 = vpack.c.bf16 %v11493_v47, %v11492_v46  ;;  %v11523_v46 = vld [vmem:[%s20713_s24 + $0x88] sm:$0xff] }
 0x2ea   :  { %15990 = vmatprep.subr.bf16.mxu0 %v15989_v51 }
 0x2ed   :  { %15992 = vmatpush3.bf16.msra.mxu0 %v15989_v51  ;;  %v16069_v51 = vpack.c.bf16 %v11495_v50, %v11494_v49  ;;  %v11525_v49 = vld [vmem:[%s20713_s24 + $0x98] sm:$0xff] }
 0x2ee   :  { %15994 = vmatprep.subr.bf16.mxu0 %v15993_v54  ;;  %v1531_v50 = vld [vmem:[#allocation7 + $0x18] sm:$0xff] }
 0x393   :  { %v19071_v55 = vpop.f32.mrb[0].mxu0  ;;  %v19073_v57 = vpop.f32.mrb[0].mxu1 }
 0x394   :  { %v655_v56 = vpop.f32.mrb[1].mxu0  ;;  %v19075_v58 = vpop.f32.mrb[1].mxu1 }
 0x397   :  { %v19077_v59 = vpop.f32.mrb[2].mxu0  ;;  %v19079_v61 = vpop.f32.mrb[2].mxu1 }
 0x398   :  { %v665_v60 = vpop.f32.mrb[3].mxu0  ;;  %v19081_v62 = vpop.f32.mrb[3].mxu1 }
 0x3a3   :  { %v13479_v1 = vpop.f32.mrb[4].mxu0 }
 0x3a4   :  { %v773_v2 = vpop.f32.mrb[5].mxu0 }
 0x3a5   :  { %13515 = vmatprep.mubr.f32.mxu0 %v773_v2  ;;  %v19087_v6 = vpop.f32.mrb[4].mxu1 }
 0x3a6   :  { %13516 = vmatmul.mubr.f32.vlgmr.msra.gmra.mrb[8].mxu0 %v13479_v1  ;;  %v19089_v7 = vpop.f32.mrb[5].mxu1  ;;  %v11507_v1 = vld [vmem:[%s20712_s17 + $0x1b8] sm:$0xff] }
 0x3a7   :  { %15996 = vmatpush3.bf16.msra.mxu0 %v15993_v54  ;;  %v13482_v8 = vpop.f32.mrb[6].mxu0  ;;  %v16089_v54 = vpack.c.bf16 %v11501_v53, %v11500_v52  ;;  %v16101_v2 = vpack.c.bf16 %v11507_v1, %v11506_v0  ;;  %v11526_v52 = vld [vmem:[%s20713_s24 + $0xa0] sm:$0xff]  ;;  %v11527_v53 = vld [vmem:[%s20713_s24 + $0xa8] sm:$0xff]  ;;  %v11532_v0 = vld [vmem:[%s20713_s24 + $0xd0] sm:$0xff] }
 0x3a8   :  { %v783_v9 = vpop.f32.mrb[7].mxu0  ;;  %15998 = vmatprep.subr.bf16.mxu0 %v15997_v3  ;;  %v11533_v1 = vld [vmem:[%s20713_s24 + $0xd8] sm:$0xff] }
 0x3a9   :  { %13518 = vmatprep.mubr.f32.mxu0 %v783_v9  ;;  %v19093_v13 = vpop.f32.mrb[6].mxu1  ;;  %v11512_v9 = vld [vmem:[%s20712_s17 + $0x1e0] sm:$0xff] }
 0x3aa   :  { %13519 = vmatmul.mubr.f32.gmra.mrb[10].mxu0 %v13482_v8  ;;  %v19095_v14 = vpop.f32.mrb[7].mxu1  ;;  %v16109_v8 = vpack.c.bf16 %v11511_v5, %v11510_v4  ;;  %v11536_v4 = vld [vmem:[%s20713_s24 + $0xf0] sm:$0xff]  ;;  %v11537_v5 = vld [vmem:[%s20713_s24 + $0xf8] sm:$0xff] }
 0x3ab   :  { %16000 = vmatpush3.bf16.msra.mxu0 %v15997_v3  ;;  %13553 = vmatprep.mubr.f32.mxu0 %v655_v56  ;;  %v11503_v56 = vld [vmem:[%s20712_s17 + $0x198] sm:$0xff]  ;;  %v11509_v3 = vld [vmem:[%s20712_s17 + $0x1c8] sm:$0xff] }
 0x3ac   :  { %16002 = vmatprep.subr.bf16.mxu0 %v16001_v10 }
 0x3af   :  { %16004 = vmatpush3.bf16.msra.mxu0 %v16001_v10 }
 0x3b0   :  { %16006 = vmatprep.subr.bf16.mxu0 %v16005_v15 }
 0x3b3   :  { %16008 = vmatpush3.bf16.msra.mxu0 %v16005_v15  ;;  %v1429_v15 = vld [vmem:[#allocation7] sm:$0xff] }
 0x3b4   :  { %16010 = vmatprep.subr.bf16.mxu0 %v16009_v18  ;;  %13687 = vmatprep.mubr.msk.f32.mxu1 %vm1431_vm1, %v1429_v15 }
 0x3b7   :  { %16012 = vmatpush3.bf16.msra.mxu0 %v16009_v18 }
 0x3b8   :  { %16014 = vmatprep.subr.bf16.mxu0 %v16013_v21 }
 0x3bb   :  { %16016 = vmatpush3.bf16.msra.mxu0 %v16013_v21 }
 0x3bc   :  { %16018 = vmatprep.subr.bf16.mxu0 %v16017_v24 }
 0x3bf   :  { %16020 = vmatpush3.bf16.msra.mxu0 %v16017_v24 }
 0x3c0   :  { %16022 = vmatprep.subr.bf16.mxu0 %v16021_v27 }
 0x3c3   :  { %16024 = vmatpush3.bf16.msra.mxu0 %v16021_v27 }
 0x3c4   :  { %16042 = vmatprep.subr.bf16.mxu0 %v16041_v30 }
 0x3c6   :  { %13554 = vmatmul.mubr.f32.vlgmr.msra.gmra.mrb[8].mxu0 %v19071_v55  ;;  %v11502_v55 = vld [vmem:[%s20712_s17 + $0x190] sm:$0xff] }
 0x3c7   :  { %13556 = vmatprep.mubr.f32.mxu0 %v665_v60  ;;  %16044 = vmatpush3.bf16.msra.mxu0 %v16041_v30  ;;  %v11505_v60 = vld [vmem:[%s20712_s17 + $0x1a8] sm:$0xff] }
 0x3c8   :  { %16046 = vmatprep.subr.bf16.mxu0 %v16045_v33 }
 0x3ca   :  { %13557 = vmatmul.mubr.f32.gmra.mrb[10].mxu0 %v19077_v59  ;;  %v11504_v59 = vld [vmem:[%s20712_s17 + $0x1a0] sm:$0xff] }
 0x3cb   :  { %16048 = vmatpush3.bf16.msra.mxu0 %v16045_v33  ;;  %13613 = vmatprep.mubr.f32.mxu0 %v19075_v58  ;;  %v16093_v58 = vpack.c.bf16 %v11503_v56, %v11502_v55  ;;  %v16097_v63 = vpack.c.bf16 %v11505_v60, %v11504_v59  ;;  %v11528_v55 = vld [vmem:[%s20713_s24 + $0xb0] sm:$0xff]  ;;  %v11529_v56 = vld [vmem:[%s20713_s24 + $0xb8] sm:$0xff]  ;;  %v11530_v59 = vld [vmem:[%s20713_s24 + $0xc0] sm:$0xff] }
 0x3cc   :  { %16050 = vmatprep.subr.bf16.mxu0 %v16049_v36  ;;  %v11531_v60 = vld [vmem:[%s20713_s24 + $0xc8] sm:$0xff] }
 0x3cf   :  { %16052 = vmatpush3.bf16.msra.mxu0 %v16049_v36 }
 0x3d0   :  { %16054 = vmatprep.subr.bf16.mxu0 %v16053_v39 }
 0x3d3   :  { %16056 = vmatpush3.bf16.msra.mxu0 %v16053_v39 }
 0x3d4   :  { %16058 = vmatprep.subr.bf16.mxu0 %v16057_v42 }
 0x3d7   :  { %16060 = vmatpush3.bf16.msra.mxu0 %v16057_v42 }
 0x3d8   :  { %16062 = vmatprep.subr.bf16.mxu0 %v16061_v45 }
 0x3db   :  { %16064 = vmatpush3.bf16.msra.mxu0 %v16061_v45  ;;  %v11522_v45 = vld [vmem:[%s20713_s24 + $0x80] sm:$0xff] }
 0x3dc   :  { %16066 = vmatprep.subr.bf16.mxu0 %v16065_v48  ;;  %v16137_v47 = vpack.c.bf16 %v11523_v46, %v11522_v45  ;;  %v11543_v45 = vld [vmem:[%s20713_s24 + $0x118] sm:$0xff]  ;;  %v1782_v46 = vld [vmem:[#allocation7 + $0x28] sm:$0xff] }
 0x3df   :  { %16068 = vmatpush3.bf16.msra.mxu0 %v16065_v48  ;;  %v11524_v48 = vld [vmem:[%s20713_s24 + $0x90] sm:$0xff] }
 0x3e0   :  { %16070 = vmatprep.subr.bf16.mxu0 %v16069_v51 }
 0x3e3   :  { %16072 = vmatpush3.bf16.msra.mxu0 %v16069_v51  ;;  %v16141_v51 = vpack.c.bf16 %v11525_v49, %v11524_v48  ;;  %v11544_v48 = vld [vmem:[%s20713_s24 + $0x120] sm:$0xff]  ;;  %v11545_v49 = vld [vmem:[%s20713_s24 + $0x128] sm:$0xff] }
 0x3e4   :  { %16090 = vmatprep.subr.bf16.mxu0 %v16089_v54 }
 0x3e6   :  { %13614 = vmatmul.mubr.f32.vlgmr.msra.gmra.mrb[8].mxu0 %v19073_v57  ;;  %v11508_v57 = vld [vmem:[%s20712_s17 + $0x1c0] sm:$0xff] }
 0x3e7   :  { %16092 = vmatpush3.bf16.msra.mxu0 %v16089_v54  ;;  %13616 = vmatprep.mubr.f32.mxu0 %v19081_v62  ;;  %v16105_v62 = vpack.c.bf16 %v11509_v3, %v11508_v57  ;;  %v16145_v54 = vpack.c.bf16 %v11527_v53, %v11526_v52  ;;  %v11534_v57 = vld [vmem:[%s20713_s24 + $0xe0] sm:$0xff]  ;;  %v11535_v3 = vld [vmem:[%s20713_s24 + $0xe8] sm:$0xff] }
 0x3e8   :  { %16094 = vmatprep.subr.bf16.mxu0 %v16093_v58  ;;  %v11548_v52 = vld [vmem:[%s20713_s24 + $0x140] sm:$0xff]  ;;  %v11549_v53 = vld [vmem:[%s20713_s24 + $0x148] sm:$0xff] }
 0x3ea   :  { %13617 = vmatmul.mubr.f32.gmra.mrb[10].mxu0 %v19079_v61  ;;  %v11513_v61 = vld [vmem:[%s20712_s17 + $0x1e8] sm:$0xff] }
 0x3eb   :  { %16096 = vmatpush3.bf16.msra.mxu0 %v16093_v58  ;;  %13673 = vmatprep.mubr.f32.mxu0 %v19089_v7  ;;  %v16113_v10 = vpack.c.bf16 %v11513_v61, %v11512_v9  ;;  %v11514_v7 = vld [vmem:[%s20712_s17 + $0x1f0] sm:$0xff]  ;;  %v16149_v58 = vpack.c.bf16 %v11529_v56, %v11528_v55  ;;  %v1513_v9 = vld [vmem:[%s20713_s24] sm:$0xff]  ;;  %v1514_v61 = vld [vmem:[%s20713_s24 + $0x8] sm:$0xff] }
 0x3ec   :  { %16098 = vmatprep.subr.bf16.mxu0 %v16097_v63  ;;  %v16117_v12 = vpack.c.bf16 %v11515_v11, %v11514_v7  ;;  %v1959_v7 = vld [vmem:[#allocation7 + $0x30] sm:$0xff]  ;;  %v1960_v11 = vld [vmem:[#allocation7 + $0x38] sm:$0xff] }
 0x3ed   :  { %v11550_v55 = vld [vmem:[%s20713_s24 + $0x150] sm:$0xff]  ;;  %v11551_v56 = vld [vmem:[%s20713_s24 + $0x158] sm:$0xff] }
 0x3ef   :  { %16100 = vmatpush3.bf16.msra.mxu0 %v16097_v63  ;;  %v16153_v63 = vpack.c.bf16 %v11531_v60, %v11530_v59  ;;  %v11552_v59 = vld [vmem:[%s20713_s24 + $0x160] sm:$0xff]  ;;  %v11553_v60 = vld [vmem:[%s20713_s24 + $0x168] sm:$0xff] }
 0x3f0   :  { %16102 = vmatprep.subr.bf16.mxu0 %v16101_v2 }
 0x3f3   :  { %16104 = vmatpush3.bf16.msra.mxu0 %v16101_v2  ;;  %v16157_v2 = vpack.c.bf16 %v11533_v1, %v11532_v0  ;;  %v11554_v0 = vld [vmem:[%s20713_s24 + $0x170] sm:$0xff]  ;;  %v11555_v1 = vld [vmem:[%s20713_s24 + $0x178] sm:$0xff] }
 0x3f4   :  { %16106 = vmatprep.subr.bf16.mxu0 %v16105_v62 }
 0x3f7   :  { %16108 = vmatpush3.bf16.msra.mxu0 %v16105_v62  ;;  %v16161_v62 = vpack.c.bf16 %v11535_v3, %v11534_v57  ;;  %v11558_v57 = vld [vmem:[%s20713_s24 + $0x180] sm:$0xff]  ;;  %v11559_v3 = vld [vmem:[%s20713_s24 + $0x188] sm:$0xff] }
 0x3f8   :  { %16110 = vmatprep.subr.bf16.mxu0 %v16109_v8 }
 0x3fb   :  { %16112 = vmatpush3.bf16.msra.mxu0 %v16109_v8  ;;  %v16165_v8 = vpack.c.bf16 %v11537_v5, %v11536_v4 }
 0x3fc   :  { %16114 = vmatprep.subr.bf16.mxu0 %v16113_v10 }
 0x3ff   :  { %16116 = vmatpush3.bf16.msra.mxu0 %v16113_v10  ;;  %v16169_v10 = vpack.c.bf16 %v1514_v61, %v1513_v9  ;;  %v11561_v9 = vld [vmem:[%s20713_s24 + $0x198] sm:$0xff] }
 0x400   :  { %16118 = vmatprep.subr.bf16.mxu0 %v16117_v12 }
 0x403   :  { %16120 = vmatpush3.bf16.msra.mxu0 %v16117_v12 }
 0x406   :  { %13674 = vmatmul.mubr.f32.vlgmr.msra.gmra.mrb[8].mxu0 %v19087_v6 }
 0x407   :  { %13676 = vmatprep.mubr.f32.mxu0 %v19095_v14 }
 0x40a   :  { %13677 = vmatmul.mubr.f32.gmra.mrb[10].mxu0 %v19093_v13 }
 0x40b   :  { %13825 = vmatprep.mubr.msk.f32.mxu0 %vm1431_vm1, %v1959_v7 }
 0x4d9   :  { %v13675_v18 = vpop.f32.mrb[8].mxu0 }
 0x4da   :  { %v1402_v19 = vmul.f32 %v13675_v18, %v11516_v16  ;;  %v1372_v20 = vpop.f32.mrb[9].mxu0 }
 0x4db   :  { %v1401_v21 = vmul.f32 %v11516_v16, %v1372_v20 }
 0x4dc   :  { %v1412_v22 = vadd.f32 %v11517_v17, %v1402_v19 }
 0x4dd   :  { %v1411_v23 = vadd.f32 %v11517_v17, %v1401_v21  ;;  %v13678_v24 = vpop.f32.mrb[10].mxu0  ;;  %v1517_v21 = vld [vmem:[%s20713_s24 + $0x20] sm:$0xff] }
 0x4de   :  { %vm1418_vm2 = vcmp.ge.f32.partialorder %v1412_v22, 0.0  ;;  %v1422_v25 = vmul.f32 0.2, %v1412_v22  ;;  %v9491_v6 = vmax.f32 %v1412_v22, 0.0  ;;  %v1404_v26 = vmul.f32 %v13678_v24, %v11516_v16  ;;  %v1382_v14 = vpop.f32.mrb[11].mxu0  ;;  %v1519_v24 = vld [vmem:[%s20713_s24 + $0x30] sm:$0xff] }
 0x4df   :  { %vm1417_vm3 = vcmp.ge.f32.partialorder %v1411_v23, 0.0  ;;  %v1421_v13 = vmul.f32 0.2, %v1411_v23  ;;  %v9490_v27 = vmax.f32 %v1411_v23, 0.0  ;;  %v1403_v28 = vmul.f32 %v11516_v16, %v1382_v14  ;;  %v1515_v16 = vld [vmem:[%s20713_s24 + $0x10] sm:$0xff]  ;;  %v1522_v14 = vld [vmem:[%s20713_s24 + $0x48] sm:$0xff] }
 0x4e0   :  { %v1426_v29 = vsel %vm1418_vm2, %v1412_v22, %v1422_v25  ;;  %v1414_v30 = vadd.f32 %v11517_v17, %v1404_v26  ;;  %v1518_v22 = vld [vmem:[%s20713_s24 + $0x28] sm:$0xff]  ;;  %v1520_v25 = vld [vmem:[%s20713_s24 + $0x38] sm:$0xff]  ;;  %v1521_v26 = vld [vmem:[%s20713_s24 + $0x40] sm:$0xff]  ;;  %vm4167_vm2 = vcmask 15360  }
 0x4e1   :  { %v1425_v31 = vsel %vm1417_vm3, %v1411_v23, %v1421_v13  ;;  %v19148_v32 = vpack.c.bf16 %v9491_v6, %v9490_v27  ;;  %v1413_v33 = vadd.f32 %v11517_v17, %v1403_v28  ;;  %v1516_v17 = vld [vmem:[%s20713_s24 + $0x18] sm:$0xff]  ;;  %v16177_v23 = vpack.c.bf16 %v1518_v22, %v1517_v21  ;;  %v1523_v27 = vld [vmem:[%s20713_s24 + $0x50] sm:$0xff] }
 0x4e2   :  { %v19150_v34 = vpack.c.bf16 %v1426_v29, %v1425_v31  ;;  %vm1420_vm4 = vcmp.ge.f32.partialorder %v1414_v30, 0.0  ;;  %v1424_v35 = vmul.f32 0.2, %v1414_v30  ;;  %v9493_v36 = vmax.f32 %v1414_v30, 0.0  ;;  %v1524_v28 = vld [vmem:[%s20713_s24 + $0x58] sm:$0xff]  ;;  %v1526_v31 = vld [vmem:[%s20713_s24 + $0x68] sm:$0xff] }
 0x4e3   :  { %vm1419_vm5 = vcmp.ge.f32.partialorder %v1413_v33, 0.0  ;;  %v1423_v37 = vmul.f32 0.2, %v1413_v33  ;;  %v9492_v38 = vmax.f32 %v1413_v33, 0.0  ;;  %v16173_v20 = vpack.c.bf16 %v1516_v17, %v1515_v16  ;;  %v11564_v16 = vld [vmem:[%s20713_s24 + $0x1b0] sm:$0xff]  ;;  %v11565_v17 = vld [vmem:[%s20713_s24 + $0x1b8] sm:$0xff] }
 0x4e4   :  { %v1428_v39 = vsel %vm1420_vm4, %v1414_v30, %v1424_v35  ;;  %16122 = vmatprep.subr.bf16.mxu1 %v19150_v34  ;;  %16242 = vmatprep.subr.bf16.mxu0 %v19150_v34  ;;  %v16181_v6 = vpack.c.bf16 %v1520_v25, %v1519_v24  ;;  %v16185_v13 = vpack.c.bf16 %v1522_v14, %v1521_v26  ;;  %v1525_v30 = vld [vmem:[%s20713_s24 + $0x60] sm:$0xff]  ;;  %v1527_v35 = vld [vmem:[%s20713_s24 + $0x70] sm:$0xff] }
 0x4e5   :  { %v1427_v40 = vsel %vm1419_vm5, %v1413_v33, %v1423_v37  ;;  %v19154_v41 = vpack.c.bf16 %v9493_v36, %v9492_v38  ;;  %16124 = vmatpush3.bf16.msra.mxu1 %v19150_v34  ;;  %16244 = vmatpush3.bf16.msra.mxu0 %v19150_v34  ;;  %v16189_v29 = vpack.c.bf16 %v1524_v28, %v1523_v27  ;;  %v1528_v36 = vld [vmem:[%s20713_s24 + $0x78] sm:$0xff]  ;;  %v1781_v38 = vld [vmem:[#allocation7 + $0x20] sm:$0xff]  ;;  %v11568_v22 = vld [vmem:[%s20713_s24 + $0x1d0] sm:$0xff]  ;;  %v18620_v28 = vmov 0.0|0.0  }
 0x4e6   :  { %v19158_v42 = vpack.c.bf16 %v1428_v39, %v1427_v40  ;;  %v16193_v33 = vpack.c.bf16 %v1526_v31, %v1525_v30  ;;  %v16197_v37 = vpack.c.bf16 %v1528_v36, %v1527_v35  ;;  %v11540_v39 = vld [vmem:[%s20713_s24 + $0x100] sm:$0xff]  ;;  %v11541_v40 = vld [vmem:[%s20713_s24 + $0x108] sm:$0xff]  ;;  %v11572_v14 = vld [vmem:[%s20713_s24 + $0x1f0] sm:$0xff] }
 0x4e7   :  { %v11570_v25 = vld [vmem:[%s20713_s24 + $0x1e0] sm:$0xff] }
 0x4e8   :  { %16126 = vmatprep.subr.bf16.mxu1 %v19158_v42  ;;  %16246 = vmatprep.subr.bf16.mxu0 %v19158_v42  ;;  %v11574_v30 = vld [vmem:[#allocation9] ss:$0 sm:$0xff]  ;;  %v11575_v31 = vld [vmem:[#allocation10] ss:$0 sm:$0xff] }
 0x4e9   :  { %16128 = vmatpush3.bf16.msra.mxu1 %v19158_v42  ;;  %16248 = vmatpush3.bf16.msra.mxu0 %v19158_v42 }
 0x4ea   :  { %16130 = vmatprep.subr.bf16.mxu1 %v19150_v34  ;;  %16281 = vmatprep.subr.bf16.mxu0 %v18620_v28 }
 0x4ec   :  { %13688 = vmatmul.mubr.msk.f32.vlgmr.msra.gmra.mrb[8].mxu1 %vm1431_vm1, %v1430_v43  ;;  %13826 = vmatmul.mubr.msk.f32.vlgmr.msra.gmra.mrb[12].mxu0 %vm1431_vm1, %v1960_v11  ;;  %v16209_v43 = vpack.c.bf16 %v11541_v40, %v11540_v39  ;;  %v11562_v11 = vld [vmem:[%s20713_s24 + $0x1a0] sm:$0xff] }
 0x4ed   :  { %16132 = vmatpush3.bf16.msra.mxu1 %v19150_v34  ;;  %13698 = vmatprep.mubr.msk.f32.mxu1 %vm1431_vm1, %v1530_v44  ;;  %v11542_v44 = vld [vmem:[%s20713_s24 + $0x110] sm:$0xff] }
 0x4ee   :  { %16134 = vmatprep.subr.bf16.mxu1 %v19158_v42 }
 0x4f1   :  { %16136 = vmatpush3.bf16.msra.mxu1 %v19158_v42 }
 0x4f2   :  { %16138 = vmatprep.subr.bf16.mxu1 %v16137_v47 }
 0x4f4   :  { %13699 = vmatmul.mubr.msk.f32.vlgmr.msra.gmra.mrb[10].mxu1 %vm1431_vm1, %v1531_v50  ;;  %v11546_v50 = vld [vmem:[%s20713_s24 + $0x130] sm:$0xff] }
 0x4f5   :  { %16140 = vmatpush3.bf16.msra.mxu1 %v16137_v47  ;;  %v16213_v47 = vpack.c.bf16 %v11543_v45, %v11542_v44 }
 0x4f6   :  { %16142 = vmatprep.subr.bf16.mxu1 %v16141_v51 }
 0x4f9   :  { %16144 = vmatpush3.bf16.msra.mxu1 %v16141_v51  ;;  %v11547_v51 = vld [vmem:[%s20713_s24 + $0x138] sm:$0xff] }
 0x4fa   :  { %16146 = vmatprep.subr.bf16.mxu1 %v16145_v54 }
 0x4fd   :  { %16148 = vmatpush3.bf16.msra.mxu1 %v16145_v54  ;;  %v16225_v54 = vpack.c.bf16 %v11549_v53, %v11548_v52  ;;  %v2252_v52 = vld [vmem:[#allocation12 + $0x8] sm:$0xff]  ;;  %v2647_v53 = vld [vmem:[#allocation12 + $0x18] sm:$0xff] }
 0x4fe   :  { %16150 = vmatprep.subr.bf16.mxu1 %v16149_v58 }
 0x501   :  { %16152 = vmatpush3.bf16.msra.mxu1 %v16149_v58  ;;  %v16229_v58 = vpack.c.bf16 %v11551_v56, %v11550_v55  ;;  %v11580_v55 = vld [vmem:[%s20714_s29 + $0x90] sm:$0xff]  ;;  %v11581_v56 = vld [vmem:[%s20714_s29 + $0x98] sm:$0xff] }
 0x502   :  { %16154 = vmatprep.subr.bf16.mxu1 %v16153_v63 }
 0x505   :  { %16156 = vmatpush3.bf16.msra.mxu1 %v16153_v63  ;;  %v16233_v63 = vpack.c.bf16 %v11553_v60, %v11552_v59  ;;  %v11582_v59 = vld [vmem:[%s20714_s29 + $0xa0] sm:$0xff]  ;;  %v11583_v60 = vld [vmem:[%s20714_s29 + $0xa8] sm:$0xff] }
 0x506   :  { %16158 = vmatprep.subr.bf16.mxu1 %v16157_v2 }
 0x509   :  { %16160 = vmatpush3.bf16.msra.mxu1 %v16157_v2  ;;  %v16237_v2 = vpack.c.bf16 %v11555_v1, %v11554_v0  ;;  %v11584_v0 = vld [vmem:[%s20714_s29 + $0xb0] sm:$0xff]  ;;  %v11585_v1 = vld [vmem:[%s20714_s29 + $0xb8] sm:$0xff] }
 0x50a   :  { %16162 = vmatprep.subr.bf16.mxu1 %v16161_v62 }
 0x50d   :  { %16164 = vmatpush3.bf16.msra.mxu1 %v16161_v62  ;;  %v16249_v62 = vpack.c.bf16 %v11559_v3, %v11558_v57  ;;  %v11586_v57 = vld [vmem:[%s20714_s29 + $0xc0] sm:$0xff]  ;;  %v11587_v3 = vld [vmem:[%s20714_s29 + $0xc8] sm:$0xff] }
 0x50e   :  { %16166 = vmatprep.subr.bf16.mxu1 %v16165_v8 }
 0x511   :  { %16168 = vmatpush3.bf16.msra.mxu1 %v16165_v8  ;;  %v11560_v8 = vld [vmem:[%s20713_s24 + $0x190] sm:$0xff] }
 0x512   :  { %16170 = vmatprep.subr.bf16.mxu1 %v16169_v10  ;;  %v16253_v7 = vpack.c.bf16 %v11561_v9, %v11560_v8  ;;  %v11590_v9 = vld [vmem:[%s20714_s29 + $0xe0] sm:$0xff] }
 0x5bf   :  { %v13689_v12 = vpop.f32.mrb[8].mxu1  ;;  %v13827_v4 = vpop.f32.mrb[12].mxu0 }
 0x5c0   :  { %v1504_v15 = vpop.f32.mrb[9].mxu1  ;;  %v2033_v5 = vpop.f32.mrb[13].mxu0 }
 0x5c7   :  { %v13700_v18 = vpop.f32.mrb[10].mxu1 }
 0x5c8   :  { %v1604_v19 = vpop.f32.mrb[11].mxu1 }
 0x5c9   :  { %13733 = vmatprep.mubr.f32.mxu1 %v1604_v19  ;;  %v11566_v19 = vld [vmem:[%s20713_s24 + $0x1c0] sm:$0xff] }
 0x5ca   :  { %13734 = vmatmul.mubr.f32.vlgmr.msra.gmra.mrb[12].mxu1 %v13700_v18  ;;  %v16261_v18 = vpack.c.bf16 %v11565_v17, %v11564_v16  ;;  %v2236_v16 = vld [vmem:[%s20714_s29 + $0x8] sm:$0xff] }
 0x5cb   :  { %16172 = vmatpush3.bf16.msra.mxu1 %v16169_v10  ;;  %13768 = vmatprep.mubr.f32.mxu1 %v1504_v15 }
 0x5cc   :  { %16174 = vmatprep.subr.bf16.mxu1 %v16173_v20 }
 0x5cf   :  { %16176 = vmatpush3.bf16.msra.mxu1 %v16173_v20  ;;  %v11567_v20 = vld [vmem:[%s20713_s24 + $0x1c8] sm:$0xff] }
 0x5d0   :  { %16178 = vmatprep.subr.bf16.mxu1 %v16177_v23  ;;  %v16265_v21 = vpack.c.bf16 %v11567_v20, %v11566_v19 }
 0x5d3   :  { %16180 = vmatpush3.bf16.msra.mxu1 %v16177_v23  ;;  %v11569_v23 = vld [vmem:[%s20713_s24 + $0x1d8] sm:$0xff] }
 0x5d4   :  { %16182 = vmatprep.subr.bf16.mxu1 %v16181_v6  ;;  %v16269_v24 = vpack.c.bf16 %v11569_v23, %v11568_v22  ;;  %v2237_v22 = vld [vmem:[%s20714_s29 + $0x10] sm:$0xff]  ;;  %v2238_v23 = vld [vmem:[%s20714_s29 + $0x18] sm:$0xff] }
 0x5d7   :  { %16184 = vmatpush3.bf16.msra.mxu1 %v16181_v6  ;;  %v11571_v6 = vld [vmem:[%s20713_s24 + $0x1e8] sm:$0xff] }
 0x5d8   :  { %16186 = vmatprep.subr.bf16.mxu1 %v16185_v13  ;;  %v16273_v26 = vpack.c.bf16 %v11571_v6, %v11570_v25 }
 0x5db   :  { %16188 = vmatpush3.bf16.msra.mxu1 %v16185_v13  ;;  %v11573_v13 = vld [vmem:[%s20713_s24 + $0x1f8] sm:$0xff] }
 0x5dc   :  { %16190 = vmatprep.subr.bf16.mxu1 %v16189_v29  ;;  %v16277_v27 = vpack.c.bf16 %v11573_v13, %v11572_v14  ;;  %v16315_v14 = vpack.c.bf16 %v2238_v23, %v2237_v22  ;;  %v2239_v13 = vld [vmem:[%s20714_s29 + $0x20] sm:$0xff]  ;;  %v11618_v22 = vld [vmem:[%s20714_s29 + $0x1b0] sm:$0xff] }
 0x5df   :  { %16192 = vmatpush3.bf16.msra.mxu1 %v16189_v29  ;;  %v18622_v29 = vmov 0.0  }
 0x5e0   :  { %16194 = vmatprep.subr.bf16.mxu1 %v16193_v33  ;;  %13867 = vmatprep.mubr.msk.f32.mxu0 %vm18621_vm6, %v18622_v29 }
 0x5e3   :  { %16196 = vmatpush3.bf16.msra.mxu1 %v16193_v33 }
 0x5e4   :  { %16198 = vmatprep.subr.bf16.mxu1 %v16197_v37 }
 0x5e7   :  { %16200 = vmatpush3.bf16.msra.mxu1 %v16197_v37 }
 0x5e8   :  { %16202 = vmatprep.subr.bf16.mxu1 %v19150_v34 }
 0x5ea   :  { %13769 = vmatmul.mubr.f32.vlgmr.msra.gmra.mrb[12].mxu1 %v13689_v12  ;;  %v11563_v12 = vld [vmem:[%s20713_s24 + $0x1a8] sm:$0xff] }
 0x5eb   :  { %16204 = vmatpush3.bf16.msra.mxu1 %v19150_v34  ;;  %13779 = vmatprep.mubr.msk.f32.mxu1 %vm1431_vm1, %v1781_v38  ;;  %v16217_v34 = vpack.c.bf16 %v11545_v49, %v11544_v48  ;;  %v16257_v15 = vpack.c.bf16 %v11563_v12, %v11562_v11  ;;  %v11593_v11 = vld [vmem:[%s20714_s29 + $0xf8] sm:$0xff] }
 0x5ec   :  { %16206 = vmatprep.subr.bf16.mxu1 %v19158_v42 }
 0x5ef   :  { %16208 = vmatpush3.bf16.msra.mxu1 %v19158_v42  ;;  %v16221_v42 = vpack.c.bf16 %v11547_v51, %v11546_v50  ;;  %v2484_v50 = vld [vmem:[#allocation12 + $0x10] sm:$0xff]  ;;  %v11578_v51 = vld [vmem:[%s20714_s29 + $0x80] sm:$0xff] }
 0x5f0   :  { %16210 = vmatprep.subr.bf16.mxu1 %v16209_v43 }
 0x5f2   :  { %13780 = vmatmul.mubr.msk.f32.vlgmr.msra.gmra.mrb[14].mxu1 %vm1431_vm1, %v1782_v46 }
 0x5f3   :  { %16212 = vmatpush3.bf16.msra.mxu1 %v16209_v43 }
 0x5f4   :  { %16214 = vmatprep.subr.bf16.mxu1 %v16213_v47 }
 0x5f7   :  { %16216 = vmatpush3.bf16.msra.mxu1 %v16213_v47 }
 0x5f8   :  { %16218 = vmatprep.subr.bf16.mxu1 %v16217_v34 }
 0x5fb   :  { %16220 = vmatpush3.bf16.msra.mxu1 %v16217_v34  ;;  %v2160_v34 = vld [vmem:[#allocation12] sm:$0xff] }
 0x5fc   :  { %16222 = vmatprep.subr.bf16.mxu1 %v16221_v42 }
 0x5ff   :  { %16224 = vmatpush3.bf16.msra.mxu1 %v16221_v42  ;;  %v11579_v42 = vld [vmem:[%s20714_s29 + $0x88] sm:$0xff] }
 0x600   :  { %16226 = vmatprep.subr.bf16.mxu1 %v16225_v54 }
 0x603   :  { %16228 = vmatpush3.bf16.msra.mxu1 %v16225_v54  ;;  %v16288_v54 = vpack.c.bf16 %v11579_v42, %v11578_v51  ;;  %v11596_v51 = vld [vmem:[%s20714_s29 + $0x108] sm:$0xff] }
 0x604   :  { %16230 = vmatprep.subr.bf16.mxu1 %v16229_v58 }
 0x607   :  { %16232 = vmatpush3.bf16.msra.mxu1 %v16229_v58  ;;  %v16291_v58 = vpack.c.bf16 %v11581_v56, %v11580_v55  ;;  %v11599_v55 = vld [vmem:[%s20714_s29 + $0x120] sm:$0xff]  ;;  %v11600_v56 = vld [vmem:[%s20714_s29 + $0x128] sm:$0xff] }
 0x608   :  { %16234 = vmatprep.subr.bf16.mxu1 %v16233_v63 }
 0x60b   :  { %16236 = vmatpush3.bf16.msra.mxu1 %v16233_v63  ;;  %v16294_v63 = vpack.c.bf16 %v11583_v60, %v11582_v59  ;;  %v11601_v59 = vld [vmem:[%s20714_s29 + $0x130] sm:$0xff]  ;;  %v11602_v60 = vld [vmem:[%s20714_s29 + $0x138] sm:$0xff] }
 0x60c   :  { %16238 = vmatprep.subr.bf16.mxu1 %v16237_v2 }
 0x60f   :  { %16240 = vmatpush3.bf16.msra.mxu1 %v16237_v2  ;;  %v16297_v2 = vpack.c.bf16 %v11585_v1, %v11584_v0  ;;  %v11603_v0 = vld [vmem:[%s20714_s29 + $0x140] sm:$0xff]  ;;  %v11604_v1 = vld [vmem:[%s20714_s29 + $0x148] sm:$0xff] }
 0x610   :  { %16250 = vmatprep.subr.bf16.mxu1 %v16249_v62 }
 0x6c5   :  { %v13781_v61 = vpop.f32.mrb[14].mxu1 }
 0x6c6   :  { %v1855_v10 = vpop.f32.mrb[15].mxu1 }
 0x6c7   :  { %13814 = vmatprep.mubr.f32.mxu1 %v1855_v10 }
 0x6c8   :  { %13815 = vmatmul.mubr.f32.vlgmr.msra.gmra.mrb[12].mxu1 %v13781_v61  ;;  %v11591_v61 = vld [vmem:[%s20714_s29 + $0xe8] sm:$0xff] }
 0x6c9   :  { %16252 = vmatpush3.bf16.msra.mxu1 %v16249_v62  ;;  %13860 = vmatprep.mubr.f32.mxu1 %v2033_v5  ;;  %v16300_v62 = vpack.c.bf16 %v11587_v3, %v11586_v57  ;;  %v11589_v5 = vld [vmem:[%s20714_s29 + $0xd8] sm:$0xff]  ;;  %v16306_v10 = vpack.c.bf16 %v11591_v61, %v11590_v9  ;;  %v11605_v57 = vld [vmem:[%s20714_s29 + $0x150] sm:$0xff] }
 0x6ca   :  { %16254 = vmatprep.subr.bf16.mxu1 %v16253_v7  ;;  %v11606_v3 = vld [vmem:[%s20714_s29 + $0x158] sm:$0xff]  ;;  %v11609_v9 = vld [vmem:[%s20714_s29 + $0x170] sm:$0xff] }
 0x6cb   :  { %v11610_v61 = vld [vmem:[%s20714_s29 + $0x178] sm:$0xff] }
 0x6cd   :  { %16256 = vmatpush3.bf16.msra.mxu1 %v16253_v7  ;;  %v11592_v7 = vld [vmem:[%s20714_s29 + $0xf0] sm:$0xff] }
 0x6ce   :  { %16258 = vmatprep.subr.bf16.mxu1 %v16257_v15  ;;  %v16309_v12 = vpack.c.bf16 %v11593_v11, %v11592_v7  ;;  %v11612_v7 = vld [vmem:[%s20714_s29 + $0x180] sm:$0xff]  ;;  %v11613_v11 = vld [vmem:[%s20714_s29 + $0x188] sm:$0xff] }
 0x6d1   :  { %16260 = vmatpush3.bf16.msra.mxu1 %v16257_v15  ;;  %v2235_v15 = vld [vmem:[%s20714_s29] sm:$0xff] }
 0x6d2   :  { %16262 = vmatprep.subr.bf16.mxu1 %v16261_v18 }
 0x6d5   :  { %16264 = vmatpush3.bf16.msra.mxu1 %v16261_v18 }
 0x6d6   :  { %16266 = vmatprep.subr.bf16.mxu1 %v16265_v21 }
 0x6d9   :  { %16268 = vmatpush3.bf16.msra.mxu1 %v16265_v21  ;;  %v16312_v21 = vpack.c.bf16 %v2236_v16, %v2235_v15  ;;  %v11614_v15 = vld [vmem:[%s20714_s29 + $0x190] sm:$0xff]  ;;  %v11615_v16 = vld [vmem:[%s20714_s29 + $0x198] sm:$0xff] }
 0x6da   :  { %16270 = vmatprep.subr.bf16.mxu1 %v16269_v24 }
 0x6dd   :  { %16272 = vmatpush3.bf16.msra.mxu1 %v16269_v24 }
 0x6de   :  { %16274 = vmatprep.subr.bf16.mxu1 %v16273_v26 }
 0x6e1   :  { %16276 = vmatpush3.bf16.msra.mxu1 %v16273_v26 }
 0x6e2   :  { %16278 = vmatprep.subr.bf16.mxu1 %v16277_v27 }
 0x6e5   :  { %16280 = vmatpush3.bf16.msra.mxu1 %v16277_v27  ;;  %v2240_v27 = vld [vmem:[%s20714_s29 + $0x28] sm:$0xff] }
 0x6e6   :  { %16335 = vmatprep.subr.bf16.mxu1 %v18620_v28 }
 0x6e8   :  { %13861 = vmatmul.mubr.f32.vlgmr.msra.gmra.mrb[12].mxu1 %v13827_v4  ;;  %v11588_v4 = vld [vmem:[%s20714_s29 + $0xd0] sm:$0xff] }
 0x6e9   :  { %13951 = vmatprep.mubr.msk.f32.mxu1 %vm18621_vm6, %v18622_v29  ;;  %v16303_v8 = vpack.c.bf16 %v11589_v5, %v11588_v4  ;;  %v11607_v4 = vld [vmem:[%s20714_s29 + $0x160] sm:$0xff]  ;;  %v11608_v5 = vld [vmem:[%s20714_s29 + $0x168] sm:$0xff] }
 0x7bb   :  { %v13862_v33 = vpop.f32.mrb[12].mxu1 }
 0x7bc   :  { %v2143_v35 = vmul.f32 %v13862_v33, %v11574_v30  ;;  %v2125_v36 = vpop.f32.mrb[13].mxu1  ;;  %v2242_v33 = vld [vmem:[%s20714_s29 + $0x38] sm:$0xff] }
 0x7bd   :  { %v2142_v37 = vmul.f32 %v11574_v30, %v2125_v36  ;;  %v16318_v30 = vpack.c.bf16 %v2240_v27, %v2239_v13  ;;  %v2243_v36 = vld [vmem:[%s20714_s29 + $0x40] sm:$0xff]  ;;  %v11623_v13 = vld [vmem:[%s20714_s29 + $0x1d8] sm:$0xff] }
 0x7be   :  { %v2151_v38 = vadd.f32 %v11575_v31, %v2143_v35 }
 0x7bf   :  { %v2150_v39 = vadd.f32 %v11575_v31, %v2142_v37  ;;  %v2241_v31 = vld [vmem:[%s20714_s29 + $0x30] sm:$0xff]  ;;  %v2244_v37 = vld [vmem:[%s20714_s29 + $0x48] sm:$0xff] }
 0x7c0   :  { %vm2155_vm7 = vcmp.ge.f32.partialorder %v2151_v38, 0.0  ;;  %v2157_v40 = vmul.f32 0.2, %v2151_v38  ;;  %v7887_v43 = vmax.f32 %v2151_v38, 0.0  ;;  %v16321_v35 = vpack.c.bf16 %v2242_v33, %v2241_v31  ;;  %v11625_v31 = vld [vmem:[%s20714_s29 + $0x1e8] sm:$0xff] }
 0x7c1   :  { %vm2154_vm8 = vcmp.ge.f32.partialorder %v2150_v39, 0.0  ;;  %v2156_v44 = vmul.f32 0.2, %v2150_v39  ;;  %v7886_v45 = vmax.f32 %v2150_v39, 0.0 }
 0x7c2   :  { %v2159_v46 = vsel %vm2155_vm7, %v2151_v38, %v2157_v40  ;;  %v16324_v38 = vpack.c.bf16 %v2244_v37, %v2243_v36  ;;  %v2246_v40 = vld [vmem:[%s20714_s29 + $0x58] sm:$0xff] }
 0x7c3   :  { %v19249_v47 = vpack.c.bf16 %v7887_v43, %v7886_v45  ;;  %v2158_v48 = vsel %vm2154_vm8, %v2150_v39, %v2156_v44  ;;  %v2245_v39 = vld [vmem:[%s20714_s29 + $0x50] sm:$0xff]  ;;  %v2247_v44 = vld [vmem:[%s20714_s29 + $0x60] sm:$0xff]  ;;  %v2248_v45 = vld [vmem:[%s20714_s29 + $0x68] sm:$0xff] }
 0x7c4   :  { %v16282_v49 = vpack.c.bf16 %v2159_v46, %v2158_v48  ;;  %v16327_v43 = vpack.c.bf16 %v2246_v40, %v2245_v39  ;;  %v16330_v46 = vpack.c.bf16 %v2248_v45, %v2247_v44  ;;  %v2249_v48 = vld [vmem:[%s20714_s29 + $0x70] sm:$0xff]  ;;  %v11627_v36 = vld [vmem:[%s20714_s29 + $0x1f8] sm:$0xff]  ;;  %v11629_v39 = vld [vmem:[#allocation15] ss:$0 sm:$0xff] }
 0x7c6   :  { %16283 = vmatpush3.bf16.msra.mxu0 %v16282_v49  ;;  %16337 = vmatpush3.bf16.msra.mxu1 %v16282_v49 }
 0x7c7   :  { %16284 = vmatprep.subr.bf16.mxu0 %v18620_v28  ;;  %16362 = vmatprep.subr.bf16.mxu1 %v18620_v28 }
 0x7c9   :  { %13868 = vmatmul.mubr.msk.f32.vlgmr.msra.gmra.mrb[14].mxu0 %vm2161_vm9, %v2160_v34  ;;  %13952 = vmatmul.mubr.msk.f32.vlgmr.msra.gmra.mrb[16].mxu1 %vm2161_vm9, %v2484_v50  ;;  %v11595_v50 = vld [vmem:[%s20714_s29 + $0x100] sm:$0xff] }
 0x7ca   :  { %16286 = vmatpush3.bf16.msra.mxu0 %v16282_v49  ;;  %16364 = vmatpush3.bf16.msra.mxu1 %v16282_v49  ;;  %v2250_v49 = vld [vmem:[%s20714_s29 + $0x78] sm:$0xff]  ;;  %v16339_v42 = vpack.c.bf16 %v11596_v51, %v11595_v50  ;;  %v2920_v50 = vld [vmem:[#allocation16 + $0x4] sm:$0xf] }
 0x7cb   :  { %13874 = vmatprep.mubr.msk.f32.mxu0 %vm18621_vm6, %v18622_v29  ;;  %13993 = vmatprep.mubr.msk.f32.mxu1 %vm18621_vm6, %v18622_v29  ;;  %v16333_v34 = vpack.c.bf16 %v2250_v49, %v2249_v48  ;;  %v2828_v48 = vld [vmem:[#allocation16] sm:$0xf]  ;;  %v11632_v49 = vld [vmem:[%s20715_s19 + $0x80] sm:$0xff] }
 0x7cc   :  { %16287 = vmatprep.subr.bf16.mxu0 %v18620_v28  ;;  %14031 = vmatprep.subr.mxu1 %v18622_v29 }
 0x7cd   :  { %13875 = vmatmul.mubr.msk.f32.vlgmr.msra.gmra.mrb[16].mxu0 %vm2161_vm9, %v2252_v52  ;;  %13994 = vmatmul.mubr.msk.f32.vlgmr.msra.gmra.mrb[18].mxu1 %vm2161_vm9, %v2647_v53  ;;  %v11597_v52 = vld [vmem:[%s20714_s29 + $0x110] sm:$0xff]  ;;  %v11598_v53 = vld [vmem:[%s20714_s29 + $0x118] sm:$0xff] }
 0x7ce   :  { %16289 = vmatpush3.bf16.msra.mxu0 %v16288_v54  ;;  %13909 = vmatprep.mubr.msk.f32.mxu0 %vm18621_vm6, %v18622_v29  ;;  %v16342_v54 = vpack.c.bf16 %v11598_v53, %v11597_v52  ;;  %v11635_v52 = vld [vmem:[%s20715_s19 + $0x98] sm:$0xff] }
 0x7cf   :  { %16290 = vmatprep.subr.bf16.mxu0 %v18620_v28  ;;  %14033 = vmatprep.mubr.msk.f32.mxu1 %vm18621_vm6, %v18622_v29 }
 0x7d2   :  { %16292 = vmatpush3.bf16.msra.mxu0 %v16291_v58  ;;  %v16345_v58 = vpack.c.bf16 %v11600_v56, %v11599_v55  ;;  %v11637_v55 = vld [vmem:[%s20715_s19 + $0xa8] sm:$0xff] }
 0x7d3   :  { %16293 = vmatprep.subr.bf16.mxu0 %v18620_v28 }
 0x7d6   :  { %16295 = vmatpush3.bf16.msra.mxu0 %v16294_v63  ;;  %v16348_v63 = vpack.c.bf16 %v11602_v60, %v11601_v59  ;;  %v11639_v59 = vld [vmem:[%s20715_s19 + $0xb8] sm:$0xff] }
 0x7d7   :  { %16296 = vmatprep.subr.bf16.mxu0 %v18620_v28 }
 0x7da   :  { %16298 = vmatpush3.bf16.msra.mxu0 %v16297_v2  ;;  %v16351_v2 = vpack.c.bf16 %v11604_v1, %v11603_v0  ;;  %v11641_v0 = vld [vmem:[%s20715_s19 + $0xc8] sm:$0xff] }
 0x7db   :  { %16299 = vmatprep.subr.bf16.mxu0 %v18620_v28 }
 0x7de   :  { %16301 = vmatpush3.bf16.msra.mxu0 %v16300_v62  ;;  %v16354_v62 = vpack.c.bf16 %v11606_v3, %v11605_v57  ;;  %v11643_v57 = vld [vmem:[%s20715_s19 + $0xd8] sm:$0xff] }
 0x7df   :  { %16302 = vmatprep.subr.bf16.mxu0 %v18620_v28 }
 0x7e2   :  { %16304 = vmatpush3.bf16.msra.mxu0 %v16303_v8  ;;  %v16357_v8 = vpack.c.bf16 %v11608_v5, %v11607_v4  ;;  %v11645_v4 = vld [vmem:[%s20715_s19 + $0xe8] sm:$0xff] }
 0x7e3   :  { %16305 = vmatprep.subr.bf16.mxu0 %v18620_v28 }
 0x7e6   :  { %16307 = vmatpush3.bf16.msra.mxu0 %v16306_v10  ;;  %v16360_v10 = vpack.c.bf16 %v11610_v61, %v11609_v9  ;;  %v11647_v9 = vld [vmem:[%s20715_s19 + $0xf8] sm:$0xff] }
 0x7e7   :  { %16308 = vmatprep.subr.bf16.mxu0 %v18620_v28 }
 0x7ea   :  { %16310 = vmatpush3.bf16.msra.mxu0 %v16309_v12  ;;  %v16366_v12 = vpack.c.bf16 %v11613_v11, %v11612_v7  ;;  %v2903_v7 = vld [vmem:[%s20715_s19] sm:$0xff]  ;;  %v2904_v11 = vld [vmem:[%s20715_s19 + $0x8] sm:$0xff] }
 0x7eb   :  { %16311 = vmatprep.subr.bf16.mxu0 %v18620_v28 }
 0x89c   :  { %v2231_v17 = vpop.f32.mrb[14].mxu0  ;;  %v19293_v18 = vpop.f32.mrb[16].mxu1 }
 0x89d   :  { %v13869_v19 = vpop.f32.mrb[15].mxu0  ;;  %v13953_v20 = vpop.f32.mrb[17].mxu1 }
 0x89e   :  { %v11616_v19 = vld [vmem:[%s20714_s29 + $0x1a0] sm:$0xff]  ;;  %v11617_v20 = vld [vmem:[%s20714_s29 + $0x1a8] sm:$0xff] }
 0x8a0   :  { %v2322_v24 = vpop.f32.mrb[16].mxu0  ;;  %v19297_v25 = vpop.f32.mrb[18].mxu1 }
 0x8a1   :  { %v13876_v6 = vpop.f32.mrb[17].mxu0  ;;  %13910 = vmatmul.mubr.f32.vlgmr.msra.gmra.mrb[18].mxu0 %v2322_v24  ;;  %v13995_v26 = vpop.f32.mrb[19].mxu1  ;;  %v11620_v24 = vld [vmem:[%s20714_s29 + $0x1c0] sm:$0xff] }
 0x8a2   :  { %16313 = vmatpush3.bf16.msra.mxu0 %v16312_v21  ;;  %13944 = vmatprep.mubr.msk.f32.mxu0 %vm18621_vm6, %v18622_v29  ;;  %v16372_v21 = vpack.c.bf16 %v11617_v20, %v11616_v19  ;;  %v11621_v6 = vld [vmem:[%s20714_s29 + $0x1c8] sm:$0xff]  ;;  %v2906_v19 = vld [vmem:[%s20715_s19 + $0x18] sm:$0xff] }
 0x8a3   :  { %16314 = vmatprep.subr.bf16.mxu0 %v18620_v28  ;;  %v16378_v26 = vpack.c.bf16 %v11621_v6, %v11620_v24  ;;  %v2909_v6 = vld [vmem:[%s20715_s19 + $0x30] sm:$0xff] }
 0x8a6   :  { %16316 = vmatpush3.bf16.msra.mxu0 %v16315_v14  ;;  %v11622_v14 = vld [vmem:[%s20714_s29 + $0x1d0] sm:$0xff] }
 0x8a7   :  { %16317 = vmatprep.subr.bf16.mxu0 %v18620_v28  ;;  %v16381_v27 = vpack.c.bf16 %v11623_v13, %v11622_v14  ;;  %v2911_v13 = vld [vmem:[%s20715_s19 + $0x40] sm:$0xff] }
 0x8aa   :  { %16319 = vmatpush3.bf16.msra.mxu0 %v16318_v30  ;;  %v11624_v30 = vld [vmem:[%s20714_s29 + $0x1e0] sm:$0xff] }
 0x8ab   :  { %16320 = vmatprep.subr.bf16.mxu0 %v18620_v28  ;;  %v16384_v33 = vpack.c.bf16 %v11625_v31, %v11624_v30  ;;  %v2913_v31 = vld [vmem:[%s20715_s19 + $0x50] sm:$0xff] }
 0x8ae   :  { %16322 = vmatpush3.bf16.msra.mxu0 %v16321_v35  ;;  %v11626_v35 = vld [vmem:[%s20714_s29 + $0x1f0] sm:$0xff] }
 0x8af   :  { %16323 = vmatprep.subr.bf16.mxu0 %v18620_v28  ;;  %v16387_v37 = vpack.c.bf16 %v11627_v36, %v11626_v35  ;;  %v2915_v36 = vld [vmem:[%s20715_s19 + $0x60] sm:$0xff] }
 0x8b2   :  { %16325 = vmatpush3.bf16.msra.mxu0 %v16324_v38  ;;  %v11628_v38 = vld [vmem:[#allocation13] ss:$0 sm:$0xff] }
 0x8b3   :  { %16326 = vmatprep.subr.bf16.mxu0 %v18620_v28 }
 0x8b6   :  { %16328 = vmatpush3.bf16.msra.mxu0 %v16327_v43 }
 0x8b7   :  { %16329 = vmatprep.subr.bf16.mxu0 %v18620_v28 }
 0x8ba   :  { %16331 = vmatpush3.bf16.msra.mxu0 %v16330_v46 }
 0x8bb   :  { %16332 = vmatprep.subr.bf16.mxu0 %v18620_v28 }
 0x8be   :  { %16334 = vmatpush3.bf16.msra.mxu0 %v16333_v34  ;;  %v11633_v34 = vld [vmem:[%s20715_s19 + $0x88] sm:$0xff] }
 0x8bf   :  { %16338 = vmatprep.subr.bf16.mxu0 %v18620_v28  ;;  %v16390_v51 = vpack.c.bf16 %v11633_v34, %v11632_v49  ;;  %v11651_v34 = vld [vmem:[%s20715_s19 + $0x110] sm:$0xff] }
 0x8c1   :  { %13945 = vmatmul.mubr.f32.vlgmr.msra.gmra.mrb[18].mxu0 %v2231_v17  ;;  %v16369_v17 = vpack.c.bf16 %v11615_v16, %v11614_v15  ;;  %v16414_v16 = vpack.c.bf16 %v2904_v11, %v2903_v7  ;;  %v11668_v7 = vld [vmem:[%s20715_s19 + $0x190] sm:$0xff]  ;;  %v11669_v11 = vld [vmem:[%s20715_s19 + $0x198] sm:$0xff] }
 0x8c2   :  { %16340 = vmatpush3.bf16.msra.mxu0 %v16339_v42  ;;  %13986 = vmatprep.mubr.msk.f32.mxu0 %vm18621_vm6, %v18622_v29  ;;  %v11634_v42 = vld [vmem:[%s20715_s19 + $0x90] sm:$0xff] }
 0x8c3   :  { %16341 = vmatprep.subr.bf16.mxu0 %v18620_v28  ;;  %v16393_v53 = vpack.c.bf16 %v11635_v52, %v11634_v42  ;;  %v11654_v42 = vld [vmem:[%s20715_s19 + $0x128] sm:$0xff] }
 0x8c6   :  { %16343 = vmatpush3.bf16.msra.mxu0 %v16342_v54  ;;  %v11636_v54 = vld [vmem:[%s20715_s19 + $0xa0] sm:$0xff] }
 0x8c7   :  { %16344 = vmatprep.subr.bf16.mxu0 %v18620_v28  ;;  %v16396_v56 = vpack.c.bf16 %v11637_v55, %v11636_v54  ;;  %v11656_v54 = vld [vmem:[%s20715_s19 + $0x138] sm:$0xff] }
 0x8ca   :  { %16346 = vmatpush3.bf16.msra.mxu0 %v16345_v58  ;;  %v11638_v58 = vld [vmem:[%s20715_s19 + $0xb0] sm:$0xff] }
 0x8cb   :  { %16347 = vmatprep.subr.bf16.mxu0 %v18620_v28  ;;  %v16399_v60 = vpack.c.bf16 %v11639_v59, %v11638_v58  ;;  %v11658_v58 = vld [vmem:[%s20715_s19 + $0x148] sm:$0xff] }
 0x8ce   :  { %16349 = vmatpush3.bf16.msra.mxu0 %v16348_v63  ;;  %v11640_v63 = vld [vmem:[%s20715_s19 + $0xc0] sm:$0xff] }
 0x8cf   :  { %16350 = vmatprep.subr.bf16.mxu0 %v18620_v28  ;;  %v16402_v1 = vpack.c.bf16 %v11641_v0, %v11640_v63  ;;  %v11660_v63 = vld [vmem:[%s20715_s19 + $0x158] sm:$0xff] }
 0x8d2   :  { %16352 = vmatpush3.bf16.msra.mxu0 %v16351_v2  ;;  %v11642_v2 = vld [vmem:[%s20715_s19 + $0xd0] sm:$0xff] }
 0x8d3   :  { %16353 = vmatprep.subr.bf16.mxu0 %v18620_v28  ;;  %v16405_v3 = vpack.c.bf16 %v11643_v57, %v11642_v2  ;;  %v11662_v2 = vld [vmem:[%s20715_s19 + $0x168] sm:$0xff] }
 0x8d6   :  { %16355 = vmatpush3.bf16.msra.mxu0 %v16354_v62  ;;  %v11644_v62 = vld [vmem:[%s20715_s19 + $0xe0] sm:$0xff] }
 0x8d7   :  { %16356 = vmatprep.subr.bf16.mxu0 %v18620_v28  ;;  %v16408_v5 = vpack.c.bf16 %v11645_v4, %v11644_v62  ;;  %v11664_v62 = vld [vmem:[%s20715_s19 + $0x178] sm:$0xff] }
 0x8da   :  { %16358 = vmatpush3.bf16.msra.mxu0 %v16357_v8  ;;  %v11646_v8 = vld [vmem:[%s20715_s19 + $0xf0] sm:$0xff] }
 0x8db   :  { %16359 = vmatprep.subr.bf16.mxu0 %v18620_v28  ;;  %v16411_v61 = vpack.c.bf16 %v11647_v9, %v11646_v8  ;;  %v11666_v9 = vld [vmem:[%s20715_s19 + $0x180] sm:$0xff] }
 0x8de   :  { %16361 = vmatpush3.bf16.msra.mxu0 %v16360_v10  ;;  %v3315_v10 = vld [vmem:[#allocation16 + $0xc] sm:$0xf] }
 0x8df   :  { %16365 = vmatprep.subr.bf16.mxu0 %v18620_v28 }
 0x8e1   :  { %13987 = vmatmul.mubr.f32.vlgmr.msra.gmra.mrb[18].mxu0 %v19293_v18  ;;  %v11619_v18 = vld [vmem:[%s20714_s29 + $0x1b8] sm:$0xff] }
 0x8e2   :  { %16367 = vmatpush3.bf16.msra.mxu0 %v16366_v12  ;;  %14028 = vmatprep.mubr.msk.f32.mxu0 %vm18621_vm6, %v18622_v29  ;;  %v16375_v23 = vpack.c.bf16 %v11619_v18, %v11618_v22  ;;  %v2907_v18 = vld [vmem:[%s20715_s19 + $0x20] sm:$0xff] }
 0x8e3   :  { %16368 = vmatprep.subr.bf16.mxu0 %v18620_v28 }
 0x8e6   :  { %16370 = vmatpush3.bf16.msra.mxu0 %v16369_v17  ;;  %v2905_v17 = vld [vmem:[%s20715_s19 + $0x10] sm:$0xff] }
 0x8e7   :  { %16371 = vmatprep.subr.bf16.mxu0 %v18620_v28  ;;  %v16417_v22 = vpack.c.bf16 %v2906_v19, %v2905_v17  ;;  %v11670_v17 = vld [vmem:[%s20715_s19 + $0x1a0] sm:$0xff]  ;;  %v11671_v19 = vld [vmem:[%s20715_s19 + $0x1a8] sm:$0xff] }
 0x8ea   :  { %16373 = vmatpush3.bf16.msra.mxu0 %v16372_v21 }
 0x8eb   :  { %16374 = vmatprep.subr.bf16.mxu0 %v18620_v28 }
 0x8ee   :  { %16376 = vmatpush3.bf16.msra.mxu0 %v16375_v23  ;;  %v2908_v23 = vld [vmem:[%s20715_s19 + $0x28] sm:$0xff] }
 0x8ef   :  { %16377 = vmatprep.subr.bf16.mxu0 %v18620_v28  ;;  %v16420_v24 = vpack.c.bf16 %v2908_v23, %v2907_v18  ;;  %v11674_v23 = vld [vmem:[%s20715_s19 + $0x1c0] sm:$0xff] }
 0x8f2   :  { %16379 = vmatpush3.bf16.msra.mxu0 %v16378_v26  ;;  %v2910_v26 = vld [vmem:[%s20715_s19 + $0x38] sm:$0xff] }
 0x8f3   :  { %16380 = vmatprep.subr.bf16.mxu0 %v18620_v28  ;;  %v16423_v14 = vpack.c.bf16 %v2910_v26, %v2909_v6  ;;  %v11676_v26 = vld [vmem:[%s20715_s19 + $0x1d0] sm:$0xff] }
 0x8f6   :  { %16382 = vmatpush3.bf16.msra.mxu0 %v16381_v27  ;;  %v2912_v27 = vld [vmem:[%s20715_s19 + $0x48] sm:$0xff] }
 0x8f7   :  { %16383 = vmatprep.subr.bf16.mxu0 %v18620_v28  ;;  %v16426_v30 = vpack.c.bf16 %v2912_v27, %v2911_v13  ;;  %v11678_v27 = vld [vmem:[%s20715_s19 + $0x1e0] sm:$0xff] }
 0x8fa   :  { %16385 = vmatpush3.bf16.msra.mxu0 %v16384_v33  ;;  %v2914_v33 = vld [vmem:[%s20715_s19 + $0x58] sm:$0xff] }
 0x8fb   :  { %16386 = vmatprep.subr.bf16.mxu0 %v18620_v28  ;;  %v16429_v35 = vpack.c.bf16 %v2914_v33, %v2913_v31  ;;  %v11680_v33 = vld [vmem:[%s20715_s19 + $0x1f0] sm:$0xff] }
 0x8fe   :  { %16388 = vmatpush3.bf16.msra.mxu0 %v16387_v37  ;;  %v2916_v37 = vld [vmem:[%s20715_s19 + $0x68] sm:$0xff] }
 0x8ff   :  { %14151 = vmatprep.subr.mxu0 %v18622_v29 }
 0x901   :  { %14029 = vmatmul.mubr.f32.vlgmr.msra.gmra.mrb[18].mxu0 %v19297_v25 }
 0x902   :  { %14153 = vmatprep.mubr.msk.f32.mxu0 %vm18621_vm6, %v18622_v29 }
 0x9d4   :  { %v2804_v40 = vpop.f32.mrb[18].mxu0 }
 0x9d5   :  { %v2815_v43 = vmul.f32 %v11628_v38, %v2804_v40  ;;  %v14030_v44 = vpop.f32.mrb[19].mxu0  ;;  %v16432_v38 = vpack.c.bf16 %v2916_v37, %v2915_v36  ;;  %v2918_v40 = vld [vmem:[%s20715_s19 + $0x78] sm:$0xff] }
 0x9d6   :  { %v11649_v44 = vld [vmem:[%s20715_s19 + $0x100] sm:$0xff]  ;;  %v11682_v37 = vld [vmem:[#allocation18] ss:$0 sm:$0xff] }
 0x9d7   :  { %v19377_v45 = vadd.f32 %v11629_v39, %v2815_v43  ;;  %v2917_v39 = vld [vmem:[%s20715_s19 + $0x70] sm:$0xff] }
 0x9d8   :  { %v16435_v43 = vpack.c.bf16 %v2918_v40, %v2917_v39 }
 0x9d9   :  { %vm2825_vm10 = vcmp.ge.f32.partialorder %v19377_v45, 0.0  ;;  %v2826_v46 = vmul.f32 0.2, %v19377_v45 }
 0x9db   :  { %v19382_v25 = vsel %vm2825_vm10, %v19377_v45, %v2826_v46  ;;  %v11650_v46 = vld [vmem:[%s20715_s19 + $0x108] sm:$0xff] }
 0x9dc   :  { %14032 = vmatpush3.msra.mxu1 %v19382_v25  ;;  %14152 = vmatpush3.msra.mxu0 %v19382_v25  ;;  %v16438_v49 = vpack.c.bf16 %v11650_v46, %v11649_v44 }
 0x9dd   :  { %14034 = vmatmul.mubr.msk.f32.vlgmr.msra.gmra.mrb[20].mxu1 %vm2829_vm11, %v2828_v48  ;;  %14036 = vmatprep.subr.mxu1 %v18622_v29  ;;  %v3152_v48 = vld [vmem:[#allocation16 + $0x8] sm:$0xf] }
 0x9de   :  { %14037 = vmatpush3.msra.mxu1 %v19382_v25  ;;  %14038 = vmatprep.mubr.msk.f32.mxu1 %vm18621_vm6, %v18622_v29 }
 0x9df   :  { %16389 = vmatprep.subr.bf16.mxu1 %v18620_v28  ;;  %14191 = vmatprep.subr.mxu0 %v18622_v29 }
 0x9e0   :  { %14154 = vmatmul.mubr.msk.f32.vlgmr.msra.gmra.mrb[20].mxu0 %vm2829_vm11, %v3315_v10 }
 0x9e1   :  { %14039 = vmatmul.mubr.msk.f32.vlgmr.msra.gmra.mrb[22].mxu1 %vm2829_vm11, %v2920_v50  ;;  %14193 = vmatprep.mubr.msk.f32.mxu0 %vm18621_vm6, %v18622_v29  ;;  %v11652_v50 = vld [vmem:[%s20715_s19 + $0x118] sm:$0xff] }
 0x9e2   :  { %16391 = vmatpush3.bf16.msra.mxu1 %v16390_v51  ;;  %14073 = vmatprep.mubr.msk.f32.mxu1 %vm18621_vm6, %v18622_v29  ;;  %v16441_v51 = vpack.c.bf16 %v11652_v50, %v11651_v34  ;;  %v11688_v34 = vld [vmem:[%s20716_s20 + $0x80] sm:$0xff]  ;;  %v11689_v50 = vld [vmem:[%s20716_s20 + $0x88] sm:$0xff] }
 0x9e3   :  { %16392 = vmatprep.subr.bf16.mxu1 %v18620_v28 }
 0x9e6   :  { %16394 = vmatpush3.bf16.msra.mxu1 %v16393_v53  ;;  %v11655_v53 = vld [vmem:[%s20715_s19 + $0x130] sm:$0xff] }
 0x9e7   :  { %16395 = vmatprep.subr.bf16.mxu1 %v18620_v28  ;;  %v16447_v55 = vpack.c.bf16 %v11656_v54, %v11655_v53  ;;  %v11691_v53 = vld [vmem:[%s20716_s20 + $0x98] sm:$0xff]  ;;  %v3987_v54 = vld [vmem:[#allocation21 + $0x6] sm:$0x3] }
 0x9ea   :  { %16397 = vmatpush3.bf16.msra.mxu1 %v16396_v56  ;;  %v11657_v56 = vld [vmem:[%s20715_s19 + $0x140] sm:$0xff] }
 0x9eb   :  { %16398 = vmatprep.subr.bf16.mxu1 %v18620_v28  ;;  %v16450_v59 = vpack.c.bf16 %v11658_v58, %v11657_v56  ;;  %v11692_v56 = vld [vmem:[%s20716_s20 + $0xa0] sm:$0xff]  ;;  %v11693_v58 = vld [vmem:[%s20716_s20 + $0xa8] sm:$0xff] }
 0x9ee   :  { %16400 = vmatpush3.bf16.msra.mxu1 %v16399_v60  ;;  %v11659_v60 = vld [vmem:[%s20715_s19 + $0x150] sm:$0xff] }
 0x9ef   :  { %16401 = vmatprep.subr.bf16.mxu1 %v18620_v28  ;;  %v16453_v0 = vpack.c.bf16 %v11660_v63, %v11659_v60  ;;  %v11694_v60 = vld [vmem:[%s20716_s20 + $0xb0] sm:$0xff]  ;;  %v11695_v63 = vld [vmem:[%s20716_s20 + $0xb8] sm:$0xff] }
 0x9f2   :  { %16403 = vmatpush3.bf16.msra.mxu1 %v16402_v1  ;;  %v11661_v1 = vld [vmem:[%s20715_s19 + $0x160] sm:$0xff] }
 0x9f3   :  { %16404 = vmatprep.subr.bf16.mxu1 %v18620_v28  ;;  %v16456_v57 = vpack.c.bf16 %v11662_v2, %v11661_v1  ;;  %v11696_v1 = vld [vmem:[%s20716_s20 + $0xc0] sm:$0xff]  ;;  %v11697_v2 = vld [vmem:[%s20716_s20 + $0xc8] sm:$0xff] }
 0x9f6   :  { %16406 = vmatpush3.bf16.msra.mxu1 %v16405_v3  ;;  %v11663_v3 = vld [vmem:[%s20715_s19 + $0x170] sm:$0xff] }
 0x9f7   :  { %16407 = vmatprep.subr.bf16.mxu1 %v18620_v28  ;;  %v16459_v4 = vpack.c.bf16 %v11664_v62, %v11663_v3  ;;  %v11698_v3 = vld [vmem:[%s20716_s20 + $0xd0] sm:$0xff]  ;;  %v11699_v62 = vld [vmem:[%s20716_s20 + $0xd8] sm:$0xff] }
 0x9fa   :  { %16409 = vmatpush3.bf16.msra.mxu1 %v16408_v5 }
 0x9fb   :  { %16410 = vmatprep.subr.bf16.mxu1 %v18620_v28 }
 0x9fe   :  { %16412 = vmatpush3.bf16.msra.mxu1 %v16411_v61  ;;  %v11667_v61 = vld [vmem:[%s20715_s19 + $0x188] sm:$0xff] }
 0x9ff   :  { %16413 = vmatprep.subr.bf16.mxu1 %v18620_v28  ;;  %v16462_v10 = vpack.c.bf16 %v11667_v61, %v11666_v9  ;;  %v11702_v61 = vld [vmem:[%s20716_s20 + $0xf0] sm:$0xff] }
 0xab0   :  { %v2899_v12 = vpop.f32.mrb[20].mxu1 }
 0xab1   :  { %v14035_v15 = vpop.f32.mrb[21].mxu1 }
 0xab3   :  { %v3385_v5 = vpop.f32.mrb[20].mxu0 }
 0xab4   :  { %v2990_v20 = vpop.f32.mrb[22].mxu1  ;;  %v14155_v8 = vpop.f32.mrb[21].mxu0 }
 0xab5   :  { %v14040_v21 = vpop.f32.mrb[23].mxu1  ;;  %14074 = vmatmul.mubr.f32.vlgmr.msra.gmra.mrb[24].mxu1 %v2990_v20  ;;  %v16468_v20 = vpack.c.bf16 %v11671_v19, %v11670_v17  ;;  %v11701_v8 = vld [vmem:[%s20716_s20 + $0xe8] sm:$0xff] }
 0xab6   :  { %16415 = vmatpush3.bf16.msra.mxu1 %v16414_v16  ;;  %14108 = vmatprep.mubr.msk.f32.mxu1 %vm18621_vm6, %v18622_v29  ;;  %v16465_v16 = vpack.c.bf16 %v11669_v11, %v11668_v7  ;;  %v11672_v21 = vld [vmem:[%s20715_s19 + $0x1b0] sm:$0xff]  ;;  %v3575_v11 = vld [vmem:[%s20716_s20] sm:$0xff] }
 0xab7   :  { %16416 = vmatprep.subr.bf16.mxu1 %v18620_v28 }
 0xaba   :  { %16418 = vmatpush3.bf16.msra.mxu1 %v16417_v22  ;;  %v11673_v22 = vld [vmem:[%s20715_s19 + $0x1b8] sm:$0xff] }
 0xabb   :  { %16419 = vmatprep.subr.bf16.mxu1 %v18620_v28  ;;  %v16471_v18 = vpack.c.bf16 %v11673_v22, %v11672_v21  ;;  %v3578_v21 = vld [vmem:[%s20716_s20 + $0x18] sm:$0xff] }
 0xabe   :  { %16421 = vmatpush3.bf16.msra.mxu1 %v16420_v24  ;;  %v11675_v24 = vld [vmem:[%s20715_s19 + $0x1c8] sm:$0xff] }
 0xabf   :  { %16422 = vmatprep.subr.bf16.mxu1 %v18620_v28  ;;  %v16474_v6 = vpack.c.bf16 %v11675_v24, %v11674_v23 }
 0xac2   :  { %16424 = vmatpush3.bf16.msra.mxu1 %v16423_v14  ;;  %v11677_v14 = vld [vmem:[%s20715_s19 + $0x1d8] sm:$0xff] }
 0xac3   :  { %16425 = vmatprep.subr.bf16.mxu1 %v18620_v28  ;;  %v16477_v13 = vpack.c.bf16 %v11677_v14, %v11676_v26  ;;  %v3579_v26 = vld [vmem:[%s20716_s20 + $0x20] sm:$0xff]  ;;  %v3580_v14 = vld [vmem:[%s20716_s20 + $0x28] sm:$0xff] }
 0xac6   :  { %16427 = vmatpush3.bf16.msra.mxu1 %v16426_v30  ;;  %v11679_v30 = vld [vmem:[%s20715_s19 + $0x1e8] sm:$0xff] }
 0xac7   :  { %16428 = vmatprep.subr.bf16.mxu1 %v18620_v28  ;;  %v16480_v31 = vpack.c.bf16 %v11679_v30, %v11678_v27  ;;  %v16516_v27 = vpack.c.bf16 %v3580_v14, %v3579_v26  ;;  %v3581_v30 = vld [vmem:[%s20716_s20 + $0x30] sm:$0xff]  ;;  %v11733_v26 = vld [vmem:[%s20716_s20 + $0x1c8] sm:$0xff] }
 0xaca   :  { %16430 = vmatpush3.bf16.msra.mxu1 %v16429_v35  ;;  %v11681_v35 = vld [vmem:[%s20715_s19 + $0x1f8] sm:$0xff] }
 0xacb   :  { %16431 = vmatprep.subr.bf16.mxu1 %v18620_v28  ;;  %v16483_v36 = vpack.c.bf16 %v11681_v35, %v11680_v33  ;;  %v3583_v35 = vld [vmem:[%s20716_s20 + $0x40] sm:$0xff] }
 0xace   :  { %16433 = vmatpush3.bf16.msra.mxu1 %v16432_v38  ;;  %v11683_v38 = vld [vmem:[#allocation19] ss:$0 sm:$0xff] }
 0xacf   :  { %16434 = vmatprep.subr.bf16.mxu1 %v18620_v28 }
 0xad2   :  { %16436 = vmatpush3.bf16.msra.mxu1 %v16435_v43 }
 0xad3   :  { %14111 = vmatprep.subr.mxu1 %v18622_v29 }
 0xad5   :  { %14109 = vmatmul.mubr.f32.vlgmr.msra.gmra.mrb[24].mxu1 %v2899_v12 }
 0xad6   :  { %14112 = vmatpush3.msra.mxu1 %v19382_v25  ;;  %14113 = vmatprep.mubr.msk.f32.mxu1 %vm18621_vm6, %v18622_v29  ;;  %v11653_v25 = vld [vmem:[%s20715_s19 + $0x120] sm:$0xff] }
 0xad7   :  { %16437 = vmatprep.subr.bf16.mxu1 %v18620_v28  ;;  %v16444_v52 = vpack.c.bf16 %v11654_v42, %v11653_v25  ;;  %v3592_v25 = vld [vmem:[#allocation21 + $0x2] sm:$0x3]  ;;  %v16486_v42 = vpack.c.bf16 %v11689_v50, %v11688_v34  ;;  %v3590_v34 = vld [vmem:[%s20716_s20 + $0x78] sm:$0xff] }
 0xad9   :  { %14114 = vmatmul.mubr.msk.f32.vlgmr.msra.gmra.mrb[26].mxu1 %vm2829_vm11, %v3152_v48  ;;  %v3496_v48 = vld [vmem:[#allocation21] sm:$0x3] }
 0xada   :  { %16439 = vmatpush3.bf16.msra.mxu1 %v16438_v49  ;;  %14148 = vmatprep.mubr.msk.f32.mxu1 %vm18621_vm6, %v18622_v29 }
 0xadb   :  { %16440 = vmatprep.subr.bf16.mxu1 %v18620_v28 }
 0xade   :  { %16442 = vmatpush3.bf16.msra.mxu1 %v16441_v51  ;;  %v3824_v51 = vld [vmem:[#allocation21 + $0x4] sm:$0x3] }
 0xadf   :  { %16443 = vmatprep.subr.bf16.mxu1 %v18620_v28 }
 0xae2   :  { %16445 = vmatpush3.bf16.msra.mxu1 %v16444_v52  ;;  %v11690_v52 = vld [vmem:[%s20716_s20 + $0x90] sm:$0xff] }
 0xae3   :  { %16446 = vmatprep.subr.bf16.mxu1 %v18620_v28 }
 0xae6   :  { %16448 = vmatpush3.bf16.msra.mxu1 %v16447_v55  ;;  %v16489_v55 = vpack.c.bf16 %v11691_v53, %v11690_v52  ;;  %v11708_v52 = vld [vmem:[%s20716_s20 + $0x110] sm:$0xff]  ;;  %v11709_v53 = vld [vmem:[%s20716_s20 + $0x118] sm:$0xff] }
 0xae7   :  { %16449 = vmatprep.subr.bf16.mxu1 %v18620_v28 }
 0xaea   :  { %16451 = vmatpush3.bf16.msra.mxu1 %v16450_v59  ;;  %v16492_v59 = vpack.c.bf16 %v11693_v58, %v11692_v56  ;;  %v11711_v56 = vld [vmem:[%s20716_s20 + $0x128] sm:$0xff] }
 0xaeb   :  { %16452 = vmatprep.subr.bf16.mxu1 %v18620_v28 }
 0xaee   :  { %16454 = vmatpush3.bf16.msra.mxu1 %v16453_v0  ;;  %v16495_v0 = vpack.c.bf16 %v11695_v63, %v11694_v60  ;;  %v11713_v60 = vld [vmem:[%s20716_s20 + $0x138] sm:$0xff] }
 0xaef   :  { %16455 = vmatprep.subr.bf16.mxu1 %v18620_v28 }
 0xaf2   :  { %16457 = vmatpush3.bf16.msra.mxu1 %v16456_v57  ;;  %v16498_v57 = vpack.c.bf16 %v11697_v2, %v11696_v1  ;;  %v11715_v1 = vld [vmem:[%s20716_s20 + $0x148] sm:$0xff] }
 0xaf3   :  { %16458 = vmatprep.subr.bf16.mxu1 %v18620_v28 }
 0xaf6   :  { %16460 = vmatpush3.bf16.msra.mxu1 %v16459_v4  ;;  %v16501_v4 = vpack.c.bf16 %v11699_v62, %v11698_v3  ;;  %v11717_v3 = vld [vmem:[%s20716_s20 + $0x158] sm:$0xff] }
 0xaf7   :  { %16461 = vmatprep.subr.bf16.mxu1 %v18620_v28 }
 0xbac   :  { %v3222_v12 = vpop.f32.mrb[26].mxu1 }
 0xbad   :  { %v14115_v15 = vpop.f32.mrb[27].mxu1  ;;  %14149 = vmatmul.mubr.f32.vlgmr.msra.gmra.mrb[24].mxu1 %v3222_v12  ;;  %v3576_v12 = vld [vmem:[%s20716_s20 + $0x8] sm:$0xff] }
 0xbae   :  { %16463 = vmatpush3.bf16.msra.mxu1 %v16462_v10  ;;  %14188 = vmatprep.mubr.msk.f32.mxu1 %vm18621_vm6, %v18622_v29  ;;  %v11703_v10 = vld [vmem:[%s20716_s20 + $0xf8] sm:$0xff]  ;;  %v16510_v17 = vpack.c.bf16 %v3576_v12, %v3575_v11  ;;  %v11725_v11 = vld [vmem:[%s20716_s20 + $0x188] sm:$0xff] }
 0xbaf   :  { %16464 = vmatprep.subr.bf16.mxu1 %v18620_v28  ;;  %v16507_v7 = vpack.c.bf16 %v11703_v10, %v11702_v61  ;;  %v11721_v61 = vld [vmem:[%s20716_s20 + $0x178] sm:$0xff] }
 0xbb2   :  { %16466 = vmatpush3.bf16.msra.mxu1 %v16465_v16 }
 0xbb3   :  { %16467 = vmatprep.subr.bf16.mxu1 %v18620_v28 }
 0xbb6   :  { %16469 = vmatpush3.bf16.msra.mxu1 %v16468_v20  ;;  %v3577_v20 = vld [vmem:[%s20716_s20 + $0x10] sm:$0xff] }
 0xbb7   :  { %16470 = vmatprep.subr.bf16.mxu1 %v18620_v28  ;;  %v16513_v24 = vpack.c.bf16 %v3578_v21, %v3577_v20  ;;  %v11728_v20 = vld [vmem:[%s20716_s20 + $0x1a0] sm:$0xff]  ;;  %v11729_v21 = vld [vmem:[%s20716_s20 + $0x1a8] sm:$0xff] }
 0xbba   :  { %16472 = vmatpush3.bf16.msra.mxu1 %v16471_v18 }
 0xbbb   :  { %16473 = vmatprep.subr.bf16.mxu1 %v18620_v28 }
 0xbbe   :  { %16475 = vmatpush3.bf16.msra.mxu1 %v16474_v6 }
 0xbbf   :  { %16476 = vmatprep.subr.bf16.mxu1 %v18620_v28 }
 0xbc2   :  { %16478 = vmatpush3.bf16.msra.mxu1 %v16477_v13 }
 0xbc3   :  { %16479 = vmatprep.subr.bf16.mxu1 %v18620_v28 }
 0xbc6   :  { %16481 = vmatpush3.bf16.msra.mxu1 %v16480_v31  ;;  %v3582_v31 = vld [vmem:[%s20716_s20 + $0x38] sm:$0xff] }
 0xbc7   :  { %16482 = vmatprep.subr.bf16.mxu1 %v18620_v28  ;;  %v16519_v33 = vpack.c.bf16 %v3582_v31, %v3581_v30  ;;  %v11736_v31 = vld [vmem:[%s20716_s20 + $0x1e0] sm:$0xff] }
 0xbca   :  { %16484 = vmatpush3.bf16.msra.mxu1 %v16483_v36  ;;  %v3584_v36 = vld [vmem:[%s20716_s20 + $0x48] sm:$0xff] }
 0xbcb   :  { %14271 = vmatprep.subr.mxu1 %v18622_v29 }
 0xbcd   :  { %14189 = vmatmul.mubr.f32.vlgmr.msra.gmra.mrb[24].mxu1 %v3385_v5  ;;  %v11700_v5 = vld [vmem:[%s20716_s20 + $0xe0] sm:$0xff] }
 0xbce   :  { %14273 = vmatprep.mubr.msk.f32.mxu1 %vm18621_vm6, %v18622_v29  ;;  %v16504_v9 = vpack.c.bf16 %v11701_v8, %v11700_v5  ;;  %v11719_v5 = vld [vmem:[%s20716_s20 + $0x168] sm:$0xff] }
 0xca0   :  { %v3472_v39 = vpop.f32.mrb[24].mxu1 }
 0xca1   :  { %v3483_v40 = vmul.f32 %v11682_v37, %v3472_v39  ;;  %v14190_v43 = vpop.f32.mrb[25].mxu1  ;;  %v16522_v37 = vpack.c.bf16 %v3584_v36, %v3583_v35  ;;  %v3586_v39 = vld [vmem:[%s20716_s20 + $0x58] sm:$0xff]  ;;  %v11738_v36 = vld [vmem:[%s20716_s20 + $0x1f0] sm:$0xff] }
 0xca2   :  { %v3587_v43 = vld [vmem:[%s20716_s20 + $0x60] sm:$0xff] }
 0xca3   :  { %v19508_v44 = vadd.f32 %v11683_v38, %v3483_v40  ;;  %v3585_v38 = vld [vmem:[%s20716_s20 + $0x50] sm:$0xff] }
 0xca4   :  { %v16525_v40 = vpack.c.bf16 %v3586_v39, %v3585_v38  ;;  %v11740_v39 = vld [vmem:[#allocation22] ss:$0 sm:$0xff] }
 0xca5   :  { %vm3493_vm12 = vcmp.ge.f32.partialorder %v19508_v44, 0.0  ;;  %v3494_v46 = vmul.f32 0.2, %v19508_v44 }
 0xca7   :  { %v3495_v49 = vsel %vm3493_vm12, %v19508_v44, %v3494_v46  ;;  %v3588_v46 = vld [vmem:[%s20716_s20 + $0x68] sm:$0xff] }
 0xca8   :  { %14192 = vmatpush3.msk.msra.mxu0 %vm3501_vm13, %v3495_v49  ;;  %14272 = vmatpush3.msk.msra.mxu1 %vm3501_vm13, %v3495_v49 }
 0xca9   :  { %14194 = vmatmul.mubr.msk.f32.vlgmr.msra.gmra.mrb[22].mxu0 %vm3497_vm14, %v3496_v48  ;;  %14196 = vmatprep.subr.mxu0 %v18622_v29  ;;  %v16528_v48 = vpack.c.bf16 %v3588_v46, %v3587_v43 }
 0xcaa   :  { %14311 = vmatprep.subr.mxu1 %v18622_v29  ;;  %14197 = vmatpush3.msk.msra.mxu0 %vm3501_vm13, %v3495_v49 }
 0xcab   :  { %14274 = vmatmul.mubr.msk.f32.vlgmr.msra.gmra.mrb[28].mxu1 %vm3497_vm14, %v3824_v51  ;;  %14198 = vmatprep.mubr.msk.f32.mxu0 %vm18621_vm6, %v18622_v29  ;;  %v11706_v51 = vld [vmem:[%s20716_s20 + $0x100] sm:$0xff] }
 0xcac   :  { %14312 = vmatpush3.msk.msra.mxu1 %vm3501_vm13, %v3495_v49  ;;  %14313 = vmatprep.mubr.msk.f32.mxu1 %vm18621_vm6, %v18622_v29  ;;  %v3589_v49 = vld [vmem:[%s20716_s20 + $0x70] sm:$0xff] }
 0xcad   :  { %14199 = vmatmul.mubr.msk.f32.vlgmr.msra.gmra.mrb[24].mxu0 %vm3497_vm14, %v3592_v25  ;;  %16485 = vmatprep.subr.bf16.mxu0 %v18620_v28  ;;  %v16531_v50 = vpack.c.bf16 %v3590_v34, %v3589_v49  ;;  %v11707_v25 = vld [vmem:[%s20716_s20 + $0x108] sm:$0xff] }
 0xcae   :  { %16487 = vmatpush3.bf16.msra.mxu0 %v16486_v42  ;;  %14233 = vmatprep.mubr.msk.f32.mxu0 %vm18621_vm6, %v18622_v29  ;;  %v16534_v42 = vpack.c.bf16 %v11707_v25, %v11706_v51  ;;  %v4329_v51 = vld [vmem:[#allocation25 + $0x40] sm:$0xff]  ;;  %v4330_v25 = vld [vmem:[#allocation25 + $0x48] sm:$0xff] }
 0xcaf   :  { %14314 = vmatmul.mubr.msk.f32.vlgmr.msra.gmra.mrb[30].mxu1 %vm3497_vm14, %v3987_v54  ;;  %16488 = vmatprep.subr.bf16.mxu0 %v18620_v28  ;;  %v16537_v54 = vpack.c.bf16 %v11709_v53, %v11708_v52  ;;  %v4331_v52 = vld [vmem:[#allocation25 + $0x50] sm:$0xff]  ;;  %v4332_v53 = vld [vmem:[#allocation25 + $0x58] sm:$0xff] }
 0xcb0   :  { %14351 = vmatprep.subr.mxu1 %v18622_v29  ;;  %14353 = vmatprep.mubr.msk.f32.mxu1 %vm18621_vm6, %v18622_v29 }
 0xcb2   :  { %16490 = vmatpush3.bf16.msra.mxu0 %v16489_v55  ;;  %v11710_v55 = vld [vmem:[%s20716_s20 + $0x120] sm:$0xff] }
 0xcb3   :  { %16491 = vmatprep.subr.bf16.mxu0 %v18620_v28  ;;  %v16540_v58 = vpack.c.bf16 %v11711_v56, %v11710_v55  ;;  %v4333_v55 = vld [vmem:[#allocation25 + $0x60] sm:$0xff]  ;;  %v4334_v56 = vld [vmem:[#allocation25 + $0x68] sm:$0xff] }
 0xcb6   :  { %16493 = vmatpush3.bf16.msra.mxu0 %v16492_v59  ;;  %v11712_v59 = vld [vmem:[%s20716_s20 + $0x130] sm:$0xff] }
 0xcb7   :  { %16494 = vmatprep.subr.bf16.mxu0 %v18620_v28  ;;  %v16543_v63 = vpack.c.bf16 %v11713_v60, %v11712_v59  ;;  %v4335_v59 = vld [vmem:[#allocation25 + $0x70] sm:$0xff]  ;;  %v4336_v60 = vld [vmem:[#allocation25 + $0x78] sm:$0xff] }
 0xcba   :  { %16496 = vmatpush3.bf16.msra.mxu0 %v16495_v0  ;;  %v11714_v0 = vld [vmem:[%s20716_s20 + $0x140] sm:$0xff] }
 0xcbb   :  { %16497 = vmatprep.subr.bf16.mxu0 %v18620_v28  ;;  %v16546_v2 = vpack.c.bf16 %v11715_v1, %v11714_v0  ;;  %v4245_v0 = vld [vmem:[#allocation25] sm:$0xff]  ;;  %v4246_v1 = vld [vmem:[#allocation25 + $0x8] sm:$0xff] }
 0xcbe   :  { %16499 = vmatpush3.bf16.msra.mxu0 %v16498_v57  ;;  %v11716_v57 = vld [vmem:[%s20716_s20 + $0x150] sm:$0xff] }
 0xcbf   :  { %16500 = vmatprep.subr.bf16.mxu0 %v18620_v28  ;;  %v16549_v62 = vpack.c.bf16 %v11717_v3, %v11716_v57  ;;  %v16594_v3 = vpack.c.bf16 %v4246_v1, %v4245_v0 }
 0xcc2   :  { %16502 = vmatpush3.bf16.msra.mxu0 %v16501_v4  ;;  %v11718_v4 = vld [vmem:[%s20716_s20 + $0x160] sm:$0xff] }
 0xcc3   :  { %16503 = vmatprep.subr.bf16.mxu0 %v18620_v28  ;;  %v16552_v8 = vpack.c.bf16 %v11719_v5, %v11718_v4  ;;  %v4248_v4 = vld [vmem:[#allocation25 + $0x18] sm:$0xff] }
 0xcc6   :  { %16505 = vmatpush3.bf16.msra.mxu0 %v16504_v9  ;;  %v11720_v9 = vld [vmem:[%s20716_s20 + $0x170] sm:$0xff] }
 0xcc7   :  { %16506 = vmatprep.subr.bf16.mxu0 %v18620_v28  ;;  %v16555_v10 = vpack.c.bf16 %v11721_v61, %v11720_v9  ;;  %v4249_v61 = vld [vmem:[#allocation25 + $0x20] sm:$0xff] }
 0xcca   :  { %16508 = vmatpush3.bf16.msra.mxu0 %v16507_v7  ;;  %v11724_v7 = vld [vmem:[%s20716_s20 + $0x180] sm:$0xff] }
 0xccb   :  { %16509 = vmatprep.subr.bf16.mxu0 %v18620_v28  ;;  %v16558_v12 = vpack.c.bf16 %v11725_v11, %v11724_v7  ;;  %v4251_v11 = vld [vmem:[#allocation25 + $0x30] sm:$0xff] }
 0xd7c   :  { %v3571_v15 = vpop.f32.mrb[22].mxu0 }
 0xd7d   :  { %v14195_v16 = vpop.f32.mrb[23].mxu0 }
 0xd7e   :  { %v19559_v19 = vpop.f32.mrb[28].mxu1  ;;  %v11727_v16 = vld [vmem:[%s20716_s20 + $0x198] sm:$0xff] }
 0xd7f   :  { %v14275_v22 = vpop.f32.mrb[29].mxu1 }
 0xd80   :  { %v3662_v18 = vpop.f32.mrb[24].mxu0  ;;  %v16564_v22 = vpack.c.bf16 %v11729_v21, %v11728_v20  ;;  %v4644_v20 = vld [vmem:[#allocation25 + $0xc8] sm:$0xff]  ;;  %v11752_v21 = vld [vmem:[%s20717_s2 + $0x6] sm:$0x3] }
 0xd81   :  { %v14200_v23 = vpop.f32.mrb[25].mxu0  ;;  %14234 = vmatmul.mubr.f32.vlgmr.msra.gmra.mrb[26].mxu0 %v3662_v18  ;;  %v11730_v18 = vld [vmem:[%s20716_s20 + $0x1b0] sm:$0xff] }
 0xd82   :  { %16511 = vmatpush3.bf16.msra.mxu0 %v16510_v17  ;;  %14268 = vmatprep.mubr.msk.f32.mxu0 %vm18621_vm6, %v18622_v29  ;;  %v19565_v6 = vpop.f32.mrb[30].mxu1 }
 0xd83   :  { %16512 = vmatprep.subr.bf16.mxu0 %v18620_v28  ;;  %v14315_v13 = vpop.f32.mrb[31].mxu1 }
 0xd84   :  { %v11734_v13 = vld [vmem:[%s20716_s20 + $0x1d0] sm:$0xff] }
 0xd86   :  { %16514 = vmatpush3.bf16.msra.mxu0 %v16513_v24  ;;  %v11732_v24 = vld [vmem:[%s20716_s20 + $0x1c0] sm:$0xff] }
 0xd87   :  { %16515 = vmatprep.subr.bf16.mxu0 %v18620_v28  ;;  %v16570_v14 = vpack.c.bf16 %v11733_v26, %v11732_v24  ;;  %v4647_v24 = vld [vmem:[#allocation25 + $0xe0] sm:$0xff]  ;;  %v4648_v26 = vld [vmem:[#allocation25 + $0xe8] sm:$0xff] }
 0xd8a   :  { %16517 = vmatpush3.bf16.msra.mxu0 %v16516_v27  ;;  %v11735_v27 = vld [vmem:[%s20716_s20 + $0x1d8] sm:$0xff] }
 0xd8b   :  { %16518 = vmatprep.subr.bf16.mxu0 %v18620_v28  ;;  %v16573_v30 = vpack.c.bf16 %v11735_v27, %v11734_v13  ;;  %v4649_v13 = vld [vmem:[#allocation25 + $0xf0] sm:$0xff]  ;;  %v4650_v27 = vld [vmem:[#allocation25 + $0xf8] sm:$0xff] }
 0xd8e   :  { %16520 = vmatpush3.bf16.msra.mxu0 %v16519_v33  ;;  %v11737_v33 = vld [vmem:[%s20716_s20 + $0x1e8] sm:$0xff] }
 0xd8f   :  { %16521 = vmatprep.subr.bf16.mxu0 %v18620_v28  ;;  %v16576_v35 = vpack.c.bf16 %v11737_v33, %v11736_v31 }
 0xd92   :  { %16523 = vmatpush3.bf16.msra.mxu0 %v16522_v37  ;;  %v11739_v37 = vld [vmem:[%s20716_s20 + $0x1f8] sm:$0xff] }
 0xd93   :  { %16524 = vmatprep.subr.bf16.mxu0 %v18620_v28  ;;  %v16579_v38 = vpack.c.bf16 %v11739_v37, %v11738_v36  ;;  %v4560_v36 = vld [vmem:[#allocation25 + $0x88] sm:$0xff] }
 0xd96   :  { %16526 = vmatpush3.bf16.msra.mxu0 %v16525_v40  ;;  %v11741_v40 = vld [vmem:[#allocation24] ss:$0 sm:$0xff] }
 0xd97   :  { %16527 = vmatprep.subr.bf16.mxu0 %v18620_v28 }
 0xd9a   :  { %16529 = vmatpush3.bf16.msra.mxu0 %v16528_v48 }
 0xd9b   :  { %16530 = vmatprep.subr.bf16.mxu0 %v18620_v28 }
 0xd9e   :  { %16532 = vmatpush3.bf16.msra.mxu0 %v16531_v50  ;;  %v4166_v50 = vld [vmem:[%s20717_s2] sm:$0x3] }
 0xd9f   :  { %16533 = vmatprep.subr.bf16.mxu0 %v18620_v28 }
 0xda1   :  { %14269 = vmatmul.mubr.f32.vlgmr.msra.gmra.mrb[26].mxu0 %v3571_v15  ;;  %v11726_v15 = vld [vmem:[%s20716_s20 + $0x190] sm:$0xff] }
 0xda2   :  { %16535 = vmatpush3.bf16.msra.mxu0 %v16534_v42  ;;  %14308 = vmatprep.mubr.msk.f32.mxu0 %vm18621_vm6, %v18622_v29  ;;  %v16561_v17 = vpack.c.bf16 %v11727_v16, %v11726_v15  ;;  %v16582_v42 = vpack.c.bf16 %v4330_v25, %v4329_v51  ;;  %v11749_v16 = vld [vmem:[%s20717_s2 + $0x4] sm:$0x3]  ;;  %v4565_v25 = vld [vmem:[#allocation25 + $0xb0] sm:$0xff] }
 0xda3   :  { %16536 = vmatprep.subr.bf16.mxu0 %v18620_v28 }
 0xda6   :  { %16538 = vmatpush3.bf16.msra.mxu0 %v16537_v54  ;;  %v16585_v54 = vpack.c.bf16 %v4332_v53, %v4331_v52  ;;  %v19699_v52 = vmax.f32 %v19508_v44, 0.0  ;;  %v4970_v53 = vld [vmem:[#allocation30] sm:$0xf] }
 0xda7   :  { %16539 = vmatprep.subr.bf16.mxu0 %v18620_v28 }
 0xdaa   :  { %16541 = vmatpush3.bf16.msra.mxu0 %v16540_v58  ;;  %v16588_v58 = vpack.c.bf16 %v4334_v56, %v4333_v55  ;;  %v4797_v56 = vld [vmem:[%s20718_s7] sm:$0xf] }
 0xdab   :  { %16542 = vmatprep.subr.bf16.mxu0 %v18620_v28 }
 0xdae   :  { %16544 = vmatpush3.bf16.msra.mxu0 %v16543_v63  ;;  %v16591_v63 = vpack.c.bf16 %v4336_v60, %v4335_v59  ;;  %v11762_v60 = vld [vmem:[#allocation27] ss:$0 sm:$0xff] }
 0xdaf   :  { %16545 = vmatprep.subr.bf16.mxu0 %v18620_v28 }
 0xdb2   :  { %16547 = vmatpush3.bf16.msra.mxu0 %v16546_v2 }
 0xdb3   :  { %16548 = vmatprep.subr.bf16.mxu0 %v18620_v28 }
 0xdb6   :  { %16550 = vmatpush3.bf16.msra.mxu0 %v16549_v62  ;;  %v4247_v62 = vld [vmem:[#allocation25 + $0x10] sm:$0xff] }
 0xdb7   :  { %16551 = vmatprep.subr.bf16.mxu0 %v18620_v28  ;;  %v16597_v9 = vpack.c.bf16 %v4248_v4, %v4247_v62  ;;  %v5137_v62 = vld [vmem:[%s20719_s11 + $0x8] sm:$0xff] }
 0xdba   :  { %16553 = vmatpush3.bf16.msra.mxu0 %v16552_v8 }
 0xdbb   :  { %16554 = vmatprep.subr.bf16.mxu0 %v18620_v28 }
 0xdbe   :  { %16556 = vmatpush3.bf16.msra.mxu0 %v16555_v10  ;;  %v4250_v10 = vld [vmem:[#allocation25 + $0x28] sm:$0xff] }
 0xdbf   :  { %16557 = vmatprep.subr.bf16.mxu0 %v18620_v28  ;;  %v16600_v7 = vpack.c.bf16 %v4250_v10, %v4249_v61  ;;  %v5139_v61 = vld [vmem:[%s20719_s11 + $0x18] sm:$0xff] }
 0xdc1   :  { %14309 = vmatmul.mubr.f32.vlgmr.msra.gmra.mrb[26].mxu0 %v19559_v19  ;;  %v11731_v19 = vld [vmem:[%s20716_s20 + $0x1b8] sm:$0xff] }
 0xdc2   :  { %16559 = vmatpush3.bf16.msra.mxu0 %v16558_v12  ;;  %14348 = vmatprep.mubr.msk.f32.mxu0 %vm18621_vm6, %v18622_v29  ;;  %v16567_v23 = vpack.c.bf16 %v11731_v19, %v11730_v18  ;;  %v4252_v12 = vld [vmem:[#allocation25 + $0x38] sm:$0xff]  ;;  %v4645_v18 = vld [vmem:[#allocation25 + $0xd0] sm:$0xff] }
 0xdc3   :  { %16560 = vmatprep.subr.bf16.mxu0 %v18620_v28  ;;  %v16603_v15 = vpack.c.bf16 %v4252_v12, %v4251_v11  ;;  %v4646_v19 = vld [vmem:[#allocation25 + $0xd8] sm:$0xff]  ;;  %v5613_v12 = vld [vmem:[#allocation30 + $0x8] sm:$0xf] }
 0xdc4   :  { %v5141_v11 = vld [vmem:[%s20719_s11 + $0x28] sm:$0xff] }
 0xdc6   :  { %16562 = vmatpush3.bf16.msra.mxu0 %v16561_v17  ;;  %v4643_v17 = vld [vmem:[#allocation25 + $0xc0] sm:$0xff] }
 0xdc7   :  { %16563 = vmatprep.subr.bf16.mxu0 %v18620_v28 }
 0xdca   :  { %16565 = vmatpush3.bf16.msra.mxu0 %v16564_v22  ;;  %v16606_v22 = vpack.c.bf16 %v4644_v20, %v4643_v17  ;;  %v5142_v20 = vld [vmem:[%s20719_s11 + $0x30] sm:$0xff] }
 0xdcb   :  { %16566 = vmatprep.subr.bf16.mxu0 %v18620_v28 }
 0xdce   :  { %16568 = vmatpush3.bf16.msra.mxu0 %v16567_v23  ;;  %v16609_v23 = vpack.c.bf16 %v4646_v19, %v4645_v18  ;;  %v11826_v18 = vld [vmem:[%s20719_s11 + $0x110] sm:$0xff]  ;;  %v11827_v19 = vld [vmem:[%s20719_s11 + $0x118] sm:$0xff] }
 0xdcf   :  { %16569 = vmatprep.subr.bf16.mxu0 %v18620_v28 }
 0xdd2   :  { %16571 = vmatpush3.bf16.msra.mxu0 %v16570_v14  ;;  %v16612_v14 = vpack.c.bf16 %v4648_v26, %v4647_v24  ;;  %v5144_v24 = vld [vmem:[%s20719_s11 + $0x40] sm:$0xff]  ;;  %v5145_v26 = vld [vmem:[%s20719_s11 + $0x48] sm:$0xff] }
 0xdd3   :  { %16572 = vmatprep.subr.bf16.mxu0 %v18620_v28 }
 0xdd6   :  { %16574 = vmatpush3.bf16.msra.mxu0 %v16573_v30  ;;  %v16615_v30 = vpack.c.bf16 %v4650_v27, %v4649_v13  ;;  %v11828_v13 = vld [vmem:[%s20719_s11 + $0x120] sm:$0xff]  ;;  %v11829_v27 = vld [vmem:[%s20719_s11 + $0x128] sm:$0xff] }
 0xdd7   :  { %16575 = vmatprep.subr.bf16.mxu0 %v18620_v28 }
 0xdda   :  { %16577 = vmatpush3.bf16.msra.mxu0 %v16576_v35  ;;  %v4559_v35 = vld [vmem:[#allocation25 + $0x80] sm:$0xff] }
 0xddb   :  { %16578 = vmatprep.subr.bf16.mxu0 %v18620_v28 }
 0xdde   :  { %16580 = vmatpush3.bf16.msra.mxu0 %v16579_v38 }
 0xddf   :  { %14447 = vmatprep.subr.mxu0 %v18622_v29 }
 0xde1   :  { %14349 = vmatmul.mubr.f32.vlgmr.msra.gmra.mrb[26].mxu0 %v19565_v6  ;;  %v11744_v6 = vld [vmem:[%s20717_s2 + $0x2] sm:$0x3] }
 0xde2   :  { %14449 = vmatprep.mubr.msk.f32.mxu0 %vm18621_vm6, %v18622_v29 }
 0xeb4   :  { %v4144_v43 = vpop.f32.mrb[26].mxu0 }
 0xeb5   :  { %v4155_v46 = vmul.f32 %v11740_v39, %v4144_v43  ;;  %v14350_v48 = vpop.f32.mrb[27].mxu0  ;;  %v16618_v39 = vpack.c.bf16 %v4560_v36, %v4559_v35  ;;  %v4562_v43 = vld [vmem:[#allocation25 + $0x98] sm:$0xff]  ;;  %v16732_v35 = vpack.c.bf16 %v11829_v27, %v11828_v13  ;;  %v11830_v36 = vld [vmem:[%s20719_s11 + $0x130] sm:$0xff]  ;;  %v11791_v13 = vld [vmem:[%s20719_s11 + $0x98] sm:$0xff] }
 0xeb7   :  { %v4162_v49 = vadd.f32 %v11741_v40, %v4155_v46  ;;  %v4561_v40 = vld [vmem:[#allocation25 + $0x90] sm:$0xff] }
 0xeb9   :  { %v19643_v34 = vmax.f32 %v4162_v49, 0.0  ;;  %v16621_v49 = vpack.c.bf16 %v4562_v43, %v4561_v40  ;;  %v5149_v40 = vld [vmem:[%s20719_s11 + $0x68] sm:$0xff] }
 0xebb   :  { %14352 = vmatpush3.msk.msra.mxu1 %vm4171_vm15, %v19643_v34 }
 0xebc   :  { %14354 = vmatmul.mubr.msk.f32.vlgmr.msra.gmra.mrb[32].mxu1 %vm4167_vm2, %v4166_v50  ;;  %14356 = vmatprep.subr.mxu1 %v18622_v29  ;;  %v4564_v50 = vld [vmem:[#allocation25 + $0xa8] sm:$0xff] }
 0xebd   :  { %14357 = vmatpush3.msk.msra.mxu1 %vm4171_vm15, %v19643_v34  ;;  %14358 = vmatprep.mubr.msk.f32.mxu1 %vm18621_vm6, %v18622_v29 }
 0xebe   :  { %16581 = vmatprep.subr.bf16.mxu1 %v18620_v28 }
 0xec0   :  { %14359 = vmatmul.mubr.msk.f32.vlgmr.msra.gmra.mrb[34].mxu1 %vm4167_vm2, %v11744_v6  ;;  %v4566_v6 = vld [vmem:[#allocation25 + $0xb8] sm:$0xff] }
 0xec1   :  { %16583 = vmatpush3.bf16.msra.mxu1 %v16582_v42  ;;  %14377 = vmatprep.mubr.msk.f32.mxu1 %vm18621_vm6, %v18622_v29  ;;  %v16627_v42 = vpack.c.bf16 %v4566_v6, %v4565_v25  ;;  %v5047_v6 = vld [vmem:[%s20720_s0] sm:$0xff] }
 0xec2   :  { %16584 = vmatprep.subr.bf16.mxu1 %v18620_v28 }
 0xec5   :  { %16586 = vmatpush3.bf16.msra.mxu1 %v16585_v54  ;;  %v11757_v54 = vld [vmem:[%s20718_s7 + $0x4] sm:$0xf] }
 0xec6   :  { %16587 = vmatprep.subr.bf16.mxu1 %v18620_v28 }
 0xec9   :  { %16589 = vmatpush3.bf16.msra.mxu1 %v16588_v58 }
 0xeca   :  { %16590 = vmatprep.subr.bf16.mxu1 %v18620_v28 }
 0xecd   :  { %16592 = vmatpush3.bf16.msra.mxu1 %v16591_v63  ;;  %v11763_v63 = vld [vmem:[#allocation28] ss:$0 sm:$0xff] }
 0xece   :  { %16593 = vmatprep.subr.bf16.mxu1 %v18620_v28 }
 0xf8f   :  { %v4241_v2 = vpop.f32.mrb[32].mxu1 }
 0xf90   :  { %v14355_v57 = vpop.f32.mrb[33].mxu1 }
 0xf93   :  { %v4324_v5 = vpop.f32.mrb[34].mxu1 }
 0xf94   :  { %v14360_v8 = vpop.f32.mrb[35].mxu1  ;;  %14378 = vmatmul.mubr.msk.f32.vlgmr.msra.gmra.mrb[36].mxu1 %vm576_vm0, %v4324_v5  ;;  %v5293_v5 = vld [vmem:[#allocation30 + $0x4] sm:$0xf] }
 0xf95   :  { %16595 = vmatpush3.bf16.msra.mxu1 %v16594_v3  ;;  %14396 = vmatprep.mubr.msk.f32.mxu1 %vm18621_vm6, %v18622_v29  ;;  %v5136_v3 = vld [vmem:[%s20719_s11] sm:$0xff] }
 0xf96   :  { %16596 = vmatprep.subr.bf16.mxu1 %v18620_v28  ;;  %v16630_v8 = vpack.c.bf16 %v5137_v62, %v5136_v3  ;;  %v5057_v3 = vld [vmem:[%s20720_s0 + $0x50] sm:$0xff]  ;;  %v5058_v62 = vld [vmem:[%s20720_s0 + $0x58] sm:$0xff] }
 0xf99   :  { %16598 = vmatpush3.bf16.msra.mxu1 %v16597_v9  ;;  %v5138_v9 = vld [vmem:[%s20719_s11 + $0x10] sm:$0xff] }
 0xf9a   :  { %16599 = vmatprep.subr.bf16.mxu1 %v18620_v28  ;;  %v16633_v10 = vpack.c.bf16 %v5139_v61, %v5138_v9  ;;  %v5060_v9 = vld [vmem:[%s20720_s0 + $0x68] sm:$0xff] }
 0xf9d   :  { %16601 = vmatpush3.bf16.msra.mxu1 %v16600_v7  ;;  %v5140_v7 = vld [vmem:[%s20719_s11 + $0x20] sm:$0xff] }
 0xf9e   :  { %16602 = vmatprep.subr.bf16.mxu1 %v18620_v28  ;;  %v16636_v17 = vpack.c.bf16 %v5141_v11, %v5140_v7  ;;  %v5062_v7 = vld [vmem:[%s20720_s0 + $0x78] sm:$0xff] }
 0xfa1   :  { %16604 = vmatpush3.bf16.msra.mxu1 %v16603_v15  ;;  %v11824_v15 = vld [vmem:[%s20719_s11 + $0x100] sm:$0xff] }
 0xfa2   :  { %14399 = vmatprep.subr.mxu1 %v18622_v29 }
 0xfa4   :  { %14397 = vmatmul.mubr.msk.f32.vlgmr.msra.gmra.mrb[36].mxu1 %vm576_vm0, %v4241_v2 }
 0xfa5   :  { %14400 = vmatpush3.msk.msra.mxu1 %vm4171_vm15, %v19643_v34  ;;  %14401 = vmatprep.mubr.msk.f32.mxu1 %vm18621_vm6, %v18622_v29 }
 0xfa6   :  { %14404 = vmatprep.subr.mxu1 %v18622_v29 }
 0xfa8   :  { %14402 = vmatmul.mubr.msk.f32.vlgmr.msra.gmra.mrb[38].mxu1 %vm4167_vm2, %v11749_v16  ;;  %v11825_v16 = vld [vmem:[%s20719_s11 + $0x108] sm:$0xff] }
 0xfa9   :  { %14405 = vmatpush3.msk.msra.mxu1 %vm4171_vm15, %v19643_v34  ;;  %14406 = vmatprep.mubr.msk.f32.mxu1 %vm18621_vm6, %v18622_v29  ;;  %v4563_v34 = vld [vmem:[#allocation25 + $0xa0] sm:$0xff] }
 0xfaa   :  { %16605 = vmatprep.subr.bf16.mxu1 %v18620_v28  ;;  %v16624_v51 = vpack.c.bf16 %v4564_v50, %v4563_v34  ;;  %v5150_v34 = vld [vmem:[%s20719_s11 + $0x70] sm:$0xff]  ;;  %v5151_v50 = vld [vmem:[%s20719_s11 + $0x78] sm:$0xff] }
 0xfab   :  { %v16651_v25 = vpack.c.bf16 %v5151_v50, %v5150_v34 }
 0xfac   :  { %14407 = vmatmul.mubr.msk.f32.vlgmr.msra.gmra.mrb[40].mxu1 %vm4167_vm2, %v11752_v21  ;;  %v5143_v21 = vld [vmem:[%s20719_s11 + $0x38] sm:$0xff] }
 0xfad   :  { %16607 = vmatpush3.bf16.msra.mxu1 %v16606_v22  ;;  %14425 = vmatprep.mubr.msk.f32.mxu1 %vm18621_vm6, %v18622_v29  ;;  %v16726_v22 = vpack.c.bf16 %v11825_v16, %v11824_v15  ;;  %v11835_v15 = vld [vmem:[%s20719_s11 + $0x158] sm:$0xff] }
 0xfae   :  { %16608 = vmatprep.subr.bf16.mxu1 %v18620_v28 }
 0xfb1   :  { %16610 = vmatpush3.bf16.msra.mxu1 %v16609_v23  ;;  %v16639_v23 = vpack.c.bf16 %v5143_v21, %v5142_v20  ;;  %v11837_v20 = vld [vmem:[%s20719_s11 + $0x168] sm:$0xff] }
 0xfb2   :  { %16611 = vmatprep.subr.bf16.mxu1 %v18620_v28 }
 0xfb5   :  { %16613 = vmatpush3.bf16.msra.mxu1 %v16612_v14  ;;  %v16729_v14 = vpack.c.bf16 %v11827_v19, %v11826_v18  ;;  %v11839_v18 = vld [vmem:[%s20719_s11 + $0x178] sm:$0xff] }
 0xfb6   :  { %16614 = vmatprep.subr.bf16.mxu1 %v18620_v28 }
 0xfb9   :  { %16616 = vmatpush3.bf16.msra.mxu1 %v16615_v30  ;;  %v16642_v30 = vpack.c.bf16 %v5145_v26, %v5144_v24  ;;  %v11789_v24 = vld [vmem:[%s20719_s11 + $0x88] sm:$0xff] }
 0xfba   :  { %16617 = vmatprep.subr.bf16.mxu1 %v18620_v28 }
0x1077   :  { %v4479_v31 = vpop.f32.mrb[36].mxu1 }
0x1078   :  { %v14398_v33 = vpop.f32.mrb[37].mxu1 }
0x1079   :  { %v5147_v33 = vld [vmem:[%s20719_s11 + $0x58] sm:$0xff] }
0x107b   :  { %v4554_v37 = vpop.f32.mrb[38].mxu1 }
0x107c   :  { %v14403_v38 = vpop.f32.mrb[39].mxu1 }
0x107f   :  { %v4638_v46 = vpop.f32.mrb[40].mxu1 }
0x1080   :  { %v14408_v48 = vpop.f32.mrb[41].mxu1  ;;  %14426 = vmatmul.mubr.msk.f32.vlgmr.msra.gmra.mrb[42].mxu1 %vm576_vm0, %v4638_v46  ;;  %v11832_v46 = vld [vmem:[%s20719_s11 + $0x140] sm:$0xff] }
0x1081   :  { %16619 = vmatpush3.bf16.msra.mxu1 %v16618_v39  ;;  %14444 = vmatprep.mubr.msk.f32.mxu1 %vm18621_vm6, %v18622_v29  ;;  %v5148_v39 = vld [vmem:[%s20719_s11 + $0x60] sm:$0xff]  ;;  %v11833_v48 = vld [vmem:[%s20719_s11 + $0x148] sm:$0xff] }
0x1082   :  { %16620 = vmatprep.subr.bf16.mxu1 %v18620_v28 }
0x1085   :  { %16622 = vmatpush3.bf16.msra.mxu1 %v16621_v49  ;;  %v16648_v49 = vpack.c.bf16 %v5149_v40, %v5148_v39 }
0x1086   :  { %16623 = vmatprep.subr.bf16.mxu1 %v18620_v28 }
0x1089   :  { %16625 = vmatpush3.bf16.msra.mxu1 %v16624_v51  ;;  %v16738_v51 = vpack.c.bf16 %v11833_v48, %v11832_v46  ;;  %v11795_v46 = vld [vmem:[%s20719_s11 + $0xb8] sm:$0xff]  ;;  %v11806_v48 = vld [vmem:[%s20720_s0 + $0x100] sm:$0xff] }
0x108a   :  { %16626 = vmatprep.subr.bf16.mxu1 %v18620_v28 }
0x108d   :  { %16628 = vmatpush3.bf16.msra.mxu1 %v16627_v42  ;;  %v5048_v42 = vld [vmem:[%s20720_s0 + $0x8] sm:$0xff] }
0x108e   :  { %14462 = vmatprep.subr.mxu1 %v18622_v29 }
0x1090   :  { %14445 = vmatmul.mubr.msk.f32.vlgmr.msra.gmra.mrb[42].mxu1 %vm576_vm0, %v4554_v37  ;;  %v11831_v37 = vld [vmem:[%s20719_s11 + $0x138] sm:$0xff]  ;;  %vm11374_vm0 = vcmask 785408  }
0x1091   :  { %14463 = vmatpush3.msk.msra.mxu1 %vm3501_vm13, %v19699_v52  ;;  %14464 = vmatprep.mubr.msk.f32.mxu1 %vm18621_vm6, %v18622_v29  ;;  %v16735_v43 = vpack.c.bf16 %v11831_v37, %v11830_v36  ;;  %v11792_v36 = vld [vmem:[%s20719_s11 + $0xa0] sm:$0xff]  ;;  %v11793_v37 = vld [vmem:[%s20719_s11 + $0xa8] sm:$0xff] }
0x1092   :  { %14537 = vmatprep.subr.mxu1 %v18622_v29  ;;  %v16684_v40 = vpack.c.bf16 %v11793_v37, %v11792_v36 }
0x1094   :  { %14465 = vmatmul.mubr.msk.f32.vlgmr.msra.gmra.mrb[44].mxu1 %vm3497_vm14, %v4970_v53 }
0x1095   :  { %14539 = vmatprep.mubr.msk.f32.mxu1 %vm18621_vm6, %v18622_v29 }
0x1163   :  { %v4793_v44 = vpop.f32.mrb[42].mxu1 }
0x1164   :  { %v14446_v55 = vpop.f32.mrb[43].mxu1  ;;  %14448 = vmatpush3.msk.msra.mxu0 %vm4171_vm15, %v4793_v44  ;;  %v5050_v44 = vld [vmem:[%s20720_s0 + $0x18] sm:$0xff] }
0x1165   :  { %14450 = vmatmul.mubr.msk.f32.vlgmr.msra.gmra.mrb[28].mxu0 %vm4167_vm2, %v11757_v54  ;;  %14452 = vmatprep.subr.mxu0 %v18622_v29  ;;  %v5049_v54 = vld [vmem:[%s20720_s0 + $0x10] sm:$0xff] }
0x1166   :  { %14453 = vmatpush3.msk.msra.mxu0 %vm4171_vm15, %v4479_v31  ;;  %14454 = vmatprep.mubr.msk.f32.mxu0 %vm18621_vm6, %v18622_v29  ;;  %v5146_v31 = vld [vmem:[%s20719_s11 + $0x50] sm:$0xff]  ;;  %v16657_v55 = vpack.c.bf16 %v5050_v44, %v5049_v54  ;;  %v11809_v54 = vld [vmem:[%s20720_s0 + $0x118] sm:$0xff] }
0x1167   :  { %14457 = vmatprep.subr.mxu0 %v18622_v29  ;;  %v19722_v58 = vpop.f32.mrb[44].mxu1  ;;  %v16645_v38 = vpack.c.bf16 %v5147_v33, %v5146_v31 }
0x1168   :  { %v14466_v59 = vpop.f32.mrb[45].mxu1 }
0x1169   :  { %v5052_v59 = vld [vmem:[%s20720_s0 + $0x28] sm:$0xff] }
0x116d   :  { %14455 = vmatmul.mubr.msk.f32.vlgmr.msra.gmra.mrb[28].mxu0 %vm4167_vm2, %v4797_v56  ;;  %v5051_v56 = vld [vmem:[%s20720_s0 + $0x20] sm:$0xff] }
0x116e   :  { %14459 = vmatprep.mubr.msk.f32.mxu0 %vm18621_vm6, %v18622_v29 }
0x1240   :  { %v4948_v0 = vpop.f32.mrb[28].mxu0 }
0x1241   :  { %v4958_v1 = vmul.f32 %v11762_v60, %v4948_v0  ;;  %v14456_v2 = vpop.f32.mrb[29].mxu0  ;;  %v16660_v60 = vpack.c.bf16 %v5052_v59, %v5051_v56 }
0x1242   :  { %v5056_v2 = vld [vmem:[%s20720_s0 + $0x48] sm:$0xff] }
0x1243   :  { %v4965_v57 = vadd.f32 %v11763_v63, %v4958_v1  ;;  %v5053_v63 = vld [vmem:[%s20720_s0 + $0x30] sm:$0xff]  ;;  %v5055_v1 = vld [vmem:[%s20720_s0 + $0x40] sm:$0xff] }
0x1245   :  { %v19726_v4 = vmax.f32 %v4965_v57, 0.0  ;;  %v16666_v57 = vpack.c.bf16 %v5056_v2, %v5055_v1 }
0x1247   :  { %14458 = vmatpush3.msk.msra.mxu0 %vm3501_vm13, %v19726_v4  ;;  %14538 = vmatpush3.msk.msra.mxu1 %vm3501_vm13, %v19726_v4 }
0x1248   :  { %14460 = vmatmul.mubr.msk.f32.vlgmr.msra.gmra.mrb[30].mxu0 %vm3497_vm14, %v4970_v53  ;;  %14540 = vmatmul.mubr.msk.f32.vlgmr.msra.gmra.mrb[46].mxu1 %vm3497_vm14, %v5293_v5  ;;  %v16654_v53 = vpack.c.bf16 %v5048_v42, %v5047_v6  ;;  %v11796_v6 = vld [vmem:[%s20719_s11 + $0xc0] sm:$0xff]  ;;  %v11797_v42 = vld [vmem:[%s20719_s11 + $0xc8] sm:$0xff] }
0x1249   :  { %14542 = vmatprep.subr.mxu1 %v18622_v29  ;;  %14544 = vmatprep.mubr.msk.f32.mxu1 %vm18621_vm6, %v18622_v29  ;;  %v16690_v56 = vpack.c.bf16 %v11797_v42, %v11796_v6  ;;  %v11861_v6 = vld [vmem:[%s20719_s11 + $0x188] sm:$0xff] }
0x124a   :  { %14543 = vmatpush3.msk.msra.mxu1 %vm3501_vm13, %v19699_v52  ;;  %16629 = vmatprep.subr.bf16.mxu0 %v18620_v28 }
0x124b   :  { %14617 = vmatprep.subr.mxu1 %v18622_v29  ;;  %16631 = vmatpush3.bf16.msra.mxu0 %v16630_v8  ;;  %v5059_v8 = vld [vmem:[%s20720_s0 + $0x60] sm:$0xff] }
0x124c   :  { %14545 = vmatmul.mubr.msk.f32.vlgmr.msra.gmra.mrb[48].mxu1 %vm3497_vm14, %v5293_v5  ;;  %16632 = vmatprep.subr.bf16.mxu0 %v18620_v28  ;;  %v16669_v5 = vpack.c.bf16 %v5058_v62, %v5057_v3  ;;  %v16672_v61 = vpack.c.bf16 %v5060_v9, %v5059_v8  ;;  %v11801_v3 = vld [vmem:[%s20719_s11 + $0xe8] sm:$0xff]  ;;  %v11812_v62 = vld [vmem:[%s20720_s0 + $0x130] sm:$0xff] }
0x124d   :  { %14618 = vmatpush3.msk.msra.mxu1 %vm3501_vm13, %v19726_v4  ;;  %14619 = vmatprep.mubr.msk.f32.mxu1 %vm18621_vm6, %v18622_v29 }
0x124e   :  { %14622 = vmatprep.subr.mxu1 %v18622_v29  ;;  %14499 = vmatprep.mubr.msk.f32.mxu0 %vm18621_vm6, %v18622_v29 }
0x124f   :  { %16634 = vmatpush3.bf16.msra.mxu0 %v16633_v10  ;;  %v5061_v10 = vld [vmem:[%s20720_s0 + $0x70] sm:$0xff] }
0x1250   :  { %14620 = vmatmul.mubr.msk.f32.vlgmr.msra.gmra.mrb[50].mxu1 %vm3497_vm14, %v5613_v12  ;;  %16635 = vmatprep.subr.bf16.mxu0 %v18620_v28  ;;  %v16675_v11 = vpack.c.bf16 %v5062_v7, %v5061_v10  ;;  %v11803_v10 = vld [vmem:[%s20719_s11 + $0xf8] sm:$0xff]  ;;  %v11814_v7 = vld [vmem:[%s20720_s0 + $0x140] sm:$0xff] }
0x1251   :  { %14623 = vmatpush3.msk.msra.mxu1 %vm3501_vm13, %v19699_v52  ;;  %14624 = vmatprep.mubr.msk.f32.mxu1 %vm18621_vm6, %v18622_v29 }
0x1252   :  { %16725 = vmatprep.subr.bf16.mxu1 %v18620_v28 }
0x1253   :  { %16637 = vmatpush3.bf16.msra.mxu0 %v16636_v17  ;;  %v11836_v17 = vld [vmem:[%s20719_s11 + $0x160] sm:$0xff] }
0x1254   :  { %14625 = vmatmul.mubr.msk.f32.vlgmr.msra.gmra.mrb[52].mxu1 %vm3497_vm14, %v5613_v12  ;;  %16638 = vmatprep.subr.bf16.mxu0 %v18620_v28  ;;  %v11834_v12 = vld [vmem:[%s20719_s11 + $0x150] sm:$0xff]  ;;  %v16744_v21 = vpack.c.bf16 %v11837_v20, %v11836_v17  ;;  %v11771_v17 = vld [vmem:[%s20720_s0 + $0x88] sm:$0xff] }
0x1255   :  { %16727 = vmatpush3.bf16.msra.mxu1 %v16726_v22  ;;  %14659 = vmatprep.mubr.msk.f32.mxu1 %vm18621_vm6, %v18622_v29  ;;  %v16741_v16 = vpack.c.bf16 %v11835_v15, %v11834_v12  ;;  %v11838_v22 = vld [vmem:[%s20719_s11 + $0x170] sm:$0xff] }
0x1256   :  { %16728 = vmatprep.subr.bf16.mxu1 %v18620_v28  ;;  %v16747_v19 = vpack.c.bf16 %v11839_v18, %v11838_v22  ;;  %v11816_v20 = vld [vmem:[%s20720_s0 + $0x150] sm:$0xff] }
0x1257   :  { %16640 = vmatpush3.bf16.msra.mxu0 %v16639_v23  ;;  %v11788_v23 = vld [vmem:[%s20719_s11 + $0x80] sm:$0xff] }
0x1258   :  { %16641 = vmatprep.subr.bf16.mxu0 %v18620_v28  ;;  %v16678_v26 = vpack.c.bf16 %v11789_v24, %v11788_v23  ;;  %v11773_v23 = vld [vmem:[%s20720_s0 + $0x98] sm:$0xff]  ;;  %v11818_v24 = vld [vmem:[%s20720_s0 + $0x160] sm:$0xff] }
0x1259   :  { %16730 = vmatpush3.bf16.msra.mxu1 %v16729_v14  ;;  %v11790_v14 = vld [vmem:[%s20719_s11 + $0x90] sm:$0xff] }
0x125a   :  { %16731 = vmatprep.subr.bf16.mxu1 %v18620_v28 }
0x125b   :  { %16643 = vmatpush3.bf16.msra.mxu0 %v16642_v30 }
0x125c   :  { %16644 = vmatprep.subr.bf16.mxu0 %v18620_v28 }
0x125d   :  { %16733 = vmatpush3.bf16.msra.mxu1 %v16732_v35  ;;  %v16681_v35 = vpack.c.bf16 %v11791_v13, %v11790_v14 }
0x125e   :  { %16734 = vmatprep.subr.bf16.mxu1 %v18620_v28 }
0x125f   :  { %16646 = vmatpush3.bf16.msra.mxu0 %v16645_v38 }
0x1260   :  { %16647 = vmatprep.subr.bf16.mxu0 %v18620_v28 }
0x1261   :  { %16736 = vmatpush3.bf16.msra.mxu1 %v16735_v43  ;;  %v11794_v43 = vld [vmem:[%s20719_s11 + $0xb0] sm:$0xff] }
0x1262   :  { %16737 = vmatprep.subr.bf16.mxu1 %v18620_v28 }
0x1263   :  { %16649 = vmatpush3.bf16.msra.mxu0 %v16648_v49  ;;  %v11807_v49 = vld [vmem:[%s20720_s0 + $0x108] sm:$0xff] }
0x1264   :  { %16650 = vmatprep.subr.bf16.mxu0 %v18620_v28 }
0x1265   :  { %16739 = vmatpush3.bf16.msra.mxu1 %v16738_v51  ;;  %v16687_v51 = vpack.c.bf16 %v11795_v46, %v11794_v43  ;;  %v11778_v43 = vld [vmem:[%s20720_s0 + $0xc0] sm:$0xff]  ;;  %v11779_v46 = vld [vmem:[%s20720_s0 + $0xc8] sm:$0xff] }
0x1266   :  { %16740 = vmatprep.subr.bf16.mxu1 %v18620_v28 }
0x1267   :  { %16652 = vmatpush3.bf16.msra.mxu0 %v16651_v25  ;;  %v16750_v25 = vpack.c.bf16 %v11807_v49, %v11806_v48  ;;  %v5932_v48 = vld [vmem:[#allocation30 + $0xc] sm:$0xf]  ;;  %v16714_v49 = vpack.c.bf16 %v11779_v46, %v11778_v43  ;;  %v11852_v43 = vld [vmem:[%s20720_s0 + $0x1d0] sm:$0xff] }
0x1268   :  { %16653 = vmatprep.subr.bf16.mxu0 %v18620_v28  ;;  %v11853_v46 = vld [vmem:[%s20720_s0 + $0x1d8] sm:$0xff] }
0x1269   :  { %16742 = vmatpush3.bf16.msra.mxu1 %v16741_v16  ;;  %v11770_v16 = vld [vmem:[%s20720_s0 + $0x80] sm:$0xff] }
0x126a   :  { %14500 = vmatmul.mubr.f32.vlgmr.msra.gmra.mrb[32].mxu0 %v19722_v58  ;;  %v5054_v58 = vld [vmem:[%s20720_s0 + $0x38] sm:$0xff]  ;;  %16743 = vmatprep.subr.bf16.mxu1 %v18620_v28  ;;  %v16702_v22 = vpack.c.bf16 %v11771_v17, %v11770_v16  ;;  %v11842_v16 = vld [vmem:[%s20720_s0 + $0x180] sm:$0xff]  ;;  %v11843_v17 = vld [vmem:[%s20720_s0 + $0x188] sm:$0xff] }
0x126b   :  { %16655 = vmatpush3.bf16.msra.mxu0 %v16654_v53  ;;  %14534 = vmatprep.mubr.msk.f32.mxu0 %vm18621_vm6, %v18622_v29  ;;  %v16663_v0 = vpack.c.bf16 %v5054_v58, %v5053_v63  ;;  %v11808_v53 = vld [vmem:[%s20720_s0 + $0x110] sm:$0xff]  ;;  %v11799_v63 = vld [vmem:[%s20719_s11 + $0xd8] sm:$0xff]  ;;  %v11810_v58 = vld [vmem:[%s20720_s0 + $0x120] sm:$0xff] }
0x126c   :  { %16656 = vmatprep.subr.bf16.mxu0 %v18620_v28  ;;  %v16753_v59 = vpack.c.bf16 %v11809_v54, %v11808_v53  ;;  %v11783_v53 = vld [vmem:[%s20720_s0 + $0xe8] sm:$0xff]  ;;  %v11862_v54 = vld [vmem:[%s20719_s11 + $0x190] sm:$0xff] }
0x126d   :  { %16745 = vmatpush3.bf16.msra.mxu1 %v16744_v21  ;;  %v11817_v21 = vld [vmem:[%s20720_s0 + $0x158] sm:$0xff] }
0x126e   :  { %16746 = vmatprep.subr.bf16.mxu1 %v18620_v28  ;;  %v16765_v18 = vpack.c.bf16 %v11817_v21, %v11816_v20 }
0x126f   :  { %16658 = vmatpush3.bf16.msra.mxu0 %v16657_v55 }
0x1270   :  { %16659 = vmatprep.subr.bf16.mxu0 %v18620_v28 }
0x1271   :  { %16748 = vmatpush3.bf16.msra.mxu1 %v16747_v19  ;;  %v11772_v19 = vld [vmem:[%s20720_s0 + $0x90] sm:$0xff] }
0x1272   :  { %16749 = vmatprep.subr.bf16.mxu1 %v18620_v28  ;;  %v16705_v14 = vpack.c.bf16 %v11773_v23, %v11772_v19  ;;  %v11845_v19 = vld [vmem:[%s20720_s0 + $0x198] sm:$0xff] }
0x1273   :  { %16661 = vmatpush3.bf16.msra.mxu0 %v16660_v60  ;;  %v11798_v60 = vld [vmem:[%s20719_s11 + $0xd0] sm:$0xff] }
0x1274   :  { %16662 = vmatprep.subr.bf16.mxu0 %v18620_v28  ;;  %v16693_v1 = vpack.c.bf16 %v11799_v63, %v11798_v60  ;;  %v11864_v60 = vld [vmem:[%s20719_s11 + $0x1a0] sm:$0xff]  ;;  %v11865_v63 = vld [vmem:[%s20719_s11 + $0x1a8] sm:$0xff] }
0x1277   :  { %16664 = vmatpush3.bf16.msra.mxu0 %v16663_v0  ;;  %v11811_v0 = vld [vmem:[%s20720_s0 + $0x128] sm:$0xff] }
0x1278   :  { %16665 = vmatprep.subr.bf16.mxu0 %v18620_v28  ;;  %v16756_v2 = vpack.c.bf16 %v11811_v0, %v11810_v58  ;;  %v16780_v0 = vpack.c.bf16 %v11865_v63, %v11864_v60 }
0x127b   :  { %16667 = vmatpush3.bf16.msra.mxu0 %v16666_v57  ;;  %v11800_v57 = vld [vmem:[%s20719_s11 + $0xe0] sm:$0xff] }
0x127c   :  { %16668 = vmatprep.subr.bf16.mxu0 %v18620_v28  ;;  %v16696_v8 = vpack.c.bf16 %v11801_v3, %v11800_v57  ;;  %v11868_v3 = vld [vmem:[%s20719_s11 + $0x1c0] sm:$0xff] }
0x127f   :  { %16670 = vmatpush3.bf16.msra.mxu0 %v16669_v5  ;;  %v11813_v5 = vld [vmem:[%s20720_s0 + $0x138] sm:$0xff] }
0x1280   :  { %16671 = vmatprep.subr.bf16.mxu0 %v18620_v28  ;;  %v16759_v9 = vpack.c.bf16 %v11813_v5, %v11812_v62  ;;  %v11869_v62 = vld [vmem:[%s20719_s11 + $0x1c8] sm:$0xff] }
0x1281   :  { %v16786_v5 = vpack.c.bf16 %v11869_v62, %v11868_v3  ;;  %v6586_v3 = vld [vmem:[%s20722_s15 + $0x10] sm:$0xff]  ;;  %v6587_v62 = vld [vmem:[%s20722_s15 + $0x18] sm:$0xff] }
0x1283   :  { %16673 = vmatpush3.bf16.msra.mxu0 %v16672_v61  ;;  %v11802_v61 = vld [vmem:[%s20719_s11 + $0xf0] sm:$0xff] }
0x1284   :  { %16674 = vmatprep.subr.bf16.mxu0 %v18620_v28  ;;  %v16699_v12 = vpack.c.bf16 %v11803_v10, %v11802_v61  ;;  %v11872_v10 = vld [vmem:[%s20719_s11 + $0x1e0] sm:$0xff] }
0x1287   :  { %16676 = vmatpush3.bf16.msra.mxu0 %v16675_v11  ;;  %v11815_v11 = vld [vmem:[%s20720_s0 + $0x148] sm:$0xff] }
0x1288   :  { %16677 = vmatprep.subr.bf16.mxu0 %v18620_v28  ;;  %v16762_v15 = vpack.c.bf16 %v11815_v11, %v11814_v7  ;;  %v11873_v7 = vld [vmem:[%s20719_s11 + $0x1e8] sm:$0xff]  ;;  %v11874_v11 = vld [vmem:[%s20719_s11 + $0x1f0] sm:$0xff] }
0x131b   :  { %v5043_v27 = vpop.f32.mrb[30].mxu0  ;;  %v19835_v30 = vpop.f32.mrb[46].mxu1 }
0x131c   :  { %14535 = vmatmul.mubr.f32.vlgmr.msra.gmra.mrb[32].mxu0 %v5043_v27  ;;  %v14541_v31 = vpop.f32.mrb[47].mxu1  ;;  %v14461_v33 = vpop.f32.mrb[31].mxu0  ;;  %v11774_v27 = vld [vmem:[%s20720_s0 + $0xa0] sm:$0xff] }
0x131d   :  { %16679 = vmatpush3.bf16.msra.mxu0 %v16678_v26  ;;  %14579 = vmatprep.mubr.msk.f32.mxu0 %vm18621_vm6, %v18622_v29  ;;  %v11819_v26 = vld [vmem:[%s20720_s0 + $0x168] sm:$0xff]  ;;  %v11820_v33 = vld [vmem:[%s20720_s0 + $0x170] sm:$0xff] }
0x131e   :  { %16680 = vmatprep.subr.bf16.mxu0 %v18620_v28  ;;  %v16768_v13 = vpack.c.bf16 %v11819_v26, %v11818_v24  ;;  %v11775_v31 = vld [vmem:[%s20720_s0 + $0xa8] sm:$0xff] }
0x131f   :  { %v19842_v38 = vpop.f32.mrb[48].mxu1  ;;  %v16708_v36 = vpack.c.bf16 %v11775_v31, %v11774_v27  ;;  %v11848_v31 = vld [vmem:[%s20720_s0 + $0x1b0] sm:$0xff] }
0x1320   :  { %v14546_v39 = vpop.f32.mrb[49].mxu1 }
0x1321   :  { %16682 = vmatpush3.bf16.msra.mxu0 %v16681_v35  ;;  %v11821_v35 = vld [vmem:[%s20720_s0 + $0x178] sm:$0xff] }
0x1322   :  { %16683 = vmatprep.subr.bf16.mxu0 %v18620_v28  ;;  %v16771_v37 = vpack.c.bf16 %v11821_v35, %v11820_v33  ;;  %v11777_v39 = vld [vmem:[%s20720_s0 + $0xb8] sm:$0xff] }
0x1323   :  { %v19849_v34 = vpop.f32.mrb[50].mxu1  ;;  %v11849_v33 = vld [vmem:[%s20720_s0 + $0x1b8] sm:$0xff] }
0x1324   :  { %v14621_v50 = vpop.f32.mrb[51].mxu1  ;;  %v16807_v35 = vpack.c.bf16 %v11849_v33, %v11848_v31  ;;  %v6595_v31 = vld [vmem:[%s20722_s15 + $0x58] sm:$0xff] }
0x1325   :  { %16685 = vmatpush3.bf16.msra.mxu0 %v16684_v40  ;;  %v11780_v50 = vld [vmem:[%s20720_s0 + $0xd0] sm:$0xff] }
0x1326   :  { %16686 = vmatprep.subr.bf16.mxu0 %v18620_v28 }
0x1327   :  { %v5770_v44 = vpop.f32.mrb[52].mxu1 }
0x1328   :  { %v14626_v55 = vpop.f32.mrb[53].mxu1  ;;  %14660 = vmatmul.mubr.f32.vlgmr.msra.gmra.mrb[54].mxu1 %v5770_v44  ;;  %v11863_v44 = vld [vmem:[%s20719_s11 + $0x198] sm:$0xff] }
0x1329   :  { %16688 = vmatpush3.bf16.msra.mxu0 %v16687_v51  ;;  %16751 = vmatpush3.bf16.msra.mxu1 %v16750_v25  ;;  %v11781_v51 = vld [vmem:[%s20720_s0 + $0xd8] sm:$0xff]  ;;  %v11860_v25 = vld [vmem:[%s20719_s11 + $0x180] sm:$0xff]  ;;  %v11784_v55 = vld [vmem:[%s20720_s0 + $0xf0] sm:$0xff] }
0x132a   :  { %16689 = vmatprep.subr.bf16.mxu0 %v18620_v28  ;;  %16752 = vmatprep.subr.bf16.mxu1 %v18620_v28  ;;  %v16774_v42 = vpack.c.bf16 %v11861_v6, %v11860_v25  ;;  %v11856_v25 = vld [vmem:[%s20720_s0 + $0x1f0] sm:$0xff]  ;;  %v11857_v6 = vld [vmem:[%s20720_s0 + $0x1f8] sm:$0xff] }
0x132b   :  { %14694 = vmatprep.mubr.msk.f32.mxu1 %vm18621_vm6, %v18622_v29 }
0x132d   :  { %16691 = vmatpush3.bf16.msra.mxu0 %v16690_v56  ;;  %16754 = vmatpush3.bf16.msra.mxu1 %v16753_v59  ;;  %v16777_v56 = vpack.c.bf16 %v11863_v44, %v11862_v54  ;;  %v11785_v59 = vld [vmem:[%s20720_s0 + $0xf8] sm:$0xff]  ;;  %v6251_v54 = vld [vmem:[%s20721_s12] sm:$0xff] }
0x132e   :  { %16692 = vmatprep.subr.bf16.mxu0 %v18620_v28  ;;  %16755 = vmatprep.subr.bf16.mxu1 %v18620_v28  ;;  %v16723_v58 = vpack.c.bf16 %v11785_v59, %v11784_v55  ;;  %v11881_v44 = vld [vmem:[#allocation31] ss:$0 sm:$0xff] }
0x1331   :  { %16694 = vmatpush3.bf16.msra.mxu0 %v16693_v1  ;;  %16757 = vmatpush3.bf16.msra.mxu1 %v16756_v2  ;;  %v11866_v1 = vld [vmem:[%s20719_s11 + $0x1b0] sm:$0xff]  ;;  %v11867_v2 = vld [vmem:[%s20719_s11 + $0x1b8] sm:$0xff] }
0x1332   :  { %16695 = vmatprep.subr.bf16.mxu0 %v18620_v28  ;;  %16758 = vmatprep.subr.bf16.mxu1 %v18620_v28  ;;  %v16783_v57 = vpack.c.bf16 %v11867_v2, %v11866_v1  ;;  %v20005_v1 = vmax.f32 %v19377_v45, 0.0  ;;  %v6584_v2 = vld [vmem:[%s20722_s15] sm:$0xff] }
0x1335   :  { %16697 = vmatpush3.bf16.msra.mxu0 %v16696_v8  ;;  %16760 = vmatpush3.bf16.msra.mxu1 %v16759_v9  ;;  %v11870_v8 = vld [vmem:[%s20719_s11 + $0x1d0] sm:$0xff]  ;;  %v11871_v9 = vld [vmem:[%s20719_s11 + $0x1d8] sm:$0xff] }
0x1336   :  { %16698 = vmatprep.subr.bf16.mxu0 %v18620_v28  ;;  %16761 = vmatprep.subr.bf16.mxu1 %v18620_v28  ;;  %v16789_v61 = vpack.c.bf16 %v11871_v9, %v11870_v8  ;;  %v16825_v8 = vpack.c.bf16 %v6587_v62, %v6586_v3  ;;  %v11937_v9 = vld [vmem:[%s20722_s15 + $0x100] sm:$0xff] }
0x1339   :  { %16700 = vmatpush3.bf16.msra.mxu0 %v16699_v12  ;;  %16763 = vmatpush3.bf16.msra.mxu1 %v16762_v15  ;;  %v11875_v12 = vld [vmem:[%s20719_s11 + $0x1f8] sm:$0xff] }
0x133a   :  { %16701 = vmatprep.subr.bf16.mxu0 %v18620_v28  ;;  %16764 = vmatprep.subr.bf16.mxu1 %v18620_v28  ;;  %v16795_v15 = vpack.c.bf16 %v11875_v12, %v11874_v11  ;;  %v11939_v12 = vld [vmem:[%s20722_s15 + $0x110] sm:$0xff] }
0x133c   :  { %14580 = vmatmul.mubr.f32.vlgmr.msra.gmra.mrb[32].mxu0 %v19842_v38  ;;  %v11776_v38 = vld [vmem:[%s20720_s0 + $0xb0] sm:$0xff] }
0x133d   :  { %16703 = vmatpush3.bf16.msra.mxu0 %v16702_v22  ;;  %16766 = vmatpush3.bf16.msra.mxu1 %v16765_v18  ;;  %v16711_v40 = vpack.c.bf16 %v11777_v39, %v11776_v38  ;;  %v16798_v22 = vpack.c.bf16 %v11843_v17, %v11842_v16  ;;  %v11844_v18 = vld [vmem:[%s20720_s0 + $0x190] sm:$0xff]  ;;  %v6591_v17 = vld [vmem:[%s20722_s15 + $0x38] sm:$0xff] }
0x133e   :  { %16704 = vmatprep.subr.bf16.mxu0 %v18620_v28  ;;  %16767 = vmatprep.subr.bf16.mxu1 %v18620_v28  ;;  %v16801_v26 = vpack.c.bf16 %v11845_v19, %v11844_v18  ;;  %v6590_v16 = vld [vmem:[%s20722_s15 + $0x30] sm:$0xff]  ;;  %v11942_v18 = vld [vmem:[%s20722_s15 + $0x128] sm:$0xff]  ;;  %v6592_v19 = vld [vmem:[%s20722_s15 + $0x40] sm:$0xff] }
0x133f   :  { %14614 = vmatprep.mubr.msk.f32.mxu0 %vm18621_vm6, %v18622_v29 }
0x1341   :  { %16706 = vmatpush3.bf16.msra.mxu0 %v16705_v14  ;;  %16769 = vmatpush3.bf16.msra.mxu1 %v16768_v13  ;;  %v11846_v14 = vld [vmem:[%s20720_s0 + $0x1a0] sm:$0xff]  ;;  %v11847_v13 = vld [vmem:[%s20720_s0 + $0x1a8] sm:$0xff] }
0x1342   :  { %16707 = vmatprep.subr.bf16.mxu0 %v18620_v28  ;;  %16770 = vmatprep.subr.bf16.mxu1 %v18620_v28  ;;  %v16804_v27 = vpack.c.bf16 %v11847_v13, %v11846_v14  ;;  %v11943_v14 = vld [vmem:[%s20722_s15 + $0x130] sm:$0xff]  ;;  %v11944_v13 = vld [vmem:[%s20722_s15 + $0x138] sm:$0xff] }
0x1343   :  { %v16927_v33 = vpack.c.bf16 %v11944_v13, %v11943_v14  ;;  %v11925_v14 = vld [vmem:[%s20723_s25 + $0x128] sm:$0xff] }
0x1345   :  { %16709 = vmatpush3.bf16.msra.mxu0 %v16708_v36  ;;  %16772 = vmatpush3.bf16.msra.mxu1 %v16771_v37  ;;  %v11850_v36 = vld [vmem:[%s20720_s0 + $0x1c0] sm:$0xff]  ;;  %v11851_v37 = vld [vmem:[%s20720_s0 + $0x1c8] sm:$0xff] }
0x1346   :  { %16710 = vmatprep.subr.bf16.mxu0 %v18620_v28  ;;  %14697 = vmatprep.subr.mxu1 %v18622_v29 }
0x1348   :  { %14695 = vmatmul.mubr.f32.vlgmr.msra.gmra.mrb[54].mxu1 %v19849_v34  ;;  %v11782_v34 = vld [vmem:[%s20720_s0 + $0xe0] sm:$0xff] }
0x1349   :  { %16712 = vmatpush3.bf16.msra.mxu0 %v16711_v40  ;;  %14698 = vmatpush3.msk.msra.mxu1 %vm3501_vm13, %v19726_v4  ;;  %v16717_v4 = vpack.c.bf16 %v11781_v51, %v11780_v50  ;;  %v16810_v40 = vpack.c.bf16 %v11851_v37, %v11850_v36  ;;  %v11855_v50 = vld [vmem:[%s20720_s0 + $0x1e8] sm:$0xff]  ;;  %v11945_v36 = vld [vmem:[%s20722_s15 + $0x140] sm:$0xff] }
0x134a   :  { %14699 = vmatprep.mubr.msk.f32.mxu1 %vm18621_vm6, %v18622_v29  ;;  %14702 = vmatprep.subr.mxu1 %v18622_v29  ;;  %v11946_v37 = vld [vmem:[%s20722_s15 + $0x148] sm:$0xff] }
0x134b   :  { %16713 = vmatprep.subr.bf16.mxu0 %v18620_v28 }
0x134c   :  { %14700 = vmatmul.mubr.msk.f32.vlgmr.msra.gmra.mrb[56].mxu1 %vm3497_vm14, %v5932_v48 }
0x134d   :  { %14703 = vmatpush3.msk.msra.mxu1 %vm3501_vm13, %v19699_v52  ;;  %16715 = vmatpush3.bf16.msra.mxu0 %v16714_v49  ;;  %v16720_v52 = vpack.c.bf16 %v11783_v53, %v11782_v34  ;;  %v11854_v49 = vld [vmem:[%s20720_s0 + $0x1e0] sm:$0xff]  ;;  %v11876_v34 = vld [vmem:[%s20721_s12 + $0x8] sm:$0xff] }
0x134e   :  { %14704 = vmatprep.mubr.msk.f32.mxu1 %vm18621_vm6, %v18622_v29  ;;  %16716 = vmatprep.subr.bf16.mxu0 %v18620_v28  ;;  %v16816_v51 = vpack.c.bf16 %v11855_v50, %v11854_v49  ;;  %v11947_v49 = vld [vmem:[%s20722_s15 + $0x150] sm:$0xff] }
0x134f   :  { %16773 = vmatprep.subr.bf16.mxu1 %v18620_v28 }
0x1350   :  { %14705 = vmatmul.mubr.msk.f32.vlgmr.msra.gmra.mrb[58].mxu1 %vm3497_vm14, %v5932_v48  ;;  %v16813_v48 = vpack.c.bf16 %v11853_v46, %v11852_v43  ;;  %v6598_v46 = vld [vmem:[%s20722_s15 + $0x70] sm:$0xff] }
0x1351   :  { %16718 = vmatpush3.bf16.msra.mxu0 %v16717_v4  ;;  %16775 = vmatpush3.bf16.msra.mxu1 %v16774_v42  ;;  %v16819_v4 = vpack.c.bf16 %v11857_v6, %v11856_v25  ;;  %v11949_v6 = vld [vmem:[%s20722_s15 + $0x160] sm:$0xff] }
0x1352   :  { %16719 = vmatprep.subr.bf16.mxu0 %v18620_v28  ;;  %16776 = vmatprep.subr.bf16.mxu1 %v18620_v28 }
0x1353   :  { %14739 = vmatprep.mubr.msk.f32.mxu1 %vm18621_vm6, %v18622_v29 }
0x1355   :  { %16721 = vmatpush3.bf16.msra.mxu0 %v16720_v52  ;;  %16778 = vmatpush3.bf16.msra.mxu1 %v16777_v56  ;;  %v11882_v52 = vld [vmem:[#allocation33] ss:$0 sm:$0xff] }
0x1356   :  { %16722 = vmatprep.subr.bf16.mxu0 %v18620_v28  ;;  %16779 = vmatprep.subr.bf16.mxu1 %v18620_v28 }
0x1359   :  { %16724 = vmatpush3.bf16.msra.mxu0 %v16723_v58  ;;  %16781 = vmatpush3.bf16.msra.mxu1 %v16780_v0  ;;  %v6424_v58 = vld [vmem:[#allocation34] sm:$0xff]  ;;  %v6741_v0 = vld [vmem:[#allocation34 + $0x8] sm:$0xff] }
0x135a   :  { %16782 = vmatprep.subr.bf16.mxu1 %v18620_v28  ;;  %14777 = vmatprep.subr.mxu0 %v18622_v29 }
0x135c   :  { %14615 = vmatmul.mubr.f32.vlgmr.msra.gmra.mrb[32].mxu0 %v19835_v30  ;;  %v16792_v30 = vpack.c.bf16 %v11873_v7, %v11872_v10  ;;  %v6588_v10 = vld [vmem:[%s20722_s15 + $0x20] sm:$0xff]  ;;  %v6589_v7 = vld [vmem:[%s20722_s15 + $0x28] sm:$0xff] }
0x135d   :  { %16784 = vmatpush3.bf16.msra.mxu1 %v16783_v57  ;;  %14779 = vmatprep.mubr.msk.f32.mxu0 %vm18621_vm6, %v18622_v29  ;;  %v6585_v57 = vld [vmem:[%s20722_s15 + $0x8] sm:$0xff]  ;;  %v16828_v11 = vpack.c.bf16 %v6589_v7, %v6588_v10 }
0x135e   :  { %16785 = vmatprep.subr.bf16.mxu1 %v18620_v28  ;;  %v16822_v45 = vpack.c.bf16 %v6585_v57, %v6584_v2  ;;  %v6501_v2 = vld [vmem:[%s20723_s25 + $0x18] sm:$0xff]  ;;  %v11921_v10 = vld [vmem:[%s20723_s25 + $0x108] sm:$0xff] }
0x1361   :  { %16787 = vmatpush3.bf16.msra.mxu1 %v16786_v5  ;;  %v7061_v5 = vld [vmem:[#allocation34 + $0x10] sm:$0xff] }
0x1362   :  { %16788 = vmatprep.subr.bf16.mxu1 %v18620_v28 }
0x1365   :  { %16790 = vmatpush3.bf16.msra.mxu1 %v16789_v61  ;;  %v11938_v61 = vld [vmem:[%s20722_s15 + $0x108] sm:$0xff] }
0x1366   :  { %16791 = vmatprep.subr.bf16.mxu1 %v18620_v28 }
0x1369   :  { %16793 = vmatpush3.bf16.msra.mxu1 %v16792_v30  ;;  %v16918_v30 = vpack.c.bf16 %v11938_v61, %v11937_v9  ;;  %v6503_v9 = vld [vmem:[%s20723_s25 + $0x28] sm:$0xff]  ;;  %v11920_v61 = vld [vmem:[%s20723_s25 + $0x100] sm:$0xff] }
0x136a   :  { %16794 = vmatprep.subr.bf16.mxu1 %v18620_v28 }
0x136d   :  { %16796 = vmatpush3.bf16.msra.mxu1 %v16795_v15  ;;  %v11940_v15 = vld [vmem:[%s20722_s15 + $0x118] sm:$0xff] }
0x136e   :  { %16797 = vmatprep.subr.bf16.mxu1 %v18620_v28 }
0x141f   :  { %v6002_v20 = vpop.f32.mrb[56].mxu1 }
0x1420   :  { %v14701_v21 = vpop.f32.mrb[57].mxu1 }
0x1421   :  { %v16831_v21 = vpack.c.bf16 %v6591_v17, %v6590_v16  ;;  %v6505_v16 = vld [vmem:[%s20723_s25 + $0x38] sm:$0xff]  ;;  %v11922_v17 = vld [vmem:[%s20723_s25 + $0x110] sm:$0xff] }
0x1423   :  { %v6089_v23 = vpop.f32.mrb[58].mxu1 }
0x1424   :  { %v14706_v24 = vpop.f32.mrb[59].mxu1  ;;  %14740 = vmatmul.mubr.f32.vlgmr.msra.gmra.mrb[54].mxu1 %v6089_v23  ;;  %v6593_v23 = vld [vmem:[%s20722_s15 + $0x48] sm:$0xff] }
0x1425   :  { %16799 = vmatpush3.bf16.msra.mxu1 %v16798_v22  ;;  %14774 = vmatprep.mubr.msk.f32.mxu1 %vm18621_vm6, %v18622_v29  ;;  %v11941_v22 = vld [vmem:[%s20722_s15 + $0x120] sm:$0xff] }
0x1426   :  { %16800 = vmatprep.subr.bf16.mxu1 %v18620_v28  ;;  %v16924_v24 = vpack.c.bf16 %v11942_v18, %v11941_v22 }
0x1429   :  { %16802 = vmatpush3.bf16.msra.mxu1 %v16801_v26  ;;  %v16834_v26 = vpack.c.bf16 %v6593_v23, %v6592_v19  ;;  %v6506_v23 = vld [vmem:[%s20723_s25 + $0x40] sm:$0xff] }
0x142a   :  { %16803 = vmatprep.subr.bf16.mxu1 %v18620_v28 }
0x142d   :  { %16805 = vmatpush3.bf16.msra.mxu1 %v16804_v27  ;;  %v6594_v27 = vld [vmem:[%s20722_s15 + $0x50] sm:$0xff] }
0x142e   :  { %16806 = vmatprep.subr.bf16.mxu1 %v18620_v28 }
0x142f   :  { %v5607_v38 = vpop.f32.mrb[32].mxu0 }
0x1430   :  { %v14616_v39 = vpop.f32.mrb[33].mxu0 }
0x1431   :  { %16808 = vmatpush3.bf16.msra.mxu1 %v16807_v35  ;;  %v16837_v35 = vpack.c.bf16 %v6595_v31, %v6594_v27  ;;  %v6597_v39 = vld [vmem:[%s20722_s15 + $0x68] sm:$0xff]  ;;  %v6508_v31 = vld [vmem:[%s20723_s25 + $0x50] sm:$0xff] }
0x1432   :  { %16809 = vmatprep.subr.bf16.mxu1 %v18620_v28 }
0x1435   :  { %16811 = vmatpush3.bf16.msra.mxu1 %v16810_v40  ;;  %v16930_v40 = vpack.c.bf16 %v11946_v37, %v11945_v36  ;;  %v11927_v36 = vld [vmem:[%s20723_s25 + $0x138] sm:$0xff] }
0x1436   :  { %16812 = vmatprep.subr.bf16.mxu1 %v18620_v28 }
0x1439   :  { %16814 = vmatpush3.bf16.msra.mxu1 %v16813_v48  ;;  %v6599_v48 = vld [vmem:[%s20722_s15 + $0x78] sm:$0xff] }
0x143a   :  { %16815 = vmatprep.subr.bf16.mxu1 %v18620_v28  ;;  %v16843_v50 = vpack.c.bf16 %v6599_v48, %v6598_v46  ;;  %v11929_v46 = vld [vmem:[%s20723_s25 + $0x148] sm:$0xff] }
0x143d   :  { %16817 = vmatpush3.bf16.msra.mxu1 %v16816_v51  ;;  %v11948_v51 = vld [vmem:[%s20722_s15 + $0x158] sm:$0xff] }
0x143e   :  { %16818 = vmatprep.subr.bf16.mxu1 %v18620_v28  ;;  %v16933_v25 = vpack.c.bf16 %v11948_v51, %v11947_v49  ;;  %v6513_v51 = vld [vmem:[%s20723_s25 + $0x78] sm:$0xff] }
0x1441   :  { %16820 = vmatpush3.bf16.msra.mxu1 %v16819_v4  ;;  %v11950_v4 = vld [vmem:[%s20722_s15 + $0x168] sm:$0xff] }
0x1442   :  { %14867 = vmatprep.subr.mxu1 %v18622_v29 }
0x1444   :  { %14775 = vmatmul.mubr.f32.vlgmr.msra.gmra.mrb[54].mxu1 %v6002_v20  ;;  %v16921_v20 = vpack.c.bf16 %v11940_v15, %v11939_v12  ;;  %v16942_v12 = vpack.c.bf16 %v11921_v10, %v11920_v61  ;;  %v6504_v15 = vld [vmem:[%s20723_s25 + $0x30] sm:$0xff]  ;;  %v7380_v10 = vld [vmem:[#allocation34 + $0x18] sm:$0xff] }
0x1445   :  { %14869 = vmatprep.mubr.msk.f32.mxu1 %vm18621_vm6, %v18622_v29  ;;  %v16855_v18 = vpack.c.bf16 %v6505_v16, %v6504_v15  ;;  %v11913_v15 = vld [vmem:[%s20722_s15 + $0xd0] sm:$0xff]  ;;  %v11914_v16 = vld [vmem:[%s20722_s15 + $0xd8] sm:$0xff] }
0x1517   :  { %v6246_v42 = vpop.f32.mrb[54].mxu1 }
0x1518   :  { %v14776_v53 = vpop.f32.mrb[55].mxu1  ;;  %14778 = vmatpush3.msk.msra.mxu0 %vm3501_vm13, %v6246_v42  ;;  %v11951_v42 = vld [vmem:[%s20722_s15 + $0x170] sm:$0xff] }
0x1519   :  { %14780 = vmatmul.mubr.msk.f32.vlgmr.msra.gmra.mrb[34].mxu0 %vm3497_vm14, %v11876_v34  ;;  %14782 = vmatprep.subr.mxu0 %v18622_v29  ;;  %v16936_v34 = vpack.c.bf16 %v11950_v4, %v11949_v6  ;;  %v11952_v53 = vld [vmem:[%s20722_s15 + $0x178] sm:$0xff] }
0x151a   :  { %14783 = vmatpush3.msk.msra.mxu0 %vm3501_vm13, %v5607_v38  ;;  %14784 = vmatprep.mubr.msk.f32.mxu0 %vm18621_vm6, %v18622_v29  ;;  %v6596_v38 = vld [vmem:[%s20722_s15 + $0x60] sm:$0xff]  ;;  %v11931_v6 = vld [vmem:[%s20723_s25 + $0x158] sm:$0xff] }
0x151b   :  { %14787 = vmatprep.subr.mxu0 %v18622_v29  ;;  %v16840_v43 = vpack.c.bf16 %v6597_v39, %v6596_v38  ;;  %v6510_v39 = vld [vmem:[%s20723_s25 + $0x60] sm:$0xff] }
0x1521   :  { %14785 = vmatmul.mubr.msk.f32.vlgmr.msra.gmra.mrb[34].mxu0 %vm3497_vm14, %v6251_v54  ;;  %v16939_v54 = vpack.c.bf16 %v11952_v53, %v11951_v42  ;;  %v11903_v42 = vld [vmem:[%s20722_s15 + $0x80] sm:$0xff]  ;;  %v11904_v53 = vld [vmem:[%s20722_s15 + $0x88] sm:$0xff] }
0x1522   :  { %14789 = vmatprep.mubr.msk.f32.mxu0 %vm18621_vm6, %v18622_v29 }
0x15f4   :  { %v6402_v55 = vpop.f32.mrb[34].mxu0 }
0x15f5   :  { %v6412_v56 = vmul.f32 %v11881_v44, %v6402_v55  ;;  %v14786_v59 = vpop.f32.mrb[35].mxu0  ;;  %v6498_v44 = vld [vmem:[%s20723_s25] sm:$0xff] }
0x15f7   :  { %v6419_v60 = vadd.f32 %v11882_v52, %v6412_v56  ;;  %v6499_v52 = vld [vmem:[%s20723_s25 + $0x8] sm:$0xff] }
0x15f9   :  { %v19998_v63 = vmax.f32 %v6419_v60, 0.0 }
0x15fb   :  { %14788 = vmatpush3.msra.mxu0 %v19998_v63  ;;  %14868 = vmatpush3.msra.mxu1 %v19998_v63 }
0x15fc   :  { %14790 = vmatmul.mubr.msk.f32.vlgmr.msra.gmra.mrb[36].mxu0 %vm2829_vm11, %v6424_v58  ;;  %14792 = vmatprep.subr.mxu0 %v18622_v29 }
0x15fd   :  { %14870 = vmatmul.mubr.msk.f32.vlgmr.msra.gmra.mrb[60].mxu1 %vm2829_vm11, %v6741_v0  ;;  %14872 = vmatprep.subr.mxu1 %v18622_v29 }
0x15fe   :  { %14793 = vmatpush3.msra.mxu0 %v20005_v1  ;;  %14873 = vmatpush3.msra.mxu1 %v20005_v1 }
0x15ff   :  { %14794 = vmatprep.mubr.msk.f32.mxu0 %vm18621_vm6, %v18622_v29  ;;  %14874 = vmatprep.mubr.msk.f32.mxu1 %vm18621_vm6, %v18622_v29 }
0x1600   :  { %14947 = vmatprep.subr.mxu1 %v18622_v29  ;;  %14795 = vmatmul.mubr.msk.f32.vlgmr.msra.gmra.mrb[38].mxu0 %vm2829_vm11, %v6424_v58  ;;  %v16846_v58 = vpack.c.bf16 %v6499_v52, %v6498_v44  ;;  %v11933_v44 = vld [vmem:[%s20723_s25 + $0x168] sm:$0xff]  ;;  %v16870_v52 = vpack.c.bf16 %v11904_v53, %v11903_v42  ;;  %v11983_v42 = vld [vmem:[%s20722_s15 + $0x1e0] sm:$0xff] }
0x1601   :  { %14875 = vmatmul.mubr.msk.f32.vlgmr.msra.gmra.mrb[62].mxu1 %vm2829_vm11, %v6741_v0  ;;  %16821 = vmatprep.subr.bf16.mxu0 %v18620_v28  ;;  %v6500_v0 = vld [vmem:[%s20723_s25 + $0x10] sm:$0xff]  ;;  %v11984_v53 = vld [vmem:[%s20722_s15 + $0x1e8] sm:$0xff] }
0x1602   :  { %14948 = vmatpush3.msra.mxu1 %v19998_v63  ;;  %14949 = vmatprep.mubr.msk.f32.mxu1 %vm18621_vm6, %v18622_v29 }
0x1603   :  { %14952 = vmatprep.subr.mxu1 %v18622_v29  ;;  %16823 = vmatpush3.bf16.msra.mxu0 %v16822_v45 }
0x1604   :  { %16824 = vmatprep.subr.bf16.mxu0 %v18620_v28  ;;  %14829 = vmatprep.mubr.msk.f32.mxu0 %vm18621_vm6, %v18622_v29 }
0x1605   :  { %14950 = vmatmul.mubr.msk.f32.vlgmr.msra.gmra.mrb[64].mxu1 %vm2829_vm11, %v7061_v5 }
0x1606   :  { %14953 = vmatpush3.msra.mxu1 %v20005_v1  ;;  %14954 = vmatprep.mubr.msk.f32.mxu1 %vm18621_vm6, %v18622_v29 }
0x1607   :  { %16826 = vmatpush3.bf16.msra.mxu0 %v16825_v8  ;;  %16917 = vmatprep.subr.bf16.mxu1 %v18620_v28  ;;  %v6502_v8 = vld [vmem:[%s20723_s25 + $0x20] sm:$0xff] }
0x1608   :  { %16827 = vmatprep.subr.bf16.mxu0 %v18620_v28 }
0x1609   :  { %14955 = vmatmul.mubr.msk.f32.vlgmr.msra.gmra.mrb[66].mxu1 %vm2829_vm11, %v7061_v5  ;;  %v16849_v5 = vpack.c.bf16 %v6501_v2, %v6500_v0  ;;  %v11934_v0 = vld [vmem:[%s20723_s25 + $0x170] sm:$0xff]  ;;  %v11935_v2 = vld [vmem:[%s20723_s25 + $0x178] sm:$0xff] }
0x160a   :  { %16919 = vmatpush3.bf16.msra.mxu1 %v16918_v30  ;;  %14989 = vmatprep.mubr.msk.f32.mxu1 %vm18621_vm6, %v18622_v29 }
0x160b   :  { %16829 = vmatpush3.bf16.msra.mxu0 %v16828_v11  ;;  %16920 = vmatprep.subr.bf16.mxu1 %v18620_v28  ;;  %v16852_v11 = vpack.c.bf16 %v6503_v9, %v6502_v8  ;;  %v11910_v9 = vld [vmem:[%s20722_s15 + $0xb8] sm:$0xff] }
0x160c   :  { %16830 = vmatprep.subr.bf16.mxu0 %v18620_v28 }
0x160e   :  { %16922 = vmatpush3.bf16.msra.mxu1 %v16921_v20  ;;  %v11923_v20 = vld [vmem:[%s20723_s25 + $0x118] sm:$0xff] }
0x160f   :  { %16832 = vmatpush3.bf16.msra.mxu0 %v16831_v21  ;;  %16923 = vmatprep.subr.bf16.mxu1 %v18620_v28  ;;  %v16945_v19 = vpack.c.bf16 %v11923_v20, %v11922_v17  ;;  %v11973_v20 = vld [vmem:[%s20722_s15 + $0x190] sm:$0xff] }
0x1610   :  { %16833 = vmatprep.subr.bf16.mxu0 %v18620_v28 }
0x1612   :  { %16925 = vmatpush3.bf16.msra.mxu1 %v16924_v24  ;;  %v6507_v24 = vld [vmem:[%s20723_s25 + $0x48] sm:$0xff] }
0x1613   :  { %16835 = vmatpush3.bf16.msra.mxu0 %v16834_v26  ;;  %16926 = vmatprep.subr.bf16.mxu1 %v18620_v28  ;;  %v11924_v26 = vld [vmem:[%s20723_s25 + $0x120] sm:$0xff]  ;;  %v16858_v13 = vpack.c.bf16 %v6507_v24, %v6506_v23  ;;  %v11976_v24 = vld [vmem:[%s20722_s15 + $0x1a8] sm:$0xff] }
0x1614   :  { %16836 = vmatprep.subr.bf16.mxu0 %v18620_v28  ;;  %v16948_v27 = vpack.c.bf16 %v11925_v14, %v11924_v26  ;;  %v11975_v23 = vld [vmem:[%s20722_s15 + $0x1a0] sm:$0xff]  ;;  %v11917_v14 = vld [vmem:[%s20722_s15 + $0xf0] sm:$0xff] }
0x1616   :  { %16928 = vmatpush3.bf16.msra.mxu1 %v16927_v33  ;;  %v6509_v33 = vld [vmem:[%s20723_s25 + $0x58] sm:$0xff] }
0x1617   :  { %16838 = vmatpush3.bf16.msra.mxu0 %v16837_v35  ;;  %16929 = vmatprep.subr.bf16.mxu1 %v18620_v28  ;;  %v11926_v35 = vld [vmem:[%s20723_s25 + $0x130] sm:$0xff]  ;;  %v16861_v37 = vpack.c.bf16 %v6509_v33, %v6508_v31  ;;  %v11978_v33 = vld [vmem:[%s20722_s15 + $0x1b8] sm:$0xff] }
0x1618   :  { %16839 = vmatprep.subr.bf16.mxu0 %v18620_v28  ;;  %v16951_v38 = vpack.c.bf16 %v11927_v36, %v11926_v35  ;;  %v11977_v31 = vld [vmem:[%s20722_s15 + $0x1b0] sm:$0xff]  ;;  %v11886_v36 = vld [vmem:[%s20723_s25 + $0x80] sm:$0xff] }
0x161a   :  { %16931 = vmatpush3.bf16.msra.mxu1 %v16930_v40  ;;  %v6511_v40 = vld [vmem:[%s20723_s25 + $0x68] sm:$0xff] }
0x161b   :  { %16841 = vmatpush3.bf16.msra.mxu0 %v16840_v43  ;;  %16932 = vmatprep.subr.bf16.mxu1 %v18620_v28  ;;  %v11928_v43 = vld [vmem:[%s20723_s25 + $0x140] sm:$0xff]  ;;  %v16864_v48 = vpack.c.bf16 %v6511_v40, %v6510_v39  ;;  %v11980_v40 = vld [vmem:[%s20722_s15 + $0x1c8] sm:$0xff] }
0x161c   :  { %16842 = vmatprep.subr.bf16.mxu0 %v18620_v28  ;;  %v16954_v49 = vpack.c.bf16 %v11929_v46, %v11928_v43  ;;  %v11979_v39 = vld [vmem:[%s20722_s15 + $0x1c0] sm:$0xff]  ;;  %v11888_v46 = vld [vmem:[%s20723_s25 + $0x90] sm:$0xff] }
0x161e   :  { %16934 = vmatpush3.bf16.msra.mxu1 %v16933_v25  ;;  %v11930_v25 = vld [vmem:[%s20723_s25 + $0x150] sm:$0xff] }
0x161f   :  { %16844 = vmatpush3.bf16.msra.mxu0 %v16843_v50  ;;  %16935 = vmatprep.subr.bf16.mxu1 %v18620_v28  ;;  %v6512_v50 = vld [vmem:[%s20723_s25 + $0x70] sm:$0xff] }
0x1620   :  { %16845 = vmatprep.subr.bf16.mxu0 %v18620_v28  ;;  %v16867_v4 = vpack.c.bf16 %v6513_v51, %v6512_v50  ;;  %v11981_v50 = vld [vmem:[%s20722_s15 + $0x1d0] sm:$0xff]  ;;  %v11982_v51 = vld [vmem:[%s20722_s15 + $0x1d8] sm:$0xff] }
0x1622   :  { %16937 = vmatpush3.bf16.msra.mxu1 %v16936_v34  ;;  %v16957_v34 = vpack.c.bf16 %v11931_v6, %v11930_v25  ;;  %v11890_v6 = vld [vmem:[%s20723_s25 + $0xa0] sm:$0xff] }
0x1623   :  { %16938 = vmatprep.subr.bf16.mxu1 %v18620_v28 }
0x1626   :  { %16940 = vmatpush3.bf16.msra.mxu1 %v16939_v54  ;;  %v11932_v54 = vld [vmem:[%s20723_s25 + $0x160] sm:$0xff] }
0x1627   :  { %16941 = vmatprep.subr.bf16.mxu1 %v18620_v28 }
0x16cf   :  { %v20083_v55 = vpop.f32.mrb[36].mxu0 }
0x16d0   :  { %v20085_v56 = vpop.f32.mrb[60].mxu1  ;;  %v14791_v59 = vpop.f32.mrb[37].mxu0 }
0x16d1   :  { %v14871_v60 = vpop.f32.mrb[61].mxu1  ;;  %v16960_v59 = vpack.c.bf16 %v11933_v44, %v11932_v54  ;;  %v11892_v54 = vld [vmem:[%s20723_s25 + $0xb0] sm:$0xff]  ;;  %v11893_v44 = vld [vmem:[%s20723_s25 + $0xb8] sm:$0xff] }
0x16d2   :  { %v11905_v60 = vld [vmem:[%s20722_s15 + $0x90] sm:$0xff] }
0x16d3   :  { %v6580_v57 = vpop.f32.mrb[38].mxu0 }
0x16d4   :  { %v20089_v45 = vpop.f32.mrb[62].mxu1  ;;  %14830 = vmatmul.mubr.f32.vlgmr.msra.gmra.mrb[40].mxu0 %v6580_v57  ;;  %v14796_v3 = vpop.f32.mrb[39].mxu0 }
0x16d5   :  { %16847 = vmatpush3.bf16.msra.mxu0 %v16846_v58  ;;  %v14876_v62 = vpop.f32.mrb[63].mxu1  ;;  %14864 = vmatprep.mubr.msk.f32.mxu0 %vm18621_vm6, %v18622_v29  ;;  %v11906_v58 = vld [vmem:[%s20722_s15 + $0x98] sm:$0xff]  ;;  %v16963_v3 = vpack.c.bf16 %v11935_v2, %v11934_v0  ;;  %v11896_v2 = vld [vmem:[%s20723_s25 + $0xd0] sm:$0xff] }
0x16d6   :  { %16848 = vmatprep.subr.bf16.mxu0 %v18620_v28  ;;  %v16873_v57 = vpack.c.bf16 %v11906_v58, %v11905_v60  ;;  %v11907_v62 = vld [vmem:[%s20722_s15 + $0xa0] sm:$0xff]  ;;  %v11895_v58 = vld [vmem:[%s20723_s25 + $0xc8] sm:$0xff] }
0x16d7   :  { %v11894_v60 = vld [vmem:[%s20723_s25 + $0xc0] sm:$0xff] }
0x16d8   :  { %v20098_v7 = vpop.f32.mrb[64].mxu1  ;;  %v16906_v0 = vpack.c.bf16 %v11895_v58, %v11894_v60 }
0x16d9   :  { %16850 = vmatpush3.bf16.msra.mxu0 %v16849_v5  ;;  %v14951_v30 = vpop.f32.mrb[65].mxu1  ;;  %v11908_v5 = vld [vmem:[%s20722_s15 + $0xa8] sm:$0xff] }
0x16da   :  { %16851 = vmatprep.subr.bf16.mxu0 %v18620_v28  ;;  %v16876_v8 = vpack.c.bf16 %v11908_v5, %v11907_v62  ;;  %v11911_v30 = vld [vmem:[%s20722_s15 + $0xc0] sm:$0xff]  ;;  %v11899_v5 = vld [vmem:[%s20723_s25 + $0xe8] sm:$0xff] }
0x16db   :  { %v11898_v62 = vld [vmem:[%s20723_s25 + $0xe0] sm:$0xff] }
0x16dc   :  { %v7218_v21 = vpop.f32.mrb[66].mxu1 }
0x16dd   :  { %16853 = vmatpush3.bf16.msra.mxu0 %v16852_v11  ;;  %v14956_v22 = vpop.f32.mrb[67].mxu1  ;;  %14990 = vmatmul.mubr.f32.vlgmr.msra.gmra.mrb[68].mxu1 %v7218_v21  ;;  %v11912_v11 = vld [vmem:[%s20722_s15 + $0xc8] sm:$0xff]  ;;  %v11974_v21 = vld [vmem:[%s20722_s15 + $0x198] sm:$0xff] }
0x16de   :  { %16943 = vmatpush3.bf16.msra.mxu1 %v16942_v12  ;;  %16854 = vmatprep.subr.bf16.mxu0 %v18620_v28  ;;  %v11971_v12 = vld [vmem:[%s20722_s15 + $0x180] sm:$0xff] }
0x16df   :  { %16944 = vmatprep.subr.bf16.mxu1 %v18620_v28  ;;  %15024 = vmatprep.mubr.msk.f32.mxu1 %vm18621_vm6, %v18622_v29  ;;  %v11915_v22 = vld [vmem:[%s20722_s15 + $0xe0] sm:$0xff] }
0x16e1   :  { %16856 = vmatpush3.bf16.msra.mxu0 %v16855_v18  ;;  %v11916_v18 = vld [vmem:[%s20722_s15 + $0xe8] sm:$0xff] }
0x16e2   :  { %16946 = vmatpush3.bf16.msra.mxu1 %v16945_v19  ;;  %16857 = vmatprep.subr.bf16.mxu0 %v18620_v28  ;;  %v16969_v19 = vpack.c.bf16 %v11974_v21, %v11973_v20  ;;  %v16888_v26 = vpack.c.bf16 %v11916_v18, %v11915_v22  ;;  %v11957_v20 = vld [vmem:[%s20723_s25 + $0x198] sm:$0xff]  ;;  %v11958_v22 = vld [vmem:[%s20723_s25 + $0x1a0] sm:$0xff]  ;;  %v11959_v18 = vld [vmem:[%s20723_s25 + $0x1a8] sm:$0xff] }
0x16e3   :  { %16947 = vmatprep.subr.bf16.mxu1 %v18620_v28 }
0x16e5   :  { %16859 = vmatpush3.bf16.msra.mxu0 %v16858_v13  ;;  %v11918_v13 = vld [vmem:[%s20722_s15 + $0xf8] sm:$0xff] }
0x16e6   :  { %16949 = vmatpush3.bf16.msra.mxu1 %v16948_v27  ;;  %16860 = vmatprep.subr.bf16.mxu0 %v18620_v28  ;;  %v16972_v27 = vpack.c.bf16 %v11976_v24, %v11975_v23  ;;  %v16891_v35 = vpack.c.bf16 %v11918_v13, %v11917_v14  ;;  %v11960_v23 = vld [vmem:[%s20723_s25 + $0x1b0] sm:$0xff]  ;;  %v11961_v24 = vld [vmem:[%s20723_s25 + $0x1b8] sm:$0xff]  ;;  %v11963_v14 = vld [vmem:[%s20723_s25 + $0x1c8] sm:$0xff] }
0x16e7   :  { %16950 = vmatprep.subr.bf16.mxu1 %v18620_v28 }
0x16e9   :  { %16862 = vmatpush3.bf16.msra.mxu0 %v16861_v37  ;;  %v11887_v37 = vld [vmem:[%s20723_s25 + $0x88] sm:$0xff] }
0x16ea   :  { %16952 = vmatpush3.bf16.msra.mxu1 %v16951_v38  ;;  %16863 = vmatprep.subr.bf16.mxu0 %v18620_v28  ;;  %v16975_v38 = vpack.c.bf16 %v11978_v33, %v11977_v31  ;;  %v16894_v43 = vpack.c.bf16 %v11887_v37, %v11886_v36  ;;  %v11965_v31 = vld [vmem:[%s20723_s25 + $0x1d8] sm:$0xff]  ;;  %v11967_v36 = vld [vmem:[%s20723_s25 + $0x1e8] sm:$0xff] }
0x16eb   :  { %16953 = vmatprep.subr.bf16.mxu1 %v18620_v28 }
0x16ed   :  { %16865 = vmatpush3.bf16.msra.mxu0 %v16864_v48  ;;  %v11889_v48 = vld [vmem:[%s20723_s25 + $0x98] sm:$0xff] }
0x16ee   :  { %16955 = vmatpush3.bf16.msra.mxu1 %v16954_v49  ;;  %16866 = vmatprep.subr.bf16.mxu0 %v18620_v28  ;;  %v16978_v49 = vpack.c.bf16 %v11980_v40, %v11979_v39  ;;  %v16897_v25 = vpack.c.bf16 %v11889_v48, %v11888_v46  ;;  %v11969_v39 = vld [vmem:[%s20723_s25 + $0x1f8] sm:$0xff]  ;;  %v11987_v48 = vld [vmem:[%s20724_s16 + $0x10] sm:$0xff] }
0x16ef   :  { %16956 = vmatprep.subr.bf16.mxu1 %v18620_v28 }
0x16f1   :  { %16868 = vmatpush3.bf16.msra.mxu0 %v16867_v4  ;;  %v11891_v4 = vld [vmem:[%s20723_s25 + $0xa8] sm:$0xff] }
0x16f2   :  { %16958 = vmatpush3.bf16.msra.mxu1 %v16957_v34  ;;  %16869 = vmatprep.subr.bf16.mxu0 %v18620_v28  ;;  %v16981_v34 = vpack.c.bf16 %v11982_v51, %v11981_v50  ;;  %v11988_v50 = vld [vmem:[%s20724_s16 + $0x18] sm:$0xff] }
0x16f3   :  { %16959 = vmatprep.subr.bf16.mxu1 %v18620_v28 }
0x16f4   :  { %14865 = vmatmul.mubr.f32.vlgmr.msra.gmra.mrb[40].mxu0 %v20083_v55  ;;  %v11909_v55 = vld [vmem:[%s20722_s15 + $0xb0] sm:$0xff] }
0x16f5   :  { %16871 = vmatpush3.bf16.msra.mxu0 %v16870_v52  ;;  %14909 = vmatprep.mubr.msk.f32.mxu0 %vm18621_vm6, %v18622_v29  ;;  %v16879_v61 = vpack.c.bf16 %v11910_v9, %v11909_v55  ;;  %v16984_v52 = vpack.c.bf16 %v11984_v53, %v11983_v42  ;;  %v11900_v55 = vld [vmem:[%s20723_s25 + $0xf0] sm:$0xff]  ;;  %v11901_v9 = vld [vmem:[%s20723_s25 + $0xf8] sm:$0xff]  ;;  %v11994_v42 = vld [vmem:[#allocation37] ss:$0 sm:$0xff] }
0x16f6   :  { %16961 = vmatpush3.bf16.msra.mxu1 %v16960_v59  ;;  %16872 = vmatprep.subr.bf16.mxu0 %v18620_v28  ;;  %v16903_v59 = vpack.c.bf16 %v11893_v44, %v11892_v54 }
0x16f7   :  { %16962 = vmatprep.subr.bf16.mxu1 %v18620_v28 }
0x16f9   :  { %16874 = vmatpush3.bf16.msra.mxu0 %v16873_v57  ;;  %v11897_v57 = vld [vmem:[%s20723_s25 + $0xd8] sm:$0xff] }
0x16fa   :  { %16964 = vmatpush3.bf16.msra.mxu1 %v16963_v3  ;;  %16875 = vmatprep.subr.bf16.mxu0 %v18620_v28  ;;  %v16909_v3 = vpack.c.bf16 %v11897_v57, %v11896_v2  ;;  %v8062_v2 = vld [vmem:[#allocation39] sm:$0xff]  ;;  %v8063_v57 = vld [vmem:[#allocation39 + $0x8] sm:$0xff] }
0x16fb   :  { %15027 = vmatprep.subr.mxu1 %v18622_v29 }
0x16fd   :  { %15025 = vmatmul.mubr.f32.vlgmr.msra.gmra.mrb[68].mxu1 %v20098_v7  ;;  %16877 = vmatpush3.bf16.msra.mxu0 %v16876_v8  ;;  %v11972_v7 = vld [vmem:[%s20722_s15 + $0x188] sm:$0xff]  ;;  %v16912_v8 = vpack.c.bf16 %v11899_v5, %v11898_v62  ;;  %v12000_v62 = vld [vmem:[%s20725_s14 + $0x18] sm:$0xff]  ;;  %v17021_v5 = vpack.c.bf16 %v8063_v57, %v8062_v2 }
0x16fe   :  { %15028 = vmatpush3.msra.mxu1 %v19998_v63  ;;  %15029 = vmatprep.mubr.msk.f32.mxu1 %vm18621_vm6, %v18622_v29  ;;  %v16882_v63 = vpack.c.bf16 %v11912_v11, %v11911_v30  ;;  %v16966_v17 = vpack.c.bf16 %v11972_v7, %v11971_v12  ;;  %v11986_v30 = vld [vmem:[%s20722_s15 + $0x1f8] sm:$0xff]  ;;  %v11954_v12 = vld [vmem:[%s20723_s25 + $0x180] sm:$0xff]  ;;  %v11955_v7 = vld [vmem:[%s20723_s25 + $0x188] sm:$0xff] }
0x16ff   :  { %15032 = vmatprep.subr.mxu1 %v18622_v29  ;;  %16878 = vmatprep.subr.bf16.mxu0 %v18620_v28 }
0x1701   :  { %15030 = vmatmul.mubr.msk.f32.vlgmr.msra.gmra.mrb[70].mxu1 %vm2829_vm11, %v7380_v10  ;;  %16880 = vmatpush3.bf16.msra.mxu0 %v16879_v61  ;;  %v16915_v61 = vpack.c.bf16 %v11901_v9, %v11900_v55  ;;  %v8065_v55 = vld [vmem:[#allocation39 + $0x18] sm:$0xff] }
0x1702   :  { %15033 = vmatpush3.msra.mxu1 %v20005_v1  ;;  %15034 = vmatprep.mubr.msk.f32.mxu1 %vm18621_vm6, %v18622_v29  ;;  %v16885_v1 = vpack.c.bf16 %v11914_v16, %v11913_v15  ;;  %v16990_v16 = vpack.c.bf16 %v11955_v7, %v11954_v12  ;;  %v12005_v9 = vld [vmem:[%s20725_s14 + $0x20] sm:$0xff]  ;;  %v8067_v12 = vld [vmem:[#allocation39 + $0x28] sm:$0xff]  ;;  %v12006_v7 = vld [vmem:[%s20725_s14 + $0x28] sm:$0xff] }
0x1703   :  { %16881 = vmatprep.subr.bf16.mxu0 %v18620_v28  ;;  %16965 = vmatprep.subr.bf16.mxu1 %v18620_v28 }
0x1705   :  { %15035 = vmatmul.mubr.msk.f32.vlgmr.msra.gmra.mrb[72].mxu1 %vm2829_vm11, %v7380_v10  ;;  %16883 = vmatpush3.bf16.msra.mxu0 %v16882_v63  ;;  %v11985_v10 = vld [vmem:[%s20722_s15 + $0x1f0] sm:$0xff] }
0x1706   :  { %16884 = vmatprep.subr.bf16.mxu0 %v18620_v28  ;;  %16967 = vmatpush3.bf16.msra.mxu1 %v16966_v17  ;;  %v16987_v11 = vpack.c.bf16 %v11986_v30, %v11985_v10  ;;  %v11956_v17 = vld [vmem:[%s20723_s25 + $0x190] sm:$0xff]  ;;  %v8750_v10 = vld [vmem:[#allocation39 + $0x100] sm:$0xff] }
0x1707   :  { %16968 = vmatprep.subr.bf16.mxu1 %v18620_v28  ;;  %15069 = vmatprep.mubr.msk.f32.mxu1 %vm18621_vm6, %v18622_v29  ;;  %v8751_v30 = vld [vmem:[#allocation39 + $0x108] sm:$0xff] }
0x1709   :  { %16886 = vmatpush3.bf16.msra.mxu0 %v16885_v1 }
0x170a   :  { %16887 = vmatprep.subr.bf16.mxu0 %v18620_v28  ;;  %16970 = vmatpush3.bf16.msra.mxu1 %v16969_v19  ;;  %v16996_v19 = vpack.c.bf16 %v11959_v18, %v11958_v22  ;;  %v8754_v22 = vld [vmem:[#allocation39 + $0x120] sm:$0xff]  ;;  %v8755_v18 = vld [vmem:[#allocation39 + $0x128] sm:$0xff] }
0x170b   :  { %16971 = vmatprep.subr.bf16.mxu1 %v18620_v28 }
0x170d   :  { %16889 = vmatpush3.bf16.msra.mxu0 %v16888_v26  ;;  %v16999_v26 = vpack.c.bf16 %v11961_v24, %v11960_v23  ;;  %v8071_v23 = vld [vmem:[#allocation39 + $0x48] sm:$0xff]  ;;  %v17173_v24 = vpack.c.bf16 %v8755_v18, %v8754_v22 }
0x170e   :  { %16890 = vmatprep.subr.bf16.mxu0 %v18620_v28  ;;  %16973 = vmatpush3.bf16.msra.mxu1 %v16972_v27  ;;  %v11964_v27 = vld [vmem:[%s20723_s25 + $0x1d0] sm:$0xff] }
0x170f   :  { %16974 = vmatprep.subr.bf16.mxu1 %v18620_v28  ;;  %v17005_v33 = vpack.c.bf16 %v11965_v31, %v11964_v27  ;;  %v8073_v27 = vld [vmem:[#allocation39 + $0x58] sm:$0xff]  ;;  %v7980_v18 = vld [vmem:[#allocation40 + $0x48] sm:$0xff] }
0x1711   :  { %16892 = vmatpush3.bf16.msra.mxu0 %v16891_v35  ;;  %v11966_v35 = vld [vmem:[%s20723_s25 + $0x1e0] sm:$0xff] }
0x1712   :  { %16893 = vmatprep.subr.bf16.mxu0 %v18620_v28  ;;  %16976 = vmatpush3.bf16.msra.mxu1 %v16975_v38  ;;  %v17008_v37 = vpack.c.bf16 %v11967_v36, %v11966_v35  ;;  %v11968_v38 = vld [vmem:[%s20723_s25 + $0x1f0] sm:$0xff]  ;;  %v8758_v35 = vld [vmem:[#allocation39 + $0x140] sm:$0xff] }
0x1713   :  { %16977 = vmatprep.subr.bf16.mxu1 %v18620_v28  ;;  %v17011_v40 = vpack.c.bf16 %v11969_v39, %v11968_v38  ;;  %v8759_v36 = vld [vmem:[#allocation39 + $0x148] sm:$0xff] }
0x1714   :  { %14910 = vmatmul.mubr.f32.vlgmr.msra.gmra.mrb[40].mxu0 %v20089_v45  ;;  %v16900_v45 = vpack.c.bf16 %v11891_v4, %v11890_v6  ;;  %v7888_v6 = vld [vmem:[%s20725_s14] sm:$0xff]  ;;  %v11999_v4 = vld [vmem:[%s20725_s14 + $0x10] sm:$0xff]  ;;  %v17181_v39 = vpack.c.bf16 %v8759_v36, %v8758_v35  ;;  %v7983_v35 = vld [vmem:[#allocation40 + $0x60] sm:$0xff] }
0x1715   :  { %16895 = vmatpush3.bf16.msra.mxu0 %v16894_v43  ;;  %14944 = vmatprep.mubr.msk.f32.mxu0 %vm18621_vm6, %v18622_v29  ;;  %v8075_v38 = vld [vmem:[#allocation39 + $0x68] sm:$0xff] }
0x1716   :  { %16896 = vmatprep.subr.bf16.mxu0 %v18620_v28  ;;  %16979 = vmatpush3.bf16.msra.mxu1 %v16978_v49  ;;  %v7984_v36 = vld [vmem:[#allocation40 + $0x68] sm:$0xff] }
0x1717   :  { %16980 = vmatprep.subr.bf16.mxu1 %v18620_v28 }
0x1719   :  { %16898 = vmatpush3.bf16.msra.mxu0 %v16897_v25  ;;  %v7699_v25 = vld [vmem:[%s20724_s16] sm:$0xff] }
0x171a   :  { %16899 = vmatprep.subr.bf16.mxu0 %v18620_v28  ;;  %16982 = vmatpush3.bf16.msra.mxu1 %v16981_v34  ;;  %v11993_v34 = vld [vmem:[#allocation36] ss:$0 sm:$0xff] }
0x171b   :  { %16983 = vmatprep.subr.bf16.mxu1 %v18620_v28 }
0x171d   :  { %16901 = vmatpush3.bf16.msra.mxu0 %v16900_v45 }
0x171e   :  { %16902 = vmatprep.subr.bf16.mxu0 %v18620_v28  ;;  %16985 = vmatpush3.bf16.msra.mxu1 %v16984_v52 }
0x171f   :  { %16986 = vmatprep.subr.bf16.mxu1 %v18620_v28 }
0x1721   :  { %16904 = vmatpush3.bf16.msra.mxu0 %v16903_v59 }
0x1722   :  { %16905 = vmatprep.subr.bf16.mxu0 %v18620_v28  ;;  %16988 = vmatpush3.bf16.msra.mxu1 %v16987_v11  ;;  %v8066_v11 = vld [vmem:[#allocation39 + $0x20] sm:$0xff] }
0x1723   :  { %16989 = vmatprep.subr.bf16.mxu1 %v18620_v28 }
0x1725   :  { %16907 = vmatpush3.bf16.msra.mxu0 %v16906_v0 }
0x1726   :  { %16908 = vmatprep.subr.bf16.mxu0 %v18620_v28 }
0x1729   :  { %16910 = vmatpush3.bf16.msra.mxu0 %v16909_v3  ;;  %v7889_v3 = vld [vmem:[%s20725_s14 + $0x8] sm:$0xff] }
0x172a   :  { %16911 = vmatprep.subr.bf16.mxu0 %v18620_v28 }
0x172d   :  { %16913 = vmatpush3.bf16.msra.mxu0 %v16912_v8  ;;  %v8064_v8 = vld [vmem:[#allocation39 + $0x10] sm:$0xff] }
0x172e   :  { %16914 = vmatprep.subr.bf16.mxu0 %v18620_v28 }
0x1731   :  { %16916 = vmatpush3.bf16.msra.mxu0 %v16915_v61  ;;  %v17025_v61 = vpack.c.bf16 %v8065_v55, %v8064_v8 }
0x1734   :  { %14945 = vmatmul.mubr.f32.vlgmr.msra.gmra.mrb[40].mxu0 %v20085_v56  ;;  %v16993_v56 = vpack.c.bf16 %v11957_v20, %v11956_v17  ;;  %v8753_v17 = vld [vmem:[#allocation39 + $0x118] sm:$0xff]  ;;  %v8068_v20 = vld [vmem:[#allocation39 + $0x30] sm:$0xff] }
0x1735   :  { %15109 = vmatprep.mubr.msk.f32.mxu0 %vm2829_vm11, %v11987_v48  ;;  %v8760_v48 = vld [vmem:[#allocation39 + $0x150] sm:$0xff] }
0x17d4   :  { %v7450_v63 = vpop.f32.mrb[70].mxu1 }
0x17d5   :  { %v15031_v15 = vpop.f32.mrb[71].mxu1 }
0x17d6   :  { %v17029_v15 = vpack.c.bf16 %v8067_v12, %v8066_v11 }
0x17d8   :  { %v7537_v21 = vpop.f32.mrb[72].mxu1 }
0x17d9   :  { %v15036_v1 = vpop.f32.mrb[73].mxu1  ;;  %15070 = vmatmul.mubr.f32.vlgmr.msra.gmra.mrb[68].mxu1 %v7537_v21  ;;  %v8069_v21 = vld [vmem:[#allocation39 + $0x38] sm:$0xff] }
0x17da   :  { %16991 = vmatpush3.bf16.msra.mxu1 %v16990_v16  ;;  %15104 = vmatprep.mubr.msk.f32.mxu1 %vm18621_vm6, %v18622_v29  ;;  %v11962_v29 = vld [vmem:[%s20723_s25 + $0x1c0] sm:$0xff]  ;;  %v8752_v16 = vld [vmem:[#allocation39 + $0x110] sm:$0xff] }
0x17db   :  { %16992 = vmatprep.subr.bf16.mxu1 %v18620_v28  ;;  %v17002_v13 = vpack.c.bf16 %v11963_v14, %v11962_v29  ;;  %v17169_v1 = vpack.c.bf16 %v8753_v17, %v8752_v16  ;;  %v8756_v29 = vld [vmem:[#allocation39 + $0x130] sm:$0xff]  ;;  %v8757_v14 = vld [vmem:[#allocation39 + $0x138] sm:$0xff] }
0x17dc   :  { %v17177_v31 = vpack.c.bf16 %v8757_v14, %v8756_v29  ;;  %v8660_v16 = vld [vmem:[#allocation40 + $0x110] sm:$0xff]  ;;  %v8661_v17 = vld [vmem:[#allocation40 + $0x118] sm:$0xff] }
0x17dd   :  { %v17201_v22 = vpack.c.bf16 %v8661_v17, %v8660_v16  ;;  %v7981_v29 = vld [vmem:[#allocation40 + $0x50] sm:$0xff]  ;;  %v7982_v14 = vld [vmem:[#allocation40 + $0x58] sm:$0xff] }
0x17de   :  { %16994 = vmatpush3.bf16.msra.mxu1 %v16993_v56  ;;  %v17033_v56 = vpack.c.bf16 %v8069_v21, %v8068_v20  ;;  %v8416_v16 = vld [vmem:[#allocation39 + $0xd8] sm:$0xff] }
0x17df   :  { %16995 = vmatprep.subr.bf16.mxu1 %v18620_v28 }
0x17e2   :  { %16997 = vmatpush3.bf16.msra.mxu1 %v16996_v19  ;;  %v8070_v19 = vld [vmem:[#allocation39 + $0x40] sm:$0xff] }
0x17e3   :  { %16998 = vmatprep.subr.bf16.mxu1 %v18620_v28 }
0x17e6   :  { %17000 = vmatpush3.bf16.msra.mxu1 %v16999_v26  ;;  %v17037_v26 = vpack.c.bf16 %v8071_v23, %v8070_v19  ;;  %v8662_v19 = vld [vmem:[#allocation40 + $0x120] sm:$0xff]  ;;  %v8663_v23 = vld [vmem:[#allocation40 + $0x128] sm:$0xff] }
0x17e7   :  { %17001 = vmatprep.subr.bf16.mxu1 %v18620_v28 }
0x17ea   :  { %17003 = vmatpush3.bf16.msra.mxu1 %v17002_v13  ;;  %v8072_v13 = vld [vmem:[#allocation39 + $0x50] sm:$0xff] }
0x17eb   :  { %17004 = vmatprep.subr.bf16.mxu1 %v18620_v28 }
0x17ee   :  { %17006 = vmatpush3.bf16.msra.mxu1 %v17005_v33  ;;  %v17041_v33 = vpack.c.bf16 %v8073_v27, %v8072_v13  ;;  %v8664_v13 = vld [vmem:[#allocation40 + $0x130] sm:$0xff]  ;;  %v8665_v27 = vld [vmem:[#allocation40 + $0x138] sm:$0xff] }
0x17ef   :  { %17007 = vmatprep.subr.bf16.mxu1 %v18620_v28 }
0x17f2   :  { %17009 = vmatpush3.bf16.msra.mxu1 %v17008_v37  ;;  %v8074_v37 = vld [vmem:[#allocation39 + $0x60] sm:$0xff] }
0x17f3   :  { %17010 = vmatprep.subr.bf16.mxu1 %v18620_v28  ;;  %v7700_v28 = vld [vmem:[%s20724_s16 + $0x8] sm:$0xff] }
0x17f6   :  { %17012 = vmatpush3.bf16.msra.mxu1 %v17011_v40  ;;  %v17045_v40 = vpack.c.bf16 %v8075_v38, %v8074_v37  ;;  %v8666_v37 = vld [vmem:[#allocation40 + $0x140] sm:$0xff]  ;;  %v8667_v38 = vld [vmem:[#allocation40 + $0x148] sm:$0xff] }
0x17f9   :  { %15105 = vmatmul.mubr.f32.vlgmr.msra.gmra.mrb[68].mxu1 %v7450_v63  ;;  %v17165_v63 = vpack.c.bf16 %v8751_v30, %v8750_v10  ;;  %v7975_v10 = vld [vmem:[#allocation40 + $0x20] sm:$0xff]  ;;  %v7976_v30 = vld [vmem:[#allocation40 + $0x28] sm:$0xff] }
0x17fa   :  { %15205 = vmatprep.mubr.msk.f32.mxu1 %vm2161_vm9, %v11999_v4 }
0x1807   :  { %v7055_v43 = vpop.f32.mrb[40].mxu0 }
0x1808   :  { %v14946_v46 = vpop.f32.mrb[41].mxu0 }
0x1809   :  { %v8077_v46 = vld [vmem:[#allocation39 + $0x78] sm:$0xff] }
0x18cc   :  { %v7694_v49 = vpop.f32.mrb[68].mxu1 }
0x18cd   :  { %v15106_v51 = vpop.f32.mrb[69].mxu1  ;;  %15107 = vmatprep.subr.mxu0 %v7694_v49 }
0x18ce   :  { %15108 = vmatpush3.msra.mxu0 %v7694_v49 }
0x18cf   :  { %15110 = vmatmul.mubr.msk.f32.vlgmr.msra.gmra.mrb[42].mxu0 %vm2829_vm11, %v11988_v50  ;;  %15112 = vmatprep.subr.mxu0 %v7055_v43  ;;  %v8761_v50 = vld [vmem:[#allocation39 + $0x158] sm:$0xff] }
0x18d0   :  { %15113 = vmatpush3.msra.mxu0 %v7055_v43  ;;  %15114 = vmatprep.mubr.msk.f32.mxu0 %vm2829_vm11, %v7699_v25  ;;  %v8076_v43 = vld [vmem:[#allocation39 + $0x70] sm:$0xff]  ;;  %v17185_v51 = vpack.c.bf16 %v8761_v50, %v8760_v48  ;;  %v7971_v25 = vld [vmem:[#allocation40] sm:$0xff] }
0x18d1   :  { %v17049_v49 = vpack.c.bf16 %v8077_v46, %v8076_v43  ;;  %v7985_v43 = vld [vmem:[#allocation40 + $0x70] sm:$0xff]  ;;  %v7986_v46 = vld [vmem:[#allocation40 + $0x78] sm:$0xff] }
0x18d2   :  { %v8668_v48 = vld [vmem:[#allocation40 + $0x150] sm:$0xff]  ;;  %v17081_v50 = vpack.c.bf16 %v7986_v46, %v7985_v43  ;;  %v9104_v43 = vld [vmem:[#allocation39 + $0x1d8] sm:$0xff] }
0x18d7   :  { %15115 = vmatmul.mubr.msk.f32.vlgmr.msra.gmra.mrb[42].mxu0 %vm2829_vm11, %v7700_v28  ;;  %v7972_v28 = vld [vmem:[#allocation40 + $0x8] sm:$0xff] }
0x18d8   :  { %15121 = vmatprep.mubr.msk.f32.mxu0 %vm2161_vm9, %v7888_v6 }
0x19aa   :  { %v15116_v53 = vpop.f32.mrb[42].mxu0 }
0x19ab   :  { %v7873_v45 = vmul.f32 %v15116_v53, %v11993_v34  ;;  %v7857_v54 = vpop.f32.mrb[43].mxu0  ;;  %v8764_v53 = vld [vmem:[#allocation39 + $0x170] sm:$0xff] }
0x19ac   :  { %v7872_v44 = vmul.f32 %v11993_v34, %v7857_v54  ;;  %v8763_v34 = vld [vmem:[#allocation39 + $0x168] sm:$0xff] }
0x19ad   :  { %v7881_v52 = vadd.f32 %v11994_v42, %v7873_v45  ;;  %v8765_v45 = vld [vmem:[#allocation39 + $0x178] sm:$0xff] }
0x19ae   :  { %v7880_v59 = vadd.f32 %v11994_v42, %v7872_v44  ;;  %v17193_v54 = vpack.c.bf16 %v8765_v45, %v8764_v53  ;;  %v8658_v44 = vld [vmem:[#allocation40 + $0x100] sm:$0xff]  ;;  %v8407_v53 = vld [vmem:[#allocation39 + $0x90] sm:$0xff]  ;;  %v8408_v45 = vld [vmem:[#allocation39 + $0x98] sm:$0xff] }
0x19af   :  { %v7885_v60 = vmax.f32 %v7881_v52, 0.0  ;;  %v8659_v52 = vld [vmem:[#allocation40 + $0x108] sm:$0xff] }
0x19b0   :  { %v7884_v58 = vmax.f32 %v7880_v59, 0.0  ;;  %v17197_v59 = vpack.c.bf16 %v8659_v52, %v8658_v44  ;;  %v8673_v44 = vld [vmem:[#allocation40 + $0x178] sm:$0xff]  ;;  %v17097_v52 = vpack.c.bf16 %v8408_v45, %v8407_v53  ;;  %v8321_v53 = vld [vmem:[#allocation40 + $0xc0] sm:$0xff]  ;;  %v8322_v45 = vld [vmem:[#allocation40 + $0xc8] sm:$0xff] }
0x19b2   :  { %v20269_v0 = vpack.c.bf16 %v7885_v60, %v7884_v58 }
0x19b4   :  { %17014 = vmatprep.subr.bf16.mxu0 %v20269_v0  ;;  %17086 = vmatprep.subr.bf16.mxu1 %v20269_v0 }
0x19b5   :  { %17016 = vmatpush3.bf16.msra.mxu0 %v20269_v0  ;;  %17088 = vmatpush3.bf16.msra.mxu1 %v20269_v0 }
0x19b6   :  { %17018 = vmatprep.subr.bf16.mxu0 %v19249_v47  ;;  %17090 = vmatprep.subr.bf16.mxu1 %v19249_v47 }
0x19b8   :  { %15122 = vmatmul.mubr.msk.f32.vlgmr.msra.gmra.mrb[44].mxu0 %vm2161_vm9, %v7889_v3  ;;  %15206 = vmatmul.mubr.msk.f32.vlgmr.msra.gmra.mrb[74].mxu1 %vm2161_vm9, %v12000_v62 }
0x19b9   :  { %17020 = vmatpush3.bf16.msra.mxu0 %v19249_v47  ;;  %17092 = vmatpush3.bf16.msra.mxu1 %v19249_v47 }
0x19ba   :  { %17158 = vmatprep.subr.bf16.mxu1 %v20269_v0  ;;  %15128 = vmatprep.mubr.msk.f32.mxu0 %vm2161_vm9, %v7888_v6  ;;  %v8762_v6 = vld [vmem:[#allocation39 + $0x160] sm:$0xff] }
0x19bb   :  { %15212 = vmatprep.mubr.msk.f32.mxu1 %vm2161_vm9, %v11999_v4  ;;  %17022 = vmatprep.subr.bf16.mxu0 %v17021_v5  ;;  %v17053_v4 = vpack.c.bf16 %v7972_v28, %v7971_v25  ;;  %v17189_v42 = vpack.c.bf16 %v8763_v34, %v8762_v6  ;;  %v8405_v25 = vld [vmem:[#allocation39 + $0x80] sm:$0xff]  ;;  %v8406_v28 = vld [vmem:[#allocation39 + $0x88] sm:$0xff] }
0x19bc   :  { %15129 = vmatmul.mubr.msk.f32.vlgmr.msra.gmra.mrb[46].mxu0 %vm2161_vm9, %v7889_v3  ;;  %15213 = vmatmul.mubr.msk.f32.vlgmr.msra.gmra.mrb[76].mxu1 %vm2161_vm9, %v12000_v62  ;;  %v7973_v3 = vld [vmem:[#allocation40 + $0x10] sm:$0xff]  ;;  %v7974_v62 = vld [vmem:[#allocation40 + $0x18] sm:$0xff]  ;;  %v8670_v6 = vld [vmem:[#allocation40 + $0x160] sm:$0xff]  ;;  %v17093_v34 = vpack.c.bf16 %v8406_v28, %v8405_v25 }
0x19bd   :  { %17160 = vmatpush3.bf16.msra.mxu1 %v20269_v0  ;;  %15289 = vmatprep.mubr.msk.f32.mxu1 %vm2161_vm9, %v12005_v9  ;;  %v9106_v25 = vld [vmem:[#allocation39 + $0x1e8] sm:$0xff] }
0x19be   :  { %17162 = vmatprep.subr.bf16.mxu1 %v19249_v47  ;;  %17024 = vmatpush3.bf16.msra.mxu0 %v17021_v5 }
0x19bf   :  { %17026 = vmatprep.subr.bf16.mxu0 %v17025_v61 }
0x19c0   :  { %15290 = vmatmul.mubr.msk.f32.vlgmr.msra.gmra.mrb[78].mxu1 %vm2161_vm9, %v12006_v7 }
0x19c1   :  { %17164 = vmatpush3.bf16.msra.mxu1 %v19249_v47  ;;  %15296 = vmatprep.mubr.msk.f32.mxu1 %vm2161_vm9, %v12005_v9 }
0x19c2   :  { %17028 = vmatpush3.bf16.msra.mxu0 %v17025_v61  ;;  %17166 = vmatprep.subr.bf16.mxu1 %v17165_v63  ;;  %v17057_v61 = vpack.c.bf16 %v7974_v62, %v7973_v3  ;;  %v8410_v3 = vld [vmem:[#allocation39 + $0xa8] sm:$0xff] }
0x19c3   :  { %17030 = vmatprep.subr.bf16.mxu0 %v17029_v15 }
0x19c4   :  { %15297 = vmatmul.mubr.msk.f32.vlgmr.msra.gmra.mrb[80].mxu1 %vm2161_vm9, %v12006_v7  ;;  %v17061_v7 = vpack.c.bf16 %v7976_v30, %v7975_v10  ;;  %v8413_v30 = vld [vmem:[#allocation39 + $0xc0] sm:$0xff] }
0x19c5   :  { %17168 = vmatpush3.bf16.msra.mxu1 %v17165_v63  ;;  %v7977_v63 = vld [vmem:[#allocation40 + $0x30] sm:$0xff] }
0x19c6   :  { %17032 = vmatpush3.bf16.msra.mxu0 %v17029_v15  ;;  %17170 = vmatprep.subr.bf16.mxu1 %v17169_v1  ;;  %v7978_v15 = vld [vmem:[#allocation40 + $0x38] sm:$0xff] }
0x19c7   :  { %17034 = vmatprep.subr.bf16.mxu0 %v17033_v56 }
0x19c9   :  { %17172 = vmatpush3.bf16.msra.mxu1 %v17169_v1  ;;  %v17065_v1 = vpack.c.bf16 %v7978_v15, %v7977_v63  ;;  %v8415_v15 = vld [vmem:[#allocation39 + $0xd0] sm:$0xff] }
0x19ca   :  { %17036 = vmatpush3.bf16.msra.mxu0 %v17033_v56  ;;  %17174 = vmatprep.subr.bf16.mxu1 %v17173_v24  ;;  %v7979_v56 = vld [vmem:[#allocation40 + $0x40] sm:$0xff] }
0x19cb   :  { %17038 = vmatprep.subr.bf16.mxu0 %v17037_v26 }
0x19cd   :  { %17176 = vmatpush3.bf16.msra.mxu1 %v17173_v24  ;;  %v17069_v24 = vpack.c.bf16 %v7980_v18, %v7979_v56  ;;  %v9098_v18 = vld [vmem:[#allocation39 + $0x1a8] sm:$0xff] }
0x19ce   :  { %17040 = vmatpush3.bf16.msra.mxu0 %v17037_v26  ;;  %17178 = vmatprep.subr.bf16.mxu1 %v17177_v31  ;;  %v17205_v26 = vpack.c.bf16 %v8663_v23, %v8662_v19  ;;  %v8419_v23 = vld [vmem:[#allocation39 + $0xf0] sm:$0xff] }
0x19cf   :  { %17042 = vmatprep.subr.bf16.mxu0 %v17041_v33 }
0x19d1   :  { %17180 = vmatpush3.bf16.msra.mxu1 %v17177_v31  ;;  %v17073_v31 = vpack.c.bf16 %v7982_v14, %v7981_v29  ;;  %v9100_v29 = vld [vmem:[#allocation39 + $0x1b8] sm:$0xff] }
0x19d2   :  { %17044 = vmatpush3.bf16.msra.mxu0 %v17041_v33  ;;  %17182 = vmatprep.subr.bf16.mxu1 %v17181_v39  ;;  %v17209_v33 = vpack.c.bf16 %v8665_v27, %v8664_v13  ;;  %v8313_v13 = vld [vmem:[#allocation40 + $0x80] sm:$0xff]  ;;  %v8314_v27 = vld [vmem:[#allocation40 + $0x88] sm:$0xff] }
0x19d3   :  { %17046 = vmatprep.subr.bf16.mxu0 %v17045_v40 }
0x19d5   :  { %17184 = vmatpush3.bf16.msra.mxu1 %v17181_v39  ;;  %v17077_v39 = vpack.c.bf16 %v7984_v36, %v7983_v35  ;;  %v9102_v35 = vld [vmem:[#allocation39 + $0x1c8] sm:$0xff]  ;;  %v17125_v36 = vpack.c.bf16 %v8314_v27, %v8313_v13  ;;  %v9015_v13 = vld [vmem:[#allocation40 + $0x1f0] sm:$0xff]  ;;  %v9016_v27 = vld [vmem:[#allocation40 + $0x1f8] sm:$0xff] }
0x19d6   :  { %17048 = vmatpush3.bf16.msra.mxu0 %v17045_v40  ;;  %17186 = vmatprep.subr.bf16.mxu1 %v17185_v51  ;;  %v17213_v40 = vpack.c.bf16 %v8667_v38, %v8666_v37  ;;  %v8315_v37 = vld [vmem:[#allocation40 + $0x90] sm:$0xff]  ;;  %v8316_v38 = vld [vmem:[#allocation40 + $0x98] sm:$0xff] }
0x19d7   :  { %17050 = vmatprep.subr.bf16.mxu0 %v17049_v49  ;;  %v17129_v46 = vpack.c.bf16 %v8316_v38, %v8315_v37  ;;  %v12017_v37 = vld [vmem:[%s20726_s18 + $0x20] sm:$0xff] }
0x19d9   :  { %17188 = vmatpush3.bf16.msra.mxu1 %v17185_v51 }
0x19da   :  { %17052 = vmatpush3.bf16.msra.mxu0 %v17049_v49  ;;  %17190 = vmatprep.subr.bf16.mxu1 %v17189_v42  ;;  %v8669_v49 = vld [vmem:[#allocation40 + $0x158] sm:$0xff] }
0x19db   :  { %17054 = vmatprep.subr.bf16.mxu0 %v17053_v4  ;;  %v17217_v51 = vpack.c.bf16 %v8669_v49, %v8668_v48  ;;  %v8317_v48 = vld [vmem:[#allocation40 + $0xa0] sm:$0xff]  ;;  %v8318_v49 = vld [vmem:[#allocation40 + $0xa8] sm:$0xff] }
0x19dc   :  { %v17133_v28 = vpack.c.bf16 %v8318_v49, %v8317_v48  ;;  %v12020_v48 = vld [vmem:[%s20726_s18 + $0x38] sm:$0xff]  ;;  %v9261_v49 = vld [vmem:[%s20726_s18] sm:$0xff] }
0x19dd   :  { %17192 = vmatpush3.bf16.msra.mxu1 %v17189_v42 }
0x19de   :  { %17194 = vmatprep.subr.bf16.mxu1 %v17193_v54 }
0x19e1   :  { %17196 = vmatpush3.bf16.msra.mxu1 %v17193_v54  ;;  %v8672_v54 = vld [vmem:[#allocation40 + $0x170] sm:$0xff] }
0x19e2   :  { %17198 = vmatprep.subr.bf16.mxu1 %v17197_v59 }
0x1a8b   :  { %v20297_v60 = vpop.f32.mrb[74].mxu1  ;;  %v20299_v58 = vpop.f32.mrb[44].mxu0 }
0x1a8c   :  { %v20301_v2 = vpop.f32.mrb[75].mxu1  ;;  %v7962_v57 = vpop.f32.mrb[45].mxu0 }
0x1a8f   :  { %v15130_v5 = vpop.f32.mrb[46].mxu0  ;;  %v20303_v8 = vpop.f32.mrb[76].mxu1 }
0x1a90   :  { %v8053_v55 = vpop.f32.mrb[47].mxu0  ;;  %v20305_v9 = vpop.f32.mrb[77].mxu1 }
0x1a91   :  { %15163 = vmatprep.mubr.f32.mxu0 %v8053_v55  ;;  %v8412_v55 = vld [vmem:[#allocation39 + $0xb8] sm:$0xff] }
0x1a92   :  { %15164 = vmatmul.mubr.f32.vlgmr.msra.gmra.mrb[48].mxu0 %v15130_v5  ;;  %v8411_v5 = vld [vmem:[#allocation39 + $0xb0] sm:$0xff] }
0x1a93   :  { %17056 = vmatpush3.bf16.msra.mxu0 %v17053_v4  ;;  %v20307_v11 = vpop.f32.mrb[78].mxu1  ;;  %15198 = vmatprep.mubr.f32.mxu0 %v7962_v57  ;;  %v8671_v4 = vld [vmem:[#allocation40 + $0x168] sm:$0xff]  ;;  %v8409_v57 = vld [vmem:[#allocation39 + $0xa0] sm:$0xff]  ;;  %v17105_v10 = vpack.c.bf16 %v8412_v55, %v8411_v5  ;;  %v9107_v55 = vld [vmem:[#allocation39 + $0x1f0] sm:$0xff] }
0x1a94   :  { %17058 = vmatprep.subr.bf16.mxu0 %v17057_v61  ;;  %v8648_v12 = vpop.f32.mrb[79].mxu1  ;;  %v17221_v42 = vpack.c.bf16 %v8671_v4, %v8670_v6  ;;  %v17101_v62 = vpack.c.bf16 %v8410_v3, %v8409_v57  ;;  %v8319_v6 = vld [vmem:[#allocation40 + $0xb0] sm:$0xff]  ;;  %v8320_v4 = vld [vmem:[#allocation40 + $0xb8] sm:$0xff] }
0x1a95   :  { %v8327_v3 = vld [vmem:[#allocation40 + $0xf0] sm:$0xff] }
0x1a97   :  { %17060 = vmatpush3.bf16.msra.mxu0 %v17057_v61  ;;  %v15298_v20 = vpop.f32.mrb[80].mxu1  ;;  %v12011_v61 = vld [vmem:[%s20725_s14 + $0x30] sm:$0xff] }
0x1a98   :  { %v8740_v21 = vpop.f32.mrb[81].mxu1  ;;  %17062 = vmatprep.subr.bf16.mxu0 %v17061_v7 }
0x1a99   :  { %15331 = vmatprep.mubr.f32.mxu1 %v8740_v21  ;;  %v9096_v21 = vld [vmem:[#allocation39 + $0x198] sm:$0xff] }
0x1a9a   :  { %15332 = vmatmul.mubr.f32.vlgmr.msra.gmra.mrb[82].mxu1 %v15298_v20  ;;  %v9095_v20 = vld [vmem:[#allocation39 + $0x190] sm:$0xff] }
0x1a9b   :  { %17064 = vmatpush3.bf16.msra.mxu0 %v17061_v7  ;;  %17200 = vmatpush3.bf16.msra.mxu1 %v17197_v59  ;;  %v17225_v59 = vpack.c.bf16 %v8673_v44, %v8672_v54  ;;  %v9094_v7 = vld [vmem:[#allocation39 + $0x188] sm:$0xff]  ;;  %v17241_v56 = vpack.c.bf16 %v9096_v21, %v9095_v20  ;;  %v8323_v54 = vld [vmem:[#allocation40 + $0xd0] sm:$0xff]  ;;  %v9005_v21 = vld [vmem:[#allocation40 + $0x1a0] sm:$0xff] }
0x1a9c   :  { %15366 = vmatprep.mubr.f32.mxu1 %v8648_v12  ;;  %17066 = vmatprep.subr.bf16.mxu0 %v17065_v1  ;;  %v8414_v12 = vld [vmem:[#allocation39 + $0xc8] sm:$0xff] }
0x1a9d   :  { %17202 = vmatprep.subr.bf16.mxu1 %v17201_v22  ;;  %v17109_v63 = vpack.c.bf16 %v8414_v12, %v8413_v30  ;;  %v9001_v30 = vld [vmem:[#allocation40 + $0x180] sm:$0xff]  ;;  %v9002_v12 = vld [vmem:[#allocation40 + $0x188] sm:$0xff] }
0x1a9f   :  { %17068 = vmatpush3.bf16.msra.mxu0 %v17065_v1  ;;  %17204 = vmatpush3.bf16.msra.mxu1 %v17201_v22  ;;  %v8418_v1 = vld [vmem:[#allocation39 + $0xe8] sm:$0xff]  ;;  %v9097_v22 = vld [vmem:[#allocation39 + $0x1a0] sm:$0xff] }
0x1aa0   :  { %17070 = vmatprep.subr.bf16.mxu0 %v17069_v24  ;;  %17206 = vmatprep.subr.bf16.mxu1 %v17205_v26 }
0x1aa3   :  { %17072 = vmatpush3.bf16.msra.mxu0 %v17069_v24  ;;  %17208 = vmatpush3.bf16.msra.mxu1 %v17205_v26  ;;  %v8420_v24 = vld [vmem:[#allocation39 + $0xf8] sm:$0xff]  ;;  %v9099_v26 = vld [vmem:[#allocation39 + $0x1b0] sm:$0xff] }
0x1aa4   :  { %17074 = vmatprep.subr.bf16.mxu0 %v17073_v31  ;;  %17210 = vmatprep.subr.bf16.mxu1 %v17209_v33  ;;  %v17121_v14 = vpack.c.bf16 %v8420_v24, %v8419_v23  ;;  %v9011_v23 = vld [vmem:[#allocation40 + $0x1d0] sm:$0xff]  ;;  %v9012_v24 = vld [vmem:[#allocation40 + $0x1d8] sm:$0xff] }
0x1aa7   :  { %17076 = vmatpush3.bf16.msra.mxu0 %v17073_v31  ;;  %17212 = vmatpush3.bf16.msra.mxu1 %v17209_v33  ;;  %v17249_v31 = vpack.c.bf16 %v9100_v29, %v9099_v26  ;;  %v9101_v33 = vld [vmem:[#allocation39 + $0x1c0] sm:$0xff]  ;;  %v9014_v29 = vld [vmem:[#allocation40 + $0x1e8] sm:$0xff] }
0x1aa8   :  { %17078 = vmatprep.subr.bf16.mxu0 %v17077_v39  ;;  %17214 = vmatprep.subr.bf16.mxu1 %v17213_v40  ;;  %v9013_v26 = vld [vmem:[#allocation40 + $0x1e0] sm:$0xff] }
0x1aab   :  { %17080 = vmatpush3.bf16.msra.mxu0 %v17077_v39  ;;  %17216 = vmatpush3.bf16.msra.mxu1 %v17213_v40  ;;  %v17253_v39 = vpack.c.bf16 %v9102_v35, %v9101_v33  ;;  %v9103_v40 = vld [vmem:[#allocation39 + $0x1d0] sm:$0xff] }
0x1aac   :  { %17082 = vmatprep.subr.bf16.mxu0 %v17081_v50  ;;  %17218 = vmatprep.subr.bf16.mxu1 %v17217_v51 }
0x1aaf   :  { %17084 = vmatpush3.bf16.msra.mxu0 %v17081_v50  ;;  %17220 = vmatpush3.bf16.msra.mxu1 %v17217_v51  ;;  %v17257_v50 = vpack.c.bf16 %v9104_v43, %v9103_v40  ;;  %v9105_v51 = vld [vmem:[#allocation39 + $0x1e0] sm:$0xff] }
0x1ab0   :  { %17094 = vmatprep.subr.bf16.mxu0 %v17093_v34  ;;  %17222 = vmatprep.subr.bf16.mxu1 %v17221_v42  ;;  %v12018_v43 = vld [vmem:[%s20726_s18 + $0x28] sm:$0xff] }
0x1ab2   :  { %15199 = vmatmul.mubr.f32.vlgmr.msra.gmra.mrb[48].mxu0 %v20299_v58  ;;  %v9093_v58 = vld [vmem:[#allocation39 + $0x180] sm:$0xff] }
0x1ab3   :  { %17096 = vmatpush3.bf16.msra.mxu0 %v17093_v34  ;;  %15247 = vmatprep.mubr.f32.mxu0 %v20305_v9  ;;  %v12012_v9 = vld [vmem:[%s20725_s14 + $0x38] sm:$0xff]  ;;  %v17237_v17 = vpack.c.bf16 %v9094_v7, %v9093_v58  ;;  %v17261_v34 = vpack.c.bf16 %v9106_v25, %v9105_v51  ;;  %v17269_v58 = vpack.c.bf16 %v9002_v12, %v9001_v30  ;;  %v9263_v51 = vld [vmem:[%s20726_s18 + $0x10] sm:$0xff] }
0x1ab4   :  { %17224 = vmatpush3.bf16.msra.mxu1 %v17221_v42  ;;  %17098 = vmatprep.subr.bf16.mxu0 %v17097_v52  ;;  %v17137_v42 = vpack.c.bf16 %v8320_v4, %v8319_v6  ;;  %v9264_v25 = vld [vmem:[%s20726_s18 + $0x18] sm:$0xff]  ;;  %v9883_v6 = vld [vmem:[#allocation45 + $0x20] sm:$0xff]  ;;  %v12029_v4 = vld [vmem:[#allocation42] ss:$0 sm:$0xff] }
0x1ab5   :  { %17226 = vmatprep.subr.bf16.mxu1 %v17225_v59 }
0x1ab7   :  { %17100 = vmatpush3.bf16.msra.mxu0 %v17097_v52  ;;  %v8325_v52 = vld [vmem:[#allocation40 + $0xe0] sm:$0xff] }
0x1ab8   :  { %17228 = vmatpush3.bf16.msra.mxu1 %v17225_v59  ;;  %17102 = vmatprep.subr.bf16.mxu0 %v17101_v62  ;;  %v8326_v59 = vld [vmem:[#allocation40 + $0xe8] sm:$0xff] }
0x1ab9   :  { %17230 = vmatprep.subr.bf16.mxu1 %v20269_v0  ;;  %v17149_v57 = vpack.c.bf16 %v8326_v59, %v8325_v52 }
0x1abb   :  { %15367 = vmatmul.mubr.f32.vlgmr.msra.gmra.mrb[82].mxu1 %v20307_v11  ;;  %17104 = vmatpush3.bf16.msra.mxu0 %v17101_v62  ;;  %v8417_v11 = vld [vmem:[#allocation39 + $0xe0] sm:$0xff]  ;;  %v8328_v62 = vld [vmem:[#allocation40 + $0xf8] sm:$0xff] }
0x1abc   :  { %17232 = vmatpush3.bf16.msra.mxu1 %v20269_v0  ;;  %15373 = vmatprep.mubr.msk.f32.mxu1 %vm2161_vm9, %v12011_v61  ;;  %v17113_v0 = vpack.c.bf16 %v8416_v16, %v8415_v15  ;;  %v17117_v19 = vpack.c.bf16 %v8418_v1, %v8417_v11  ;;  %v17153_v5 = vpack.c.bf16 %v8328_v62, %v8327_v3  ;;  %v9004_v15 = vld [vmem:[#allocation40 + $0x198] sm:$0xff]  ;;  %v9007_v11 = vld [vmem:[#allocation40 + $0x1b0] sm:$0xff] }
0x1abd   :  { %17234 = vmatprep.subr.bf16.mxu1 %v19249_v47  ;;  %17106 = vmatprep.subr.bf16.mxu0 %v17105_v10  ;;  %v9008_v1 = vld [vmem:[#allocation40 + $0x1b8] sm:$0xff] }
0x1abf   :  { %15374 = vmatmul.mubr.msk.f32.vlgmr.msra.gmra.mrb[84].mxu1 %vm2161_vm9, %v12012_v9  ;;  %17108 = vmatpush3.bf16.msra.mxu0 %v17105_v10 }
0x1ac0   :  { %17236 = vmatpush3.bf16.msra.mxu1 %v19249_v47  ;;  %15380 = vmatprep.mubr.msk.f32.mxu1 %vm2161_vm9, %v12011_v61  ;;  %v17245_v47 = vpack.c.bf16 %v9098_v18, %v9097_v22  ;;  %v9108_v61 = vld [vmem:[#allocation39 + $0x1f8] sm:$0xff]  ;;  %v9009_v22 = vld [vmem:[#allocation40 + $0x1c0] sm:$0xff]  ;;  %v9010_v18 = vld [vmem:[#allocation40 + $0x1c8] sm:$0xff] }
0x1ac1   :  { %17110 = vmatprep.subr.bf16.mxu0 %v17109_v63  ;;  %17238 = vmatprep.subr.bf16.mxu1 %v17237_v17  ;;  %v17265_v10 = vpack.c.bf16 %v9108_v61, %v9107_v55 }
0x1ac3   :  { %15381 = vmatmul.mubr.msk.f32.vlgmr.msra.gmra.mrb[86].mxu1 %vm2161_vm9, %v12012_v9  ;;  %17112 = vmatpush3.bf16.msra.mxu0 %v17109_v63  ;;  %v9003_v63 = vld [vmem:[#allocation40 + $0x190] sm:$0xff] }
0x1ac4   :  { %17114 = vmatprep.subr.bf16.mxu0 %v17113_v0  ;;  %17240 = vmatpush3.bf16.msra.mxu1 %v17237_v17  ;;  %v17273_v20 = vpack.c.bf16 %v9004_v15, %v9003_v63  ;;  %v9885_v63 = vld [vmem:[#allocation45 + $0x30] sm:$0xff] }
0x1ac5   :  { %17242 = vmatprep.subr.bf16.mxu1 %v17241_v56  ;;  %v9696_v15 = vld [vmem:[%s20727_s6] sm:$0xff] }
0x1ac7   :  { %17116 = vmatpush3.bf16.msra.mxu0 %v17113_v0  ;;  %v9006_v0 = vld [vmem:[#allocation40 + $0x1a8] sm:$0xff] }
0x1ac8   :  { %17118 = vmatprep.subr.bf16.mxu0 %v17117_v19  ;;  %17244 = vmatpush3.bf16.msra.mxu1 %v17241_v56  ;;  %v17281_v56 = vpack.c.bf16 %v9008_v1, %v9007_v11  ;;  %v9700_v11 = vld [vmem:[%s20727_s6 + $0x20] sm:$0xff]  ;;  %v9701_v1 = vld [vmem:[%s20727_s6 + $0x28] sm:$0xff] }
0x1ac9   :  { %17246 = vmatprep.subr.bf16.mxu1 %v17245_v47 }
0x1acb   :  { %17120 = vmatpush3.bf16.msra.mxu0 %v17117_v19  ;;  %v17285_v19 = vpack.c.bf16 %v9010_v18, %v9009_v22  ;;  %v17333_v18 = vpack.c.bf16 %v9701_v1, %v9700_v11  ;;  %v9597_v1 = vld [vmem:[%s20728_s22 + $0x10] sm:$0xff] }
0x1acc   :  { %17122 = vmatprep.subr.bf16.mxu0 %v17121_v14  ;;  %17248 = vmatpush3.bf16.msra.mxu1 %v17245_v47  ;;  %v17289_v47 = vpack.c.bf16 %v9012_v24, %v9011_v23  ;;  %v9702_v23 = vld [vmem:[%s20727_s6 + $0x30] sm:$0xff]  ;;  %v9703_v24 = vld [vmem:[%s20727_s6 + $0x38] sm:$0xff] }
0x1acd   :  { %17250 = vmatprep.subr.bf16.mxu1 %v17249_v31 }
0x1acf   :  { %17124 = vmatpush3.bf16.msra.mxu0 %v17121_v14  ;;  %v17293_v14 = vpack.c.bf16 %v9014_v29, %v9013_v26  ;;  %v12103_v26 = vld [vmem:[%s20727_s6 + $0x100] sm:$0xff]  ;;  %v12104_v29 = vld [vmem:[%s20727_s6 + $0x108] sm:$0xff] }
0x1ad0   :  { %17126 = vmatprep.subr.bf16.mxu0 %v17125_v36  ;;  %17252 = vmatpush3.bf16.msra.mxu1 %v17249_v31  ;;  %v17297_v31 = vpack.c.bf16 %v9016_v27, %v9015_v13  ;;  %v10281_v13 = vld [vmem:[#allocation45 + $0x58] sm:$0xff] }
0x1ad1   :  { %17254 = vmatprep.subr.bf16.mxu1 %v17253_v39  ;;  %v9704_v27 = vld [vmem:[%s20727_s6 + $0x40] sm:$0xff] }
0x1ad2   :  { %15248 = vmatmul.mubr.f32.vlgmr.msra.gmra.mrb[48].mxu0 %v20303_v8  ;;  %v17141_v8 = vpack.c.bf16 %v8322_v45, %v8321_v53 }
0x1ad3   :  { %17128 = vmatpush3.bf16.msra.mxu0 %v17125_v36  ;;  %15282 = vmatprep.mubr.f32.mxu0 %v20301_v2  ;;  %v8324_v2 = vld [vmem:[#allocation40 + $0xd8] sm:$0xff] }
0x1ad4   :  { %17130 = vmatprep.subr.bf16.mxu0 %v17129_v46  ;;  %17256 = vmatpush3.bf16.msra.mxu1 %v17253_v39  ;;  %v17145_v44 = vpack.c.bf16 %v8324_v2, %v8323_v54 }
0x1ad5   :  { %17258 = vmatprep.subr.bf16.mxu1 %v17257_v50 }
0x1ad7   :  { %17132 = vmatpush3.bf16.msra.mxu0 %v17129_v46  ;;  %v12019_v46 = vld [vmem:[%s20726_s18 + $0x30] sm:$0xff] }
0x1ad8   :  { %17134 = vmatprep.subr.bf16.mxu0 %v17133_v28  ;;  %17260 = vmatpush3.bf16.msra.mxu1 %v17257_v50  ;;  %v9262_v50 = vld [vmem:[%s20726_s18 + $0x8] sm:$0xff] }
0x1ad9   :  { %17262 = vmatprep.subr.bf16.mxu1 %v17261_v34 }
0x1adb   :  { %17136 = vmatpush3.bf16.msra.mxu0 %v17133_v28  ;;  %v9494_v28 = vld [vmem:[#allocation45] sm:$0xff] }
0x1adc   :  { %17138 = vmatprep.subr.bf16.mxu0 %v17137_v42  ;;  %17264 = vmatpush3.bf16.msra.mxu1 %v17261_v34  ;;  %v12030_v34 = vld [vmem:[#allocation43] ss:$0 sm:$0xff] }
0x1add   :  { %17266 = vmatprep.subr.bf16.mxu1 %v17265_v10 }
0x1adf   :  { %17140 = vmatpush3.bf16.msra.mxu0 %v17137_v42 }
0x1ae0   :  { %17142 = vmatprep.subr.bf16.mxu0 %v17141_v8  ;;  %17268 = vmatpush3.bf16.msra.mxu1 %v17265_v10 }
0x1ae1   :  { %17270 = vmatprep.subr.bf16.mxu1 %v17269_v58 }
0x1ae3   :  { %17144 = vmatpush3.bf16.msra.mxu0 %v17141_v8 }
0x1ae4   :  { %17146 = vmatprep.subr.bf16.mxu0 %v17145_v44 }
0x1ae7   :  { %17148 = vmatpush3.bf16.msra.mxu0 %v17145_v44 }
0x1ae8   :  { %17150 = vmatprep.subr.bf16.mxu0 %v17149_v57 }
0x1aeb   :  { %17152 = vmatpush3.bf16.msra.mxu0 %v17149_v57 }
0x1aec   :  { %17154 = vmatprep.subr.bf16.mxu0 %v17153_v5 }
0x1aef   :  { %17156 = vmatpush3.bf16.msra.mxu0 %v17153_v5 }
0x1af2   :  { %15283 = vmatmul.mubr.f32.vlgmr.msra.gmra.mrb[48].mxu0 %v20297_v60  ;;  %v17277_v60 = vpack.c.bf16 %v9006_v0, %v9005_v21  ;;  %v9698_v0 = vld [vmem:[%s20727_s6 + $0x10] sm:$0xff] }
0x1af3   :  { %15457 = vmatprep.mubr.msk.f32.mxu0 %vm2161_vm9, %v12017_v37 }
0x1b92   :  { %v15375_v7 = vpop.f32.mrb[84].mxu1 }
0x1b93   :  { %v8991_v9 = vpop.f32.mrb[85].mxu1 }
0x1b96   :  { %v15382_v16 = vpop.f32.mrb[86].mxu1 }
0x1b97   :  { %v9083_v17 = vpop.f32.mrb[87].mxu1 }
0x1b98   :  { %15415 = vmatprep.mubr.f32.mxu1 %v9083_v17  ;;  %v9497_v17 = vld [vmem:[#allocation45 + $0x18] sm:$0xff] }
0x1b99   :  { %15416 = vmatmul.mubr.f32.vlgmr.msra.gmra.mrb[82].mxu1 %v15382_v16  ;;  %v9697_v16 = vld [vmem:[%s20727_s6 + $0x8] sm:$0xff] }
0x1b9a   :  { %17272 = vmatpush3.bf16.msra.mxu1 %v17269_v58  ;;  %15450 = vmatprep.mubr.f32.mxu1 %v8991_v9  ;;  %v9495_v58 = vld [vmem:[#allocation45 + $0x8] sm:$0xff]  ;;  %v9496_v9 = vld [vmem:[#allocation45 + $0x10] sm:$0xff]  ;;  %v17325_v21 = vpack.c.bf16 %v9697_v16, %v9696_v15 }
0x1b9b   :  { %17274 = vmatprep.subr.bf16.mxu1 %v17273_v20 }
0x1b9e   :  { %17276 = vmatpush3.bf16.msra.mxu1 %v17273_v20  ;;  %v9886_v20 = vld [vmem:[#allocation45 + $0x38] sm:$0xff] }
0x1b9f   :  { %17278 = vmatprep.subr.bf16.mxu1 %v17277_v60 }
0x1ba2   :  { %17280 = vmatpush3.bf16.msra.mxu1 %v17277_v60  ;;  %v9699_v60 = vld [vmem:[%s20727_s6 + $0x18] sm:$0xff] }
0x1ba3   :  { %17282 = vmatprep.subr.bf16.mxu1 %v17281_v56  ;;  %v17329_v22 = vpack.c.bf16 %v9699_v60, %v9698_v0 }
0x1ba6   :  { %17284 = vmatpush3.bf16.msra.mxu1 %v17281_v56  ;;  %v10278_v56 = vld [vmem:[#allocation45 + $0x40] sm:$0xff] }
0x1ba7   :  { %17286 = vmatprep.subr.bf16.mxu1 %v17285_v19 }
0x1baa   :  { %17288 = vmatpush3.bf16.msra.mxu1 %v17285_v19  ;;  %v10279_v19 = vld [vmem:[#allocation45 + $0x48] sm:$0xff] }
0x1bab   :  { %17290 = vmatprep.subr.bf16.mxu1 %v17289_v47 }
0x1bae   :  { %17292 = vmatpush3.bf16.msra.mxu1 %v17289_v47  ;;  %v10280_v47 = vld [vmem:[#allocation45 + $0x50] sm:$0xff] }
0x1baf   :  { %17294 = vmatprep.subr.bf16.mxu1 %v17293_v14 }
0x1bb2   :  { %17296 = vmatpush3.bf16.msra.mxu1 %v17293_v14  ;;  %v17337_v14 = vpack.c.bf16 %v9703_v24, %v9702_v23 }
0x1bb3   :  { %17298 = vmatprep.subr.bf16.mxu1 %v17297_v31 }
0x1bb6   :  { %17300 = vmatpush3.bf16.msra.mxu1 %v17297_v31  ;;  %v9705_v31 = vld [vmem:[%s20727_s6 + $0x48] sm:$0xff] }
0x1bb7   :  { %v17341_v37 = vpack.c.bf16 %v9705_v31, %v9704_v27 }
0x1bb9   :  { %15451 = vmatmul.mubr.f32.vlgmr.msra.gmra.mrb[82].mxu1 %v15375_v7  ;;  %v9884_v7 = vld [vmem:[#allocation45 + $0x28] sm:$0xff] }
0x1bba   :  { %15585 = vmatprep.mubr.msk.f32.mxu1 %vm1431_vm1, %v9883_v6 }
0x1bc5   :  { %v15284_v33 = vpop.f32.mrb[48].mxu0 }
0x1bc6   :  { %v8562_v35 = vpop.f32.mrb[49].mxu0 }
0x1bc7   :  { %v17305_v36 = vpack.c.bf16 %v15284_v33, %v8562_v35  ;;  %v17485_v33 = vpack.c.bf16 %v12104_v29, %v12103_v26  ;;  %v12105_v35 = vld [vmem:[%s20727_s6 + $0x110] sm:$0xff]  ;;  %v9600_v26 = vld [vmem:[%s20728_s22 + $0x28] sm:$0xff] }
0x1c8c   :  { %v15452_v38 = vpop.f32.mrb[82].mxu1 }
0x1c8d   :  { %v9250_v39 = vpop.f32.mrb[83].mxu1 }
0x1c8e   :  { %v17301_v40 = vpack.c.bf16 %v15452_v38, %v9250_v39  ;;  %v9706_v38 = vld [vmem:[%s20727_s6 + $0x50] sm:$0xff]  ;;  %v9707_v39 = vld [vmem:[%s20727_s6 + $0x58] sm:$0xff] }
0x1c90   :  { %17302 = vmatprep.subr.bf16.mxu0 %v17301_v40 }
0x1c91   :  { %17304 = vmatpush3.bf16.msra.mxu0 %v17301_v40 }
0x1c92   :  { %17306 = vmatprep.subr.bf16.mxu0 %v17305_v36 }
0x1c94   :  { %15458 = vmatmul.mubr.msk.f32.vlgmr.msra.gmra.mrb[50].mxu0 %vm2161_vm9, %v12018_v43  ;;  %v17345_v43 = vpack.c.bf16 %v9707_v39, %v9706_v38  ;;  %v9603_v39 = vld [vmem:[%s20728_s22 + $0x40] sm:$0xff] }
0x1c95   :  { %17308 = vmatpush3.bf16.msra.mxu0 %v17305_v36  ;;  %15460 = vmatprep.mubr.msk.f32.mxu0 %vm2161_vm9, %v12019_v46  ;;  %v12106_v36 = vld [vmem:[%s20727_s6 + $0x118] sm:$0xff]  ;;  %v9708_v46 = vld [vmem:[%s20727_s6 + $0x60] sm:$0xff] }
0x1c96   :  { %v17489_v40 = vpack.c.bf16 %v12106_v36, %v12105_v35  ;;  %v9602_v35 = vld [vmem:[%s20728_s22 + $0x38] sm:$0xff] }
0x1c98   :  { %15461 = vmatmul.mubr.msk.f32.gmra.mrb[52].mxu0 %vm2161_vm9, %v12020_v48  ;;  %v9709_v48 = vld [vmem:[%s20727_s6 + $0x68] sm:$0xff] }
0x1c99   :  { %15467 = vmatprep.mubr.msk.f32.mxu0 %vm2161_vm9, %v9261_v49  ;;  %v12107_v49 = vld [vmem:[%s20727_s6 + $0x120] sm:$0xff] }
0x1c9c   :  { %15468 = vmatmul.mubr.msk.f32.vlgmr.msra.gmra.mrb[50].mxu0 %vm2161_vm9, %v9262_v50  ;;  %v17349_v50 = vpack.c.bf16 %v9709_v48, %v9708_v46 }
0x1c9d   :  { %15470 = vmatprep.mubr.msk.f32.mxu0 %vm2161_vm9, %v9263_v51  ;;  %v12108_v51 = vld [vmem:[%s20727_s6 + $0x128] sm:$0xff] }
0x1ca0   :  { %15471 = vmatmul.mubr.msk.f32.gmra.mrb[52].mxu0 %vm2161_vm9, %v9264_v25  ;;  %v17493_v25 = vpack.c.bf16 %v12108_v51, %v12107_v49  ;;  %v9605_v49 = vld [vmem:[%s20728_s22 + $0x50] sm:$0xff] }
0x1ca1   :  { %15481 = vmatprep.mubr.msk.f32.mxu0 %vm1431_vm1, %v9494_v28  ;;  %v12085_v51 = vld [vmem:[%s20728_s22 + $0x110] sm:$0xff] }
0x1d6f   :  { %v15469_v42 = vpop.f32.mrb[50].mxu0 }
0x1d70   :  { %v9471_v53 = vmul.f32 %v15469_v42, %v12029_v4  ;;  %v9445_v45 = vpop.f32.mrb[51].mxu0  ;;  %v12110_v42 = vld [vmem:[%s20727_s6 + $0x138] sm:$0xff] }
0x1d71   :  { %v9470_v8 = vmul.f32 %v12029_v4, %v9445_v45  ;;  %v9595_v45 = vld [vmem:[%s20728_s22] sm:$0xff] }
0x1d72   :  { %v9481_v54 = vadd.f32 %v12030_v34, %v9471_v53 }
0x1d73   :  { %v9480_v2 = vadd.f32 %v12030_v34, %v9470_v8  ;;  %v15472_v44 = vpop.f32.mrb[52].mxu0  ;;  %v9596_v8 = vld [vmem:[%s20728_s22 + $0x8] sm:$0xff] }
0x1d74   :  { %v9487_v52 = vmax.f32 %v9481_v54, 0.0  ;;  %v9473_v59 = vmul.f32 %v15472_v44, %v12029_v4  ;;  %v9455_v57 = vpop.f32.mrb[53].mxu0  ;;  %v12111_v54 = vld [vmem:[%s20727_s6 + $0x140] sm:$0xff]  ;;  %v12112_v44 = vld [vmem:[%s20727_s6 + $0x148] sm:$0xff] }
0x1d75   :  { %v9486_v3 = vmax.f32 %v9480_v2, 0.0  ;;  %v9472_v62 = vmul.f32 %v12029_v4, %v9455_v57  ;;  %v12109_v4 = vld [vmem:[%s20727_s6 + $0x130] sm:$0xff]  ;;  %v17357_v2 = vpack.c.bf16 %v9596_v8, %v9595_v45  ;;  %v12114_v57 = vld [vmem:[%s20727_s6 + $0x158] sm:$0xff]  ;;  %v12087_v45 = vld [vmem:[%s20728_s22 + $0x120] sm:$0xff] }
0x1d76   :  { %v9483_v5 = vadd.f32 %v12030_v34, %v9473_v59  ;;  %v17497_v53 = vpack.c.bf16 %v12110_v42, %v12109_v4  ;;  %v12113_v59 = vld [vmem:[%s20727_s6 + $0x150] sm:$0xff]  ;;  %v9607_v42 = vld [vmem:[%s20728_s22 + $0x60] sm:$0xff]  ;;  %v12088_v8 = vld [vmem:[%s20728_s22 + $0x128] sm:$0xff] }
0x1d77   :  { %v20343_v55 = vpack.c.bf16 %v9487_v52, %v9486_v3  ;;  %v9482_v61 = vadd.f32 %v12030_v34, %v9472_v62  ;;  %v17501_v52 = vpack.c.bf16 %v12112_v44, %v12111_v54  ;;  %v17505_v3 = vpack.c.bf16 %v12114_v57, %v12113_v59  ;;  %v12115_v62 = vld [vmem:[%s20727_s6 + $0x160] sm:$0xff]  ;;  %v9610_v57 = vld [vmem:[%s20728_s22 + $0x78] sm:$0xff] }
0x1d78   :  { %v9489_v10 = vmax.f32 %v9483_v5, 0.0  ;;  %v12116_v5 = vld [vmem:[%s20727_s6 + $0x168] sm:$0xff]  ;;  %v17525_v59 = vpack.c.bf16 %v12088_v8, %v12087_v45  ;;  %v12143_v45 = vld [vmem:[%s20727_s6 + $0x180] sm:$0xff] }
0x1d79   :  { %v9488_v30 = vmax.f32 %v9482_v61, 0.0  ;;  %17310 = vmatprep.subr.bf16.mxu0 %v20343_v55  ;;  %17390 = vmatprep.subr.bf16.mxu1 %v20343_v55  ;;  %v17509_v61 = vpack.c.bf16 %v12116_v5, %v12115_v62  ;;  %v12090_v62 = vld [vmem:[%s20728_s22 + $0x138] sm:$0xff]  ;;  %v12144_v8 = vld [vmem:[%s20727_s6 + $0x188] sm:$0xff] }
0x1d7a   :  { %17312 = vmatpush3.bf16.msra.mxu0 %v20343_v55  ;;  %17392 = vmatpush3.bf16.msra.mxu1 %v20343_v55 }
0x1d7b   :  { %v20349_v12 = vpack.c.bf16 %v9489_v10, %v9488_v30  ;;  %v12117_v10 = vld [vmem:[%s20727_s6 + $0x170] sm:$0xff]  ;;  %v12118_v30 = vld [vmem:[%s20727_s6 + $0x178] sm:$0xff] }
0x1d7d   :  { %17314 = vmatprep.subr.bf16.mxu0 %v20349_v12  ;;  %17394 = vmatprep.subr.bf16.mxu1 %v20349_v12 }
0x1d7e   :  { %17316 = vmatpush3.bf16.msra.mxu0 %v20349_v12  ;;  %17396 = vmatpush3.bf16.msra.mxu1 %v20349_v12 }
0x1d7f   :  { %17318 = vmatprep.subr.bf16.mxu0 %v19148_v32  ;;  %17398 = vmatprep.subr.bf16.mxu1 %v19148_v32 }
0x1d81   :  { %15482 = vmatmul.mubr.msk.f32.vlgmr.msra.gmra.mrb[54].mxu0 %vm1431_vm1, %v9495_v58  ;;  %15586 = vmatmul.mubr.msk.f32.vlgmr.msra.gmra.mrb[88].mxu1 %vm1431_vm1, %v9884_v7 }
0x1d82   :  { %17320 = vmatpush3.bf16.msra.mxu0 %v19148_v32  ;;  %17400 = vmatpush3.bf16.msra.mxu1 %v19148_v32 }
0x1d83   :  { %17322 = vmatprep.subr.bf16.mxu0 %v19154_v41  ;;  %17402 = vmatprep.subr.bf16.mxu1 %v19154_v41 }
0x1d84   :  { %15484 = vmatprep.mubr.msk.f32.mxu0 %vm1431_vm1, %v9496_v9  ;;  %15588 = vmatprep.mubr.msk.f32.mxu1 %vm1431_vm1, %v9885_v63 }
0x1d85   :  { %15485 = vmatmul.mubr.msk.f32.gmra.mrb[56].mxu0 %vm1431_vm1, %v9497_v17  ;;  %15589 = vmatmul.mubr.msk.f32.gmra.mrb[90].mxu1 %vm1431_vm1, %v9886_v20 }
0x1d86   :  { %17324 = vmatpush3.bf16.msra.mxu0 %v19154_v41  ;;  %17404 = vmatpush3.bf16.msra.mxu1 %v19154_v41 }
0x1d87   :  { %17470 = vmatprep.subr.bf16.mxu1 %v20343_v55  ;;  %15495 = vmatprep.mubr.msk.f32.mxu0 %vm1431_vm1, %v9494_v28  ;;  %v9710_v28 = vld [vmem:[%s20727_s6 + $0x70] sm:$0xff] }
0x1d88   :  { %15599 = vmatprep.mubr.msk.f32.mxu1 %vm1431_vm1, %v9883_v6  ;;  %17326 = vmatprep.subr.bf16.mxu0 %v17325_v21  ;;  %v9711_v6 = vld [vmem:[%s20727_s6 + $0x78] sm:$0xff] }
0x1d89   :  { %15496 = vmatmul.mubr.msk.f32.vlgmr.msra.gmra.mrb[58].mxu0 %vm1431_vm1, %v9495_v58  ;;  %15600 = vmatmul.mubr.msk.f32.vlgmr.msra.gmra.mrb[92].mxu1 %vm1431_vm1, %v9884_v7  ;;  %v17353_v34 = vpack.c.bf16 %v9711_v6, %v9710_v28  ;;  %v17513_v58 = vpack.c.bf16 %v12118_v30, %v12117_v10  ;;  %v12083_v7 = vld [vmem:[%s20728_s22 + $0x100] sm:$0xff]  ;;  %v12064_v30 = vld [vmem:[%s20727_s6 + $0x88] sm:$0xff] }
0x1d8a   :  { %17472 = vmatpush3.bf16.msra.mxu1 %v20343_v55  ;;  %15602 = vmatprep.mubr.msk.f32.mxu1 %vm1431_vm1, %v9885_v63  ;;  %v12063_v10 = vld [vmem:[%s20727_s6 + $0x80] sm:$0xff] }
0x1d8b   :  { %17474 = vmatprep.subr.bf16.mxu1 %v20349_v12  ;;  %15498 = vmatprep.mubr.msk.f32.mxu0 %vm1431_vm1, %v9496_v9  ;;  %v12084_v9 = vld [vmem:[%s20728_s22 + $0x108] sm:$0xff] }
0x1d8c   :  { %17328 = vmatpush3.bf16.msra.mxu0 %v17325_v21  ;;  %v17517_v63 = vpack.c.bf16 %v12084_v9, %v12083_v7  ;;  %v12092_v7 = vld [vmem:[%s20728_s22 + $0x148] sm:$0xff]  ;;  %v17405_v9 = vpack.c.bf16 %v12064_v30, %v12063_v10  ;;  %v12050_v10 = vld [vmem:[%s20728_s22 + $0xb8] sm:$0xff] }
0x1d8d   :  { %15603 = vmatmul.mubr.msk.f32.gmra.mrb[94].mxu1 %vm1431_vm1, %v9886_v20  ;;  %15499 = vmatmul.mubr.msk.f32.gmra.mrb[60].mxu0 %vm1431_vm1, %v9497_v17 }
0x1d8e   :  { %17476 = vmatpush3.bf16.msra.mxu1 %v20349_v12  ;;  %15689 = vmatprep.mubr.msk.f32.mxu1 %vm1431_vm1, %v10278_v56 }
0x1d8f   :  { %17478 = vmatprep.subr.bf16.mxu1 %v19148_v32  ;;  %17330 = vmatprep.subr.bf16.mxu0 %v17329_v22 }
0x1d90   :  { %17332 = vmatpush3.bf16.msra.mxu0 %v17329_v22 }
0x1d91   :  { %15690 = vmatmul.mubr.msk.f32.vlgmr.msra.gmra.mrb[96].mxu1 %vm1431_vm1, %v10279_v19  ;;  %17334 = vmatprep.subr.bf16.mxu0 %v17333_v18 }
0x1d92   :  { %17480 = vmatpush3.bf16.msra.mxu1 %v19148_v32  ;;  %15692 = vmatprep.mubr.msk.f32.mxu1 %vm1431_vm1, %v10280_v47 }
0x1d93   :  { %17482 = vmatprep.subr.bf16.mxu1 %v19154_v41 }
0x1d94   :  { %17336 = vmatpush3.bf16.msra.mxu0 %v17333_v18 }
0x1d95   :  { %15693 = vmatmul.mubr.msk.f32.gmra.mrb[98].mxu1 %vm1431_vm1, %v10281_v13  ;;  %17338 = vmatprep.subr.bf16.mxu0 %v17337_v14 }
0x1d96   :  { %17484 = vmatpush3.bf16.msra.mxu1 %v19154_v41  ;;  %15703 = vmatprep.mubr.msk.f32.mxu1 %vm1431_vm1, %v10278_v56  ;;  %v9598_v56 = vld [vmem:[%s20728_s22 + $0x18] sm:$0xff] }
0x1d97   :  { %17486 = vmatprep.subr.bf16.mxu1 %v17485_v33  ;;  %v17361_v24 = vpack.c.bf16 %v9598_v56, %v9597_v1  ;;  %v12066_v1 = vld [vmem:[%s20727_s6 + $0x98] sm:$0xff]  ;;  %v12093_v56 = vld [vmem:[%s20728_s22 + $0x150] sm:$0xff] }
0x1d98   :  { %17340 = vmatpush3.bf16.msra.mxu0 %v17337_v14 }
0x1d99   :  { %15704 = vmatmul.mubr.msk.f32.vlgmr.msra.gmra.mrb[100].mxu1 %vm1431_vm1, %v10279_v19  ;;  %17342 = vmatprep.subr.bf16.mxu0 %v17341_v37 }
0x1d9a   :  { %15706 = vmatprep.mubr.msk.f32.mxu1 %vm1431_vm1, %v10280_v47  ;;  %17488 = vmatpush3.bf16.msra.mxu1 %v17485_v33  ;;  %v9599_v47 = vld [vmem:[%s20728_s22 + $0x20] sm:$0xff]  ;;  %v9601_v33 = vld [vmem:[%s20728_s22 + $0x30] sm:$0xff] }
0x1d9b   :  { %17490 = vmatprep.subr.bf16.mxu1 %v17489_v40  ;;  %v17365_v27 = vpack.c.bf16 %v9600_v26, %v9599_v47  ;;  %v17369_v38 = vpack.c.bf16 %v9602_v35, %v9601_v33  ;;  %v12067_v47 = vld [vmem:[%s20727_s6 + $0xa0] sm:$0xff]  ;;  %v12068_v26 = vld [vmem:[%s20727_s6 + $0xa8] sm:$0xff]  ;;  %v12069_v35 = vld [vmem:[%s20727_s6 + $0xb0] sm:$0xff] }
0x1d9c   :  { %17344 = vmatpush3.bf16.msra.mxu0 %v17341_v37 }
0x1d9d   :  { %15707 = vmatmul.mubr.msk.f32.gmra.mrb[102].mxu1 %vm1431_vm1, %v10281_v13  ;;  %17346 = vmatprep.subr.bf16.mxu0 %v17345_v43 }
0x1d9e   :  { %17492 = vmatpush3.bf16.msra.mxu1 %v17489_v40  ;;  %v9604_v40 = vld [vmem:[%s20728_s22 + $0x48] sm:$0xff] }
0x1d9f   :  { %17494 = vmatprep.subr.bf16.mxu1 %v17493_v25  ;;  %v17373_v48 = vpack.c.bf16 %v9604_v40, %v9603_v39  ;;  %v12098_v39 = vld [vmem:[%s20728_s22 + $0x178] sm:$0xff]  ;;  %v12071_v40 = vld [vmem:[%s20727_s6 + $0xc0] sm:$0xff] }
0x1da0   :  { %17348 = vmatpush3.bf16.msra.mxu0 %v17345_v43 }
0x1da1   :  { %17350 = vmatprep.subr.bf16.mxu0 %v17349_v50 }
0x1da2   :  { %17496 = vmatpush3.bf16.msra.mxu1 %v17493_v25  ;;  %v12086_v25 = vld [vmem:[%s20728_s22 + $0x118] sm:$0xff] }
0x1da3   :  { %17498 = vmatprep.subr.bf16.mxu1 %v17497_v53 }
0x1da4   :  { %17352 = vmatpush3.bf16.msra.mxu0 %v17349_v50  ;;  %v9606_v50 = vld [vmem:[%s20728_s22 + $0x58] sm:$0xff] }
0x1da5   :  { %17354 = vmatprep.subr.bf16.mxu0 %v17353_v34  ;;  %v17377_v4 = vpack.c.bf16 %v9606_v50, %v9605_v49  ;;  %v12073_v49 = vld [vmem:[%s20727_s6 + $0xd0] sm:$0xff]  ;;  %v12074_v50 = vld [vmem:[%s20727_s6 + $0xd8] sm:$0xff] }
0x1da6   :  { %17500 = vmatpush3.bf16.msra.mxu1 %v17497_v53  ;;  %v9608_v53 = vld [vmem:[%s20728_s22 + $0x68] sm:$0xff] }
0x1da7   :  { %17502 = vmatprep.subr.bf16.mxu1 %v17501_v52  ;;  %v17381_v44 = vpack.c.bf16 %v9608_v53, %v9607_v42  ;;  %v12043_v42 = vld [vmem:[%s20728_s22 + $0x80] sm:$0xff]  ;;  %v12044_v53 = vld [vmem:[%s20728_s22 + $0x88] sm:$0xff] }
0x1da8   :  { %17356 = vmatpush3.bf16.msra.mxu0 %v17353_v34  ;;  %v17521_v34 = vpack.c.bf16 %v12086_v25, %v12085_v51  ;;  %v12075_v51 = vld [vmem:[%s20727_s6 + $0xe0] sm:$0xff]  ;;  %v12076_v25 = vld [vmem:[%s20727_s6 + $0xe8] sm:$0xff] }
0x1da9   :  { %17358 = vmatprep.subr.bf16.mxu0 %v17357_v2 }
0x1daa   :  { %17504 = vmatpush3.bf16.msra.mxu1 %v17501_v52  ;;  %v9609_v52 = vld [vmem:[%s20728_s22 + $0x70] sm:$0xff] }
0x1dab   :  { %17506 = vmatprep.subr.bf16.mxu1 %v17505_v3  ;;  %v17385_v5 = vpack.c.bf16 %v9610_v57, %v9609_v52  ;;  %v12145_v52 = vld [vmem:[%s20727_s6 + $0x190] sm:$0xff]  ;;  %v12047_v57 = vld [vmem:[%s20728_s22 + $0xa0] sm:$0xff] }
0x1dae   :  { %17508 = vmatpush3.bf16.msra.mxu1 %v17505_v3  ;;  %v12089_v3 = vld [vmem:[%s20728_s22 + $0x130] sm:$0xff] }
0x1daf   :  { %17510 = vmatprep.subr.bf16.mxu1 %v17509_v61 }
0x1db2   :  { %17512 = vmatpush3.bf16.msra.mxu1 %v17509_v61  ;;  %v17529_v61 = vpack.c.bf16 %v12090_v62, %v12089_v3  ;;  %v12048_v3 = vld [vmem:[%s20728_s22 + $0xa8] sm:$0xff] }
0x1db3   :  { %17514 = vmatprep.subr.bf16.mxu1 %v17513_v58 }
0x1db6   :  { %17516 = vmatpush3.bf16.msra.mxu1 %v17513_v58  ;;  %v12091_v58 = vld [vmem:[%s20728_s22 + $0x140] sm:$0xff] }
0x1db7   :  { %17518 = vmatprep.subr.bf16.mxu1 %v17517_v63 }
0x1e54   :  { %v20429_v15 = vpop.f32.mrb[88].mxu1  ;;  %v20431_v16 = vpop.f32.mrb[54].mxu0 }
0x1e55   :  { %v20433_v17 = vpop.f32.mrb[89].mxu1  ;;  %v9576_v20 = vpop.f32.mrb[55].mxu0 }
0x1e58   :  { %v20435_v21 = vpop.f32.mrb[90].mxu1  ;;  %v20437_v0 = vpop.f32.mrb[56].mxu0 }
0x1e59   :  { %v20439_v60 = vpop.f32.mrb[91].mxu1  ;;  %v20441_v11 = vpop.f32.mrb[57].mxu0 }
0x1e5c   :  { %v15497_v22 = vpop.f32.mrb[58].mxu0  ;;  %v20445_v18 = vpop.f32.mrb[92].mxu1 }
0x1e5d   :  { %v9677_v19 = vpop.f32.mrb[59].mxu0  ;;  %v20447_v23 = vpop.f32.mrb[93].mxu1 }
0x1e5e   :  { %15533 = vmatprep.mubr.f32.mxu0 %v9677_v19 }
0x1e5f   :  { %15534 = vmatmul.mubr.f32.vlgmr.msra.gmra.mrb[62].mxu0 %v15497_v22  ;;  %v12094_v22 = vld [vmem:[%s20728_s22 + $0x158] sm:$0xff] }
0x1e60   :  { %17360 = vmatpush3.bf16.msra.mxu0 %v17357_v2  ;;  %v20451_v29 = vpop.f32.mrb[94].mxu1  ;;  %v15500_v14 = vpop.f32.mrb[60].mxu0 }
0x1e61   :  { %17362 = vmatprep.subr.bf16.mxu0 %v17361_v24  ;;  %v20453_v13 = vpop.f32.mrb[95].mxu1  ;;  %v9687_v31 = vpop.f32.mrb[61].mxu0 }
0x1e62   :  { %15536 = vmatprep.mubr.f32.mxu0 %v9687_v31  ;;  %v17413_v31 = vpack.c.bf16 %v12068_v26, %v12067_v47  ;;  %v12154_v47 = vld [vmem:[%s20727_s6 + $0x1d8] sm:$0xff] }
0x1e63   :  { %15537 = vmatmul.mubr.f32.gmra.mrb[64].mxu0 %v15500_v14  ;;  %v12095_v14 = vld [vmem:[%s20728_s22 + $0x160] sm:$0xff] }
0x1e64   :  { %17364 = vmatpush3.bf16.msra.mxu0 %v17361_v24  ;;  %v20457_v36 = vpop.f32.mrb[96].mxu1  ;;  %15571 = vmatprep.mubr.f32.mxu0 %v9576_v20  ;;  %v12065_v20 = vld [vmem:[%s20727_s6 + $0x90] sm:$0xff]  ;;  %v17537_v24 = vpack.c.bf16 %v12094_v22, %v12093_v56  ;;  %v12054_v22 = vld [vmem:[%s20728_s22 + $0xd8] sm:$0xff] }
0x1e65   :  { %17366 = vmatprep.subr.bf16.mxu0 %v17365_v27  ;;  %v10360_v37 = vpop.f32.mrb[97].mxu1  ;;  %v17409_v19 = vpack.c.bf16 %v12066_v1, %v12065_v20  ;;  %v12151_v20 = vld [vmem:[%s20727_s6 + $0x1c0] sm:$0xff]  ;;  %v12152_v1 = vld [vmem:[%s20727_s6 + $0x1c8] sm:$0xff]  ;;  %v12053_v56 = vld [vmem:[%s20728_s22 + $0xd0] sm:$0xff] }
0x1e66   :  { %v17457_v26 = vpack.c.bf16 %v12054_v22, %v12053_v56  ;;  %v12160_v56 = vld [vmem:[%s18866_s9 + $0x48] sm:$0xff]  ;;  %v12161_v22 = vld [vmem:[%s18866_s9 + $0x50] sm:$0xff] }
0x1e68   :  { %17368 = vmatpush3.bf16.msra.mxu0 %v17365_v27  ;;  %v20461_v43 = vpop.f32.mrb[98].mxu1  ;;  %v12096_v27 = vld [vmem:[%s20728_s22 + $0x168] sm:$0xff] }
0x1e69   :  { %17370 = vmatprep.subr.bf16.mxu0 %v17369_v38  ;;  %v20463_v46 = vpop.f32.mrb[99].mxu1  ;;  %v17541_v33 = vpack.c.bf16 %v12096_v27, %v12095_v14  ;;  %v12055_v14 = vld [vmem:[%s20728_s22 + $0xe0] sm:$0xff]  ;;  %v12056_v27 = vld [vmem:[%s20728_s22 + $0xe8] sm:$0xff] }
0x1e6c   :  { %17372 = vmatpush3.bf16.msra.mxu0 %v17369_v38  ;;  %v15705_v28 = vpop.f32.mrb[100].mxu1  ;;  %v12097_v38 = vld [vmem:[%s20728_s22 + $0x170] sm:$0xff] }
0x1e6d   :  { %v10462_v6 = vpop.f32.mrb[101].mxu1  ;;  %17374 = vmatprep.subr.bf16.mxu0 %v17373_v48 }
0x1e6e   :  { %15741 = vmatprep.mubr.f32.mxu1 %v10462_v6  ;;  %v17429_v6 = vpack.c.bf16 %v12076_v25, %v12075_v51  ;;  %v12125_v25 = vld [vmem:[%s20728_s22 + $0x190] sm:$0xff] }
0x1e6f   :  { %15742 = vmatmul.mubr.f32.vlgmr.msra.gmra.mrb[104].mxu1 %v15705_v28  ;;  %v10669_v28 = vld [vmem:[#allocation45 + $0x60] sm:$0xff] }
0x1e70   :  { %17376 = vmatpush3.bf16.msra.mxu0 %v17373_v48  ;;  %17520 = vmatpush3.bf16.msra.mxu1 %v17517_v63  ;;  %v15708_v54 = vpop.f32.mrb[102].mxu1  ;;  %v17533_v63 = vpack.c.bf16 %v12092_v7, %v12091_v58  ;;  %v12072_v48 = vld [vmem:[%s20727_s6 + $0xc8] sm:$0xff]  ;;  %v12150_v58 = vld [vmem:[%s20727_s6 + $0x1b8] sm:$0xff] }
0x1e71   :  { %v10472_v2 = vpop.f32.mrb[103].mxu1  ;;  %17378 = vmatprep.subr.bf16.mxu0 %v17377_v4  ;;  %17522 = vmatprep.subr.bf16.mxu1 %v17521_v34 }
0x1e72   :  { %15744 = vmatprep.mubr.f32.mxu1 %v10472_v2  ;;  %v12045_v2 = vld [vmem:[%s20728_s22 + $0x90] sm:$0xff] }
0x1e73   :  { %15745 = vmatmul.mubr.f32.gmra.mrb[106].mxu1 %v15708_v54  ;;  %v17565_v54 = vpack.c.bf16 %v12144_v8, %v12143_v45  ;;  %v12129_v45 = vld [vmem:[%s20728_s22 + $0x1b0] sm:$0xff]  ;;  %v12130_v8 = vld [vmem:[%s20728_s22 + $0x1b8] sm:$0xff] }
0x1e74   :  { %17380 = vmatpush3.bf16.msra.mxu0 %v17377_v4  ;;  %17524 = vmatpush3.bf16.msra.mxu1 %v17521_v34  ;;  %v12077_v4 = vld [vmem:[%s20727_s6 + $0xf0] sm:$0xff]  ;;  %v12078_v34 = vld [vmem:[%s20727_s6 + $0xf8] sm:$0xff] }
0x1e75   :  { %15779 = vmatprep.mubr.f32.mxu1 %v10360_v37  ;;  %17382 = vmatprep.subr.bf16.mxu0 %v17381_v44  ;;  %v12070_v37 = vld [vmem:[%s20727_s6 + $0xb8] sm:$0xff] }
0x1e76   :  { %17526 = vmatprep.subr.bf16.mxu1 %v17525_v59 }
0x1e78   :  { %17384 = vmatpush3.bf16.msra.mxu0 %v17381_v44  ;;  %17528 = vmatpush3.bf16.msra.mxu1 %v17525_v59  ;;  %v12046_v44 = vld [vmem:[%s20728_s22 + $0x98] sm:$0xff] }
0x1e79   :  { %17386 = vmatprep.subr.bf16.mxu0 %v17385_v5  ;;  %17530 = vmatprep.subr.bf16.mxu1 %v17529_v61  ;;  %v12146_v59 = vld [vmem:[%s20727_s6 + $0x198] sm:$0xff] }
0x1e7a   :  { %v17569_v62 = vpack.c.bf16 %v12146_v59, %v12145_v52  ;;  %v12134_v52 = vld [vmem:[%s20728_s22 + $0x1d8] sm:$0xff] }
0x1e7c   :  { %17388 = vmatpush3.bf16.msra.mxu0 %v17385_v5  ;;  %17532 = vmatpush3.bf16.msra.mxu1 %v17529_v61  ;;  %v12147_v5 = vld [vmem:[%s20727_s6 + $0x1a0] sm:$0xff]  ;;  %v17445_v61 = vpack.c.bf16 %v12048_v3, %v12047_v57  ;;  %v12136_v57 = vld [vmem:[%s20728_s22 + $0x1e8] sm:$0xff] }
0x1e7d   :  { %17406 = vmatprep.subr.bf16.mxu0 %v17405_v9  ;;  %17534 = vmatprep.subr.bf16.mxu1 %v17533_v63 }
0x1e7f   :  { %15572 = vmatmul.mubr.f32.vlgmr.msra.gmra.mrb[62].mxu0 %v20431_v16  ;;  %v17417_v16 = vpack.c.bf16 %v12070_v37, %v12069_v35  ;;  %v12057_v35 = vld [vmem:[%s20728_s22 + $0xf0] sm:$0xff]  ;;  %v12058_v37 = vld [vmem:[%s20728_s22 + $0xf8] sm:$0xff] }
0x1e80   :  { %17408 = vmatpush3.bf16.msra.mxu0 %v17405_v9  ;;  %17536 = vmatpush3.bf16.msra.mxu1 %v17533_v63  ;;  %v12052_v9 = vld [vmem:[%s20728_s22 + $0xc8] sm:$0xff] }
0x1e81   :  { %15574 = vmatprep.mubr.f32.mxu0 %v20441_v11  ;;  %17410 = vmatprep.subr.bf16.mxu0 %v17409_v19  ;;  %v17545_v11 = vpack.c.bf16 %v12098_v39, %v12097_v38  ;;  %v17465_v38 = vpack.c.bf16 %v12058_v37, %v12057_v35  ;;  %v12155_v39 = vld [vmem:[%s20727_s6 + $0x1e0] sm:$0xff]  ;;  %v11066_v35 = vld [vmem:[%s18866_s9 + $0x18] sm:$0xff] }
0x1e82   :  { %17538 = vmatprep.subr.bf16.mxu1 %v17537_v24  ;;  %v11067_v37 = vld [vmem:[%s18866_s9 + $0x20] sm:$0xff] }
0x1e83   :  { %15575 = vmatmul.mubr.f32.gmra.mrb[64].mxu0 %v20437_v0  ;;  %v17421_v0 = vpack.c.bf16 %v12072_v48, %v12071_v40  ;;  %v12157_v40 = vld [vmem:[%s20727_s6 + $0x1f0] sm:$0xff]  ;;  %v12158_v48 = vld [vmem:[%s20727_s6 + $0x1f8] sm:$0xff] }
0x1e84   :  { %17412 = vmatpush3.bf16.msra.mxu0 %v17409_v19  ;;  %15637 = vmatprep.mubr.f32.mxu0 %v20447_v23  ;;  %v17425_v23 = vpack.c.bf16 %v12074_v50, %v12073_v49  ;;  %v17581_v19 = vpack.c.bf16 %v12152_v1, %v12151_v20  ;;  %v12123_v49 = vld [vmem:[%s20728_s22 + $0x180] sm:$0xff] }
0x1e85   :  { %17540 = vmatpush3.bf16.msra.mxu1 %v17537_v24  ;;  %17414 = vmatprep.subr.bf16.mxu0 %v17413_v31  ;;  %v12153_v24 = vld [vmem:[%s20727_s6 + $0x1d0] sm:$0xff] }
0x1e86   :  { %17542 = vmatprep.subr.bf16.mxu1 %v17541_v33 }
0x1e88   :  { %17416 = vmatpush3.bf16.msra.mxu0 %v17413_v31  ;;  %v17585_v31 = vpack.c.bf16 %v12154_v47, %v12153_v24  ;;  %v12163_v24 = vld [vmem:[%s18866_s9 + $0x60] sm:$0xff]  ;;  %v12164_v47 = vld [vmem:[%s18866_s9 + $0x68] sm:$0xff] }
0x1e89   :  { %17544 = vmatpush3.bf16.msra.mxu1 %v17541_v33  ;;  %17418 = vmatprep.subr.bf16.mxu0 %v17417_v16  ;;  %v17461_v33 = vpack.c.bf16 %v12056_v27, %v12055_v14  ;;  %v12166_v14 = vld [vmem:[%s18866_s9 + $0x78] sm:$0xff]  ;;  %v11063_v27 = vld [vmem:[%s18866_s9] sm:$0xff] }
0x1e8a   :  { %17546 = vmatprep.subr.bf16.mxu1 %v17545_v11 }
0x1e8c   :  { %17420 = vmatpush3.bf16.msra.mxu0 %v17417_v16  ;;  %v12156_v16 = vld [vmem:[%s20727_s6 + $0x1e8] sm:$0xff] }
0x1e8d   :  { %17548 = vmatpush3.bf16.msra.mxu1 %v17545_v11  ;;  %17422 = vmatprep.subr.bf16.mxu0 %v17421_v0  ;;  %v17589_v11 = vpack.c.bf16 %v12156_v16, %v12155_v39  ;;  %v11069_v39 = vld [vmem:[%s18866_s9 + $0x30] sm:$0xff]  ;;  %v11070_v16 = vld [vmem:[%s18866_s9 + $0x38] sm:$0xff] }
0x1e8e   :  { %17550 = vmatprep.subr.bf16.mxu1 %v20343_v55 }
0x1e90   :  { %15780 = vmatmul.mubr.f32.vlgmr.msra.gmra.mrb[104].mxu1 %v20457_v36  ;;  %17424 = vmatpush3.bf16.msra.mxu0 %v17421_v0  ;;  %v10670_v36 = vld [vmem:[#allocation45 + $0x68] sm:$0xff]  ;;  %v17593_v0 = vpack.c.bf16 %v12158_v48, %v12157_v40  ;;  %v12184_v40 = vld [vmem:[%s18876_s3] ss:$0 sm:$0xff] }
0x1e91   :  { %15782 = vmatprep.mubr.f32.mxu1 %v20463_v46  ;;  %17552 = vmatpush3.bf16.msra.mxu1 %v20343_v55  ;;  %v10671_v55 = vld [vmem:[#allocation45 + $0x70] sm:$0xff]  ;;  %v17433_v46 = vpack.c.bf16 %v12078_v34, %v12077_v4 }
0x1e92   :  { %17554 = vmatprep.subr.bf16.mxu1 %v20349_v12  ;;  %17426 = vmatprep.subr.bf16.mxu0 %v17425_v23 }
0x1e94   :  { %15783 = vmatmul.mubr.f32.gmra.mrb[106].mxu1 %v20461_v43  ;;  %17428 = vmatpush3.bf16.msra.mxu0 %v17425_v23  ;;  %v17437_v43 = vpack.c.bf16 %v12044_v53, %v12043_v42 }
0x1e95   :  { %17556 = vmatpush3.bf16.msra.mxu1 %v20349_v12  ;;  %15793 = vmatprep.mubr.msk.f32.mxu1 %vm1431_vm1, %v10669_v28  ;;  %v10672_v12 = vld [vmem:[#allocation45 + $0x78] sm:$0xff] }
0x1e96   :  { %17558 = vmatprep.subr.bf16.mxu1 %v19148_v32  ;;  %17430 = vmatprep.subr.bf16.mxu0 %v17429_v6 }
0x1e98   :  { %15794 = vmatmul.mubr.msk.f32.vlgmr.msra.gmra.mrb[108].mxu1 %vm1431_vm1, %v10670_v36  ;;  %17432 = vmatpush3.bf16.msra.mxu0 %v17429_v6 }
0x1e99   :  { %17560 = vmatpush3.bf16.msra.mxu1 %v19148_v32  ;;  %15796 = vmatprep.mubr.msk.f32.mxu1 %vm1431_vm1, %v10671_v55  ;;  %v17441_v32 = vpack.c.bf16 %v12046_v44, %v12045_v2  ;;  %v12133_v44 = vld [vmem:[%s20728_s22 + $0x1d0] sm:$0xff] }
0x1e9a   :  { %17562 = vmatprep.subr.bf16.mxu1 %v19154_v41  ;;  %17434 = vmatprep.subr.bf16.mxu0 %v17433_v46  ;;  %v17617_v59 = vpack.c.bf16 %v12134_v52, %v12133_v44 }
0x1e9c   :  { %15797 = vmatmul.mubr.msk.f32.gmra.mrb[110].mxu1 %vm1431_vm1, %v10672_v12  ;;  %17436 = vmatpush3.bf16.msra.mxu0 %v17433_v46 }
0x1e9d   :  { %17564 = vmatpush3.bf16.msra.mxu1 %v19154_v41  ;;  %15807 = vmatprep.mubr.msk.f32.mxu1 %vm1431_vm1, %v10669_v28  ;;  %v12148_v41 = vld [vmem:[%s20727_s6 + $0x1a8] sm:$0xff]  ;;  %v12126_v28 = vld [vmem:[%s20728_s22 + $0x198] sm:$0xff] }
0x1e9e   :  { %17438 = vmatprep.subr.bf16.mxu0 %v17437_v43  ;;  %17566 = vmatprep.subr.bf16.mxu1 %v17565_v54  ;;  %v17573_v30 = vpack.c.bf16 %v12148_v41, %v12147_v5  ;;  %v17601_v34 = vpack.c.bf16 %v12126_v28, %v12125_v25  ;;  %v12138_v5 = vld [vmem:[%s20728_s22 + $0x1f8] sm:$0xff] }
0x1e9f   :  { %15638 = vmatmul.mubr.f32.vlgmr.msra.gmra.mrb[62].mxu0 %v20445_v18  ;;  %v12049_v18 = vld [vmem:[%s20728_s22 + $0xb0] sm:$0xff] }
0x1ea0   :  { %15808 = vmatmul.mubr.msk.f32.vlgmr.msra.gmra.mrb[112].mxu1 %vm1431_vm1, %v10670_v36  ;;  %15640 = vmatprep.mubr.f32.mxu0 %v20453_v13  ;;  %v12149_v13 = vld [vmem:[%s20727_s6 + $0x1b0] sm:$0xff]  ;;  %v17449_v7 = vpack.c.bf16 %v12050_v10, %v12049_v18  ;;  %v12127_v36 = vld [vmem:[%s20728_s22 + $0x1a0] sm:$0xff] }
0x1ea1   :  { %17440 = vmatpush3.bf16.msra.mxu0 %v17437_v43  ;;  %15810 = vmatprep.mubr.msk.f32.mxu1 %vm1431_vm1, %v10671_v55  ;;  %v17577_v63 = vpack.c.bf16 %v12150_v58, %v12149_v13  ;;  %v12128_v55 = vld [vmem:[%s20728_s22 + $0x1a8] sm:$0xff]  ;;  %v12131_v43 = vld [vmem:[%s20728_s22 + $0x1c0] sm:$0xff] }
0x1ea2   :  { %17442 = vmatprep.subr.bf16.mxu0 %v17441_v32  ;;  %17568 = vmatpush3.bf16.msra.mxu1 %v17565_v54  ;;  %v17605_v53 = vpack.c.bf16 %v12128_v55, %v12127_v36  ;;  %v12132_v54 = vld [vmem:[%s20728_s22 + $0x1c8] sm:$0xff] }
0x1ea3   :  { %15641 = vmatmul.mubr.f32.gmra.mrb[64].mxu0 %v20451_v29  ;;  %17570 = vmatprep.subr.bf16.mxu1 %v17569_v62  ;;  %v12051_v29 = vld [vmem:[%s20728_s22 + $0xc0] sm:$0xff]  ;;  %v17613_v2 = vpack.c.bf16 %v12132_v54, %v12131_v43 }
0x1ea4   :  { %15811 = vmatmul.mubr.msk.f32.gmra.mrb[114].mxu1 %vm1431_vm1, %v10672_v12  ;;  %15675 = vmatprep.mubr.f32.mxu0 %v20433_v17  ;;  %v17453_v17 = vpack.c.bf16 %v12052_v9, %v12051_v29  ;;  %v17609_v12 = vpack.c.bf16 %v12130_v8, %v12129_v45 }
0x1ea5   :  { %17444 = vmatpush3.bf16.msra.mxu0 %v17441_v32  ;;  %v12135_v32 = vld [vmem:[%s20728_s22 + $0x1e0] sm:$0xff] }
0x1ea6   :  { %17446 = vmatprep.subr.bf16.mxu0 %v17445_v61  ;;  %17572 = vmatpush3.bf16.msra.mxu1 %v17569_v62  ;;  %v17621_v3 = vpack.c.bf16 %v12136_v57, %v12135_v32  ;;  %v12137_v62 = vld [vmem:[%s20728_s22 + $0x1f0] sm:$0xff] }
0x1ea7   :  { %17574 = vmatprep.subr.bf16.mxu1 %v17573_v30  ;;  %v17625_v41 = vpack.c.bf16 %v12138_v5, %v12137_v62 }
0x1ea9   :  { %17448 = vmatpush3.bf16.msra.mxu0 %v17445_v61 }
0x1eaa   :  { %17450 = vmatprep.subr.bf16.mxu0 %v17449_v7  ;;  %17576 = vmatpush3.bf16.msra.mxu1 %v17573_v30 }
0x1eab   :  { %17578 = vmatprep.subr.bf16.mxu1 %v17577_v63 }
0x1ead   :  { %17452 = vmatpush3.bf16.msra.mxu0 %v17449_v7  ;;  %v12159_v7 = vld [vmem:[%s18866_s9 + $0x40] sm:$0xff] }
0x1eae   :  { %17454 = vmatprep.subr.bf16.mxu0 %v17453_v17  ;;  %17580 = vmatpush3.bf16.msra.mxu1 %v17577_v63 }
0x1eaf   :  { %17582 = vmatprep.subr.bf16.mxu1 %v17581_v19 }
0x1eb1   :  { %17456 = vmatpush3.bf16.msra.mxu0 %v17453_v17 }
0x1eb2   :  { %17458 = vmatprep.subr.bf16.mxu0 %v17457_v26  ;;  %17584 = vmatpush3.bf16.msra.mxu1 %v17581_v19  ;;  %v12162_v19 = vld [vmem:[%s18866_s9 + $0x58] sm:$0xff] }
0x1eb3   :  { %17586 = vmatprep.subr.bf16.mxu1 %v17585_v31 }
0x1eb5   :  { %17460 = vmatpush3.bf16.msra.mxu0 %v17457_v26  ;;  %v12165_v26 = vld [vmem:[%s18866_s9 + $0x70] sm:$0xff] }
0x1eb6   :  { %17462 = vmatprep.subr.bf16.mxu0 %v17461_v33  ;;  %17588 = vmatpush3.bf16.msra.mxu1 %v17585_v31  ;;  %v11064_v31 = vld [vmem:[%s18866_s9 + $0x8] sm:$0xff] }
0x1eb7   :  { %17590 = vmatprep.subr.bf16.mxu1 %v17589_v11 }
0x1eb9   :  { %17464 = vmatpush3.bf16.msra.mxu0 %v17461_v33  ;;  %v11065_v33 = vld [vmem:[%s18866_s9 + $0x10] sm:$0xff] }
0x1eba   :  { %17466 = vmatprep.subr.bf16.mxu0 %v17465_v38  ;;  %17592 = vmatpush3.bf16.msra.mxu1 %v17589_v11  ;;  %v12183_v11 = vld [vmem:[%s18871_s21] ss:$0 sm:$0xff] }
0x1ebb   :  { %17594 = vmatprep.subr.bf16.mxu1 %v17593_v0 }
0x1ebd   :  { %17468 = vmatpush3.bf16.msra.mxu0 %v17465_v38  ;;  %v11068_v38 = vld [vmem:[%s18866_s9 + $0x28] sm:$0xff] }
0x1ebe   :  { %17596 = vmatpush3.bf16.msra.mxu1 %v17593_v0 }
0x1ec0   :  { %15676 = vmatmul.mubr.f32.vlgmr.msra.gmra.mrb[62].mxu0 %v20429_v15  ;;  %v12124_v15 = vld [vmem:[%s20728_s22 + $0x188] sm:$0xff] }
0x1ec1   :  { %15678 = vmatprep.mubr.f32.mxu0 %v20439_v60  ;;  %v17597_v50 = vpack.c.bf16 %v12124_v15, %v12123_v49 }
0x1ec3   :  { %17598 = vmatprep.subr.bf16.mxu1 %v17597_v50 }
0x1ec4   :  { %15679 = vmatmul.mubr.f32.gmra.mrb[64].mxu0 %v20435_v21 }
0x1ec5   :  { %15897 = vmatprep.mubr.msk.f32.mxu0 %vm1431_vm1, %v12159_v7 }
0x1f6b   :  { %v15795_v60 = vpop.f32.mrb[108].mxu1 }
0x1f6c   :  { %v10751_v21 = vpop.f32.mrb[109].mxu1 }
0x1f6f   :  { %v15798_v23 = vpop.f32.mrb[110].mxu1 }
0x1f70   :  { %v10761_v51 = vpop.f32.mrb[111].mxu1 }
0x1f73   :  { %v15809_v6 = vpop.f32.mrb[112].mxu1 }
0x1f74   :  { %v10853_v4 = vpop.f32.mrb[113].mxu1 }
0x1f75   :  { %15845 = vmatprep.mubr.f32.mxu1 %v10853_v4 }
0x1f76   :  { %15846 = vmatmul.mubr.f32.vlgmr.msra.gmra.mrb[104].mxu1 %v15809_v6 }
0x1f77   :  { %17600 = vmatpush3.bf16.msra.mxu1 %v17597_v50  ;;  %v15812_v46 = vpop.f32.mrb[114].mxu1 }
0x1f78   :  { %v10863_v42 = vpop.f32.mrb[115].mxu1  ;;  %17602 = vmatprep.subr.bf16.mxu1 %v17601_v34 }
0x1f79   :  { %15848 = vmatprep.mubr.f32.mxu1 %v10863_v42 }
0x1f7a   :  { %15849 = vmatmul.mubr.f32.gmra.mrb[106].mxu1 %v15812_v46 }
0x1f7b   :  { %17604 = vmatpush3.bf16.msra.mxu1 %v17601_v34  ;;  %15883 = vmatprep.mubr.f32.mxu1 %v10751_v21 }
0x1f7c   :  { %17606 = vmatprep.subr.bf16.mxu1 %v17605_v53 }
0x1f7f   :  { %17608 = vmatpush3.bf16.msra.mxu1 %v17605_v53 }
0x1f80   :  { %17610 = vmatprep.subr.bf16.mxu1 %v17609_v12 }
0x1f83   :  { %17612 = vmatpush3.bf16.msra.mxu1 %v17609_v12 }
0x1f84   :  { %17614 = vmatprep.subr.bf16.mxu1 %v17613_v2 }
0x1f87   :  { %17616 = vmatpush3.bf16.msra.mxu1 %v17613_v2 }
0x1f88   :  { %17618 = vmatprep.subr.bf16.mxu1 %v17617_v59 }
0x1f8b   :  { %17620 = vmatpush3.bf16.msra.mxu1 %v17617_v59 }
0x1f8c   :  { %17622 = vmatprep.subr.bf16.mxu1 %v17621_v3 }
0x1f8f   :  { %17624 = vmatpush3.bf16.msra.mxu1 %v17621_v3 }
0x1f90   :  { %17626 = vmatprep.subr.bf16.mxu1 %v17625_v41 }
0x1f93   :  { %17628 = vmatpush3.bf16.msra.mxu1 %v17625_v41  ;;  %v15677_v61 = vpop.f32.mrb[62].mxu0 }
0x1f94   :  { %v10254_v18 = vpop.f32.mrb[63].mxu0 }
0x1f95   :  { %v17637_v10 = vpack.c.bf16 %v15677_v61, %v10254_v18 }
0x1f96   :  { %15884 = vmatmul.mubr.f32.vlgmr.msra.gmra.mrb[104].mxu1 %v15795_v60 }
0x1f97   :  { %15886 = vmatprep.mubr.f32.mxu1 %v10761_v51  ;;  %v15680_v30 = vpop.f32.mrb[64].mxu0 }
0x1f98   :  { %v10264_v13 = vpop.f32.mrb[65].mxu0 }
0x1f99   :  { %v17641_v58 = vpack.c.bf16 %v15680_v30, %v10264_v13 }
0x1f9a   :  { %15887 = vmatmul.mubr.f32.gmra.mrb[106].mxu1 %v15798_v23 }
0x2069   :  { %v15885_v29 = vpop.f32.mrb[104].mxu1 }
0x206a   :  { %v11040_v9 = vpop.f32.mrb[105].mxu1 }
0x206b   :  { %v17629_v63 = vpack.c.bf16 %v15885_v29, %v11040_v9 }
0x206d   :  { %v15888_v20 = vpop.f32.mrb[106].mxu1  ;;  %17630 = vmatprep.subr.bf16.mxu0 %v17629_v63 }
0x206e   :  { %v11050_v1 = vpop.f32.mrb[107].mxu1  ;;  %17632 = vmatpush3.bf16.msra.mxu0 %v17629_v63 }
0x206f   :  { %v17633_v17 = vpack.c.bf16 %v15888_v20, %v11050_v1 }
0x2071   :  { %17634 = vmatprep.subr.bf16.mxu0 %v17633_v17 }
0x2072   :  { %17636 = vmatpush3.bf16.msra.mxu0 %v17633_v17 }
0x2073   :  { %17638 = vmatprep.subr.bf16.mxu0 %v17637_v10 }
0x2075   :  { %15898 = vmatmul.mubr.msk.f32.vlgmr.msra.gmra.mrb[66].mxu0 %vm1431_vm1, %v12160_v56 }
0x2076   :  { %17640 = vmatpush3.bf16.msra.mxu0 %v17637_v10  ;;  %15900 = vmatprep.mubr.msk.f32.mxu0 %vm1431_vm1, %v12161_v22 }
0x2077   :  { %17642 = vmatprep.subr.bf16.mxu0 %v17641_v58 }
0x2079   :  { %15901 = vmatmul.mubr.msk.f32.gmra.mrb[68].mxu0 %vm1431_vm1, %v12162_v19 }
0x207a   :  { %17644 = vmatpush3.bf16.msra.mxu0 %v17641_v58  ;;  %15903 = vmatprep.mubr.msk.f32.mxu0 %vm1431_vm1, %v12163_v24 }
0x207d   :  { %15904 = vmatmul.mubr.msk.f32.gmra.mrb[70].mxu0 %vm1431_vm1, %v12164_v47 }
0x207e   :  { %15906 = vmatprep.mubr.msk.f32.mxu0 %vm1431_vm1, %v12165_v26 }
0x2081   :  { %15907 = vmatmul.mubr.msk.f32.gmra.mrb[72].mxu0 %vm1431_vm1, %v12166_v14 }
0x2082   :  { %15917 = vmatprep.mubr.msk.f32.mxu0 %vm1431_vm1, %v11063_v27 }
0x2085   :  { %15918 = vmatmul.mubr.msk.f32.vlgmr.msra.gmra.mrb[66].mxu0 %vm1431_vm1, %v11064_v31 }
0x2086   :  { %15920 = vmatprep.mubr.msk.f32.mxu0 %vm1431_vm1, %v11065_v33 }
0x2089   :  { %15921 = vmatmul.mubr.msk.f32.gmra.mrb[68].mxu0 %vm1431_vm1, %v11066_v35 }
0x208a   :  { %15923 = vmatprep.mubr.msk.f32.mxu0 %vm1431_vm1, %v11067_v37 }
0x208d   :  { %15924 = vmatmul.mubr.msk.f32.gmra.mrb[70].mxu0 %vm1431_vm1, %v11068_v38 }
0x208e   :  { %15926 = vmatprep.mubr.msk.f32.mxu0 %vm1431_vm1, %v11069_v39 }
0x2091   :  { %15927 = vmatmul.mubr.msk.f32.gmra.mrb[72].mxu0 %vm1431_vm1, %v11070_v16 }
0x2158   :  { %v15919_v48 = vpop.f32.mrb[66].mxu0 }
0x2159   :  { %v11345_v0 = vmul.f32 %v15919_v48, %v12183_v11  ;;  %v11299_v49 = vpop.f32.mrb[67].mxu0 }
0x215a   :  { %v11344_v15 = vmul.f32 %v12183_v11, %v11299_v49 }
0x215b   :  { %v11359_v50 = vadd.f32 %v12184_v40, %v11345_v0 }
0x215c   :  { %v11358_v60 = vadd.f32 %v12184_v40, %v11344_v15  ;;  %v15922_v21 = vpop.f32.mrb[68].mxu0 }
0x215d   :  { %17851 = vtanh.f32 %v11359_v50  ;;  %v11347_v23 = vmul.f32 %v15922_v21, %v12183_v11  ;;  %v11309_v51 = vpop.f32.mrb[69].mxu0 }
0x215e   :  { %17853 = vtanh.f32 %v11358_v60  ;;  %v11346_v25 = vmul.f32 %v12183_v11, %v11309_v51 }
0x215f   :  { %v11361_v28 = vadd.f32 %v12184_v40, %v11347_v23 }
0x2160   :  { %v11360_v6 = vadd.f32 %v12184_v40, %v11346_v25  ;;  %v15925_v4 = vpop.f32.mrb[70].mxu0 }
0x2161   :  { %17855 = vtanh.f32 %v11361_v28  ;;  %v11349_v34 = vmul.f32 %v15925_v4, %v12183_v11  ;;  %v11319_v36 = vpop.f32.mrb[71].mxu0 }
0x2162   :  { %17857 = vtanh.f32 %v11360_v6  ;;  %v11348_v55 = vmul.f32 %v12183_v11, %v11319_v36 }
0x2163   :  { %v11363_v46 = vadd.f32 %v12184_v40, %v11349_v34 }
0x2164   :  { %v11362_v42 = vadd.f32 %v12184_v40, %v11348_v55  ;;  %v15928_v53 = vpop.f32.mrb[72].mxu0 }
0x2165   :  { %17859 = vtanh.f32 %v11363_v46  ;;  %v11351_v45 = vmul.f32 %v15928_v53, %v12183_v11  ;;  %v11329_v8 = vpop.f32.mrb[73].mxu0 }
0x2166   :  { %17861 = vtanh.f32 %v11362_v42  ;;  %v11350_v12 = vmul.f32 %v12183_v11, %v11329_v8 }
0x2167   :  { %v17852_v43 = vpop.eup %17851  ;;  %v11365_v54 = vadd.f32 %v12184_v40, %v11351_v45 }
0x2168   :  { %v17854_v2 = vpop.eup %17853  ;;  %11376 = vst.msk [vmem:[%s18881_s30 + $0x8] sm:$0xff] %vm11374_vm0, %v17852_v43  ;;  %v11364_v44 = vadd.f32 %v12184_v40, %v11350_v12 }
0x2169   :  { %11375 = vst.msk [vmem:[%s18881_s30] sm:$0xff] %vm11374_vm0, %v17854_v2  ;;  %17863 = vtanh.f32 %v11365_v54 }
0x216a   :  { %17865 = vtanh.f32 %v11364_v44 }
0x216b   :  { %v17856_v52 = vpop.eup %17855 }
0x216c   :  { %v17858_v59 = vpop.eup %17857  ;;  %11378 = vst.msk [vmem:[%s18881_s30 + $0x18] sm:$0xff] %vm11374_vm0, %v17856_v52 }
0x216d   :  { %11377 = vst.msk [vmem:[%s18881_s30 + $0x10] sm:$0xff] %vm11374_vm0, %v17858_v59 }
0x216f   :  { %v17860_v32 = vpop.eup %17859 }
0x2170   :  { %v17862_v57 = vpop.eup %17861  ;;  %11380 = vst.msk [vmem:[%s18881_s30 + $0x28] sm:$0xff] %vm11374_vm0, %v17860_v32 }
0x2171   :  { %11379 = vst.msk [vmem:[%s18881_s30 + $0x20] sm:$0xff] %vm11374_vm0, %v17862_v57 }
0x2173   :  { %v17864_v3 = vpop.eup %17863 }
0x2174   :  { %v17866_v62 = vpop.eup %17865  ;;  %11382 = vst.msk [vmem:[%s18881_s30 + $0x38] sm:$0xff] %vm11374_vm0, %v17864_v3 }
0x2175   :  { %11381 = vst.msk [vmem:[%s18881_s30 + $0x30] sm:$0xff] %vm11374_vm0, %v17866_v62 }
0x2176   :  { %11387 = vsyncpa [#allocation3], 1 }
0x2177   :  { %11388 = vsyncpa [#allocation5], 1 }
0x2178   :  { %11389 = vsyncpa [#allocation8], 1 }
0x2179   :  { %11390 = vsyncpa [#allocation11], 1 }
0x217a   :  { %11391 = vsyncpa [#allocation14], 1 }
0x217b   :  { %11392 = vsyncpa [#allocation17], 1 }
0x217c   :  { %11393 = vsyncpa [#allocation20], 1 }
0x217d   :  { %11394 = vsyncpa [#allocation23], 1 }
0x217e   :  { %11395 = vsyncpa [#allocation26], 1 }
0x217f   :  { %11396 = vsyncpa [#allocation29], 1 }
0x2180   :  { %11397 = vsyncpa [#allocation32], 1 }
0x2181   :  { %11398 = vsyncpa [#allocation35], 1 }
0x2182   :  { %11399 = vsyncpa [#allocation38], 1 }
0x2183   :  { %11400 = vsyncpa [#allocation41], 1 }
0x2184   :  { %11401 = vsyncpa [#allocation44], 1 }

</bundles_post_ra>
